<compile_context>
chip_gen: v6e
topology: v6e:2x2x1
jax: 0.10.0
libtpu: 0.0.40
codegen_flags: <defaults>
</compile_context>

<pallas_src>
import functools

import jax
import jax.numpy as jnp
from jax import lax
from jax.experimental import pallas as pl
from jax.experimental.pallas import tpu as pltpu


def _round_up(x, m):
    return (x + m - 1) // m * m


def _silu(x, approx):
    # exp -> EUP slot; reciprocal: approx=True also goes to EUP (bf16 path),
    # exact divide kept for the f32 debug path.
    return x * pl.reciprocal(1.0 + jnp.exp(-x), approx=approx)


def _vmem_capacity_bytes():
    try:
        return int(pltpu.get_tpu_info().vmem_capacity_bytes)
    except Exception:
        return 64 * 1024 * 1024   # v7x floor


def _compiler_params(**kw):
    cp = getattr(pltpu, "CompilerParams", None)
    if cp is None:  # very old jax fallback
        cp = getattr(pltpu, "TPUCompilerParams")
    return cp(**kw)


def _pick_nb(n, fixed_bytes, per_image_bytes, budget):
    for nb in (8, 4, 2, 1):
        if n % nb != 0:
            continue
        if n >= 2 and (n // nb) < 2:
            # keep >= 2 grid steps so both TensorCores get work under "parallel"
            continue
        if fixed_bytes + nb * per_image_bytes <= budget:
            return nb
    return 1


def _resblock_kernel(*refs, use_skip_conv, transpose_out, K, H, W, A, B, Nb,
                     Cin, Chid, Cout, compute_dtype, approx_silu):
    """One batch block (Nb images) per grid step.

    refs (identity skip):  x, w1, b1, w2, b2, out, xcat, hcat, h, acc1, acc2
    refs (1x1-conv skip):  x, w1, b1, w2, b2, wskip, bskip, out, xcat, hcat, h, acc1, acc2
    """
    if use_skip_conv:
        (x_ref, w1_ref, b1_ref, w2_ref, b2_ref, wsk_ref, bsk_ref, out_ref,
         xcat_ref, hcat_ref, h_ref, acc1_ref, acc2_ref) = refs
    else:
        (x_ref, w1_ref, b1_ref, w2_ref, b2_ref, out_ref,
         xcat_ref, hcat_ref, h_ref, acc1_ref, acc2_ref) = refs
        wsk_ref = bsk_ref = None

    pad = (K - 1) // 2
    Hh = H + 2 * pad              # padded hidden-map height
    Wp = W + 2 * pad              # padded width actually consumed downstream
    cdt = compute_dtype

    # ---------------- per-step halo zeroing (thin strips only) ----------------
    # Regions outside these strips are either overwritten per image or never
    # consumed by any read that reaches the final output.
    if pad > 0:
        # xcat rows that feed valid conv1 output rows but are never written:
        xcat_ref[pad:2 * pad] = jnp.zeros((pad, A, K * Cin), cdt)
        xcat_ref[2 * pad + H:3 * pad + H] = jnp.zeros((pad, A, K * Cin), cdt)
        # hidden-map halo rows (the zero padding conv2 expects):
        h_ref[0:pad] = jnp.zeros((pad, A, Chid), cdt)
        h_ref[pad + H:Hh] = jnp.zeros((pad, A, Chid), cdt)
        hcat_ref[0:pad, 0:W] = jnp.zeros((pad, W, K * Chid), cdt)
        hcat_ref[pad + H:Hh, 0:W] = jnp.zeros((pad, W, K * Chid), cdt)
    # per-dx column halos of xcat inside the written rows:
    for dx in range(K):
        lo = 2 * pad - dx
        if lo > 0:
            xcat_ref[2 * pad:2 * pad + H, 0:lo, dx * Cin:(dx + 1) * Cin] = (
                jnp.zeros((H, lo, Cin), cdt))
        if dx > 0:
            xcat_ref[2 * pad:2 * pad + H, lo + W:Wp, dx * Cin:(dx + 1) * Cin] = (
                jnp.zeros((H, dx, Cin), cdt))
    if B > W:   # keep (unused) width-pad columns of hcat defined
        hcat_ref[:, W:B] = jnp.zeros((Hh, B - W, K * Chid), cdt)

    b1 = b1_ref[...].reshape(1, 1, Chid)
    b2 = b2_ref[...]

    # ---------------------------- per-image work ------------------------------
    for b in range(Nb):
        x = x_ref[b]                                  # (H, W, Cin) f32
        xc = x.astype(cdt)

        # conv1 operand: dx taps folded into the contraction dim.
        for dx in range(K):
            lo = 2 * pad - dx
            xcat_ref[2 * pad:2 * pad + H, lo:lo + W, dx * Cin:(dx + 1) * Cin] = xc

        # conv1: K MXU matmuls (contraction K*Cin), f32 accumulation in VMEM.
        for dy in range(K):
            lhs = xcat_ref[dy:dy + Hh].reshape(Hh * A, K * Cin)
            part = jnp.dot(lhs, w1_ref[dy],
                           preferred_element_type=jnp.float32).reshape(Hh, A, Chid)
            if dy == 0:
                acc1_ref[...] = part
            else:
                acc1_ref[...] += part

        # bias + SiLU on the interior rows; thin column halos re-zeroed.
        h_ref[pad:pad + H] = _silu(acc1_ref[pad:pad + H] + b1,
                                   approx_silu).astype(cdt)
        if pad > 0:
            h_ref[pad:pad + H, 0:pad] = jnp.zeros((H, pad, Chid), cdt)
            h_ref[pad:pad + H, pad + W:Wp] = jnp.zeros((H, pad, Chid), cdt)

        # conv2 operand: dx taps of the zero-padded hidden map.
        for dx in range(K):
            hcat_ref[pad:pad + H, 0:W, dx * Chid:(dx + 1) * Chid] = (
                h_ref[pad:pad + H, dx:dx + W, :])

        # conv2: K MXU matmuls (contraction K*Chid), f32 accumulation in VMEM.
        for dy in range(K):
            lhs = hcat_ref[dy:dy + H].reshape(H * B, K * Chid)
            part = jnp.dot(lhs, w2_ref[dy], preferred_element_type=jnp.float32)
            if dy == 0:
                acc2_ref[...] = part
            else:
                acc2_ref[...] += part
        out = acc2_ref[...] + b2                      # (H*B, Cout) f32

        # skip path
        if B == W:
            x_res = x
        else:                                         # only when W % sublane != 0
            x_res = jnp.concatenate(
                [x, jnp.zeros((H, B - W, Cin), x.dtype)], axis=1)
        x2d = x_res.reshape(H * B, Cin)
        if use_skip_conv:
            res = jnp.dot(x2d.astype(cdt), wsk_ref[...],
                          preferred_element_type=jnp.float32) + bsk_ref[...]
        else:
            res = x2d                                 # identity skip (Cin == Cout)

        y = _silu(out + res, approx_silu)             # (H*B, Cout) f32

        if transpose_out:
            out_ref[b] = y.T                          # (Cout, H*B) lane-dense, NCHW-ready
        else:
            out_ref[b] = y                            # already lane-dense (Cout >= 128)


def resblock_pallas(x_nchw, params, *, compute_dtype=jnp.bfloat16):
    """x_nchw: (N, Cin, H, W) float32; params: PyTorch-layout weights (OIHW)."""
    N, Cin, H, W = map(int, x_nchw.shape)
    w1, b1 = params["w1"], params["b1"]               # (Chid, Cin, K, K), (Chid,)
    w2, b2 = params["w2"], params["b2"]               # (Cout, Chid, K, K), (Cout,)
    Chid, Cout = int(w1.shape[0]), int(w2.shape[0])
    K = int(w1.shape[2])
    assert w1.shape[2] == w1.shape[3] == w2.shape[2] == w2.shape[3] == K
    assert K % 2 == 1, "odd square kernels only (PyTorch 'same', stride 1)"
    pad = (K - 1) // 2
    use_skip_conv = (Cin != Cout)
    transpose_out = Cout < 128

    cdt = jnp.dtype(compute_dtype)
    cs = cdt.itemsize
    sub = 8 * (4 // cs)                    # sublane tile: f32->8, bf16->16, int8->32
    A = _round_up(W + 2 * pad, sub)        # conv1 / hidden-map width
    B = _round_up(W, sub)                  # conv2 / output width
    Hh = H + 2 * pad

    # NCHW -> NHWC once on the input side; the kernel emits NCHW-flat directly
    # (or NHWC-flat when Cout >= 128 and the transpose is cheaper outside).
    x_nhwc = jnp.transpose(x_nchw, (0, 2, 3, 1)).astype(jnp.float32)

    # OIHW -> (K, K*C, Cout): the (dx, cin) flattening matches the dx-concatenated
    # channel layout built in the kernel.  Matmul operands in compute_dtype.
    w1m = jnp.transpose(w1, (2, 3, 1, 0)).reshape(K, K * Cin, Chid).astype(cdt)
    w2m = jnp.transpose(w2, (2, 3, 1, 0)).reshape(K, K * Chid, Cout).astype(cdt)
    b1r = b1.reshape(1, Chid).astype(jnp.float32)
    b2r = b2.reshape(1, Cout).astype(jnp.float32)

    # ---- VMEM budgeting: pick Nb (images per grid step) and the vmem limit ----
    w_bytes = (w1m.size * cs + w2m.size * cs + b1r.size * 4 + b2r.size * 4)
    if use_skip_conv:
        w_bytes += Cin * Cout * cs + Cout * 4
    scratch_bytes = ((H + 4 * pad) * A * K * Cin * cs      # xcat
                     + Hh * B * K * Chid * cs              # hcat
                     + Hh * A * Chid * cs                  # h
                     + Hh * A * Chid * 4                   # acc1 (f32)
                     + H * B * Cout * 4)                   # acc2 (f32)
    live_bytes = 4 * (Hh * A * Chid + H * A * Chid + H * B * (3 * Cout + Cin))
    per_image_io = 2 * (H * W * Cin * 4 + H * B * Cout * 4)   # double-buffered blocks
    fixed = 2 * w_bytes + scratch_bytes + live_bytes

    vmem_cap = _vmem_capacity_bytes()
    budget = int(0.7 * vmem_cap)
    Nb = _pick_nb(N, fixed, per_image_io, budget)
    est = fixed + Nb * per_image_io
    vmem_limit = int(min(max(2 * est, 32 * 1024 * 1024), int(0.9 * vmem_cap)))

    inputs = [x_nhwc, w1m, b1r, w2m, b2r]
    in_specs = [
        pl.BlockSpec((Nb, H, W, Cin), lambda n: (n, 0, 0, 0)),
        pl.BlockSpec((K, K * Cin, Chid), lambda n: (0, 0, 0)),
        pl.BlockSpec((1, Chid), lambda n: (0, 0)),
        pl.BlockSpec((K, K * Chid, Cout), lambda n: (0, 0, 0)),
        pl.BlockSpec((1, Cout), lambda n: (0, 0)),
    ]
    if use_skip_conv:
        wsk = params["wskip"].reshape(Cout, Cin).T.astype(cdt)      # (Cin, Cout)
        bsk = params["bskip"].reshape(1, Cout).astype(jnp.float32)
        inputs += [wsk, bsk]
        in_specs += [pl.BlockSpec((Cin, Cout), lambda n: (0, 0)),
                     pl.BlockSpec((1, Cout), lambda n: (0, 0))]

    if transpose_out:
        out_shape = jax.ShapeDtypeStruct((N, Cout, H * B), jnp.float32)
        out_specs = pl.BlockSpec((Nb, Cout, H * B), lambda n: (n, 0, 0))
    else:
        out_shape = jax.ShapeDtypeStruct((N, H * B, Cout), jnp.float32)
        out_specs = pl.BlockSpec((Nb, H * B, Cout), lambda n: (n, 0, 0))

    scratch_shapes = [
        pltpu.VMEM((H + 4 * pad, A, K * Cin), cdt),     # xcat
        pltpu.VMEM((Hh, B, K * Chid), cdt),             # hcat
        pltpu.VMEM((Hh, A, Chid), cdt),                 # h (post-SiLU hidden map)
        pltpu.VMEM((Hh, A, Chid), jnp.float32),         # acc1
        pltpu.VMEM((H * B, Cout), jnp.float32),         # acc2
    ]

    flops = 2 * N * (Hh * A * (K * K * Cin) * Chid
                     + H * B * (K * K * Chid) * Cout
                     + (H * B * Cin * Cout if use_skip_conv else 0))
    transcendentals = N * (H * A * Chid + H * B * Cout)
    grid_len = N // Nb
    bytes_accessed = (int(x_nhwc.size) * 4 + N * Cout * H * B * 4
                      + grid_len * w_bytes)

    kern = functools.partial(
        _resblock_kernel, use_skip_conv=use_skip_conv, transpose_out=transpose_out,
        K=K, H=H, W=W, A=A, B=B, Nb=Nb, Cin=Cin, Chid=Chid, Cout=Cout,
        compute_dtype=cdt, approx_silu=(cdt != jnp.dtype(jnp.float32)))

    out = pl.pallas_call(
        kern,
        out_shape=out_shape,
        grid=(grid_len,),
        in_specs=in_specs,
        out_specs=out_specs,
        scratch_shapes=scratch_shapes,
        compiler_params=_compiler_params(
            dimension_semantics=("parallel",),
            vmem_limit_bytes=vmem_limit),
        cost_estimate=pl.CostEstimate(
            flops=flops, transcendentals=transcendentals,
            bytes_accessed=bytes_accessed),
    )(*inputs)

    if transpose_out:
        out = out.reshape(N, Cout, H, B)
    else:
        out = jnp.transpose(out.reshape(N, H, B, Cout), (0, 3, 1, 2))
    if B != W:
        out = out[..., :W]
    return out                                          # NCHW, float32


# ----------------------------- reference (plain JAX) -----------------------------
def resblock_ref(x, params):
    def conv(x, w, b, padding):
        y = lax.conv_general_dilated(
            x, w, window_strides=(1, 1), padding=padding,
            dimension_numbers=("NCHW", "OIHW", "NCHW"),
            precision=lax.Precision.HIGHEST)
        return y + b.reshape(1, -1, 1, 1)

    Cin = x.shape[1]
    Cout = params["w2"].shape[0]
    if Cin != Cout:
        residual = conv(x, params["wskip"], params["bskip"], "VALID")
    else:
        residual = x
    out = jax.nn.silu(conv(x, params["w1"], params["b1"], "SAME"))
    out = conv(out, params["w2"], params["b2"], "SAME")
    return jax.nn.silu(out + residual)


if __name__ == "__main__":
    # Small deterministic config: in_ch == out_ch -> identity skip (module default).
    # N=4 so the Nb=2 batch-blocking path (grid of 2 steps) is exercised.
    N, Cin, H, W = 4, 4, 16, 16
    Chid, Cout, Kk = 32, 4, 3

    key = jax.random.PRNGKey(0)
    kx, k1, k2, k3, k4, k5, k6, k7, k8 = jax.random.split(key, 9)
    x = jax.random.normal(kx, (N, Cin, H, W), jnp.float32)

    params = {
        "w1": 0.1 * jax.random.normal(k1, (Chid, Cin, Kk, Kk), jnp.float32),
        "b1": 0.05 * jax.random.normal(k2, (Chid,), jnp.float32),
        "w2": 0.1 * jax.random.normal(k3, (Cout, Chid, Kk, Kk), jnp.float32),
        "b2": 0.05 * jax.random.normal(k4, (Cout,), jnp.float32),
    }
    y_ref = resblock_ref(x, params)

    # f32 matmul path: checks structure / padding / indexing.
    y32 = resblock_pallas(x, params, compute_dtype=jnp.float32)
    jax.block_until_ready(y32)
    assert y32.shape == (N, Cout, H, W)
    err32 = float(jnp.max(jnp.abs(y32 - y_ref)))
    assert err32 < 3e-2, f"f32 path max err {err32}"

    # Default bf16-MXU path: looser tolerance for bf16 operand rounding + approx SiLU.
    ybf = resblock_pallas(x, params)
    jax.block_until_ready(ybf)
    errbf = float(jnp.max(jnp.abs(ybf - y_ref)))
    assert errbf < 1e-1, f"bf16 path max err {errbf}"

    # Exercise the 1x1-conv skip branch (in_ch != out_ch).
    Cout2 = 8
    params2 = {
        "w1": params["w1"], "b1": params["b1"],
        "w2": 0.1 * jax.random.normal(k5, (Cout2, Chid, Kk, Kk), jnp.float32),
        "b2": 0.05 * jax.random.normal(k6, (Cout2,), jnp.float32),
        "wskip": 0.1 * jax.random.normal(k7, (Cout2, Cin, 1, 1), jnp.float32),
        "bskip": 0.05 * jax.random.normal(k8, (Cout2,), jnp.float32),
    }
    y2 = resblock_pallas(x, params2, compute_dtype=jnp.float32)
    jax.block_until_ready(y2)
    y2_ref = resblock_ref(x, params2)
    err2 = float(jnp.max(jnp.abs(y2 - y2_ref)))
    assert y2.shape == (N, Cout2, H, W)
    assert err2 < 3e-2, f"skip-conv path max err {err2}"

    print("KERNEL_OK")
</pallas_src>

<mosaic_0001>
module attributes {stable_mosaic.version = 11 : i64} {
  func.func @_resblock_kernel(%arg0: i32, %arg1: memref<2x16x16x4xf32, #tpu.memory_space<vmem>>, %arg2: memref<3x12x32xf32, #tpu.memory_space<vmem>>, %arg3: memref<1x32xf32, #tpu.memory_space<vmem>>, %arg4: memref<3x96x4xf32, #tpu.memory_space<vmem>>, %arg5: memref<1x4xf32, #tpu.memory_space<vmem>>, %arg6: memref<2x4x256xf32, #tpu.memory_space<vmem>>, %arg7: memref<20x24x12xf32, #tpu.memory_space<vmem>>, %arg8: memref<18x16x96xf32, #tpu.memory_space<vmem>>, %arg9: memref<18x24x32xf32, #tpu.memory_space<vmem>>, %arg10: memref<18x24x32xf32, #tpu.memory_space<vmem>>, %arg11: memref<256x4xf32, #tpu.memory_space<vmem>>) attributes {dimension_semantics = [#tpu.dimension_semantics<parallel>], iteration_bounds = array<i64: 2>, scalar_prefetch = 0 : i64, scratch_operands = 5 : i64, tpu.core_type = #tpu.core_type<tc>, window_params = [{transform_indices = @transform_0, window_bounds = array<i64: 2, 16, 16, 4>}, {pipeline_mode = #tpu.pipeline_mode<synchronous>, transform_indices = @transform_1, window_bounds = array<i64: 3, 12, 32>}, {pipeline_mode = #tpu.pipeline_mode<synchronous>, transform_indices = @transform_2, window_bounds = array<i64: 1, 32>}, {pipeline_mode = #tpu.pipeline_mode<synchronous>, transform_indices = @transform_3, window_bounds = array<i64: 3, 96, 4>}, {pipeline_mode = #tpu.pipeline_mode<synchronous>, transform_indices = @transform_4, window_bounds = array<i64: 1, 4>}, {transform_indices = @transform_5, window_bounds = array<i64: 2, 4, 256>}]} {
    %cst = arith.constant 0.000000e+00 : f32
    %0 = vector.broadcast %cst : f32 to vector<1x24x12xf32>
    %c1 = arith.constant 1 : index
    %c0 = arith.constant 0 : index
    %c0_0 = arith.constant 0 : index
    %1 = vector.load %arg7[%c1, %c0, %c0_0] : memref<20x24x12xf32, #tpu.memory_space<vmem>>, vector<1x24x12xf32>
    tpu.vector_store %arg7[%c1, %c0, %c0_0], %0 {strides = array<i32>} : memref<20x24x12xf32, #tpu.memory_space<vmem>>, vector<1x24x12xf32>,
    %cst_1 = arith.constant 0.000000e+00 : f32
    %2 = vector.broadcast %cst_1 : f32 to vector<1x24x12xf32>
    %c18 = arith.constant 18 : index
    %c0_2 = arith.constant 0 : index
    %c0_3 = arith.constant 0 : index
    %3 = vector.load %arg7[%c18, %c0_2, %c0_3] : memref<20x24x12xf32, #tpu.memory_space<vmem>>, vector<1x24x12xf32>
    tpu.vector_store %arg7[%c18, %c0_2, %c0_3], %2 {strides = array<i32>} : memref<20x24x12xf32, #tpu.memory_space<vmem>>, vector<1x24x12xf32>,
    %cst_4 = arith.constant 0.000000e+00 : f32
    %4 = vector.broadcast %cst_4 : f32 to vector<1x24x32xf32>
    %c0_5 = arith.constant 0 : index
    %c0_6 = arith.constant 0 : index
    %c0_7 = arith.constant 0 : index
    %5 = vector.load %arg9[%c0_5, %c0_6, %c0_7] : memref<18x24x32xf32, #tpu.memory_space<vmem>>, vector<1x24x32xf32>
    tpu.vector_store %arg9[%c0_5, %c0_6, %c0_7], %4 {strides = array<i32>} : memref<18x24x32xf32, #tpu.memory_space<vmem>>, vector<1x24x32xf32>,
    %cst_8 = arith.constant 0.000000e+00 : f32
    %6 = vector.broadcast %cst_8 : f32 to vector<1x24x32xf32>
    %c17 = arith.constant 17 : index
    %c0_9 = arith.constant 0 : index
    %c0_10 = arith.constant 0 : index
    %7 = vector.load %arg9[%c17, %c0_9, %c0_10] : memref<18x24x32xf32, #tpu.memory_space<vmem>>, vector<1x24x32xf32>
    tpu.vector_store %arg9[%c17, %c0_9, %c0_10], %6 {strides = array<i32>} : memref<18x24x32xf32, #tpu.memory_space<vmem>>, vector<1x24x32xf32>,
    %cst_11 = arith.constant 0.000000e+00 : f32
    %8 = vector.broadcast %cst_11 : f32 to vector<1x16x96xf32>
    %c0_12 = arith.constant 0 : index
    %c0_13 = arith.constant 0 : index
    %c0_14 = arith.constant 0 : index
    %9 = vector.load %arg8[%c0_12, %c0_13, %c0_14] : memref<18x16x96xf32, #tpu.memory_space<vmem>>, vector<1x16x96xf32>
    tpu.vector_store %arg8[%c0_12, %c0_13, %c0_14], %8 {strides = array<i32>} : memref<18x16x96xf32, #tpu.memory_space<vmem>>, vector<1x16x96xf32>,
    %cst_15 = arith.constant 0.000000e+00 : f32
    %10 = vector.broadcast %cst_15 : f32 to vector<1x16x96xf32>
    %c17_16 = arith.constant 17 : index
    %c0_17 = arith.constant 0 : index
    %c0_18 = arith.constant 0 : index
    %11 = vector.load %arg8[%c17_16, %c0_17, %c0_18] : memref<18x16x96xf32, #tpu.memory_space<vmem>>, vector<1x16x96xf32>
    tpu.vector_store %arg8[%c17_16, %c0_17, %c0_18], %10 {strides = array<i32>} : memref<18x16x96xf32, #tpu.memory_space<vmem>>, vector<1x16x96xf32>,
    %cst_19 = arith.constant 0.000000e+00 : f32
    %12 = vector.broadcast %cst_19 : f32 to vector<16x2x4xf32>
    %c2 = arith.constant 2 : index
    %c0_20 = arith.constant 0 : index
    %c0_21 = arith.constant 0 : index
    %13 = vector.load %arg7[%c2, %c0_20, %c0_21] : memref<20x24x12xf32, #tpu.memory_space<vmem>>, vector<16x2x4xf32>
    tpu.vector_store %arg7[%c2, %c0_20, %c0_21], %12 {strides = array<i32>} : memref<20x24x12xf32, #tpu.memory_space<vmem>>, vector<16x2x4xf32>,
    %cst_22 = arith.constant 0.000000e+00 : f32
    %14 = vector.broadcast %cst_22 : f32 to vector<16x1x4xf32>
    %c2_23 = arith.constant 2 : index
    %c0_24 = arith.constant 0 : index
    %c4 = arith.constant 4 : index
    %15 = vector.load %arg7[%c2_23, %c0_24, %c4] : memref<20x24x12xf32, #tpu.memory_space<vmem>>, vector<16x1x4xf32>
    tpu.vector_store %arg7[%c2_23, %c0_24, %c4], %14 {strides = array<i32>} : memref<20x24x12xf32, #tpu.memory_space<vmem>>, vector<16x1x4xf32>,
    %cst_25 = arith.constant 0.000000e+00 : f32
    %16 = vector.broadcast %cst_25 : f32 to vector<16x1x4xf32>
    %c2_26 = arith.constant 2 : index
    %c17_27 = arith.constant 17 : index
    %c4_28 = arith.constant 4 : index
    %17 = vector.load %arg7[%c2_26, %c17_27, %c4_28] : memref<20x24x12xf32, #tpu.memory_space<vmem>>, vector<16x1x4xf32>
    tpu.vector_store %arg7[%c2_26, %c17_27, %c4_28], %16 {strides = array<i32>} : memref<20x24x12xf32, #tpu.memory_space<vmem>>, vector<16x1x4xf32>,
    %cst_29 = arith.constant 0.000000e+00 : f32
    %18 = vector.broadcast %cst_29 : f32 to vector<16x2x4xf32>
    %c2_30 = arith.constant 2 : index
    %c16 = arith.constant 16 : index
    %c8 = arith.constant 8 : index
    %19 = vector.load %arg7[%c2_30, %c16, %c8] : memref<20x24x12xf32, #tpu.memory_space<vmem>>, vector<16x2x4xf32>
    tpu.vector_store %arg7[%c2_30, %c16, %c8], %18 {strides = array<i32>} : memref<20x24x12xf32, #tpu.memory_space<vmem>>, vector<16x2x4xf32>,
    %c0_31 = arith.constant 0 : index
    %c0_32 = arith.constant 0 : index
    %20 = vector.load %arg3[%c0_31, %c0_32] : memref<1x32xf32, #tpu.memory_space<vmem>>, vector<1x32xf32>
    %21 = vector.shape_cast %20 : vector<1x32xf32> to vector<1x1x32xf32>
    %c0_33 = arith.constant 0 : index
    %c0_34 = arith.constant 0 : index
    %22 = vector.load %arg5[%c0_33, %c0_34] : memref<1x4xf32, #tpu.memory_space<vmem>>, vector<1x4xf32>
    %c0_35 = arith.constant 0 : index
    %c0_36 = arith.constant 0 : index
    %c0_37 = arith.constant 0 : index
    %c0_38 = arith.constant 0 : index
    %23 = vector.load %arg1[%c0_35, %c0_36, %c0_37, %c0_38] : memref<2x16x16x4xf32, #tpu.memory_space<vmem>>, vector<1x16x16x4xf32>
    %24 = vector.shape_cast %23 : vector<1x16x16x4xf32> to vector<16x16x4xf32>
    %c2_39 = arith.constant 2 : index
    %c2_40 = arith.constant 2 : index
    %c0_41 = arith.constant 0 : index
    %25 = vector.load %arg7[%c2_39, %c2_40, %c0_41] : memref<20x24x12xf32, #tpu.memory_space<vmem>>, vector<16x16x4xf32>
    tpu.vector_store %arg7[%c2_39, %c2_40, %c0_41], %24 {strides = array<i32>} : memref<20x24x12xf32, #tpu.memory_space<vmem>>, vector<16x16x4xf32>,
    %c2_42 = arith.constant 2 : index
    %c1_43 = arith.constant 1 : index
    %c4_44 = arith.constant 4 : index
    %26 = vector.load %arg7[%c2_42, %c1_43, %c4_44] : memref<20x24x12xf32, #tpu.memory_space<vmem>>, vector<16x16x4xf32>
    tpu.vector_store %arg7[%c2_42, %c1_43, %c4_44], %24 {strides = array<i32>} : memref<20x24x12xf32, #tpu.memory_space<vmem>>, vector<16x16x4xf32>,
    %c2_45 = arith.constant 2 : index
    %c0_46 = arith.constant 0 : index
    %c8_47 = arith.constant 8 : index
    %27 = vector.load %arg7[%c2_45, %c0_46, %c8_47] : memref<20x24x12xf32, #tpu.memory_space<vmem>>, vector<16x16x4xf32>
    tpu.vector_store %arg7[%c2_45, %c0_46, %c8_47], %24 {strides = array<i32>} : memref<20x24x12xf32, #tpu.memory_space<vmem>>, vector<16x16x4xf32>,
    %c0_48 = arith.constant 0 : index
    %c0_49 = arith.constant 0 : index
    %c0_50 = arith.constant 0 : index
    %28 = vector.load %arg7[%c0_48, %c0_49, %c0_50] : memref<20x24x12xf32, #tpu.memory_space<vmem>>, vector<18x24x12xf32>
    %29 = vector.shape_cast %28 : vector<18x24x12xf32> to vector<432x12xf32>
    %c0_51 = arith.constant 0 : index
    %c0_52 = arith.constant 0 : index
    %c0_53 = arith.constant 0 : index
    %30 = vector.load %arg2[%c0_51, %c0_52, %c0_53] : memref<3x12x32xf32, #tpu.memory_space<vmem>>, vector<1x12x32xf32>
    %31 = vector.shape_cast %30 : vector<1x12x32xf32> to vector<12x32xf32>
    %cst_54 = arith.constant dense<0.000000e+00> : vector<432x32xf32>
    %32 = tpu.matmul %29, %31, %cst_54 {dimension_numbers = #tpu.dot_dimension_numbers<[1], [0], [0], [1], [0, 0, 1, 1], [], []>} : vector<432x12xf32>, vector<12x32xf32>, vector<432x32xf32> -> vector<432x32xf32>
    %33 = vector.shape_cast %32 : vector<432x32xf32> to vector<18x24x32xf32>
    %c0_55 = arith.constant 0 : index
    %c0_56 = arith.constant 0 : index
    %c0_57 = arith.constant 0 : index
    %34 = vector.load %arg10[%c0_55, %c0_56, %c0_57] : memref<18x24x32xf32, #tpu.memory_space<vmem>>, vector<18x24x32xf32>
    tpu.vector_store %arg10[%c0_55, %c0_56, %c0_57], %33 {strides = array<i32>} : memref<18x24x32xf32, #tpu.memory_space<vmem>>, vector<18x24x32xf32>,
    %c1_58 = arith.constant 1 : index
    %c0_59 = arith.constant 0 : index
    %c0_60 = arith.constant 0 : index
    %35 = vector.load %arg7[%c1_58, %c0_59, %c0_60] : memref<20x24x12xf32, #tpu.memory_space<vmem>>, vector<18x24x12xf32>
    %36 = vector.shape_cast %35 : vector<18x24x12xf32> to vector<432x12xf32>
    %c1_61 = arith.constant 1 : index
    %c0_62 = arith.constant 0 : index
    %c0_63 = arith.constant 0 : index
    %37 = vector.load %arg2[%c1_61, %c0_62, %c0_63] : memref<3x12x32xf32, #tpu.memory_space<vmem>>, vector<1x12x32xf32>
    %38 = vector.shape_cast %37 : vector<1x12x32xf32> to vector<12x32xf32>
    %cst_64 = arith.constant dense<0.000000e+00> : vector<432x32xf32>
    %39 = tpu.matmul %36, %38, %cst_64 {dimension_numbers = #tpu.dot_dimension_numbers<[1], [0], [0], [1], [0, 0, 1, 1], [], []>} : vector<432x12xf32>, vector<12x32xf32>, vector<432x32xf32> -> vector<432x32xf32>
    %40 = vector.shape_cast %39 : vector<432x32xf32> to vector<18x24x32xf32>
    %c0_65 = arith.constant 0 : index
    %c0_66 = arith.constant 0 : index
    %c0_67 = arith.constant 0 : index
    %41 = vector.load %arg10[%c0_65, %c0_66, %c0_67] : memref<18x24x32xf32, #tpu.memory_space<vmem>>, vector<18x24x32xf32>
    %42 = arith.addf %41, %40 : vector<18x24x32xf32>
    %c0_68 = arith.constant 0 : index
    %c0_69 = arith.constant 0 : index
    %c0_70 = arith.constant 0 : index
    %43 = vector.load %arg10[%c0_68, %c0_69, %c0_70] : memref<18x24x32xf32, #tpu.memory_space<vmem>>, vector<18x24x32xf32>
    tpu.vector_store %arg10[%c0_68, %c0_69, %c0_70], %42 {strides = array<i32>} : memref<18x24x32xf32, #tpu.memory_space<vmem>>, vector<18x24x32xf32>,
    %c2_71 = arith.constant 2 : index
    %c0_72 = arith.constant 0 : index
    %c0_73 = arith.constant 0 : index
    %44 = vector.load %arg7[%c2_71, %c0_72, %c0_73] : memref<20x24x12xf32, #tpu.memory_space<vmem>>, vector<18x24x12xf32>
    %45 = vector.shape_cast %44 : vector<18x24x12xf32> to vector<432x12xf32>
    %c2_74 = arith.constant 2 : index
    %c0_75 = arith.constant 0 : index
    %c0_76 = arith.constant 0 : index
    %46 = vector.load %arg2[%c2_74, %c0_75, %c0_76] : memref<3x12x32xf32, #tpu.memory_space<vmem>>, vector<1x12x32xf32>
    %47 = vector.shape_cast %46 : vector<1x12x32xf32> to vector<12x32xf32>
    %cst_77 = arith.constant dense<0.000000e+00> : vector<432x32xf32>
    %48 = tpu.matmul %45, %47, %cst_77 {dimension_numbers = #tpu.dot_dimension_numbers<[1], [0], [0], [1], [0, 0, 1, 1], [], []>} : vector<432x12xf32>, vector<12x32xf32>, vector<432x32xf32> -> vector<432x32xf32>
    %49 = vector.shape_cast %48 : vector<432x32xf32> to vector<18x24x32xf32>
    %c0_78 = arith.constant 0 : index
    %c0_79 = arith.constant 0 : index
    %c0_80 = arith.constant 0 : index
    %50 = vector.load %arg10[%c0_78, %c0_79, %c0_80] : memref<18x24x32xf32, #tpu.memory_space<vmem>>, vector<18x24x32xf32>
    %51 = arith.addf %50, %49 : vector<18x24x32xf32>
    %c0_81 = arith.constant 0 : index
    %c0_82 = arith.constant 0 : index
    %c0_83 = arith.constant 0 : index
    %52 = vector.load %arg10[%c0_81, %c0_82, %c0_83] : memref<18x24x32xf32, #tpu.memory_space<vmem>>, vector<18x24x32xf32>
    tpu.vector_store %arg10[%c0_81, %c0_82, %c0_83], %51 {strides = array<i32>} : memref<18x24x32xf32, #tpu.memory_space<vmem>>, vector<18x24x32xf32>,
    %c1_84 = arith.constant 1 : index
    %c0_85 = arith.constant 0 : index
    %c0_86 = arith.constant 0 : index
    %53 = vector.load %arg10[%c1_84, %c0_85, %c0_86] : memref<18x24x32xf32, #tpu.memory_space<vmem>>, vector<16x24x32xf32>
    %54 = vector.broadcast %21 : vector<1x1x32xf32> to vector<16x24x32xf32>
    %55 = arith.addf %53, %54 : vector<16x24x32xf32>
    %cst_87 = arith.constant 0.000000e+00 : f32
    %56 = vector.broadcast %cst_87 : f32 to vector<16x24x32xf32>
    %57 = arith.subf %56, %55 : vector<16x24x32xf32>
    %58 = math.exp %57 : vector<16x24x32xf32>
    %cst_88 = arith.constant 1.000000e+00 : f32
    %59 = vector.broadcast %cst_88 : f32 to vector<16x24x32xf32>
    %60 = arith.addf %59, %58 : vector<16x24x32xf32>
    %61 = tpu.reciprocal %60 : vector<16x24x32xf32> -> vector<16x24x32xf32>
    %62 = arith.mulf %55, %61 : vector<16x24x32xf32>
    %c1_89 = arith.constant 1 : index
    %c0_90 = arith.constant 0 : index
    %c0_91 = arith.constant 0 : index
    %63 = vector.load %arg9[%c1_89, %c0_90, %c0_91] : memref<18x24x32xf32, #tpu.memory_space<vmem>>, vector<16x24x32xf32>
    tpu.vector_store %arg9[%c1_89, %c0_90, %c0_91], %62 {strides = array<i32>} : memref<18x24x32xf32, #tpu.memory_space<vmem>>, vector<16x24x32xf32>,
    %cst_92 = arith.constant 0.000000e+00 : f32
    %64 = vector.broadcast %cst_92 : f32 to vector<16x1x32xf32>
    %c1_93 = arith.constant 1 : index
    %c0_94 = arith.constant 0 : index
    %c0_95 = arith.constant 0 : index
    %65 = vector.load %arg9[%c1_93, %c0_94, %c0_95] : memref<18x24x32xf32, #tpu.memory_space<vmem>>, vector<16x1x32xf32>
    tpu.vector_store %arg9[%c1_93, %c0_94, %c0_95], %64 {strides = array<i32>} : memref<18x24x32xf32, #tpu.memory_space<vmem>>, vector<16x1x32xf32>,
    %cst_96 = arith.constant 0.000000e+00 : f32
    %66 = vector.broadcast %cst_96 : f32 to vector<16x1x32xf32>
    %c1_97 = arith.constant 1 : index
    %c17_98 = arith.constant 17 : index
    %c0_99 = arith.constant 0 : index
    %67 = vector.load %arg9[%c1_97, %c17_98, %c0_99] : memref<18x24x32xf32, #tpu.memory_space<vmem>>, vector<16x1x32xf32>
    tpu.vector_store %arg9[%c1_97, %c17_98, %c0_99], %66 {strides = array<i32>} : memref<18x24x32xf32, #tpu.memory_space<vmem>>, vector<16x1x32xf32>,
    %c1_100 = arith.constant 1 : index
    %c0_101 = arith.constant 0 : index
    %c0_102 = arith.constant 0 : index
    %68 = vector.load %arg9[%c1_100, %c0_101, %c0_102] : memref<18x24x32xf32, #tpu.memory_space<vmem>>, vector<16x16x32xf32>
    %c1_103 = arith.constant 1 : index
    %c0_104 = arith.constant 0 : index
    %c0_105 = arith.constant 0 : index
    %69 = vector.load %arg8[%c1_103, %c0_104, %c0_105] : memref<18x16x96xf32, #tpu.memory_space<vmem>>, vector<16x16x32xf32>
    tpu.vector_store %arg8[%c1_103, %c0_104, %c0_105], %68 {strides = array<i32>} : memref<18x16x96xf32, #tpu.memory_space<vmem>>, vector<16x16x32xf32>,
    %c1_106 = arith.constant 1 : index
    %c1_107 = arith.constant 1 : index
    %c0_108 = arith.constant 0 : index
    %70 = vector.load %arg9[%c1_106, %c1_107, %c0_108] : memref<18x24x32xf32, #tpu.memory_space<vmem>>, vector<16x16x32xf32>
    %c1_109 = arith.constant 1 : index
    %c0_110 = arith.constant 0 : index
    %c32 = arith.constant 32 : index
    %71 = vector.load %arg8[%c1_109, %c0_110, %c32] : memref<18x16x96xf32, #tpu.memory_space<vmem>>, vector<16x16x32xf32>
    tpu.vector_store %arg8[%c1_109, %c0_110, %c32], %70 {strides = array<i32>} : memref<18x16x96xf32, #tpu.memory_space<vmem>>, vector<16x16x32xf32>,
    %c1_111 = arith.constant 1 : index
    %c2_112 = arith.constant 2 : index
    %c0_113 = arith.constant 0 : index
    %72 = vector.load %arg9[%c1_111, %c2_112, %c0_113] : memref<18x24x32xf32, #tpu.memory_space<vmem>>, vector<16x16x32xf32>
    %c1_114 = arith.constant 1 : index
    %c0_115 = arith.constant 0 : index
    %c64 = arith.constant 64 : index
    %73 = vector.load %arg8[%c1_114, %c0_115, %c64] : memref<18x16x96xf32, #tpu.memory_space<vmem>>, vector<16x16x32xf32>
    tpu.vector_store %arg8[%c1_114, %c0_115, %c64], %72 {strides = array<i32>} : memref<18x16x96xf32, #tpu.memory_space<vmem>>, vector<16x16x32xf32>,
    %c0_116 = arith.constant 0 : index
    %c0_117 = arith.constant 0 : index
    %c0_118 = arith.constant 0 : index
    %74 = vector.load %arg8[%c0_116, %c0_117, %c0_118] : memref<18x16x96xf32, #tpu.memory_space<vmem>>, vector<16x16x96xf32>
    %75 = vector.shape_cast %74 : vector<16x16x96xf32> to vector<256x96xf32>
    %c0_119 = arith.constant 0 : index
    %c0_120 = arith.constant 0 : index
    %c0_121 = arith.constant 0 : index
    %76 = vector.load %arg4[%c0_119, %c0_120, %c0_121] : memref<3x96x4xf32, #tpu.memory_space<vmem>>, vector<1x96x4xf32>
    %77 = vector.shape_cast %76 : vector<1x96x4xf32> to vector<96x4xf32>
    %cst_122 = arith.constant dense<0.000000e+00> : vector<256x4xf32>
    %78 = tpu.matmul %75, %77, %cst_122 {dimension_numbers = #tpu.dot_dimension_numbers<[1], [0], [0], [1], [0, 0, 1, 1], [], []>} : vector<256x96xf32>, vector<96x4xf32>, vector<256x4xf32> -> vector<256x4xf32>
    %c0_123 = arith.constant 0 : index
    %c0_124 = arith.constant 0 : index
    %79 = vector.load %arg11[%c0_123, %c0_124] : memref<256x4xf32, #tpu.memory_space<vmem>>, vector<256x4xf32>
    tpu.vector_store %arg11[%c0_123, %c0_124], %78 {strides = array<i32>} : memref<256x4xf32, #tpu.memory_space<vmem>>, vector<256x4xf32>,
    %c1_125 = arith.constant 1 : index
    %c0_126 = arith.constant 0 : index
    %c0_127 = arith.constant 0 : index
    %80 = vector.load %arg8[%c1_125, %c0_126, %c0_127] : memref<18x16x96xf32, #tpu.memory_space<vmem>>, vector<16x16x96xf32>
    %81 = vector.shape_cast %80 : vector<16x16x96xf32> to vector<256x96xf32>
    %c1_128 = arith.constant 1 : index
    %c0_129 = arith.constant 0 : index
    %c0_130 = arith.constant 0 : index
    %82 = vector.load %arg4[%c1_128, %c0_129, %c0_130] : memref<3x96x4xf32, #tpu.memory_space<vmem>>, vector<1x96x4xf32>
    %83 = vector.shape_cast %82 : vector<1x96x4xf32> to vector<96x4xf32>
    %cst_131 = arith.constant dense<0.000000e+00> : vector<256x4xf32>
    %84 = tpu.matmul %81, %83, %cst_131 {dimension_numbers = #tpu.dot_dimension_numbers<[1], [0], [0], [1], [0, 0, 1, 1], [], []>} : vector<256x96xf32>, vector<96x4xf32>, vector<256x4xf32> -> vector<256x4xf32>
    %c0_132 = arith.constant 0 : index
    %c0_133 = arith.constant 0 : index
    %85 = vector.load %arg11[%c0_132, %c0_133] : memref<256x4xf32, #tpu.memory_space<vmem>>, vector<256x4xf32>
    %86 = arith.addf %85, %84 : vector<256x4xf32>
    %c0_134 = arith.constant 0 : index
    %c0_135 = arith.constant 0 : index
    %87 = vector.load %arg11[%c0_134, %c0_135] : memref<256x4xf32, #tpu.memory_space<vmem>>, vector<256x4xf32>
    tpu.vector_store %arg11[%c0_134, %c0_135], %86 {strides = array<i32>} : memref<256x4xf32, #tpu.memory_space<vmem>>, vector<256x4xf32>,
    %c2_136 = arith.constant 2 : index
    %c0_137 = arith.constant 0 : index
    %c0_138 = arith.constant 0 : index
    %88 = vector.load %arg8[%c2_136, %c0_137, %c0_138] : memref<18x16x96xf32, #tpu.memory_space<vmem>>, vector<16x16x96xf32>
    %89 = vector.shape_cast %88 : vector<16x16x96xf32> to vector<256x96xf32>
    %c2_139 = arith.constant 2 : index
    %c0_140 = arith.constant 0 : index
    %c0_141 = arith.constant 0 : index
    %90 = vector.load %arg4[%c2_139, %c0_140, %c0_141] : memref<3x96x4xf32, #tpu.memory_space<vmem>>, vector<1x96x4xf32>
    %91 = vector.shape_cast %90 : vector<1x96x4xf32> to vector<96x4xf32>
    %cst_142 = arith.constant dense<0.000000e+00> : vector<256x4xf32>
    %92 = tpu.matmul %89, %91, %cst_142 {dimension_numbers = #tpu.dot_dimension_numbers<[1], [0], [0], [1], [0, 0, 1, 1], [], []>} : vector<256x96xf32>, vector<96x4xf32>, vector<256x4xf32> -> vector<256x4xf32>
    %c0_143 = arith.constant 0 : index
    %c0_144 = arith.constant 0 : index
    %93 = vector.load %arg11[%c0_143, %c0_144] : memref<256x4xf32, #tpu.memory_space<vmem>>, vector<256x4xf32>
    %94 = arith.addf %93, %92 : vector<256x4xf32>
    %c0_145 = arith.constant 0 : index
    %c0_146 = arith.constant 0 : index
    %95 = vector.load %arg11[%c0_145, %c0_146] : memref<256x4xf32, #tpu.memory_space<vmem>>, vector<256x4xf32>
    tpu.vector_store %arg11[%c0_145, %c0_146], %94 {strides = array<i32>} : memref<256x4xf32, #tpu.memory_space<vmem>>, vector<256x4xf32>,
    %c0_147 = arith.constant 0 : index
    %c0_148 = arith.constant 0 : index
    %96 = vector.load %arg11[%c0_147, %c0_148] : memref<256x4xf32, #tpu.memory_space<vmem>>, vector<256x4xf32>
    %97 = vector.broadcast %22 : vector<1x4xf32> to vector<256x4xf32>
    %98 = arith.addf %96, %97 : vector<256x4xf32>
    %99 = vector.shape_cast %24 : vector<16x16x4xf32> to vector<256x4xf32>
    %100 = arith.addf %98, %99 : vector<256x4xf32>
    %cst_149 = arith.constant 0.000000e+00 : f32
    %101 = vector.broadcast %cst_149 : f32 to vector<256x4xf32>
    %102 = arith.subf %101, %100 : vector<256x4xf32>
    %103 = math.exp %102 : vector<256x4xf32>
    %cst_150 = arith.constant 1.000000e+00 : f32
    %104 = vector.broadcast %cst_150 : f32 to vector<256x4xf32>
    %105 = arith.addf %104, %103 : vector<256x4xf32>
    %106 = tpu.reciprocal %105 : vector<256x4xf32> -> vector<256x4xf32>
    %107 = arith.mulf %100, %106 : vector<256x4xf32>
    %108 = tpu.transpose %107, [1, 0] : vector<256x4xf32> -> vector<4x256xf32>
    %c0_151 = arith.constant 0 : index
    %c0_152 = arith.constant 0 : index
    %c0_153 = arith.constant 0 : index
    %109 = vector.load %arg6[%c0_151, %c0_152, %c0_153] : memref<2x4x256xf32, #tpu.memory_space<vmem>>, vector<1x4x256xf32>
    %110 = vector.shape_cast %109 : vector<1x4x256xf32> to vector<4x256xf32>
    %111 = vector.shape_cast %108 : vector<4x256xf32> to vector<1x4x256xf32>
    tpu.vector_store %arg6[%c0_151, %c0_152, %c0_153], %111 {strides = array<i32>} : memref<2x4x256xf32, #tpu.memory_space<vmem>>, vector<1x4x256xf32>,
    %c1_154 = arith.constant 1 : index
    %c0_155 = arith.constant 0 : index
    %c0_156 = arith.constant 0 : index
    %c0_157 = arith.constant 0 : index
    %112 = vector.load %arg1[%c1_154, %c0_155, %c0_156, %c0_157] : memref<2x16x16x4xf32, #tpu.memory_space<vmem>>, vector<1x16x16x4xf32>
    %113 = vector.shape_cast %112 : vector<1x16x16x4xf32> to vector<16x16x4xf32>
    %c2_158 = arith.constant 2 : index
    %c2_159 = arith.constant 2 : index
    %c0_160 = arith.constant 0 : index
    %114 = vector.load %arg7[%c2_158, %c2_159, %c0_160] : memref<20x24x12xf32, #tpu.memory_space<vmem>>, vector<16x16x4xf32>
    tpu.vector_store %arg7[%c2_158, %c2_159, %c0_160], %113 {strides = array<i32>} : memref<20x24x12xf32, #tpu.memory_space<vmem>>, vector<16x16x4xf32>,
    %c2_161 = arith.constant 2 : index
    %c1_162 = arith.constant 1 : index
    %c4_163 = arith.constant 4 : index
    %115 = vector.load %arg7[%c2_161, %c1_162, %c4_163] : memref<20x24x12xf32, #tpu.memory_space<vmem>>, vector<16x16x4xf32>
    tpu.vector_store %arg7[%c2_161, %c1_162, %c4_163], %113 {strides = array<i32>} : memref<20x24x12xf32, #tpu.memory_space<vmem>>, vector<16x16x4xf32>,
    %c2_164 = arith.constant 2 : index
    %c0_165 = arith.constant 0 : index
    %c8_166 = arith.constant 8 : index
    %116 = vector.load %arg7[%c2_164, %c0_165, %c8_166] : memref<20x24x12xf32, #tpu.memory_space<vmem>>, vector<16x16x4xf32>
    tpu.vector_store %arg7[%c2_164, %c0_165, %c8_166], %113 {strides = array<i32>} : memref<20x24x12xf32, #tpu.memory_space<vmem>>, vector<16x16x4xf32>,
    %c0_167 = arith.constant 0 : index
    %c0_168 = arith.constant 0 : index
    %c0_169 = arith.constant 0 : index
    %117 = vector.load %arg7[%c0_167, %c0_168, %c0_169] : memref<20x24x12xf32, #tpu.memory_space<vmem>>, vector<18x24x12xf32>
    %118 = vector.shape_cast %117 : vector<18x24x12xf32> to vector<432x12xf32>
    %c0_170 = arith.constant 0 : index
    %c0_171 = arith.constant 0 : index
    %c0_172 = arith.constant 0 : index
    %119 = vector.load %arg2[%c0_170, %c0_171, %c0_172] : memref<3x12x32xf32, #tpu.memory_space<vmem>>, vector<1x12x32xf32>
    %120 = vector.shape_cast %119 : vector<1x12x32xf32> to vector<12x32xf32>
    %cst_173 = arith.constant dense<0.000000e+00> : vector<432x32xf32>
    %121 = tpu.matmul %118, %120, %cst_173 {dimension_numbers = #tpu.dot_dimension_numbers<[1], [0], [0], [1], [0, 0, 1, 1], [], []>} : vector<432x12xf32>, vector<12x32xf32>, vector<432x32xf32> -> vector<432x32xf32>
    %122 = vector.shape_cast %121 : vector<432x32xf32> to vector<18x24x32xf32>
    %c0_174 = arith.constant 0 : index
    %c0_175 = arith.constant 0 : index
    %c0_176 = arith.constant 0 : index
    %123 = vector.load %arg10[%c0_174, %c0_175, %c0_176] : memref<18x24x32xf32, #tpu.memory_space<vmem>>, vector<18x24x32xf32>
    tpu.vector_store %arg10[%c0_174, %c0_175, %c0_176], %122 {strides = array<i32>} : memref<18x24x32xf32, #tpu.memory_space<vmem>>, vector<18x24x32xf32>,
    %c1_177 = arith.constant 1 : index
    %c0_178 = arith.constant 0 : index
    %c0_179 = arith.constant 0 : index
    %124 = vector.load %arg7[%c1_177, %c0_178, %c0_179] : memref<20x24x12xf32, #tpu.memory_space<vmem>>, vector<18x24x12xf32>
    %125 = vector.shape_cast %124 : vector<18x24x12xf32> to vector<432x12xf32>
    %c1_180 = arith.constant 1 : index
    %c0_181 = arith.constant 0 : index
    %c0_182 = arith.constant 0 : index
    %126 = vector.load %arg2[%c1_180, %c0_181, %c0_182] : memref<3x12x32xf32, #tpu.memory_space<vmem>>, vector<1x12x32xf32>
    %127 = vector.shape_cast %126 : vector<1x12x32xf32> to vector<12x32xf32>
    %cst_183 = arith.constant dense<0.000000e+00> : vector<432x32xf32>
    %128 = tpu.matmul %125, %127, %cst_183 {dimension_numbers = #tpu.dot_dimension_numbers<[1], [0], [0], [1], [0, 0, 1, 1], [], []>} : vector<432x12xf32>, vector<12x32xf32>, vector<432x32xf32> -> vector<432x32xf32>
    %129 = vector.shape_cast %128 : vector<432x32xf32> to vector<18x24x32xf32>
    %c0_184 = arith.constant 0 : index
    %c0_185 = arith.constant 0 : index
    %c0_186 = arith.constant 0 : index
    %130 = vector.load %arg10[%c0_184, %c0_185, %c0_186] : memref<18x24x32xf32, #tpu.memory_space<vmem>>, vector<18x24x32xf32>
    %131 = arith.addf %130, %129 : vector<18x24x32xf32>
    %c0_187 = arith.constant 0 : index
    %c0_188 = arith.constant 0 : index
    %c0_189 = arith.constant 0 : index
    %132 = vector.load %arg10[%c0_187, %c0_188, %c0_189] : memref<18x24x32xf32, #tpu.memory_space<vmem>>, vector<18x24x32xf32>
    tpu.vector_store %arg10[%c0_187, %c0_188, %c0_189], %131 {strides = array<i32>} : memref<18x24x32xf32, #tpu.memory_space<vmem>>, vector<18x24x32xf32>,
    %c2_190 = arith.constant 2 : index
    %c0_191 = arith.constant 0 : index
    %c0_192 = arith.constant 0 : index
    %133 = vector.load %arg7[%c2_190, %c0_191, %c0_192] : memref<20x24x12xf32, #tpu.memory_space<vmem>>, vector<18x24x12xf32>
    %134 = vector.shape_cast %133 : vector<18x24x12xf32> to vector<432x12xf32>
    %c2_193 = arith.constant 2 : index
    %c0_194 = arith.constant 0 : index
    %c0_195 = arith.constant 0 : index
    %135 = vector.load %arg2[%c2_193, %c0_194, %c0_195] : memref<3x12x32xf32, #tpu.memory_space<vmem>>, vector<1x12x32xf32>
    %136 = vector.shape_cast %135 : vector<1x12x32xf32> to vector<12x32xf32>
    %cst_196 = arith.constant dense<0.000000e+00> : vector<432x32xf32>
    %137 = tpu.matmul %134, %136, %cst_196 {dimension_numbers = #tpu.dot_dimension_numbers<[1], [0], [0], [1], [0, 0, 1, 1], [], []>} : vector<432x12xf32>, vector<12x32xf32>, vector<432x32xf32> -> vector<432x32xf32>
    %138 = vector.shape_cast %137 : vector<432x32xf32> to vector<18x24x32xf32>
    %c0_197 = arith.constant 0 : index
    %c0_198 = arith.constant 0 : index
    %c0_199 = arith.constant 0 : index
    %139 = vector.load %arg10[%c0_197, %c0_198, %c0_199] : memref<18x24x32xf32, #tpu.memory_space<vmem>>, vector<18x24x32xf32>
    %140 = arith.addf %139, %138 : vector<18x24x32xf32>
    %c0_200 = arith.constant 0 : index
    %c0_201 = arith.constant 0 : index
    %c0_202 = arith.constant 0 : index
    %141 = vector.load %arg10[%c0_200, %c0_201, %c0_202] : memref<18x24x32xf32, #tpu.memory_space<vmem>>, vector<18x24x32xf32>
    tpu.vector_store %arg10[%c0_200, %c0_201, %c0_202], %140 {strides = array<i32>} : memref<18x24x32xf32, #tpu.memory_space<vmem>>, vector<18x24x32xf32>,
    %c1_203 = arith.constant 1 : index
    %c0_204 = arith.constant 0 : index
    %c0_205 = arith.constant 0 : index
    %142 = vector.load %arg10[%c1_203, %c0_204, %c0_205] : memref<18x24x32xf32, #tpu.memory_space<vmem>>, vector<16x24x32xf32>
    %143 = vector.broadcast %21 : vector<1x1x32xf32> to vector<16x24x32xf32>
    %144 = arith.addf %142, %143 : vector<16x24x32xf32>
    %cst_206 = arith.constant 0.000000e+00 : f32
    %145 = vector.broadcast %cst_206 : f32 to vector<16x24x32xf32>
    %146 = arith.subf %145, %144 : vector<16x24x32xf32>
    %147 = math.exp %146 : vector<16x24x32xf32>
    %cst_207 = arith.constant 1.000000e+00 : f32
    %148 = vector.broadcast %cst_207 : f32 to vector<16x24x32xf32>
    %149 = arith.addf %148, %147 : vector<16x24x32xf32>
    %150 = tpu.reciprocal %149 : vector<16x24x32xf32> -> vector<16x24x32xf32>
    %151 = arith.mulf %144, %150 : vector<16x24x32xf32>
    %c1_208 = arith.constant 1 : index
    %c0_209 = arith.constant 0 : index
    %c0_210 = arith.constant 0 : index
    %152 = vector.load %arg9[%c1_208, %c0_209, %c0_210] : memref<18x24x32xf32, #tpu.memory_space<vmem>>, vector<16x24x32xf32>
    tpu.vector_store %arg9[%c1_208, %c0_209, %c0_210], %151 {strides = array<i32>} : memref<18x24x32xf32, #tpu.memory_space<vmem>>, vector<16x24x32xf32>,
    %cst_211 = arith.constant 0.000000e+00 : f32
    %153 = vector.broadcast %cst_211 : f32 to vector<16x1x32xf32>
    %c1_212 = arith.constant 1 : index
    %c0_213 = arith.constant 0 : index
    %c0_214 = arith.constant 0 : index
    %154 = vector.load %arg9[%c1_212, %c0_213, %c0_214] : memref<18x24x32xf32, #tpu.memory_space<vmem>>, vector<16x1x32xf32>
    tpu.vector_store %arg9[%c1_212, %c0_213, %c0_214], %153 {strides = array<i32>} : memref<18x24x32xf32, #tpu.memory_space<vmem>>, vector<16x1x32xf32>,
    %cst_215 = arith.constant 0.000000e+00 : f32
    %155 = vector.broadcast %cst_215 : f32 to vector<16x1x32xf32>
    %c1_216 = arith.constant 1 : index
    %c17_217 = arith.constant 17 : index
    %c0_218 = arith.constant 0 : index
    %156 = vector.load %arg9[%c1_216, %c17_217, %c0_218] : memref<18x24x32xf32, #tpu.memory_space<vmem>>, vector<16x1x32xf32>
    tpu.vector_store %arg9[%c1_216, %c17_217, %c0_218], %155 {strides = array<i32>} : memref<18x24x32xf32, #tpu.memory_space<vmem>>, vector<16x1x32xf32>,
    %c1_219 = arith.constant 1 : index
    %c0_220 = arith.constant 0 : index
    %c0_221 = arith.constant 0 : index
    %157 = vector.load %arg9[%c1_219, %c0_220, %c0_221] : memref<18x24x32xf32, #tpu.memory_space<vmem>>, vector<16x16x32xf32>
    %c1_222 = arith.constant 1 : index
    %c0_223 = arith.constant 0 : index
    %c0_224 = arith.constant 0 : index
    %158 = vector.load %arg8[%c1_222, %c0_223, %c0_224] : memref<18x16x96xf32, #tpu.memory_space<vmem>>, vector<16x16x32xf32>
    tpu.vector_store %arg8[%c1_222, %c0_223, %c0_224], %157 {strides = array<i32>} : memref<18x16x96xf32, #tpu.memory_space<vmem>>, vector<16x16x32xf32>,
    %c1_225 = arith.constant 1 : index
    %c1_226 = arith.constant 1 : index
    %c0_227 = arith.constant 0 : index
    %159 = vector.load %arg9[%c1_225, %c1_226, %c0_227] : memref<18x24x32xf32, #tpu.memory_space<vmem>>, vector<16x16x32xf32>
    %c1_228 = arith.constant 1 : index
    %c0_229 = arith.constant 0 : index
    %c32_230 = arith.constant 32 : index
    %160 = vector.load %arg8[%c1_228, %c0_229, %c32_230] : memref<18x16x96xf32, #tpu.memory_space<vmem>>, vector<16x16x32xf32>
    tpu.vector_store %arg8[%c1_228, %c0_229, %c32_230], %159 {strides = array<i32>} : memref<18x16x96xf32, #tpu.memory_space<vmem>>, vector<16x16x32xf32>,
    %c1_231 = arith.constant 1 : index
    %c2_232 = arith.constant 2 : index
    %c0_233 = arith.constant 0 : index
    %161 = vector.load %arg9[%c1_231, %c2_232, %c0_233] : memref<18x24x32xf32, #tpu.memory_space<vmem>>, vector<16x16x32xf32>
    %c1_234 = arith.constant 1 : index
    %c0_235 = arith.constant 0 : index
    %c64_236 = arith.constant 64 : index
    %162 = vector.load %arg8[%c1_234, %c0_235, %c64_236] : memref<18x16x96xf32, #tpu.memory_space<vmem>>, vector<16x16x32xf32>
    tpu.vector_store %arg8[%c1_234, %c0_235, %c64_236], %161 {strides = array<i32>} : memref<18x16x96xf32, #tpu.memory_space<vmem>>, vector<16x16x32xf32>,
    %c0_237 = arith.constant 0 : index
    %c0_238 = arith.constant 0 : index
    %c0_239 = arith.constant 0 : index
    %163 = vector.load %arg8[%c0_237, %c0_238, %c0_239] : memref<18x16x96xf32, #tpu.memory_space<vmem>>, vector<16x16x96xf32>
    %164 = vector.shape_cast %163 : vector<16x16x96xf32> to vector<256x96xf32>
    %c0_240 = arith.constant 0 : index
    %c0_241 = arith.constant 0 : index
    %c0_242 = arith.constant 0 : index
    %165 = vector.load %arg4[%c0_240, %c0_241, %c0_242] : memref<3x96x4xf32, #tpu.memory_space<vmem>>, vector<1x96x4xf32>
    %166 = vector.shape_cast %165 : vector<1x96x4xf32> to vector<96x4xf32>
    %cst_243 = arith.constant dense<0.000000e+00> : vector<256x4xf32>
    %167 = tpu.matmul %164, %166, %cst_243 {dimension_numbers = #tpu.dot_dimension_numbers<[1], [0], [0], [1], [0, 0, 1, 1], [], []>} : vector<256x96xf32>, vector<96x4xf32>, vector<256x4xf32> -> vector<256x4xf32>
    %c0_244 = arith.constant 0 : index
    %c0_245 = arith.constant 0 : index
    %168 = vector.load %arg11[%c0_244, %c0_245] : memref<256x4xf32, #tpu.memory_space<vmem>>, vector<256x4xf32>
    tpu.vector_store %arg11[%c0_244, %c0_245], %167 {strides = array<i32>} : memref<256x4xf32, #tpu.memory_space<vmem>>, vector<256x4xf32>,
    %c1_246 = arith.constant 1 : index
    %c0_247 = arith.constant 0 : index
    %c0_248 = arith.constant 0 : index
    %169 = vector.load %arg8[%c1_246, %c0_247, %c0_248] : memref<18x16x96xf32, #tpu.memory_space<vmem>>, vector<16x16x96xf32>
    %170 = vector.shape_cast %169 : vector<16x16x96xf32> to vector<256x96xf32>
    %c1_249 = arith.constant 1 : index
    %c0_250 = arith.constant 0 : index
    %c0_251 = arith.constant 0 : index
    %171 = vector.load %arg4[%c1_249, %c0_250, %c0_251] : memref<3x96x4xf32, #tpu.memory_space<vmem>>, vector<1x96x4xf32>
    %172 = vector.shape_cast %171 : vector<1x96x4xf32> to vector<96x4xf32>
    %cst_252 = arith.constant dense<0.000000e+00> : vector<256x4xf32>
    %173 = tpu.matmul %170, %172, %cst_252 {dimension_numbers = #tpu.dot_dimension_numbers<[1], [0], [0], [1], [0, 0, 1, 1], [], []>} : vector<256x96xf32>, vector<96x4xf32>, vector<256x4xf32> -> vector<256x4xf32>
    %c0_253 = arith.constant 0 : index
    %c0_254 = arith.constant 0 : index
    %174 = vector.load %arg11[%c0_253, %c0_254] : memref<256x4xf32, #tpu.memory_space<vmem>>, vector<256x4xf32>
    %175 = arith.addf %174, %173 : vector<256x4xf32>
    %c0_255 = arith.constant 0 : index
    %c0_256 = arith.constant 0 : index
    %176 = vector.load %arg11[%c0_255, %c0_256] : memref<256x4xf32, #tpu.memory_space<vmem>>, vector<256x4xf32>
    tpu.vector_store %arg11[%c0_255, %c0_256], %175 {strides = array<i32>} : memref<256x4xf32, #tpu.memory_space<vmem>>, vector<256x4xf32>,
    %c2_257 = arith.constant 2 : index
    %c0_258 = arith.constant 0 : index
    %c0_259 = arith.constant 0 : index
    %177 = vector.load %arg8[%c2_257, %c0_258, %c0_259] : memref<18x16x96xf32, #tpu.memory_space<vmem>>, vector<16x16x96xf32>
    %178 = vector.shape_cast %177 : vector<16x16x96xf32> to vector<256x96xf32>
    %c2_260 = arith.constant 2 : index
    %c0_261 = arith.constant 0 : index
    %c0_262 = arith.constant 0 : index
    %179 = vector.load %arg4[%c2_260, %c0_261, %c0_262] : memref<3x96x4xf32, #tpu.memory_space<vmem>>, vector<1x96x4xf32>
    %180 = vector.shape_cast %179 : vector<1x96x4xf32> to vector<96x4xf32>
    %cst_263 = arith.constant dense<0.000000e+00> : vector<256x4xf32>
    %181 = tpu.matmul %178, %180, %cst_263 {dimension_numbers = #tpu.dot_dimension_numbers<[1], [0], [0], [1], [0, 0, 1, 1], [], []>} : vector<256x96xf32>, vector<96x4xf32>, vector<256x4xf32> -> vector<256x4xf32>
    %c0_264 = arith.constant 0 : index
    %c0_265 = arith.constant 0 : index
    %182 = vector.load %arg11[%c0_264, %c0_265] : memref<256x4xf32, #tpu.memory_space<vmem>>, vector<256x4xf32>
    %183 = arith.addf %182, %181 : vector<256x4xf32>
    %c0_266 = arith.constant 0 : index
    %c0_267 = arith.constant 0 : index
    %184 = vector.load %arg11[%c0_266, %c0_267] : memref<256x4xf32, #tpu.memory_space<vmem>>, vector<256x4xf32>
    tpu.vector_store %arg11[%c0_266, %c0_267], %183 {strides = array<i32>} : memref<256x4xf32, #tpu.memory_space<vmem>>, vector<256x4xf32>,
    %c0_268 = arith.constant 0 : index
    %c0_269 = arith.constant 0 : index
    %185 = vector.load %arg11[%c0_268, %c0_269] : memref<256x4xf32, #tpu.memory_space<vmem>>, vector<256x4xf32>
    %186 = vector.broadcast %22 : vector<1x4xf32> to vector<256x4xf32>
    %187 = arith.addf %185, %186 : vector<256x4xf32>
    %188 = vector.shape_cast %113 : vector<16x16x4xf32> to vector<256x4xf32>
    %189 = arith.addf %187, %188 : vector<256x4xf32>
    %cst_270 = arith.constant 0.000000e+00 : f32
    %190 = vector.broadcast %cst_270 : f32 to vector<256x4xf32>
    %191 = arith.subf %190, %189 : vector<256x4xf32>
    %192 = math.exp %191 : vector<256x4xf32>
    %cst_271 = arith.constant 1.000000e+00 : f32
    %193 = vector.broadcast %cst_271 : f32 to vector<256x4xf32>
    %194 = arith.addf %193, %192 : vector<256x4xf32>
    %195 = tpu.reciprocal %194 : vector<256x4xf32> -> vector<256x4xf32>
    %196 = arith.mulf %189, %195 : vector<256x4xf32>
    %197 = tpu.transpose %196, [1, 0] : vector<256x4xf32> -> vector<4x256xf32>
    %c1_272 = arith.constant 1 : index
    %c0_273 = arith.constant 0 : index
    %c0_274 = arith.constant 0 : index
    %198 = vector.load %arg6[%c1_272, %c0_273, %c0_274] : memref<2x4x256xf32, #tpu.memory_space<vmem>>, vector<1x4x256xf32>
    %199 = vector.shape_cast %198 : vector<1x4x256xf32> to vector<4x256xf32>
    %200 = vector.shape_cast %197 : vector<4x256xf32> to vector<1x4x256xf32>
    tpu.vector_store %arg6[%c1_272, %c0_273, %c0_274], %200 {strides = array<i32>} : memref<2x4x256xf32, #tpu.memory_space<vmem>>, vector<1x4x256xf32>,
    return
  }
  func.func @transform_0(%arg0: i32) -> (i32, i32, i32, i32) {
    %c0_i32 = arith.constant 0 : i32
    %c0_i32_0 = arith.constant 0 : i32
    %c0_i32_1 = arith.constant 0 : i32
    %c0_i32_2 = arith.constant 0 : i32
    return %arg0, %c0_i32, %c0_i32_0, %c0_i32_1 : i32, i32, i32, i32
  }
  func.func @transform_1(%arg0: i32) -> (i32, i32, i32) {
    %c0_i32 = arith.constant 0 : i32
    %c0_i32_0 = arith.constant 0 : i32
    %c0_i32_1 = arith.constant 0 : i32
    %c0_i32_2 = arith.constant 0 : i32
    return %c0_i32, %c0_i32_0, %c0_i32_1 : i32, i32, i32
  }
  func.func @transform_2(%arg0: i32) -> (i32, i32) {
    %c0_i32 = arith.constant 0 : i32
    %c0_i32_0 = arith.constant 0 : i32
    %c0_i32_1 = arith.constant 0 : i32
    return %c0_i32, %c0_i32_0 : i32, i32
  }
  func.func @transform_3(%arg0: i32) -> (i32, i32, i32) {
    %c0_i32 = arith.constant 0 : i32
    %c0_i32_0 = arith.constant 0 : i32
    %c0_i32_1 = arith.constant 0 : i32
    %c0_i32_2 = arith.constant 0 : i32
    return %c0_i32, %c0_i32_0, %c0_i32_1 : i32, i32, i32
  }
  func.func @transform_4(%arg0: i32) -> (i32, i32) {
    %c0_i32 = arith.constant 0 : i32
    %c0_i32_0 = arith.constant 0 : i32
    %c0_i32_1 = arith.constant 0 : i32
    return %c0_i32, %c0_i32_0 : i32, i32
  }
  func.func @transform_5(%arg0: i32) -> (i32, i32, i32) {
    %c0_i32 = arith.constant 0 : i32
    %c0_i32_0 = arith.constant 0 : i32
    %c0_i32_1 = arith.constant 0 : i32
    return %arg0, %c0_i32, %c0_i32_0 : i32, i32, i32
  }
}

</mosaic_0001>

<bundles_post_ra>
// kernel: tpu_custom_call.1
= control target key start
LH: loop header
LB: loop body
LE: loop exit
PB: predicated region body
PF: predicated region fallthrough
CT: control target
= control target key end

     0   :  { %10 = vsyncpa [#allocation8], 0  ;;  %s18133_s0 = inlined_call_operand.vmem [shape: f32[4,16,16,4], index: 0, kind: input, shape index: {}]   ;;  %s18134_s1 = inlined_call_operand.vmem [shape: f32[3,12,32], index: 1, kind: input, shape index: {}]   ;;  %s18135_s2 = inlined_call_operand.vmem [shape: f32[1,32], index: 2, kind: input, shape index: {}]   ;;  %s18136_s3 = inlined_call_operand.vmem [shape: f32[3,96,4], index: 3, kind: input, shape index: {}]   ;;  %s18137_s4 = inlined_call_operand.vmem [shape: f32[1,4], index: 4, kind: input, shape index: {}]   ;;  %s18138_s5 = inlined_call_operand.hbm [shape: f32[4,4,256], index: 5, kind: output, shape index: {}]  }
   0x1   :  { %12 = vsyncpa [#allocation8 + $0x1], 0  ;;  %s13360_s18 = smov 0   ;;  %s13362_s19 = smov 0  }
   0x2   :  { %s13364_s20 = smov 0   ;;  %s13366_s21 = smov 0  }
   0x3 LB: > { %s13381_s22 = sadd.s32 4294967295, %s13321_s21   ;;  %s10400_s23 = sadd.s32 4294967294, %s13321_s21   ;;  %s13321_s21 = sphi %s13366_s21, %s18366_s21   ;;  %s13317_s20 = sphi %s13364_s20, %s18365_s20   ;;  %s13313_s19 = sphi %s13362_s19, %s18364_s19   ;;  %s13309_s18 = sphi %s13360_s18, %s18363_s18  }
   0x4   : > { %s13385_s24 = sadd.s32 1, %s13321_s21   ;;  %s135_s25 = sadd.s32 1, %s13317_s20 }
   0x5   : > { %s132_s26 = ssub.s32 %s13321_s21, %s13385_s24  ;;  %p145_p0 = scmp.ne.s32.totalorder %s13317_s20, %s13313_s19 }
   0x6   : > { %p133_p1 = scmp.eq.s32.totalorder %s132_s26, 0  ;;  %p146_p2 = scmp.eq.s32.totalorder %s13381_s22, 1 }
   0x7   : > { %p151_p3 = scmp.ne.s32.totalorder %s13313_s19, %s13309_s18  ;;  %p152_p4 = scmp.eq.s32.totalorder %s10400_s23, 1 }
   0x8   : > { %s13396_s27 = scalar_select %p133_p1, %s13317_s20, %s135_s25  }
   0x9   : > { %p13398_p5 = por %p146_p2, %p145_p0  ;;  %p13402_p6 = por %p152_p4, %p151_p3 }
   0xa   : > { %p10403_p7 = scmp.ge.s32.totalorder %s13321_s21, 1  ;;  %p192_p8 = scmp.lt.s32.totalorder %s13321_s21, 3 }
   0xc   : > { %p193_p9 = pnand %p10403_p7, %p192_p8 }
   0xe   : > { %196 = sbr.rel (%p193_p9) target bundleno = 1911 (0x777), region = 40 }
  0x13   : > { %s10405_s30 = sshll.u32 %s13381_s22, 1  ;;  %vm270_vm0 = vcmask 57376   ;;  %vm303_vm1 = vcmask 91200   ;;  %v18139_v0 = vmov 0.0   ;;  %v732_v1 = vld [vmem:[%s18134_s1 + $0x8] sm:$0xf] }
  0x14   : > { %p13411_p10 = scmp.lt.s32.totalorder %s10405_s30, 3  ;;  %287 = vst.msk [vmem:[#allocation2 + $0x41] sm:$0x1] %vm270_vm0, %v18139_v0  ;;  %288 = vst.msk [vmem:[#allocation2 + $0x59] sm:$0x1] %vm270_vm0, %v18139_v0  ;;  %vm895_vm2 = vcmask 1043456  }
  0x15   : > { %289 = vst.msk [vmem:[#allocation2 + $0x71] sm:$0x1] %vm270_vm0, %v18139_v0  ;;  %290 = vst.msk [vmem:[#allocation2 + $0x89] sm:$0x1] %vm270_vm0, %v18139_v0  ;;  %v13453_v2 = vld [vmem:[%s18134_s1] sm:$0xff]  ;;  %11630 = vmatprep.subr.msk.mxu0 %vm895_vm2, %v732_v1  ;;  %vm230_vm3 = vcmask 97280  }
  0x16   : > { %291 = vst.msk [vmem:[#allocation2 + $0xa1] sm:$0x1] %vm270_vm0, %v18139_v0  ;;  %292 = vst.msk [vmem:[#allocation2 + $0xb9] sm:$0x1] %vm270_vm0, %v18139_v0  ;;  %v677_v3 = vld [vmem:[#allocation2] sm:$0xff]  ;;  %vm253_vm4 = vcmask 25600   ;;  %11631 = vmatpush3.msk.msra.mxu0 %vm895_vm2, %v732_v1 }
  0x17   : > { %293 = vst.msk [vmem:[#allocation2 + $0xd1] sm:$0x1] %vm270_vm0, %v18139_v0  ;;  %294 = vst.msk [vmem:[#allocation2 + $0xe9] sm:$0x1] %vm270_vm0, %v18139_v0  ;;  %s18368_s30 = smov (!%p13411_p10, %s10405_s30), 3  ;;  %11634 = vmatprep.mubr.msk.f32.mxu0 %vm230_vm3, %v677_v3  ;;  %v678_v4 = vld [vmem:[#allocation2 + $0x8] sm:$0xff]  ;;  %11632 = vmatprep.subr.mxu0 %v13453_v2 }
  0x18   : > { %295 = vst.msk [vmem:[#allocation2 + $0x101] sm:$0x1] %vm270_vm0, %v18139_v0  ;;  %296 = vst.msk [vmem:[#allocation2 + $0x119] sm:$0x1] %vm270_vm0, %v18139_v0  ;;  %v10464_v5 = vld [vmem:[%s18134_s1 + $0x18] sm:$0xf]  ;;  %11633 = vmatpush3.msra.mxu0 %v13453_v2 }
  0x19   : > { %297 = vst.msk [vmem:[#allocation2 + $0x131] sm:$0x1] %vm270_vm0, %v18139_v0  ;;  %298 = vst.msk [vmem:[#allocation2 + $0x149] sm:$0x1] %vm270_vm0, %v18139_v0  ;;  %v10463_v6 = vld [vmem:[%s18134_s1 + $0x10] sm:$0xff]  ;;  %11715 = vmatprep.subr.msk.mxu1 %vm895_vm2, %v10464_v5  ;;  %s11027_s15 = sshll.u32 %s18368_s30, 8  ;;  %11635 = vmatmul.mubr.msk.f32.vlgmr.msra.gmra.mxu0 %vm230_vm3, %v678_v4 }
  0x1a   : > { %299 = vst.msk [vmem:[#allocation2 + $0x161] sm:$0x1] %vm270_vm0, %v18139_v0  ;;  %300 = vst.msk [vmem:[#allocation2 + $0x179] sm:$0x1] %vm270_vm0, %v18139_v0  ;;  %v679_v7 = vld [vmem:[#allocation2 + $0x10] sm:$0xff]  ;;  %vm354_vm5 = vcmask 31744   ;;  %11716 = vmatpush3.msk.msra.mxu1 %vm895_vm2, %v10464_v5  ;;  %s13586_s23 = scalar_lea.vmem %s18133_s0, %s11027_s15 }
  0x1b   : > { %301 = vst.msk [vmem:[#allocation2 + $0x191] sm:$0x1] %vm270_vm0, %v18139_v0  ;;  %302 = vst.msk [vmem:[#allocation2 + $0x1a9] sm:$0x1] %vm270_vm0, %v18139_v0  ;;  %11717 = vmatprep.subr.mxu1 %v10463_v6  ;;  %v13590_v8 = vld [vmem:[%s13586_s23] sm:$0xff]  ;;  %v13593_v9 = vld [vmem:[%s13586_s23 + $0x8] sm:$0xff]  ;;  %11637 = vmatprep.mubr.msk.f32.mxu0 %vm230_vm3, %v679_v7 }
  0x1c   : > { %304 = vst.msk [vmem:[#allocation2 + $0x40] sm:$0x3] %vm303_vm1, %v18139_v0  ;;  %305 = vst.msk [vmem:[#allocation2 + $0x58] sm:$0x3] %vm303_vm1, %v18139_v0  ;;  %v13596_v10 = vld [vmem:[%s13586_s23 + $0x10] sm:$0xff]  ;;  %11718 = vmatpush3.msra.mxu1 %v10463_v6  ;;  %s13324_s25 = smov 4  }
  0x1d   : > { %306 = vst.msk [vmem:[#allocation2 + $0x70] sm:$0x3] %vm303_vm1, %v18139_v0  ;;  %307 = vst.msk [vmem:[#allocation2 + $0x88] sm:$0x3] %vm303_vm1, %v18139_v0  ;;  %419 = vrot.lane.b32.xlu0 %v13590_v8, %s13324_s25  ;;  %s13325_s26 = smov 8   ;;  %v13610_v11 = vld [vmem:[%s13586_s23 + $0x18] sm:$0xff] }
  0x1e   : > { %308 = vst.msk [vmem:[#allocation2 + $0xa0] sm:$0x3] %vm303_vm1, %v18139_v0  ;;  %309 = vst.msk [vmem:[#allocation2 + $0xb8] sm:$0x3] %vm303_vm1, %v18139_v0  ;;  %548 = vrot.lane.b32.xlu1 %v13590_v8, %s13325_s26  ;;  %v13613_v12 = vld [vmem:[%s13586_s23 + $0x20] sm:$0xff]  ;;  %v13620_v13 = vld [vmem:[%s13586_s23 + $0x28] sm:$0xff] }
  0x1f   : > { %310 = vst.msk [vmem:[#allocation2 + $0xd0] sm:$0x3] %vm303_vm1, %v18139_v0  ;;  %311 = vst.msk [vmem:[#allocation2 + $0xe8] sm:$0x3] %vm303_vm1, %v18139_v0  ;;  %v13623_v14 = vld [vmem:[%s13586_s23 + $0x30] sm:$0xff]  ;;  %v13626_v15 = vld [vmem:[%s13586_s23 + $0x38] sm:$0xff] }
  0x20   : > { %312 = vst.msk [vmem:[#allocation2 + $0x100] sm:$0x3] %vm303_vm1, %v18139_v0  ;;  %313 = vst.msk [vmem:[#allocation2 + $0x118] sm:$0x3] %vm303_vm1, %v18139_v0  ;;  %v13635_v16 = vld [vmem:[%s13586_s23 + $0x40] sm:$0xff]  ;;  %v13638_v17 = vld [vmem:[%s13586_s23 + $0x48] sm:$0xff] }
  0x21   : > { %314 = vst.msk [vmem:[#allocation2 + $0x130] sm:$0x3] %vm303_vm1, %v18139_v0  ;;  %315 = vst.msk [vmem:[#allocation2 + $0x148] sm:$0x3] %vm303_vm1, %v18139_v0  ;;  %v13641_v18 = vld [vmem:[%s13586_s23 + $0x50] sm:$0xff]  ;;  %v13650_v19 = vld [vmem:[%s13586_s23 + $0x58] sm:$0xff]  ;;  %421 = vrot.lane.b32.xlu0 %v13593_v9, %s13324_s25 }
  0x22   : > { %316 = vst.msk [vmem:[#allocation2 + $0x160] sm:$0x3] %vm303_vm1, %v18139_v0  ;;  %317 = vst.msk [vmem:[#allocation2 + $0x178] sm:$0x3] %vm303_vm1, %v18139_v0  ;;  %v13653_v20 = vld [vmem:[%s13586_s23 + $0x60] sm:$0xff]  ;;  %v13656_v21 = vld [vmem:[%s13586_s23 + $0x68] sm:$0xff]  ;;  %550 = vrot.lane.b32.xlu1 %v13593_v9, %s13325_s26 }
  0x23   : > { %318 = vst.msk [vmem:[#allocation2 + $0x190] sm:$0x3] %vm303_vm1, %v18139_v0  ;;  %319 = vst.msk [vmem:[#allocation2 + $0x1a8] sm:$0x3] %vm303_vm1, %v18139_v0  ;;  %v13669_v22 = vld [vmem:[%s13586_s23 + $0x70] sm:$0xff]  ;;  %v13672_v23 = vld [vmem:[%s13586_s23 + $0x78] sm:$0xff] }
  0x24   : > { %231 = vst.msk [vmem:[#allocation2 + $0x18] sm:$0xff] %vm230_vm3, %v18139_v0  ;;  %232 = vst.msk [vmem:[#allocation2 + $0x20] sm:$0xff] %vm230_vm3, %v18139_v0  ;;  %v13679_v25 = vld [vmem:[%s13586_s23 + $0x80] sm:$0xff]  ;;  %v13682_v26 = vld [vmem:[%s13586_s23 + $0x88] sm:$0xff]  ;;  %vm515_vm6 = vcmask 64544   ;;  %vm644_vm7 = vcmask 97344  }
  0x25   : > { %233 = vst.msk [vmem:[#allocation2 + $0x28] sm:$0xff] %vm230_vm3, %v18139_v0  ;;  %235 = vst.msk [vmem:[#allocation2 + $0x1b0] sm:$0xff] %vm230_vm3, %v18139_v0  ;;  %v13685_v27 = vld [vmem:[%s13586_s23 + $0x90] sm:$0xff]  ;;  %v13696_v28 = vld [vmem:[%s13586_s23 + $0x98] sm:$0xff]  ;;  %423 = vrot.lane.b32.xlu0 %v13596_v10, %s13324_s25  ;;  %vm238_vm8 = vcmask 261120   ;;  %vm3166_vm9 = vcmask 253952  }
  0x26   : > { %236 = vst.msk [vmem:[#allocation2 + $0x1b8] sm:$0xff] %vm230_vm3, %v18139_v0  ;;  %237 = vst.msk [vmem:[#allocation2 + $0x1c0] sm:$0xff] %vm230_vm3, %v18139_v0  ;;  %v13699_v29 = vld [vmem:[%s13586_s23 + $0xa0] sm:$0xff]  ;;  %v13702_v30 = vld [vmem:[%s13586_s23 + $0xa8] sm:$0xff]  ;;  %552 = vrot.lane.b32.xlu1 %v13596_v10, %s13325_s26  ;;  %s13326_s17 = smov 32   ;;  %s13327_s11 = smov 64  }
  0x27   : > { %254 = vst.msk [vmem:[#allocation2 + $0x30] sm:$0x3] %vm253_vm4, %v18139_v0  ;;  %255 = vst.msk [vmem:[#allocation2 + $0x48] sm:$0x3] %vm253_vm4, %v18139_v0  ;;  %v13711_v31 = vld [vmem:[%s13586_s23 + $0xb0] sm:$0xff]  ;;  %v13714_v32 = vld [vmem:[%s13586_s23 + $0xb8] sm:$0xff] }
  0x28   : > { %256 = vst.msk [vmem:[#allocation2 + $0x60] sm:$0x3] %vm253_vm4, %v18139_v0  ;;  %257 = vst.msk [vmem:[#allocation2 + $0x78] sm:$0x3] %vm253_vm4, %v18139_v0  ;;  %v13717_v33 = vld [vmem:[%s13586_s23 + $0xc0] sm:$0xff]  ;;  %v13730_v34 = vld [vmem:[%s13586_s23 + $0xc8] sm:$0xff] }
  0x29   : > { %258 = vst.msk [vmem:[#allocation2 + $0x90] sm:$0x3] %vm253_vm4, %v18139_v0  ;;  %259 = vst.msk [vmem:[#allocation2 + $0xa8] sm:$0x3] %vm253_vm4, %v18139_v0  ;;  %v13733_v35 = vld [vmem:[%s13586_s23 + $0xd0] sm:$0xff]  ;;  %v13740_v37 = vld [vmem:[%s13586_s23 + $0xd8] sm:$0xff]  ;;  %425 = vrot.lane.b32.xlu0 %v13610_v11, %s13324_s25 }
  0x2a   : > { %260 = vst.msk [vmem:[#allocation2 + $0xc0] sm:$0x3] %vm253_vm4, %v18139_v0  ;;  %261 = vst.msk [vmem:[#allocation2 + $0xd8] sm:$0x3] %vm253_vm4, %v18139_v0  ;;  %v13743_v38 = vld [vmem:[%s13586_s23 + $0xe0] sm:$0xff]  ;;  %v13746_v39 = vld [vmem:[%s13586_s23 + $0xe8] sm:$0xff]  ;;  %554 = vrot.lane.b32.xlu1 %v13610_v11, %s13325_s26 }
  0x2b   : > { %262 = vst.msk [vmem:[#allocation2 + $0xf0] sm:$0x3] %vm253_vm4, %v18139_v0  ;;  %263 = vst.msk [vmem:[#allocation2 + $0x108] sm:$0x3] %vm253_vm4, %v18139_v0  ;;  %v680_v24 = vld [vmem:[#allocation2 + $0x18] sm:$0xff]  ;;  %v681_v36 = vld [vmem:[#allocation2 + $0x20] sm:$0xff] }
  0x2c   : > { %264 = vst.msk [vmem:[#allocation2 + $0x120] sm:$0x3] %vm253_vm4, %v18139_v0  ;;  %265 = vst.msk [vmem:[#allocation2 + $0x138] sm:$0x3] %vm253_vm4, %v18139_v0  ;;  %11638 = vmatmul.mubr.msk.f32.gmra.mxu0 %vm230_vm3, %v680_v24  ;;  %11719 = vmatprep.mubr.msk.f32.mxu1 %vm230_vm3, %v680_v24  ;;  %v13757_v40 = vld [vmem:[%s13586_s23 + $0xf0] sm:$0xff]  ;;  %v682_v41 = vld [vmem:[#allocation2 + $0x28] sm:$0xff] }
  0x2d   : > { %266 = vst.msk [vmem:[#allocation2 + $0x150] sm:$0x3] %vm253_vm4, %v18139_v0  ;;  %267 = vst.msk [vmem:[#allocation2 + $0x168] sm:$0x3] %vm253_vm4, %v18139_v0  ;;  %11640 = vmatprep.mubr.msk.f32.mxu0 %vm230_vm3, %v681_v36  ;;  %11720 = vmatmul.mubr.msk.f32.vlgmr.msra.gmra.mxu1 %vm230_vm3, %v681_v36  ;;  %v13760_v42 = vld [vmem:[%s13586_s23 + $0xf8] sm:$0xff]  ;;  %v10520_v44 = vld [vmem:[%s18134_s1 + $0x20] sm:$0xff] }
  0x2e   : > { %268 = vst.msk [vmem:[#allocation2 + $0x180] sm:$0x3] %vm253_vm4, %v18139_v0  ;;  %269 = vst.msk [vmem:[#allocation2 + $0x198] sm:$0x3] %vm253_vm4, %v18139_v0  ;;  %11722 = vmatprep.mubr.msk.f32.mxu1 %vm230_vm3, %v682_v41  ;;  %427 = vrot.lane.b32.xlu0 %v13613_v12, %s13324_s25  ;;  %v10521_v43 = vld [vmem:[%s18134_s1 + $0x28] sm:$0xf] }
  0x2f   : > { %271 = vst.msk [vmem:[#allocation2 + $0x30] sm:$0x1] %vm270_vm0, %v18139_v0  ;;  %272 = vst.msk [vmem:[#allocation2 + $0x48] sm:$0x1] %vm270_vm0, %v18139_v0  ;;  %429 = vrot.lane.b32.xlu1 %v13620_v13, %s13324_s25  ;;  %11800 = vmatprep.subr.msk.mxu0 %vm895_vm2, %v10521_v43  ;;  %vm246_vm10 = vcmask 785408   ;;  %vm3424_vm11 = vcmask 523520  }
  0x30   : > { %273 = vst.msk [vmem:[#allocation2 + $0x60] sm:$0x1] %vm270_vm0, %v18139_v0  ;;  %274 = vst.msk [vmem:[#allocation2 + $0x78] sm:$0x1] %vm270_vm0, %v18139_v0  ;;  %11641 = vmatmul.mubr.msk.f32.gmra.mxu0 %vm230_vm3, %v682_v41  ;;  %vm3617_vm12 = vcmask 785920   ;;  %s218_s14 = sand.u32 1, %s13313_s19  }
  0x31   : > { %275 = vst.msk [vmem:[#allocation2 + $0x90] sm:$0x1] %vm270_vm0, %v18139_v0  ;;  %276 = vst.msk [vmem:[#allocation2 + $0xa8] sm:$0x1] %vm270_vm0, %v18139_v0  ;;  %11801 = vmatpush3.msk.msra.mxu0 %vm895_vm2, %v10521_v43  ;;  %s10404_s15 = sshll.u32 %s218_s14, 4  ;;  %s11029_s6 = sshll.u32 %s13381_s22, 8 }
  0x32   : > { %277 = vst.msk [vmem:[#allocation2 + $0xc0] sm:$0x1] %vm270_vm0, %v18139_v0  ;;  %278 = vst.msk [vmem:[#allocation2 + $0xd8] sm:$0x1] %vm270_vm0, %v18139_v0  ;;  %556 = vrot.lane.b32.xlu0 %v13613_v12, %s13325_s26  ;;  %11802 = vmatprep.subr.mxu0 %v10520_v44  ;;  %s17833_s16 = scalar_lea.vmem [#allocation7], %s10404_s15  ;;  %s18092_s9 = scalar_lea.sflag [#allocation8], %s218_s14 }
  0x33   : > { %279 = vst.msk [vmem:[#allocation2 + $0xf0] sm:$0x1] %vm270_vm0, %v18139_v0  ;;  %280 = vst.msk [vmem:[#allocation2 + $0x108] sm:$0x1] %vm270_vm0, %v18139_v0  ;;  %558 = vrot.lane.b32.xlu1 %v13620_v13, %s13325_s26  ;;  %11803 = vmatpush3.msra.mxu0 %v10520_v44  ;;  %s10338_s30 = sshll.u32 %s17833_s16, 4  ;;  %s13328_s22 = smov [#allocation7]   ;;  %s18082_s30 = int_to_ptr.vmem [resolvable:$true] %s10338_s30 }
  0x34   : > { %281 = vst.msk [vmem:[#allocation2 + $0x120] sm:$0x1] %vm270_vm0, %v18139_v0  ;;  %282 = vst.msk [vmem:[#allocation2 + $0x138] sm:$0x1] %vm270_vm0, %v18139_v0  ;;  %s13261_s10 = scalar_lea.vmem %s18082_s30, 256  ;;  %s13265_s12 = sshll.u32 %s13328_s22, 4  ;;  %s13266_s12 = int_to_ptr.vmem [resolvable:$false] %s13265_s12 }
  0x35   : > { %283 = vst.msk [vmem:[#allocation2 + $0x150] sm:$0x1] %vm270_vm0, %v18139_v0  ;;  %284 = vst.msk [vmem:[#allocation2 + $0x168] sm:$0x1] %vm270_vm0, %v18139_v0  ;;  %p13262_p11 = scmp.ne.s32.totalorder %s18082_s30, %s13261_s10  ;;  %p13268_p0 = scmp.lt.s32.totalorder %s18082_s30, %s13266_s12 }
  0x36   : > { %285 = vst.msk [vmem:[#allocation2 + $0x180] sm:$0x1] %vm270_vm0, %v18139_v0  ;;  %286 = vst.msk [vmem:[#allocation2 + $0x198] sm:$0x1] %vm270_vm0, %v18139_v0  ;;  %431 = vrot.lane.b32.xlu0 %v13623_v14, %s13324_s25 }
  0x37   : > { %18217 = vst [vmem:[#allocation10_spill] sm:$0xff] %v13590_v8  ;;  %18218 = vst [vmem:[#allocation11_spill] sm:$0xff] %v13593_v9  ;;  %560 = vrot.lane.b32.xlu1 %v13623_v14, %s13325_s26  ;;  %p13263_p12 = pnand %p13262_p11, %p13398_p5 }
  0x38   : > { %18219 = vst [vmem:[#allocation12_spill] sm:$0xff] %v13596_v10  ;;  %356 = vst.msk [vmem:[#allocation2 + $0x3a] sm:$0xff] %vm354_vm5, %v13593_v9 }
  0x39   : > { %355 = vst.msk [vmem:[#allocation2 + $0x32] sm:$0xff] %vm354_vm5, %v13590_v8  ;;  %357 = vst.msk [vmem:[#allocation2 + $0x4a] sm:$0xff] %vm354_vm5, %v13596_v10  ;;  %p13264_p13 = pneg %p13263_p12 }
  0x3a   : > { %18220 = vst [vmem:[#allocation13_spill] sm:$0xff] %v13610_v11  ;;  %18221 = vst [vmem:[#allocation14_spill] sm:$0xff] %v13613_v12  ;;  %433 = vrot.lane.b32.xlu0 %v13626_v15, %s13324_s25 }
  0x3b   : > { %358 = vst.msk [vmem:[#allocation2 + $0x52] sm:$0xff] %vm354_vm5, %v13610_v11  ;;  %359 = vst.msk [vmem:[#allocation2 + $0x62] sm:$0xff] %vm354_vm5, %v13613_v12  ;;  %562 = vrot.lane.b32.xlu1 %v13626_v15, %s13325_s26 }
  0x3c   : > { %18222 = vst [vmem:[#allocation15_spill] sm:$0xff] %v13620_v13  ;;  %18223 = vst [vmem:[#allocation16_spill] sm:$0xff] %v13623_v14 }
  0x3d   : > { %18224 = vst [vmem:[#allocation17_spill] sm:$0xff] %v13626_v15  ;;  %360 = vst.msk [vmem:[#allocation2 + $0x6a] sm:$0xff] %vm354_vm5, %v13620_v13  ;;  %v16109_v13 = vld [vmem:[#allocation2 + $0x1c0] sm:$0xff] }
  0x3e   : > { %361 = vst.msk [vmem:[#allocation2 + $0x7a] sm:$0xff] %vm354_vm5, %v13623_v14  ;;  %362 = vst.msk [vmem:[#allocation2 + $0x82] sm:$0xff] %vm354_vm5, %v13626_v15  ;;  %435 = vrot.lane.b32.xlu0 %v13635_v16, %s13324_s25 }
  0x3f   : > { %18225 = vst [vmem:[#allocation18_spill] sm:$0xff] %v13635_v16  ;;  %18226 = vst [vmem:[#allocation19_spill] sm:$0xff] %v13638_v17  ;;  %437 = vrot.lane.b32.xlu1 %v13638_v17, %s13324_s25 }
  0x40   : > { %18227 = vst [vmem:[#allocation20_spill] sm:$0xff] %v13641_v18  ;;  %363 = vst.msk [vmem:[#allocation2 + $0x92] sm:$0xff] %vm354_vm5, %v13635_v16 }
  0x41   : > { %364 = vst.msk [vmem:[#allocation2 + $0x9a] sm:$0xff] %vm354_vm5, %v13638_v17  ;;  %365 = vst.msk [vmem:[#allocation2 + $0xaa] sm:$0xff] %vm354_vm5, %v13641_v18 }
  0x42   : > { %18228 = vst [vmem:[#allocation21_spill] sm:$0xff] %v13650_v19  ;;  %18229 = vst [vmem:[#allocation22_spill] sm:$0xff] %v13653_v20  ;;  %564 = vrot.lane.b32.xlu0 %v13635_v16, %s13325_s26  ;;  %v14256_v16 = vld [vmem:[#allocation2 + $0x1b8] sm:$0xff] }
  0x43   : > { %18230 = vst [vmem:[#allocation23_spill] sm:$0xff] %v13656_v21  ;;  %366 = vst.msk [vmem:[#allocation2 + $0xb2] sm:$0xff] %vm354_vm5, %v13650_v19  ;;  %566 = vrot.lane.b32.xlu1 %v13638_v17, %s13325_s26 }
  0x44   : > { %367 = vst.msk [vmem:[#allocation2 + $0xc2] sm:$0xff] %vm354_vm5, %v13653_v20  ;;  %368 = vst.msk [vmem:[#allocation2 + $0xca] sm:$0xff] %vm354_vm5, %v13656_v21 }
  0x45   : > { %18231 = vst [vmem:[#allocation24_spill] sm:$0xff] %v13669_v22  ;;  %18232 = vst [vmem:[#allocation25_spill] sm:$0xff] %v13672_v23 }
  0x46   : > { %369 = vst.msk [vmem:[#allocation2 + $0xda] sm:$0xff] %vm354_vm5, %v13669_v22  ;;  %370 = vst.msk [vmem:[#allocation2 + $0xe2] sm:$0xff] %vm354_vm5, %v13672_v23  ;;  %439 = vrot.lane.b32.xlu0 %v13641_v18, %s13324_s25 }
  0x47   : > { %18233 = vst [vmem:[#allocation26_spill] sm:$0xff] %v13679_v25  ;;  %18234 = vst [vmem:[#allocation27_spill] sm:$0xff] %v13682_v26  ;;  %568 = vrot.lane.b32.xlu1 %v13641_v18, %s13325_s26 }
  0x48   : > { %18235 = vst [vmem:[#allocation28_spill] sm:$0xff] %v13685_v27  ;;  %371 = vst.msk [vmem:[#allocation2 + $0xf2] sm:$0xff] %vm354_vm5, %v13679_v25 }
  0x49   : > { %372 = vst.msk [vmem:[#allocation2 + $0xfa] sm:$0xff] %vm354_vm5, %v13682_v26  ;;  %373 = vst.msk [vmem:[#allocation2 + $0x10a] sm:$0xff] %vm354_vm5, %v13685_v27 }
  0x4a   : > { %18236 = vst [vmem:[#allocation29_spill] sm:$0xff] %v13696_v28  ;;  %18237 = vst [vmem:[#allocation30_spill] sm:$0xff] %v13699_v29  ;;  %441 = vrot.lane.b32.xlu0 %v13650_v19, %s13324_s25 }
  0x4b   : > { %18238 = vst [vmem:[#allocation31_spill] sm:$0xff] %v13702_v30  ;;  %374 = vst.msk [vmem:[#allocation2 + $0x112] sm:$0xff] %vm354_vm5, %v13696_v28  ;;  %570 = vrot.lane.b32.xlu1 %v13650_v19, %s13325_s26 }
  0x4c   : > { %375 = vst.msk [vmem:[#allocation2 + $0x122] sm:$0xff] %vm354_vm5, %v13699_v29  ;;  %376 = vst.msk [vmem:[#allocation2 + $0x12a] sm:$0xff] %vm354_vm5, %v13702_v30 }
  0x4d   : > { %18239 = vst [vmem:[#allocation32_spill] sm:$0xff] %v13711_v31  ;;  %18240 = vst [vmem:[#allocation33_spill] sm:$0xff] %v13714_v32 }
  0x4e   : > { %18241 = vst [vmem:[#allocation34_spill] sm:$0xff] %v13717_v33  ;;  %377 = vst.msk [vmem:[#allocation2 + $0x13a] sm:$0xff] %vm354_vm5, %v13711_v31  ;;  %443 = vrot.lane.b32.xlu0 %v13653_v20, %s13324_s25 }
  0x4f   : > { %378 = vst.msk [vmem:[#allocation2 + $0x142] sm:$0xff] %vm354_vm5, %v13714_v32  ;;  %379 = vst.msk [vmem:[#allocation2 + $0x152] sm:$0xff] %vm354_vm5, %v13717_v33  ;;  %445 = vrot.lane.b32.xlu1 %v13656_v21, %s13324_s25 }
  0x50   : > { %18242 = vst [vmem:[#allocation35_spill] sm:$0xff] %v13730_v34  ;;  %18243 = vst [vmem:[#allocation36_spill] sm:$0xff] %v13733_v35 }
  0x51   : > { %380 = vst.msk [vmem:[#allocation2 + $0x15a] sm:$0xff] %vm354_vm5, %v13730_v34  ;;  %381 = vst.msk [vmem:[#allocation2 + $0x16a] sm:$0xff] %vm354_vm5, %v13733_v35 }
  0x52   : > { %18244 = vst [vmem:[#allocation37_spill] sm:$0xff] %v13740_v37  ;;  %18245 = vst [vmem:[#allocation38_spill] sm:$0xff] %v13743_v38  ;;  %572 = vrot.lane.b32.xlu0 %v13653_v20, %s13325_s26 }
  0x53   : > { %18246 = vst [vmem:[#allocation39_spill] sm:$0xff] %v13746_v39  ;;  %382 = vst.msk [vmem:[#allocation2 + $0x172] sm:$0xff] %vm354_vm5, %v13740_v37  ;;  %574 = vrot.lane.b32.xlu1 %v13656_v21, %s13325_s26 }
  0x54   : > { %383 = vst.msk [vmem:[#allocation2 + $0x182] sm:$0xff] %vm354_vm5, %v13743_v38  ;;  %384 = vst.msk [vmem:[#allocation2 + $0x18a] sm:$0xff] %vm354_vm5, %v13746_v39 }
  0x55   : > { %18247 = vst [vmem:[#allocation40_spill] sm:$0xff] %v13757_v40  ;;  %18248 = vst [vmem:[#allocation41_spill] sm:$0xff] %v13760_v42 }
  0x56   : > { %385 = vst.msk [vmem:[#allocation2 + $0x19a] sm:$0xff] %vm354_vm5, %v13757_v40  ;;  %386 = vst.msk [vmem:[#allocation2 + $0x1a2] sm:$0xff] %vm354_vm5, %v13760_v42  ;;  %447 = vrot.lane.b32.xlu0 %v13669_v22, %s13324_s25 }
  0x57   : > { %576 = vrot.lane.b32.xlu1 %v13669_v22, %s13325_s26  ;;  %18289 = vst [vmem:[#allocation81_spill] sm:$0xff] %v16109_v13 }
  0x5a   : > { %449 = vrot.lane.b32.xlu0 %v13672_v23, %s13324_s25 }
  0x5b   : > { %578 = vrot.lane.b32.xlu1 %v13672_v23, %s13325_s26 }
  0x5e   : > { %451 = vrot.lane.b32.xlu0 %v13679_v25, %s13324_s25 }
  0x5f   : > { %453 = vrot.lane.b32.xlu1 %v13682_v26, %s13324_s25 }
  0x62   : > { %580 = vrot.lane.b32.xlu0 %v13679_v25, %s13325_s26 }
  0x63   : > { %582 = vrot.lane.b32.xlu1 %v13682_v26, %s13325_s26 }
  0x66   : > { %455 = vrot.lane.b32.xlu0 %v13685_v27, %s13324_s25 }
  0x67   : > { %584 = vrot.lane.b32.xlu1 %v13685_v27, %s13325_s26 }
  0x6a   : > { %457 = vrot.lane.b32.xlu0 %v13696_v28, %s13324_s25 }
  0x6b   : > { %586 = vrot.lane.b32.xlu1 %v13696_v28, %s13325_s26  ;;  %v16098_v28 = vld [vmem:[#allocation2 + $0x1b8] sm:$0xff] }
  0x6c   : > { %18288 = vst [vmem:[#allocation80_spill] sm:$0xff] %v16098_v28 }
  0x6e   : > { %459 = vrot.lane.b32.xlu0 %v13699_v29, %s13324_s25 }
  0x6f   : > { %461 = vrot.lane.b32.xlu1 %v13702_v30, %s13324_s25 }
  0x72   : > { %588 = vrot.lane.b32.xlu0 %v13699_v29, %s13325_s26  ;;  %v14264_v29 = vld [vmem:[#allocation2 + $0x1c0] sm:$0xff] }
  0x73   : > { %590 = vrot.lane.b32.xlu1 %v13702_v30, %s13325_s26  ;;  %v14252_v30 = vld [vmem:[#allocation2 + $0x1b0] sm:$0xff] }
  0x76   : > { %463 = vrot.lane.b32.xlu0 %v13711_v31, %s13324_s25 }
  0x77   : > { %592 = vrot.lane.b32.xlu1 %v13711_v31, %s13325_s26 }
  0x7a   : > { %465 = vrot.lane.b32.xlu0 %v13714_v32, %s13324_s25 }
  0x7b   : > { %594 = vrot.lane.b32.xlu1 %v13714_v32, %s13325_s26 }
  0x7e   : > { %467 = vrot.lane.b32.xlu0 %v13717_v33, %s13324_s25 }
  0x7f   : > { %469 = vrot.lane.b32.xlu1 %v13730_v34, %s13324_s25 }
  0x82   : > { %596 = vrot.lane.b32.xlu0 %v13717_v33, %s13325_s26 }
  0x83   : > { %598 = vrot.lane.b32.xlu1 %v13730_v34, %s13325_s26 }
  0x86   : > { %471 = vrot.lane.b32.xlu0 %v13733_v35, %s13324_s25 }
  0x87   : > { %600 = vrot.lane.b32.xlu1 %v13733_v35, %s13325_s26 }
  0x8a   : > { %473 = vrot.lane.b32.xlu0 %v13740_v37, %s13324_s25 }
  0x8b   : > { %602 = vrot.lane.b32.xlu1 %v13740_v37, %s13325_s26 }
  0x8e   : > { %475 = vrot.lane.b32.xlu0 %v13743_v38, %s13324_s25 }
  0x8f   : > { %477 = vrot.lane.b32.xlu1 %v13746_v39, %s13324_s25  ;;  %v420_v45 = vpop.permute.xlu0 %419 }
  0x90   : > { %v549_v46 = vpop.permute.xlu1 %548  ;;  %516 = vst.msk [vmem:[#allocation2 + $0x31] sm:$0xff] %vm515_vm6, %v420_v45 }
  0x91   : > { %645 = vst.msk [vmem:[#allocation2 + $0x30] sm:$0xff] %vm644_vm7, %v549_v46 }
  0x92   : > { %604 = vrot.lane.b32.xlu0 %v13743_v38, %s13325_s26 }
  0x93   : > { %606 = vrot.lane.b32.xlu1 %v13746_v39, %s13325_s26  ;;  %v422_v47 = vpop.permute.xlu0 %421 }
  0x94   : > { %v551_v48 = vpop.permute.xlu1 %550  ;;  %517 = vst.msk [vmem:[#allocation2 + $0x39] sm:$0xff] %vm515_vm6, %v422_v47 }
  0x95   : > { %646 = vst.msk [vmem:[#allocation2 + $0x38] sm:$0xff] %vm644_vm7, %v551_v48 }
  0x96   : > { %479 = vrot.lane.b32.xlu0 %v13757_v40, %s13324_s25 }
  0x97   : > { %608 = vrot.lane.b32.xlu1 %v13757_v40, %s13325_s26  ;;  %v424_v49 = vpop.permute.xlu0 %423 }
  0x98   : > { %v553_v50 = vpop.permute.xlu1 %552  ;;  %518 = vst.msk [vmem:[#allocation2 + $0x49] sm:$0xff] %vm515_vm6, %v424_v49  ;;  %v13893_v51 = vld [vmem:[#allocation2 + $0x30] sm:$0xff] }
  0x99   : > { %647 = vst.msk [vmem:[#allocation2 + $0x48] sm:$0xff] %vm644_vm7, %v553_v50  ;;  %11643 = vmatprep.mubr.msk.f32.mxu0 %vm230_vm3, %v13893_v51  ;;  %11723 = vmatmul.mubr.msk.f32.gmra.mxu1 %vm230_vm3, %v13893_v51 }
  0x9a   : > { %481 = vrot.lane.b32.xlu0 %v13760_v42, %s13324_s25 }
  0x9b   : > { %610 = vrot.lane.b32.xlu1 %v13760_v42, %s13325_s26  ;;  %v426_v52 = vpop.permute.xlu0 %425  ;;  %v13912_v55 = vld [vmem:[#allocation2 + $0x40] sm:$0xff] }
  0x9c   : > { %v555_v53 = vpop.permute.xlu1 %554  ;;  %519 = vst.msk [vmem:[#allocation2 + $0x51] sm:$0xff] %vm515_vm6, %v426_v52  ;;  %v13905_v54 = vld [vmem:[#allocation2 + $0x38] sm:$0xff] }
  0x9d   : > { %648 = vst.msk [vmem:[#allocation2 + $0x50] sm:$0xff] %vm644_vm7, %v555_v53  ;;  %11644 = vmatmul.mubr.msk.f32.gmra.mxu0 %vm230_vm3, %v13905_v54  ;;  %11725 = vmatprep.mubr.msk.f32.mxu1 %vm230_vm3, %v13905_v54 }
  0x9e   : > { %11646 = vmatprep.mubr.msk.f32.mxu0 %vm230_vm3, %v13912_v55  ;;  %11726 = vmatmul.mubr.msk.f32.gmra.mxu1 %vm230_vm3, %v13912_v55 }
  0xa0   : > { %v428_v56 = vpop.permute.xlu0 %427  ;;  %v13920_v58 = vld [vmem:[#allocation2 + $0x48] sm:$0xff] }
  0xa1   : > { %v430_v57 = vpop.permute.xlu1 %429  ;;  %520 = vst.msk [vmem:[#allocation2 + $0x61] sm:$0xff] %vm515_vm6, %v428_v56  ;;  %11647 = vmatmul.mubr.msk.f32.gmra.mxu0 %vm230_vm3, %v13920_v58  ;;  %11728 = vmatprep.mubr.msk.f32.mxu1 %vm230_vm3, %v13920_v58 }
  0xa2   : > { %521 = vst.msk [vmem:[#allocation2 + $0x69] sm:$0xff] %vm515_vm6, %v430_v57 }
  0xa3   : > { %v13934_v62 = vld [vmem:[#allocation2 + $0x58] sm:$0xff] }
  0xa4   : > { %v557_v59 = vpop.permute.xlu0 %556  ;;  %v13928_v61 = vld [vmem:[#allocation2 + $0x50] sm:$0xff] }
  0xa5   : > { %v559_v60 = vpop.permute.xlu1 %558  ;;  %649 = vst.msk [vmem:[#allocation2 + $0x60] sm:$0xff] %vm644_vm7, %v557_v59  ;;  %11649 = vmatprep.mubr.msk.f32.mxu0 %vm230_vm3, %v13928_v61  ;;  %11729 = vmatmul.mubr.msk.f32.gmra.mxu1 %vm230_vm3, %v13928_v61 }
  0xa6   : > { %650 = vst.msk [vmem:[#allocation2 + $0x68] sm:$0xff] %vm644_vm7, %v559_v60  ;;  %11650 = vmatmul.mubr.msk.f32.gmra.mxu0 %vm230_vm3, %v13934_v62  ;;  %11731 = vmatprep.mubr.msk.f32.mxu1 %vm230_vm3, %v13934_v62 }
  0xa8   : > { %v432_v63 = vpop.permute.xlu0 %431 }
  0xa9   : > { %v561_v1 = vpop.permute.xlu1 %560  ;;  %522 = vst.msk [vmem:[#allocation2 + $0x79] sm:$0xff] %vm515_vm6, %v432_v63  ;;  %v13956_v6 = vld [vmem:[#allocation2 + $0x70] sm:$0xff] }
  0xaa   : > { %651 = vst.msk [vmem:[#allocation2 + $0x78] sm:$0xff] %vm644_vm7, %v561_v1 }
  0xac   : > { %v434_v2 = vpop.permute.xlu0 %433  ;;  %v13942_v4 = vld [vmem:[#allocation2 + $0x60] sm:$0xff] }
  0xad   : > { %v563_v3 = vpop.permute.xlu1 %562  ;;  %v13944_v5 = vld [vmem:[#allocation2 + $0x68] sm:$0xff]  ;;  %523 = vst.msk [vmem:[#allocation2 + $0x81] sm:$0xff] %vm515_vm6, %v434_v2  ;;  %11652 = vmatprep.mubr.msk.f32.mxu0 %vm230_vm3, %v13942_v4  ;;  %11732 = vmatmul.mubr.msk.f32.gmra.mxu1 %vm230_vm3, %v13942_v4 }
  0xae   : > { %652 = vst.msk [vmem:[#allocation2 + $0x80] sm:$0xff] %vm644_vm7, %v563_v3  ;;  %11653 = vmatmul.mubr.msk.f32.gmra.mxu0 %vm230_vm3, %v13944_v5  ;;  %11734 = vmatprep.mubr.msk.f32.mxu1 %vm230_vm3, %v13944_v5 }
  0xaf   : > { %11655 = vmatprep.mubr.msk.f32.mxu0 %vm230_vm3, %v13956_v6 }
  0xb0   : > { %v436_v7 = vpop.permute.xlu0 %435 }
  0xb1   : > { %v438_v24 = vpop.permute.xlu1 %437  ;;  %524 = vst.msk [vmem:[#allocation2 + $0x91] sm:$0xff] %vm515_vm6, %v436_v7  ;;  %11735 = vmatmul.mubr.msk.f32.gmra.mxu1 %vm230_vm3, %v13956_v6  ;;  %v13964_v36 = vld [vmem:[#allocation2 + $0x78] sm:$0xff] }
  0xb2   : > { %525 = vst.msk [vmem:[#allocation2 + $0x99] sm:$0xff] %vm515_vm6, %v438_v24  ;;  %11656 = vmatmul.mubr.msk.f32.gmra.mxu0 %vm230_vm3, %v13964_v36  ;;  %11737 = vmatprep.mubr.msk.f32.mxu1 %vm230_vm3, %v13964_v36 }
  0xb4   : > { %v565_v41 = vpop.permute.xlu0 %564  ;;  %v13978_v45 = vld [vmem:[#allocation2 + $0x88] sm:$0xff] }
  0xb5   : > { %v567_v43 = vpop.permute.xlu1 %566  ;;  %653 = vst.msk [vmem:[#allocation2 + $0x90] sm:$0xff] %vm644_vm7, %v565_v41  ;;  %v13972_v44 = vld [vmem:[#allocation2 + $0x80] sm:$0xff] }
  0xb6   : > { %654 = vst.msk [vmem:[#allocation2 + $0x98] sm:$0xff] %vm644_vm7, %v567_v43  ;;  %11658 = vmatprep.mubr.msk.f32.mxu0 %vm230_vm3, %v13972_v44  ;;  %11738 = vmatmul.mubr.msk.f32.gmra.mxu1 %vm230_vm3, %v13972_v44 }
  0xb7   : > { %11659 = vmatmul.mubr.msk.f32.gmra.mxu0 %vm230_vm3, %v13978_v45  ;;  %11740 = vmatprep.mubr.msk.f32.mxu1 %vm230_vm3, %v13978_v45 }
  0xb8   : > { %v440_v46 = vpop.permute.xlu0 %439 }
  0xb9   : > { %v569_v47 = vpop.permute.xlu1 %568  ;;  %526 = vst.msk [vmem:[#allocation2 + $0xa9] sm:$0xff] %vm515_vm6, %v440_v46  ;;  %v14000_v53 = vld [vmem:[#allocation2 + $0xa0] sm:$0xff] }
  0xba   : > { %655 = vst.msk [vmem:[#allocation2 + $0xa8] sm:$0xff] %vm644_vm7, %v569_v47 }
  0xbc   : > { %v442_v48 = vpop.permute.xlu0 %441  ;;  %v13986_v50 = vld [vmem:[#allocation2 + $0x90] sm:$0xff] }
  0xbd   : > { %v571_v49 = vpop.permute.xlu1 %570  ;;  %v13988_v52 = vld [vmem:[#allocation2 + $0x98] sm:$0xff]  ;;  %527 = vst.msk [vmem:[#allocation2 + $0xb1] sm:$0xff] %vm515_vm6, %v442_v48  ;;  %11661 = vmatprep.mubr.msk.f32.mxu0 %vm230_vm3, %v13986_v50  ;;  %11741 = vmatmul.mubr.msk.f32.gmra.mxu1 %vm230_vm3, %v13986_v50 }
  0xbe   : > { %656 = vst.msk [vmem:[#allocation2 + $0xb0] sm:$0xff] %vm644_vm7, %v571_v49  ;;  %11662 = vmatmul.mubr.msk.f32.gmra.mxu0 %vm230_vm3, %v13988_v52  ;;  %11743 = vmatprep.mubr.msk.f32.mxu1 %vm230_vm3, %v13988_v52 }
  0xbf   : > { %11664 = vmatprep.mubr.msk.f32.mxu0 %vm230_vm3, %v14000_v53 }
  0xc0   : > { %v444_v56 = vpop.permute.xlu0 %443 }
  0xc1   : > { %v446_v57 = vpop.permute.xlu1 %445  ;;  %528 = vst.msk [vmem:[#allocation2 + $0xc1] sm:$0xff] %vm515_vm6, %v444_v56  ;;  %11744 = vmatmul.mubr.msk.f32.gmra.mxu1 %vm230_vm3, %v14000_v53  ;;  %v14008_v59 = vld [vmem:[#allocation2 + $0xa8] sm:$0xff] }
  0xc2   : > { %529 = vst.msk [vmem:[#allocation2 + $0xc9] sm:$0xff] %vm515_vm6, %v446_v57  ;;  %11665 = vmatmul.mubr.msk.f32.gmra.mxu0 %vm230_vm3, %v14008_v59  ;;  %11746 = vmatprep.mubr.msk.f32.mxu1 %vm230_vm3, %v14008_v59 }
  0xc4   : > { %v573_v60 = vpop.permute.xlu0 %572  ;;  %v14022_v2 = vld [vmem:[#allocation2 + $0xb8] sm:$0xff] }
  0xc5   : > { %v575_v63 = vpop.permute.xlu1 %574  ;;  %657 = vst.msk [vmem:[#allocation2 + $0xc0] sm:$0xff] %vm644_vm7, %v573_v60  ;;  %v14016_v1 = vld [vmem:[#allocation2 + $0xb0] sm:$0xff] }
  0xc6   : > { %658 = vst.msk [vmem:[#allocation2 + $0xc8] sm:$0xff] %vm644_vm7, %v575_v63  ;;  %11667 = vmatprep.mubr.msk.f32.mxu0 %vm230_vm3, %v14016_v1  ;;  %11747 = vmatmul.mubr.msk.f32.gmra.mxu1 %vm230_vm3, %v14016_v1 }
  0xc7   : > { %11668 = vmatmul.mubr.msk.f32.gmra.mxu0 %vm230_vm3, %v14022_v2  ;;  %11749 = vmatprep.mubr.msk.f32.mxu1 %vm230_vm3, %v14022_v2 }
  0xc8   : > { %v448_v3 = vpop.permute.xlu0 %447 }
  0xc9   : > { %v577_v7 = vpop.permute.xlu1 %576  ;;  %530 = vst.msk [vmem:[#allocation2 + $0xd9] sm:$0xff] %vm515_vm6, %v448_v3  ;;  %v14044_v47 = vld [vmem:[#allocation2 + $0xd0] sm:$0xff] }
  0xca   : > { %659 = vst.msk [vmem:[#allocation2 + $0xd8] sm:$0xff] %vm644_vm7, %v577_v7 }
  0xcc   : > { %v450_v24 = vpop.permute.xlu0 %449  ;;  %v14030_v43 = vld [vmem:[#allocation2 + $0xc0] sm:$0xff] }
  0xcd   : > { %v579_v41 = vpop.permute.xlu1 %578  ;;  %v14032_v46 = vld [vmem:[#allocation2 + $0xc8] sm:$0xff]  ;;  %531 = vst.msk [vmem:[#allocation2 + $0xe1] sm:$0xff] %vm515_vm6, %v450_v24  ;;  %11670 = vmatprep.mubr.msk.f32.mxu0 %vm230_vm3, %v14030_v43  ;;  %11750 = vmatmul.mubr.msk.f32.gmra.mxu1 %vm230_vm3, %v14030_v43 }
  0xce   : > { %660 = vst.msk [vmem:[#allocation2 + $0xe0] sm:$0xff] %vm644_vm7, %v579_v41  ;;  %11671 = vmatmul.mubr.msk.f32.gmra.mxu0 %vm230_vm3, %v14032_v46  ;;  %11752 = vmatprep.mubr.msk.f32.mxu1 %vm230_vm3, %v14032_v46 }
  0xcf   : > { %11673 = vmatprep.mubr.msk.f32.mxu0 %vm230_vm3, %v14044_v47 }
  0xd0   : > { %v452_v48 = vpop.permute.xlu0 %451 }
  0xd1   : > { %v454_v49 = vpop.permute.xlu1 %453  ;;  %532 = vst.msk [vmem:[#allocation2 + $0xf1] sm:$0xff] %vm515_vm6, %v452_v48  ;;  %11753 = vmatmul.mubr.msk.f32.gmra.mxu1 %vm230_vm3, %v14044_v47  ;;  %v14052_v56 = vld [vmem:[#allocation2 + $0xd8] sm:$0xff] }
  0xd2   : > { %533 = vst.msk [vmem:[#allocation2 + $0xf9] sm:$0xff] %vm515_vm6, %v454_v49  ;;  %11674 = vmatmul.mubr.msk.f32.gmra.mxu0 %vm230_vm3, %v14052_v56  ;;  %11755 = vmatprep.mubr.msk.f32.mxu1 %vm230_vm3, %v14052_v56 }
  0xd4   : > { %v581_v57 = vpop.permute.xlu0 %580  ;;  %v14066_v3 = vld [vmem:[#allocation2 + $0xe8] sm:$0xff] }
  0xd5   : > { %v583_v60 = vpop.permute.xlu1 %582  ;;  %661 = vst.msk [vmem:[#allocation2 + $0xf0] sm:$0xff] %vm644_vm7, %v581_v57  ;;  %v14060_v63 = vld [vmem:[#allocation2 + $0xe0] sm:$0xff] }
  0xd6   : > { %662 = vst.msk [vmem:[#allocation2 + $0xf8] sm:$0xff] %vm644_vm7, %v583_v60  ;;  %11676 = vmatprep.mubr.msk.f32.mxu0 %vm230_vm3, %v14060_v63  ;;  %11756 = vmatmul.mubr.msk.f32.gmra.mxu1 %vm230_vm3, %v14060_v63 }
  0xd7   : > { %11677 = vmatmul.mubr.msk.f32.gmra.mxu0 %vm230_vm3, %v14066_v3  ;;  %11758 = vmatprep.mubr.msk.f32.mxu1 %vm230_vm3, %v14066_v3 }
  0xd8   : > { %v456_v7 = vpop.permute.xlu0 %455 }
  0xd9   : > { %v585_v24 = vpop.permute.xlu1 %584  ;;  %534 = vst.msk [vmem:[#allocation2 + $0x109] sm:$0xff] %vm515_vm6, %v456_v7  ;;  %v11636_v60 = vpop.f32.mrf.mxu0  ;;  %v14088_v7 = vld [vmem:[#allocation2 + $0x100] sm:$0xff] }
  0xda   : > { %663 = vst.msk [vmem:[#allocation2 + $0x108] sm:$0xff] %vm644_vm7, %v585_v24 }
  0xdb   : > { %1235 = vst.msk [vmem:[#allocation5 + $0x8] sm:$0xff] %vm238_vm8, %v11636_v60  ;;  %v965_v24 = vpop.f32.mrf.mxu0 }
  0xdc   : > { %v458_v41 = vpop.permute.xlu0 %457  ;;  %v14074_v49 = vld [vmem:[#allocation2 + $0xf0] sm:$0xff]  ;;  %1234 = vst.msk [vmem:[#allocation5] sm:$0xff] %vm238_vm8, %v965_v24 }
  0xdd   : > { %v587_v48 = vpop.permute.xlu1 %586  ;;  %v14076_v57 = vld [vmem:[#allocation2 + $0xf8] sm:$0xff]  ;;  %535 = vst.msk [vmem:[#allocation2 + $0x111] sm:$0xff] %vm515_vm6, %v458_v41  ;;  %11679 = vmatprep.mubr.msk.f32.mxu0 %vm230_vm3, %v14074_v49  ;;  %11759 = vmatmul.mubr.msk.f32.gmra.mxu1 %vm230_vm3, %v14074_v49 }
  0xde   : > { %664 = vst.msk [vmem:[#allocation2 + $0x110] sm:$0xff] %vm644_vm7, %v587_v48  ;;  %11680 = vmatmul.mubr.msk.f32.gmra.mxu0 %vm230_vm3, %v14076_v57  ;;  %11761 = vmatprep.mubr.msk.f32.mxu1 %vm230_vm3, %v14076_v57 }
  0xdf   : > { %11682 = vmatprep.mubr.msk.f32.mxu0 %vm230_vm3, %v14088_v7 }
  0xe0   : > { %v460_v41 = vpop.permute.xlu0 %459 }
  0xe1   : > { %v462_v0 = vpop.permute.xlu1 %461  ;;  %536 = vst.msk [vmem:[#allocation2 + $0x121] sm:$0xff] %vm515_vm6, %v460_v41  ;;  %11762 = vmatmul.mubr.msk.f32.gmra.mxu1 %vm230_vm3, %v14088_v7  ;;  %v14098_v48 = vld [vmem:[#allocation2 + $0x108] sm:$0xff] }
  0xe2   : > { %537 = vst.msk [vmem:[#allocation2 + $0x129] sm:$0xff] %vm515_vm6, %v462_v0  ;;  %11683 = vmatmul.mubr.msk.f32.gmra.mxu0 %vm230_vm3, %v14098_v48  ;;  %11764 = vmatprep.mubr.msk.f32.mxu1 %vm230_vm3, %v14098_v48  ;;  %v1846_v41 = vld [vmem:[#allocation5 + $0x8] sm:$0xff] }
  0xe4   : > { %v589_v42 = vpop.permute.xlu0 %588  ;;  %v14113_v39 = vld [vmem:[#allocation2 + $0x118] sm:$0xff] }
  0xe5   : > { %v591_v40 = vpop.permute.xlu1 %590  ;;  %665 = vst.msk [vmem:[#allocation2 + $0x120] sm:$0xff] %vm644_vm7, %v589_v42  ;;  %v14107_v0 = vld [vmem:[#allocation2 + $0x110] sm:$0xff] }
  0xe6   : > { %666 = vst.msk [vmem:[#allocation2 + $0x128] sm:$0xff] %vm644_vm7, %v591_v40  ;;  %11685 = vmatprep.mubr.msk.f32.mxu0 %vm230_vm3, %v14107_v0  ;;  %11765 = vmatmul.mubr.msk.f32.gmra.mxu1 %vm230_vm3, %v14107_v0  ;;  %v1845_v42 = vld [vmem:[#allocation5] sm:$0xff] }
  0xe7   : > { %11686 = vmatmul.mubr.msk.f32.gmra.mxu0 %vm230_vm3, %v14113_v39  ;;  %11767 = vmatprep.mubr.msk.f32.mxu1 %vm230_vm3, %v14113_v39 }
  0xe9   : > { %v593_v23 = vpop.permute.xlu1 %592 }
  0xec   : > { %v11639_v60 = vpop.f32.mrf.mxu0  ;;  %v14124_v34 = vld [vmem:[#allocation2 + $0x120] sm:$0xff] }
  0xed   : > { %1237 = vst.msk [vmem:[#allocation5 + $0x18] sm:$0xff] %vm238_vm8, %v11639_v60  ;;  %v11721_v40 = vpop.f32.mrf.mxu1  ;;  %v464_v60 = vpop.permute.xlu0 %463  ;;  %v14126_v33 = vld [vmem:[#allocation2 + $0x128] sm:$0xff]  ;;  %11688 = vmatprep.mubr.msk.f32.mxu0 %vm230_vm3, %v14124_v34  ;;  %11768 = vmatmul.mubr.msk.f32.gmra.mxu1 %vm230_vm3, %v14124_v34 }
  0xee   : > { %v975_v24 = vpop.f32.mrf.mxu0  ;;  %v1900_v38 = vadd.f32 %v11721_v40, %v1846_v41  ;;  %538 = vst.msk [vmem:[#allocation2 + $0x139] sm:$0xff] %vm515_vm6, %v464_v60  ;;  %v595_v20 = vpop.permute.xlu1 %594  ;;  %11689 = vmatmul.mubr.msk.f32.gmra.mxu0 %vm230_vm3, %v14126_v33  ;;  %11770 = vmatprep.mubr.msk.f32.mxu1 %vm230_vm3, %v14126_v33 }
  0xef   : > { %1236 = vst.msk [vmem:[#allocation5 + $0x10] sm:$0xff] %vm238_vm8, %v975_v24  ;;  %v1576_v37 = vpop.f32.mrf.mxu1 }
  0xf0   : > { %v11642_v22 = vpop.f32.mrf.mxu0  ;;  %667 = vst.msk [vmem:[#allocation2 + $0x138] sm:$0xff] %vm644_vm7, %v593_v23  ;;  %v1899_v24 = vadd.f32 %v1845_v42, %v1576_v37 }
  0xf1   : > { %1954 = vst.msk [vmem:[#allocation5 + $0x8] sm:$0xff] %vm238_vm8, %v1900_v38  ;;  %1239 = vst.msk [vmem:[#allocation5 + $0x28] sm:$0xff] %vm238_vm8, %v11642_v22  ;;  %v466_v21 = vpop.permute.xlu0 %465  ;;  %v14140_v22 = vld [vmem:[#allocation2 + $0x130] sm:$0xff] }
  0xf2   : > { %v985_v35 = vpop.f32.mrf.mxu0  ;;  %1953 = vst.msk [vmem:[#allocation5] sm:$0xff] %vm238_vm8, %v1899_v24  ;;  %11691 = vmatprep.mubr.msk.f32.mxu0 %vm230_vm3, %v14140_v22  ;;  %v470_v23 = vpop.permute.xlu1 %469  ;;  %11771 = vmatmul.mubr.msk.f32.gmra.mxu1 %vm230_vm3, %v14140_v22 }
  0xf3   : > { %1238 = vst.msk [vmem:[#allocation5 + $0x20] sm:$0xff] %vm238_vm8, %v985_v35 }
  0xf4   : > { %539 = vst.msk [vmem:[#allocation2 + $0x141] sm:$0xff] %vm515_vm6, %v466_v21  ;;  %541 = vst.msk [vmem:[#allocation2 + $0x159] sm:$0xff] %vm515_vm6, %v470_v23 }
  0xf5   : > { %668 = vst.msk [vmem:[#allocation2 + $0x140] sm:$0xff] %vm644_vm7, %v595_v20  ;;  %v468_v21 = vpop.permute.xlu0 %467 }
  0xf6   : > { %540 = vst.msk [vmem:[#allocation2 + $0x151] sm:$0xff] %vm515_vm6, %v468_v21  ;;  %v599_v37 = vpop.permute.xlu1 %598 }
  0xf7   : > { %v14148_v20 = vld [vmem:[#allocation2 + $0x138] sm:$0xff]  ;;  %670 = vst.msk [vmem:[#allocation2 + $0x158] sm:$0xff] %vm644_vm7, %v599_v37 }
  0xf8   : > { %11692 = vmatmul.mubr.msk.f32.gmra.mxu0 %vm230_vm3, %v14148_v20  ;;  %11773 = vmatprep.mubr.msk.f32.mxu1 %vm230_vm3, %v14148_v20 }
  0xf9   : > { %v597_v35 = vpop.permute.xlu0 %596 }
  0xfa   : > { %669 = vst.msk [vmem:[#allocation2 + $0x150] sm:$0xff] %vm644_vm7, %v597_v35  ;;  %v601_v42 = vpop.permute.xlu1 %600 }
  0xfb   : > { %v14162_v41 = vld [vmem:[#allocation2 + $0x148] sm:$0xff]  ;;  %v14184_v35 = vld [vmem:[#allocation2 + $0x160] sm:$0xff] }
  0xfc   : > { %v14156_v38 = vld [vmem:[#allocation2 + $0x140] sm:$0xff] }
  0xfd   : > { %11694 = vmatprep.mubr.msk.f32.mxu0 %vm230_vm3, %v14156_v38  ;;  %11774 = vmatmul.mubr.msk.f32.gmra.mxu1 %vm230_vm3, %v14156_v38  ;;  %v472_v40 = vpop.permute.xlu0 %471 }
  0xfe   : > { %11695 = vmatmul.mubr.msk.f32.gmra.mxu0 %vm230_vm3, %v14162_v41  ;;  %11776 = vmatprep.mubr.msk.f32.mxu1 %vm230_vm3, %v14162_v41  ;;  %542 = vst.msk [vmem:[#allocation2 + $0x169] sm:$0xff] %vm515_vm6, %v472_v40  ;;  %v603_v24 = vpop.permute.xlu1 %602  ;;  %v14172_v23 = vld [vmem:[#allocation2 + $0x158] sm:$0xff] }
  0xff   : > { %671 = vst.msk [vmem:[#allocation2 + $0x168] sm:$0xff] %vm644_vm7, %v601_v42 }
 0x101   : > { %v474_v60 = vpop.permute.xlu0 %473  ;;  %v14170_v21 = vld [vmem:[#allocation2 + $0x150] sm:$0xff] }
 0x102   : > { %543 = vst.msk [vmem:[#allocation2 + $0x171] sm:$0xff] %vm515_vm6, %v474_v60  ;;  %11697 = vmatprep.mubr.msk.f32.mxu0 %vm230_vm3, %v14170_v21  ;;  %11777 = vmatmul.mubr.msk.f32.gmra.mxu1 %vm230_vm3, %v14170_v21  ;;  %v478_v40 = vpop.permute.xlu1 %477 }
 0x103   : > { %672 = vst.msk [vmem:[#allocation2 + $0x170] sm:$0xff] %vm644_vm7, %v603_v24  ;;  %11698 = vmatmul.mubr.msk.f32.gmra.mxu0 %vm230_vm3, %v14172_v23  ;;  %11779 = vmatprep.mubr.msk.f32.mxu1 %vm230_vm3, %v14172_v23 }
 0x104   : > { %11700 = vmatprep.mubr.msk.f32.mxu0 %vm230_vm3, %v14184_v35  ;;  %545 = vst.msk [vmem:[#allocation2 + $0x189] sm:$0xff] %vm515_vm6, %v478_v40 }
 0x105   : > { %v476_v37 = vpop.permute.xlu0 %475 }
 0x106   : > { %544 = vst.msk [vmem:[#allocation2 + $0x181] sm:$0xff] %vm515_vm6, %v476_v37  ;;  %11780 = vmatmul.mubr.msk.f32.gmra.mxu1 %vm230_vm3, %v14184_v35  ;;  %v14192_v42 = vld [vmem:[#allocation2 + $0x168] sm:$0xff]  ;;  %v607_v24 = vpop.permute.xlu1 %606 }
 0x107   : > { %11701 = vmatmul.mubr.msk.f32.gmra.mxu0 %vm230_vm3, %v14192_v42  ;;  %11782 = vmatprep.mubr.msk.f32.mxu1 %vm230_vm3, %v14192_v42  ;;  %674 = vst.msk [vmem:[#allocation2 + $0x188] sm:$0xff] %vm644_vm7, %v607_v24 }
 0x109   : > { %v605_v60 = vpop.permute.xlu0 %604  ;;  %v14206_v40 = vld [vmem:[#allocation2 + $0x178] sm:$0xff] }
 0x10a   : > { %673 = vst.msk [vmem:[#allocation2 + $0x180] sm:$0xff] %vm644_vm7, %v605_v60  ;;  %v14200_v37 = vld [vmem:[#allocation2 + $0x170] sm:$0xff]  ;;  %v609_v60 = vpop.permute.xlu1 %608 }
 0x10b   : > { %11703 = vmatprep.mubr.msk.f32.mxu0 %vm230_vm3, %v14200_v37  ;;  %11783 = vmatmul.mubr.msk.f32.gmra.mxu1 %vm230_vm3, %v14200_v37 }
 0x10c   : > { %11704 = vmatmul.mubr.msk.f32.gmra.mxu0 %vm230_vm3, %v14206_v40  ;;  %11785 = vmatprep.mubr.msk.f32.mxu1 %vm230_vm3, %v14206_v40 }
 0x10d   : > { %v480_v19 = vpop.permute.xlu0 %479 }
 0x10e   : > { %546 = vst.msk [vmem:[#allocation2 + $0x199] sm:$0xff] %vm515_vm6, %v480_v19  ;;  %v14216_v18 = vld [vmem:[#allocation2 + $0x188] sm:$0xff]  ;;  %v611_v31 = vpop.permute.xlu1 %610  ;;  %v14228_v19 = vld [vmem:[#allocation2 + $0x190] sm:$0xff] }
 0x10f   : > { %675 = vst.msk [vmem:[#allocation2 + $0x198] sm:$0xff] %vm644_vm7, %v609_v60 }
 0x111   : > { %v482_v24 = vpop.permute.xlu0 %481  ;;  %v14214_v32 = vld [vmem:[#allocation2 + $0x180] sm:$0xff] }
 0x112   : > { %547 = vst.msk [vmem:[#allocation2 + $0x1a1] sm:$0xff] %vm515_vm6, %v482_v24  ;;  %11706 = vmatprep.mubr.msk.f32.mxu0 %vm230_vm3, %v14214_v32  ;;  %11786 = vmatmul.mubr.msk.f32.gmra.mxu1 %vm230_vm3, %v14214_v32 }
 0x113   : > { %676 = vst.msk [vmem:[#allocation2 + $0x1a0] sm:$0xff] %vm644_vm7, %v611_v31  ;;  %11707 = vmatmul.mubr.msk.f32.gmra.mxu0 %vm230_vm3, %v14216_v18  ;;  %11788 = vmatprep.mubr.msk.f32.mxu1 %vm230_vm3, %v14216_v18 }
 0x114   : > { %11709 = vmatprep.mubr.msk.f32.mxu0 %vm230_vm3, %v14228_v19 }
 0x116   : > { %11789 = vmatmul.mubr.msk.f32.gmra.mxu1 %vm230_vm3, %v14228_v19  ;;  %v14234_v60 = vld [vmem:[#allocation2 + $0x198] sm:$0xff] }
 0x117   : > { %11710 = vmatmul.mubr.msk.f32.gmra.mxu0 %vm230_vm3, %v14234_v60  ;;  %11791 = vmatprep.mubr.msk.f32.mxu1 %vm230_vm3, %v14234_v60 }
 0x119   : > { %v14246_v24 = vld [vmem:[#allocation2 + $0x1a8] sm:$0xff] }
 0x11a   : > { %v14240_v31 = vld [vmem:[#allocation2 + $0x1a0] sm:$0xff] }
 0x11b   : > { %11712 = vmatprep.mubr.msk.f32.mxu0 %vm230_vm3, %v14240_v31  ;;  %11792 = vmatmul.mubr.msk.f32.gmra.mxu1 %vm230_vm3, %v14240_v31 }
 0x11c   : > { %11713 = vmatmul.mubr.msk.f32.gmra.mxu0 %vm230_vm3, %v14246_v24  ;;  %11794 = vmatprep.mubr.msk.f32.mxu1 %vm230_vm3, %v14246_v24 }
 0x11d   : > { %11804 = vmatprep.mubr.msk.f32.mxu0 %vm230_vm3, %v13893_v51  ;;  %v1848_v51 = vld [vmem:[#allocation5 + $0x18] sm:$0xff] }
 0x11f   : > { %11795 = vmatmul.mubr.msk.f32.gmra.mxu1 %vm230_vm3, %v14252_v30 }
 0x120   : > { %11805 = vmatmul.mubr.msk.f32.vlgmr.msra.gmra.mxu0 %vm230_vm3, %v13905_v54  ;;  %11797 = vmatprep.mubr.msk.f32.mxu1 %vm230_vm3, %v14256_v16 }
 0x121   : > { %11807 = vmatprep.mubr.msk.f32.mxu0 %vm230_vm3, %v13912_v55  ;;  %v1847_v55 = vld [vmem:[#allocation5 + $0x10] sm:$0xff] }
 0x123   : > { %11798 = vmatmul.mubr.msk.f32.gmra.mxu1 %vm230_vm3, %v14264_v29 }
 0x124   : > { %11808 = vmatmul.mubr.msk.f32.gmra.mxu0 %vm230_vm3, %v13920_v58 }
 0x125   : > { %11810 = vmatprep.mubr.msk.f32.mxu0 %vm230_vm3, %v13928_v61  ;;  %v1850_v61 = vld [vmem:[#allocation5 + $0x28] sm:$0xff] }
 0x128   : > { %11811 = vmatmul.mubr.msk.f32.gmra.mxu0 %vm230_vm3, %v13934_v62 }
 0x129   : > { %11813 = vmatprep.mubr.msk.f32.mxu0 %vm230_vm3, %v13942_v4  ;;  %v1849_v4 = vld [vmem:[#allocation5 + $0x20] sm:$0xff] }
 0x12c   : > { %11814 = vmatmul.mubr.msk.f32.gmra.mxu0 %vm230_vm3, %v13944_v5 }
 0x12d   : > { %11816 = vmatprep.mubr.msk.f32.mxu0 %vm230_vm3, %v13956_v6 }
 0x130   : > { %11817 = vmatmul.mubr.msk.f32.gmra.mxu0 %vm230_vm3, %v13964_v36 }
 0x131   : > { %11819 = vmatprep.mubr.msk.f32.mxu0 %vm230_vm3, %v13972_v44 }
 0x134   : > { %11820 = vmatmul.mubr.msk.f32.gmra.mxu0 %vm230_vm3, %v13978_v45 }
 0x135   : > { %11822 = vmatprep.mubr.msk.f32.mxu0 %vm230_vm3, %v13986_v50 }
 0x138   : > { %11823 = vmatmul.mubr.msk.f32.gmra.mxu0 %vm230_vm3, %v13988_v52 }
 0x139   : > { %11825 = vmatprep.mubr.msk.f32.mxu0 %vm230_vm3, %v14000_v53 }
 0x13c   : > { %11826 = vmatmul.mubr.msk.f32.gmra.mxu0 %vm230_vm3, %v14008_v59 }
 0x13d   : > { %11828 = vmatprep.mubr.msk.f32.mxu0 %vm230_vm3, %v14016_v1 }
 0x140   : > { %11829 = vmatmul.mubr.msk.f32.gmra.mxu0 %vm230_vm3, %v14022_v2 }
 0x141   : > { %11831 = vmatprep.mubr.msk.f32.mxu0 %vm230_vm3, %v14030_v43 }
 0x144   : > { %11832 = vmatmul.mubr.msk.f32.gmra.mxu0 %vm230_vm3, %v14032_v46 }
 0x145   : > { %11834 = vmatprep.mubr.msk.f32.mxu0 %vm230_vm3, %v14044_v47 }
 0x148   : > { %11835 = vmatmul.mubr.msk.f32.gmra.mxu0 %vm230_vm3, %v14052_v56 }
 0x149   : > { %11837 = vmatprep.mubr.msk.f32.mxu0 %vm230_vm3, %v14060_v63 }
 0x14c   : > { %11838 = vmatmul.mubr.msk.f32.gmra.mxu0 %vm230_vm3, %v14066_v3 }
 0x14d   : > { %11840 = vmatprep.mubr.msk.f32.mxu0 %vm230_vm3, %v14074_v49 }
 0x150   : > { %11841 = vmatmul.mubr.msk.f32.gmra.mxu0 %vm230_vm3, %v14076_v57 }
 0x151   : > { %11843 = vmatprep.mubr.msk.f32.mxu0 %vm230_vm3, %v14088_v7 }
 0x154   : > { %11844 = vmatmul.mubr.msk.f32.gmra.mxu0 %vm230_vm3, %v14098_v48 }
 0x155   : > { %11846 = vmatprep.mubr.msk.f32.mxu0 %vm230_vm3, %v14107_v0 }
 0x158   : > { %11847 = vmatmul.mubr.msk.f32.gmra.mxu0 %vm230_vm3, %v14113_v39 }
 0x159   : > { %11849 = vmatprep.mubr.msk.f32.mxu0 %vm230_vm3, %v14124_v34  ;;  %v11724_v54 = vpop.f32.mrf.mxu1 }
 0x15a   : > { %v1902_v58 = vadd.f32 %v11724_v54, %v1848_v51 }
 0x15b   : > { %v1586_v39 = vpop.f32.mrf.mxu1 }
 0x15c   : > { %11850 = vmatmul.mubr.msk.f32.gmra.mxu0 %vm230_vm3, %v14126_v33  ;;  %1956 = vst.msk [vmem:[#allocation5 + $0x18] sm:$0xff] %vm238_vm8, %v1902_v58  ;;  %v1901_v34 = vadd.f32 %v1847_v55, %v1586_v39  ;;  %v2059_v58 = vld [vmem:[#allocation2 + $0x1d0] sm:$0xff] }
 0x15d   : > { %11852 = vmatprep.mubr.msk.f32.mxu0 %vm230_vm3, %v14140_v22  ;;  %v11645_v62 = vpop.f32.mrf.mxu0 }
 0x15e   : > { %1241 = vst.msk [vmem:[#allocation5 + $0x38] sm:$0xff] %vm238_vm8, %v11645_v62  ;;  %v11727_v33 = vpop.f32.mrf.mxu1  ;;  %1955 = vst.msk [vmem:[#allocation5 + $0x10] sm:$0xff] %vm238_vm8, %v1901_v34 }
 0x15f   : > { %v1904_v5 = vadd.f32 %v11727_v33, %v1850_v61  ;;  %v995_v6 = vpop.f32.mrf.mxu0 }
 0x160   : > { %11853 = vmatmul.mubr.msk.f32.gmra.mxu0 %vm230_vm3, %v14148_v20  ;;  %1240 = vst.msk [vmem:[#allocation5 + $0x30] sm:$0xff] %vm238_vm8, %v995_v6  ;;  %v1596_v36 = vpop.f32.mrf.mxu1 }
 0x161   : > { %11855 = vmatprep.mubr.msk.f32.mxu0 %vm230_vm3, %v14156_v38  ;;  %1958 = vst.msk [vmem:[#allocation5 + $0x28] sm:$0xff] %vm238_vm8, %v1904_v5  ;;  %v1903_v44 = vadd.f32 %v1849_v4, %v1596_v36  ;;  %v11648_v45 = vpop.f32.mrf.mxu0 }
 0x162   : > { %1243 = vst.msk [vmem:[#allocation5 + $0x48] sm:$0xff] %vm238_vm8, %v11648_v45 }
 0x163   : > { %1957 = vst.msk [vmem:[#allocation5 + $0x20] sm:$0xff] %vm238_vm8, %v1903_v44  ;;  %v1005_v50 = vpop.f32.mrf.mxu0 }
 0x164   : > { %11856 = vmatmul.mubr.msk.f32.gmra.mxu0 %vm230_vm3, %v14162_v41  ;;  %1242 = vst.msk [vmem:[#allocation5 + $0x40] sm:$0xff] %vm238_vm8, %v1005_v50 }
 0x165   : > { %11858 = vmatprep.mubr.msk.f32.mxu0 %vm230_vm3, %v14170_v21  ;;  %v11730_v52 = vpop.f32.mrf.mxu1  ;;  %v1852_v53 = vld [vmem:[#allocation5 + $0x38] sm:$0xff] }
 0x166   : > { %v1906_v59 = vadd.f32 %v11730_v52, %v1852_v53  ;;  %v11651_v1 = vpop.f32.mrf.mxu0 }
 0x167   : > { %1245 = vst.msk [vmem:[#allocation5 + $0x58] sm:$0xff] %vm238_vm8, %v11651_v1  ;;  %v1606_v2 = vpop.f32.mrf.mxu1  ;;  %v1851_v43 = vld [vmem:[#allocation5 + $0x30] sm:$0xff] }
 0x168   : > { %11859 = vmatmul.mubr.msk.f32.gmra.mxu0 %vm230_vm3, %v14172_v23  ;;  %1960 = vst.msk [vmem:[#allocation5 + $0x38] sm:$0xff] %vm238_vm8, %v1906_v59  ;;  %v1905_v46 = vadd.f32 %v1851_v43, %v1606_v2  ;;  %v1015_v47 = vpop.f32.mrf.mxu0 }
 0x169   : > { %11861 = vmatprep.mubr.msk.f32.mxu0 %vm230_vm3, %v14184_v35  ;;  %1244 = vst.msk [vmem:[#allocation5 + $0x50] sm:$0xff] %vm238_vm8, %v1015_v47  ;;  %v1854_v63 = vld [vmem:[#allocation5 + $0x48] sm:$0xff] }
 0x16a   : > { %1959 = vst.msk [vmem:[#allocation5 + $0x30] sm:$0xff] %vm238_vm8, %v1905_v46 }
 0x16b   : > { %v1853_v7 = vld [vmem:[#allocation5 + $0x40] sm:$0xff] }
 0x16c   : > { %11862 = vmatmul.mubr.msk.f32.gmra.mxu0 %vm230_vm3, %v14192_v42 }
 0x16d   : > { %11864 = vmatprep.mubr.msk.f32.mxu0 %vm230_vm3, %v14200_v37  ;;  %v11733_v56 = vpop.f32.mrf.mxu1 }
 0x16e   : > { %v1908_v3 = vadd.f32 %v11733_v56, %v1854_v63  ;;  %v11654_v49 = vpop.f32.mrf.mxu0  ;;  %v1856_v22 = vld [vmem:[#allocation5 + $0x58] sm:$0xff] }
 0x16f   : > { %1247 = vst.msk [vmem:[#allocation5 + $0x68] sm:$0xff] %vm238_vm8, %v11654_v49  ;;  %v1616_v57 = vpop.f32.mrf.mxu1 }
 0x170   : > { %11865 = vmatmul.mubr.msk.f32.gmra.mxu0 %vm230_vm3, %v14206_v40  ;;  %1962 = vst.msk [vmem:[#allocation5 + $0x48] sm:$0xff] %vm238_vm8, %v1908_v3  ;;  %v1907_v48 = vadd.f32 %v1853_v7, %v1616_v57  ;;  %v1025_v0 = vpop.f32.mrf.mxu0  ;;  %v1855_v21 = vld [vmem:[#allocation5 + $0x50] sm:$0xff] }
 0x171   : > { %11867 = vmatprep.mubr.msk.f32.mxu0 %vm230_vm3, %v14214_v32  ;;  %1246 = vst.msk [vmem:[#allocation5 + $0x60] sm:$0xff] %vm238_vm8, %v1025_v0  ;;  %v11736_v32 = vpop.f32.mrf.mxu1 }
 0x172   : > { %1961 = vst.msk [vmem:[#allocation5 + $0x40] sm:$0xff] %vm238_vm8, %v1907_v48  ;;  %v1910_v20 = vadd.f32 %v11736_v32, %v1856_v22  ;;  %v11657_v38 = vpop.f32.mrf.mxu0 }
 0x173   : > { %1249 = vst.msk [vmem:[#allocation5 + $0x78] sm:$0xff] %vm238_vm8, %v11657_v38  ;;  %v1626_v41 = vpop.f32.mrf.mxu1 }
 0x174   : > { %11868 = vmatmul.mubr.msk.f32.gmra.mxu0 %vm230_vm3, %v14216_v18  ;;  %1964 = vst.msk [vmem:[#allocation5 + $0x58] sm:$0xff] %vm238_vm8, %v1910_v20  ;;  %v1909_v18 = vadd.f32 %v1855_v21, %v1626_v41  ;;  %v1035_v23 = vpop.f32.mrf.mxu0 }
 0x175   : > { %11870 = vmatprep.mubr.msk.f32.mxu0 %vm230_vm3, %v14228_v19  ;;  %1248 = vst.msk [vmem:[#allocation5 + $0x70] sm:$0xff] %vm238_vm8, %v1035_v23 }
 0x176   : > { %1963 = vst.msk [vmem:[#allocation5 + $0x50] sm:$0xff] %vm238_vm8, %v1909_v18  ;;  %v11739_v35 = vpop.f32.mrf.mxu1  ;;  %v1858_v42 = vld [vmem:[#allocation5 + $0x68] sm:$0xff] }
 0x177   : > { %v1912_v37 = vadd.f32 %v11739_v35, %v1858_v42  ;;  %v11660_v40 = vpop.f32.mrf.mxu0 }
 0x178   : > { %11871 = vmatmul.mubr.msk.f32.gmra.mxu0 %vm230_vm3, %v14234_v60  ;;  %1251 = vst.msk [vmem:[#allocation5 + $0x88] sm:$0xff] %vm238_vm8, %v11660_v40  ;;  %v1636_v19 = vpop.f32.mrf.mxu1  ;;  %v1857_v60 = vld [vmem:[#allocation5 + $0x60] sm:$0xff] }
 0x179   : > { %11873 = vmatprep.mubr.msk.f32.mxu0 %vm230_vm3, %v14240_v31  ;;  %1966 = vst.msk [vmem:[#allocation5 + $0x68] sm:$0xff] %vm238_vm8, %v1912_v37  ;;  %v1911_v31 = vadd.f32 %v1857_v60, %v1636_v19  ;;  %v1045_v51 = vpop.f32.mrf.mxu0 }
 0x17a   : > { %1250 = vst.msk [vmem:[#allocation5 + $0x80] sm:$0xff] %vm238_vm8, %v1045_v51  ;;  %v1860_v55 = vld [vmem:[#allocation5 + $0x78] sm:$0xff] }
 0x17b   : > { %1965 = vst.msk [vmem:[#allocation5 + $0x60] sm:$0xff] %vm238_vm8, %v1911_v31 }
 0x17c   : > { %11874 = vmatmul.mubr.msk.f32.gmra.mxu0 %vm230_vm3, %v14246_v24  ;;  %v2058_v24 = vld [vmem:[#allocation2 + $0x1c8] sm:$0xff]  ;;  %v1859_v34 = vld [vmem:[#allocation5 + $0x70] sm:$0xff] }
 0x17d   : > { %11876 = vmatprep.mubr.msk.f32.mxu0 %vm230_vm3, %v14252_v30  ;;  %v11742_v54 = vpop.f32.mrf.mxu1 }
 0x17e   : > { %v1914_v39 = vadd.f32 %v11742_v54, %v1860_v55  ;;  %v11663_v30 = vpop.f32.mrf.mxu0 }
 0x17f   : > { %1253 = vst.msk [vmem:[#allocation5 + $0x98] sm:$0xff] %vm238_vm8, %v11663_v30  ;;  %v1646_v61 = vpop.f32.mrf.mxu1  ;;  %v1862_v4 = vld [vmem:[#allocation5 + $0x88] sm:$0xff] }
 0x180   : > { %11877 = vmatmul.mubr.msk.f32.gmra.mxu0 %vm230_vm3, %v14256_v16  ;;  %1968 = vst.msk [vmem:[#allocation5 + $0x78] sm:$0xff] %vm238_vm8, %v1914_v39  ;;  %v1913_v62 = vadd.f32 %v1859_v34, %v1646_v61  ;;  %v1055_v33 = vpop.f32.mrf.mxu0  ;;  %v2060_v16 = vld [vmem:[#allocation2 + $0x1d8] sm:$0xff] }
 0x181   : > { %11879 = vmatprep.mubr.msk.f32.mxu0 %vm230_vm3, %v14264_v29  ;;  %1252 = vst.msk [vmem:[#allocation5 + $0x90] sm:$0xff] %vm238_vm8, %v1055_v33  ;;  %v11745_v29 = vpop.f32.mrf.mxu1  ;;  %v1861_v44 = vld [vmem:[#allocation5 + $0x80] sm:$0xff] }
 0x182   : > { %1967 = vst.msk [vmem:[#allocation5 + $0x70] sm:$0xff] %vm238_vm8, %v1913_v62  ;;  %v1916_v5 = vadd.f32 %v11745_v29, %v1862_v4  ;;  %v11666_v6 = vpop.f32.mrf.mxu0 }
 0x183   : > { %1255 = vst.msk [vmem:[#allocation5 + $0xa8] sm:$0xff] %vm238_vm8, %v11666_v6  ;;  %v1656_v36 = vpop.f32.mrf.mxu1 }
 0x184   : > { %11880 = vmatmul.mubr.msk.f32.gmra.mxu0 %vm230_vm3, %v2058_v24  ;;  %1970 = vst.msk [vmem:[#allocation5 + $0x88] sm:$0xff] %vm238_vm8, %v1916_v5  ;;  %v1915_v45 = vadd.f32 %v1861_v44, %v1656_v36  ;;  %v1065_v50 = vpop.f32.mrf.mxu0 }
 0x185   : > { %11882 = vmatprep.mubr.msk.f32.mxu0 %vm230_vm3, %v2059_v58  ;;  %1254 = vst.msk [vmem:[#allocation5 + $0xa0] sm:$0xff] %vm238_vm8, %v1065_v50 }
 0x186   : > { %1969 = vst.msk [vmem:[#allocation5 + $0x80] sm:$0xff] %vm238_vm8, %v1915_v45  ;;  %v11748_v52 = vpop.f32.mrf.mxu1  ;;  %v1864_v53 = vld [vmem:[#allocation5 + $0x98] sm:$0xff] }
 0x187   : > { %v1918_v59 = vadd.f32 %v11748_v52, %v1864_v53  ;;  %v11669_v1 = vpop.f32.mrf.mxu0 }
 0x188   : > { %11883 = vmatmul.mubr.msk.f32.gmra.mxu0 %vm230_vm3, %v2060_v16  ;;  %1257 = vst.msk [vmem:[#allocation5 + $0xb8] sm:$0xff] %vm238_vm8, %v11669_v1  ;;  %v1666_v2 = vpop.f32.mrf.mxu1  ;;  %v1863_v43 = vld [vmem:[#allocation5 + $0x90] sm:$0xff] }
 0x189   : > { %1972 = vst.msk [vmem:[#allocation5 + $0x98] sm:$0xff] %vm238_vm8, %v1918_v59  ;;  %v1917_v46 = vadd.f32 %v1863_v43, %v1666_v2  ;;  %v1075_v47 = vpop.f32.mrf.mxu0 }
 0x18a   : > { %1256 = vst.msk [vmem:[#allocation5 + $0xb0] sm:$0xff] %vm238_vm8, %v1075_v47  ;;  %v1866_v63 = vld [vmem:[#allocation5 + $0xa8] sm:$0xff] }
 0x18b   : > { %1971 = vst.msk [vmem:[#allocation5 + $0x90] sm:$0xff] %vm238_vm8, %v1917_v46 }
 0x18c   : > { %v1865_v7 = vld [vmem:[#allocation5 + $0xa0] sm:$0xff] }
 0x18d   : > { %v11751_v56 = vpop.f32.mrf.mxu1 }
 0x18e   : > { %v1920_v3 = vadd.f32 %v11751_v56, %v1866_v63  ;;  %v11672_v49 = vpop.f32.mrf.mxu0 }
 0x18f   : > { %1259 = vst.msk [vmem:[#allocation5 + $0xc8] sm:$0xff] %vm238_vm8, %v11672_v49  ;;  %v1676_v57 = vpop.f32.mrf.mxu1  ;;  %v1868_v22 = vld [vmem:[#allocation5 + $0xb8] sm:$0xff] }
 0x190   : > { %1974 = vst.msk [vmem:[#allocation5 + $0xa8] sm:$0xff] %vm238_vm8, %v1920_v3  ;;  %v1919_v48 = vadd.f32 %v1865_v7, %v1676_v57  ;;  %v1085_v0 = vpop.f32.mrf.mxu0 }
 0x191   : > { %1258 = vst.msk [vmem:[#allocation5 + $0xc0] sm:$0xff] %vm238_vm8, %v1085_v0  ;;  %v11754_v32 = vpop.f32.mrf.mxu1  ;;  %v1867_v21 = vld [vmem:[#allocation5 + $0xb0] sm:$0xff] }
 0x192   : > { %1973 = vst.msk [vmem:[#allocation5 + $0xa0] sm:$0xff] %vm238_vm8, %v1919_v48  ;;  %v1922_v20 = vadd.f32 %v11754_v32, %v1868_v22  ;;  %v11675_v38 = vpop.f32.mrf.mxu0 }
 0x193   : > { %1261 = vst.msk [vmem:[#allocation5 + $0xd8] sm:$0xff] %vm238_vm8, %v11675_v38  ;;  %v1686_v41 = vpop.f32.mrf.mxu1 }
 0x194   : > { %1976 = vst.msk [vmem:[#allocation5 + $0xb8] sm:$0xff] %vm238_vm8, %v1922_v20  ;;  %v1921_v18 = vadd.f32 %v1867_v21, %v1686_v41  ;;  %v1095_v23 = vpop.f32.mrf.mxu0 }
 0x195   : > { %1260 = vst.msk [vmem:[#allocation5 + $0xd0] sm:$0xff] %vm238_vm8, %v1095_v23 }
 0x196   : > { %1975 = vst.msk [vmem:[#allocation5 + $0xb0] sm:$0xff] %vm238_vm8, %v1921_v18  ;;  %v11757_v35 = vpop.f32.mrf.mxu1  ;;  %v1870_v42 = vld [vmem:[#allocation5 + $0xc8] sm:$0xff] }
 0x197   : > { %v1924_v37 = vadd.f32 %v11757_v35, %v1870_v42  ;;  %v11678_v40 = vpop.f32.mrf.mxu0 }
 0x198   : > { %1263 = vst.msk [vmem:[#allocation5 + $0xe8] sm:$0xff] %vm238_vm8, %v11678_v40  ;;  %v1696_v19 = vpop.f32.mrf.mxu1  ;;  %v1869_v60 = vld [vmem:[#allocation5 + $0xc0] sm:$0xff] }
 0x199   : > { %1978 = vst.msk [vmem:[#allocation5 + $0xc8] sm:$0xff] %vm238_vm8, %v1924_v37  ;;  %v1923_v31 = vadd.f32 %v1869_v60, %v1696_v19  ;;  %v1105_v51 = vpop.f32.mrf.mxu0 }
 0x19a   : > { %1262 = vst.msk [vmem:[#allocation5 + $0xe0] sm:$0xff] %vm238_vm8, %v1105_v51  ;;  %v1872_v54 = vld [vmem:[#allocation5 + $0xd8] sm:$0xff] }
 0x19b   : > { %1977 = vst.msk [vmem:[#allocation5 + $0xc0] sm:$0xff] %vm238_vm8, %v1923_v31 }
 0x19c   : > { %v1871_v30 = vld [vmem:[#allocation5 + $0xd0] sm:$0xff] }
 0x19d   : > { %v11760_v24 = vpop.f32.mrf.mxu1 }
 0x19e   : > { %v1926_v55 = vadd.f32 %v11760_v24, %v1872_v54  ;;  %v11681_v58 = vpop.f32.mrf.mxu0 }
 0x19f   : > { %1265 = vst.msk [vmem:[#allocation5 + $0xf8] sm:$0xff] %vm238_vm8, %v11681_v58  ;;  %v1706_v39 = vpop.f32.mrf.mxu1  ;;  %v1874_v33 = vld [vmem:[#allocation5 + $0xe8] sm:$0xff] }
 0x1a0   : > { %1980 = vst.msk [vmem:[#allocation5 + $0xd8] sm:$0xff] %vm238_vm8, %v1926_v55  ;;  %v1925_v61 = vadd.f32 %v1871_v30, %v1706_v39  ;;  %v1115_v34 = vpop.f32.mrf.mxu0 }
 0x1a1   : > { %1264 = vst.msk [vmem:[#allocation5 + $0xf0] sm:$0xff] %vm238_vm8, %v1115_v34  ;;  %v11763_v62 = vpop.f32.mrf.mxu1  ;;  %v1873_v5 = vld [vmem:[#allocation5 + $0xe0] sm:$0xff] }
 0x1a2   : > { %1979 = vst.msk [vmem:[#allocation5 + $0xd0] sm:$0xff] %vm238_vm8, %v1925_v61  ;;  %v1928_v16 = vadd.f32 %v11763_v62, %v1874_v33  ;;  %v11684_v29 = vpop.f32.mrf.mxu0 }
 0x1a3   : > { %1267 = vst.msk [vmem:[#allocation5 + $0x108] sm:$0xff] %vm238_vm8, %v11684_v29  ;;  %v1716_v4 = vpop.f32.mrf.mxu1 }
 0x1a4   : > { %1982 = vst.msk [vmem:[#allocation5 + $0xe8] sm:$0xff] %vm238_vm8, %v1928_v16  ;;  %v1927_v6 = vadd.f32 %v1873_v5, %v1716_v4  ;;  %v1125_v36 = vpop.f32.mrf.mxu0 }
 0x1a5   : > { %1266 = vst.msk [vmem:[#allocation5 + $0x100] sm:$0xff] %vm238_vm8, %v1125_v36 }
 0x1a6   : > { %1981 = vst.msk [vmem:[#allocation5 + $0xe0] sm:$0xff] %vm238_vm8, %v1927_v6  ;;  %v11766_v44 = vpop.f32.mrf.mxu1  ;;  %v1876_v45 = vld [vmem:[#allocation5 + $0xf8] sm:$0xff] }
 0x1a7   : > { %v1930_v50 = vadd.f32 %v11766_v44, %v1876_v45  ;;  %v11687_v52 = vpop.f32.mrf.mxu0 }
 0x1a8   : > { %1269 = vst.msk [vmem:[#allocation5 + $0x118] sm:$0xff] %vm238_vm8, %v11687_v52  ;;  %v1726_v53 = vpop.f32.mrf.mxu1  ;;  %v1875_v59 = vld [vmem:[#allocation5 + $0xf0] sm:$0xff] }
 0x1a9   : > { %1984 = vst.msk [vmem:[#allocation5 + $0xf8] sm:$0xff] %vm238_vm8, %v1930_v50  ;;  %v1929_v1 = vadd.f32 %v1875_v59, %v1726_v53  ;;  %v1135_v2 = vpop.f32.mrf.mxu0 }
 0x1aa   : > { %1268 = vst.msk [vmem:[#allocation5 + $0x110] sm:$0xff] %vm238_vm8, %v1135_v2  ;;  %v1878_v46 = vld [vmem:[#allocation5 + $0x108] sm:$0xff] }
 0x1ab   : > { %1983 = vst.msk [vmem:[#allocation5 + $0xf0] sm:$0xff] %vm238_vm8, %v1929_v1 }
 0x1ac   : > { %v1877_v3 = vld [vmem:[#allocation5 + $0x100] sm:$0xff] }
 0x1ad   : > { %v11769_v43 = vpop.f32.mrf.mxu1 }
 0x1ae   : > { %v1932_v47 = vadd.f32 %v11769_v43, %v1878_v46  ;;  %v11690_v56 = vpop.f32.mrf.mxu0 }
 0x1af   : > { %1271 = vst.msk [vmem:[#allocation5 + $0x128] sm:$0xff] %vm238_vm8, %v11690_v56  ;;  %v1736_v63 = vpop.f32.mrf.mxu1  ;;  %v1880_v48 = vld [vmem:[#allocation5 + $0x118] sm:$0xff] }
 0x1b0   : > { %1986 = vst.msk [vmem:[#allocation5 + $0x108] sm:$0xff] %vm238_vm8, %v1932_v47  ;;  %v1931_v49 = vadd.f32 %v1877_v3, %v1736_v63  ;;  %v1145_v57 = vpop.f32.mrf.mxu0 }
 0x1b1   : > { %1270 = vst.msk [vmem:[#allocation5 + $0x120] sm:$0xff] %vm238_vm8, %v1145_v57  ;;  %v1879_v20 = vld [vmem:[#allocation5 + $0x110] sm:$0xff] }
 0x1b2   : > { %v11772_v7 = vpop.f32.mrf.mxu1  ;;  %1985 = vst.msk [vmem:[#allocation5 + $0x100] sm:$0xff] %vm238_vm8, %v1931_v49 }
 0x1b3   : > { %v1934_v0 = vadd.f32 %v11772_v7, %v1880_v48 }
 0x1b4   : > { %v1746_v22 = vpop.f32.mrf.mxu1 }
 0x1b5   : > { %1988 = vst.msk [vmem:[#allocation5 + $0x118] sm:$0xff] %vm238_vm8, %v1934_v0  ;;  %v1933_v38 = vadd.f32 %v1879_v20, %v1746_v22 }
 0x1b6   : > { %v1882_v18 = vld [vmem:[#allocation5 + $0x128] sm:$0xff] }
 0x1b7   : > { %1987 = vst.msk [vmem:[#allocation5 + $0x110] sm:$0xff] %vm238_vm8, %v1933_v38 }
 0x1b8   : > { %v11693_v32 = vpop.f32.mrf.mxu0  ;;  %v1881_v37 = vld [vmem:[#allocation5 + $0x120] sm:$0xff] }
 0x1b9   : > { %1273 = vst.msk [vmem:[#allocation5 + $0x138] sm:$0xff] %vm238_vm8, %v11693_v32 }
 0x1ba   : > { %v1155_v41 = vpop.f32.mrf.mxu0 }
 0x1bb   : > { %1272 = vst.msk [vmem:[#allocation5 + $0x130] sm:$0xff] %vm238_vm8, %v1155_v41 }
 0x1bd   : > { %v11775_v21 = vpop.f32.mrf.mxu1 }
 0x1be   : > { %v1936_v23 = vadd.f32 %v11775_v21, %v1882_v18  ;;  %v11696_v35 = vpop.f32.mrf.mxu0 }
 0x1bf   : > { %1275 = vst.msk [vmem:[#allocation5 + $0x148] sm:$0xff] %vm238_vm8, %v11696_v35  ;;  %v1756_v42 = vpop.f32.mrf.mxu1 }
 0x1c0   : > { %1990 = vst.msk [vmem:[#allocation5 + $0x128] sm:$0xff] %vm238_vm8, %v1936_v23  ;;  %v1935_v40 = vadd.f32 %v1881_v37, %v1756_v42  ;;  %v1165_v19 = vpop.f32.mrf.mxu0  ;;  %v1884_v31 = vld [vmem:[#allocation5 + $0x138] sm:$0xff] }
 0x1c1   : > { %1274 = vst.msk [vmem:[#allocation5 + $0x140] sm:$0xff] %vm238_vm8, %v1165_v19 }
 0x1c2   : > { %1989 = vst.msk [vmem:[#allocation5 + $0x120] sm:$0xff] %vm238_vm8, %v1935_v40  ;;  %v11778_v60 = vpop.f32.mrf.mxu1  ;;  %v1883_v55 = vld [vmem:[#allocation5 + $0x130] sm:$0xff] }
 0x1c3   : > { %v1938_v51 = vadd.f32 %v11778_v60, %v1884_v31  ;;  %v11699_v24 = vpop.f32.mrf.mxu0  ;;  %v2565_v31 = vld [vmem:[#allocation5 + $0x8] sm:$0xff] }
 0x1c4   : > { %1277 = vst.msk [vmem:[#allocation5 + $0x158] sm:$0xff] %vm238_vm8, %v11699_v24  ;;  %v1766_v54 = vpop.f32.mrf.mxu1 }
 0x1c5   : > { %1992 = vst.msk [vmem:[#allocation5 + $0x138] sm:$0xff] %vm238_vm8, %v1938_v51  ;;  %v1937_v58 = vadd.f32 %v1883_v55, %v1766_v54  ;;  %v1175_v39 = vpop.f32.mrf.mxu0 }
 0x1c6   : > { %1276 = vst.msk [vmem:[#allocation5 + $0x150] sm:$0xff] %vm238_vm8, %v1175_v39  ;;  %v11781_v30 = vpop.f32.mrf.mxu1  ;;  %v1886_v61 = vld [vmem:[#allocation5 + $0x148] sm:$0xff]  ;;  %v2564_v39 = vld [vmem:[#allocation5] sm:$0xff] }
 0x1c7   : > { %1991 = vst.msk [vmem:[#allocation5 + $0x130] sm:$0xff] %vm238_vm8, %v1937_v58  ;;  %v1940_v34 = vadd.f32 %v11781_v30, %v1886_v61  ;;  %v11702_v62 = vpop.f32.mrf.mxu0 }
 0x1c8   : > { %1279 = vst.msk [vmem:[#allocation5 + $0x168] sm:$0xff] %vm238_vm8, %v11702_v62  ;;  %v1776_v33 = vpop.f32.mrf.mxu1  ;;  %v1885_v16 = vld [vmem:[#allocation5 + $0x140] sm:$0xff] }
 0x1c9   : > { %1994 = vst.msk [vmem:[#allocation5 + $0x148] sm:$0xff] %vm238_vm8, %v1940_v34  ;;  %v1939_v29 = vadd.f32 %v1885_v16, %v1776_v33  ;;  %v1185_v4 = vpop.f32.mrf.mxu0  ;;  %v2567_v33 = vld [vmem:[#allocation5 + $0x18] sm:$0xff] }
 0x1ca   : > { %1278 = vst.msk [vmem:[#allocation5 + $0x160] sm:$0xff] %vm238_vm8, %v1185_v4 }
 0x1cb   : > { %1993 = vst.msk [vmem:[#allocation5 + $0x140] sm:$0xff] %vm238_vm8, %v1939_v29  ;;  %v11784_v5 = vpop.f32.mrf.mxu1  ;;  %v1888_v6 = vld [vmem:[#allocation5 + $0x158] sm:$0xff] }
 0x1cc   : > { %v1942_v36 = vadd.f32 %v11784_v5, %v1888_v6  ;;  %v11705_v44 = vpop.f32.mrf.mxu0 }
 0x1cd   : > { %1281 = vst.msk [vmem:[#allocation5 + $0x178] sm:$0xff] %vm238_vm8, %v11705_v44  ;;  %v1786_v45 = vpop.f32.mrf.mxu1  ;;  %v1887_v50 = vld [vmem:[#allocation5 + $0x150] sm:$0xff] }
 0x1ce   : > { %1996 = vst.msk [vmem:[#allocation5 + $0x158] sm:$0xff] %vm238_vm8, %v1942_v36  ;;  %v1941_v52 = vadd.f32 %v1887_v50, %v1786_v45  ;;  %v1195_v53 = vpop.f32.mrf.mxu0  ;;  %v2566_v36 = vld [vmem:[#allocation5 + $0x10] sm:$0xff] }
 0x1cf   : > { %1280 = vst.msk [vmem:[#allocation5 + $0x170] sm:$0xff] %vm238_vm8, %v1195_v53  ;;  %v1890_v1 = vld [vmem:[#allocation5 + $0x168] sm:$0xff] }
 0x1d0   : > { %1995 = vst.msk [vmem:[#allocation5 + $0x150] sm:$0xff] %vm238_vm8, %v1941_v52  ;;  %v2569_v52 = vld [vmem:[#allocation5 + $0x28] sm:$0xff] }
 0x1d1   : > { %v1889_v47 = vld [vmem:[#allocation5 + $0x160] sm:$0xff] }
 0x1d2   : > { %v11787_v59 = vpop.f32.mrf.mxu1 }
 0x1d3   : > { %v1944_v2 = vadd.f32 %v11787_v59, %v1890_v1  ;;  %v11708_v43 = vpop.f32.mrf.mxu0  ;;  %v2568_v1 = vld [vmem:[#allocation5 + $0x20] sm:$0xff] }
 0x1d4   : > { %1283 = vst.msk [vmem:[#allocation5 + $0x188] sm:$0xff] %vm238_vm8, %v11708_v43  ;;  %v1796_v46 = vpop.f32.mrf.mxu1  ;;  %v1892_v49 = vld [vmem:[#allocation5 + $0x178] sm:$0xff] }
 0x1d5   : > { %1998 = vst.msk [vmem:[#allocation5 + $0x168] sm:$0xff] %vm238_vm8, %v1944_v2  ;;  %v1943_v56 = vadd.f32 %v1889_v47, %v1796_v46  ;;  %v1205_v63 = vpop.f32.mrf.mxu0  ;;  %v2571_v46 = vld [vmem:[#allocation5 + $0x38] sm:$0xff]  ;;  %v14477_v47 = vld [vmem:[%s18135_s2] ss:$0 sm:$0xff] }
 0x1d6   : > { %1282 = vst.msk [vmem:[#allocation5 + $0x180] sm:$0xff] %vm238_vm8, %v1205_v63  ;;  %v11790_v3 = vpop.f32.mrf.mxu1  ;;  %v1891_v0 = vld [vmem:[#allocation5 + $0x170] sm:$0xff] }
 0x1d7   : > { %1997 = vst.msk [vmem:[#allocation5 + $0x160] sm:$0xff] %vm238_vm8, %v1943_v56  ;;  %v1946_v57 = vadd.f32 %v11790_v3, %v1892_v49  ;;  %v11711_v7 = vpop.f32.mrf.mxu0  ;;  %v3693_v56 = vld [vmem:[%s18136_s3 + $0x58] sm:$0xff] }
 0x1d8   : > { %1285 = vst.msk [vmem:[#allocation5 + $0x198] sm:$0xff] %vm238_vm8, %v11711_v7  ;;  %v1806_v48 = vpop.f32.mrf.mxu1  ;;  %11885 = vmatprep.subr.mxu1 %v3693_v56 }
 0x1d9   : > { %2000 = vst.msk [vmem:[#allocation5 + $0x178] sm:$0xff] %vm238_vm8, %v1946_v57  ;;  %v1945_v32 = vadd.f32 %v1891_v0, %v1806_v48  ;;  %v1215_v22 = vpop.f32.mrf.mxu0  ;;  %v2570_v57 = vld [vmem:[#allocation5 + $0x30] sm:$0xff]  ;;  %11886 = vmatpush3.msra.mxu1 %v3693_v56 }
 0x1da   : > { %1284 = vst.msk [vmem:[#allocation5 + $0x190] sm:$0xff] %vm238_vm8, %v1215_v22 }
 0x1db   : > { %1999 = vst.msk [vmem:[#allocation5 + $0x170] sm:$0xff] %vm238_vm8, %v1945_v32  ;;  %v11793_v20 = vpop.f32.mrf.mxu1  ;;  %v1894_v38 = vld [vmem:[#allocation5 + $0x188] sm:$0xff] }
 0x1dc   : > { %v1948_v41 = vadd.f32 %v11793_v20, %v1894_v38  ;;  %v11714_v21 = vpop.f32.mrf.mxu0  ;;  %v2573_v32 = vld [vmem:[#allocation5 + $0x48] sm:$0xff] }
 0x1dd   : > { %1287 = vst.msk [vmem:[#allocation5 + $0x1a8] sm:$0xff] %vm238_vm8, %v11714_v21  ;;  %v1816_v18 = vpop.f32.mrf.mxu1  ;;  %v1893_v23 = vld [vmem:[#allocation5 + $0x180] sm:$0xff] }
 0x1de   : > { %2002 = vst.msk [vmem:[#allocation5 + $0x188] sm:$0xff] %vm238_vm8, %v1948_v41  ;;  %v1947_v35 = vadd.f32 %v1893_v23, %v1816_v18  ;;  %v1225_v42 = vpop.f32.mrf.mxu0  ;;  %v2572_v21 = vld [vmem:[#allocation5 + $0x40] sm:$0xff] }
 0x1df   : > { %1286 = vst.msk [vmem:[#allocation5 + $0x1a0] sm:$0xff] %vm238_vm8, %v1225_v42  ;;  %v11796_v37 = vpop.f32.mrf.mxu1  ;;  %v1896_v40 = vld [vmem:[#allocation5 + $0x198] sm:$0xff] }
 0x1e0   : > { %2001 = vst.msk [vmem:[#allocation5 + $0x180] sm:$0xff] %vm238_vm8, %v1947_v35  ;;  %v1950_v19 = vadd.f32 %v11796_v37, %v1896_v40  ;;  %v11806_v60 = vpop.f32.mrf.mxu0  ;;  %v2575_v37 = vld [vmem:[#allocation5 + $0x58] sm:$0xff] }
 0x1e1   : > { %v2619_v51 = vadd.f32 %v11806_v60, %v2565_v31  ;;  %v1826_v24 = vpop.f32.mrf.mxu1  ;;  %v1895_v54 = vld [vmem:[#allocation5 + $0x190] sm:$0xff] }
 0x1e2   : > { %2004 = vst.msk [vmem:[#allocation5 + $0x198] sm:$0xff] %vm238_vm8, %v1950_v19  ;;  %v1949_v55 = vadd.f32 %v1895_v54, %v1826_v24  ;;  %v2295_v58 = vpop.f32.mrf.mxu0  ;;  %v2574_v54 = vld [vmem:[#allocation5 + $0x50] sm:$0xff] }
 0x1e3   : > { %2673 = vst.msk [vmem:[#allocation5 + $0x8] sm:$0xff] %vm238_vm8, %v2619_v51  ;;  %v2618_v30 = vadd.f32 %v2564_v39, %v2295_v58  ;;  %v11799_v61 = vpop.f32.mrf.mxu1 }
 0x1e4   : > { %2003 = vst.msk [vmem:[#allocation5 + $0x190] sm:$0xff] %vm238_vm8, %v1949_v55  ;;  %v1898_v34 = vld [vmem:[#allocation5 + $0x1a8] sm:$0xff]  ;;  %v11809_v62 = vpop.f32.mrf.mxu0 }
 0x1e5   : > { %2672 = vst.msk [vmem:[#allocation5] sm:$0xff] %vm238_vm8, %v2618_v30  ;;  %v1952_v16 = vadd.f32 %v11799_v61, %v1898_v34  ;;  %v2621_v29 = vadd.f32 %v11809_v62, %v2567_v33  ;;  %v1836_v4 = vpop.f32.mrf.mxu1  ;;  %v2577_v34 = vld [vmem:[#allocation5 + $0x68] sm:$0xff]  ;;  %v3692_v33 = vld [vmem:[%s18136_s3 + $0x50] sm:$0xff] }
 0x1e6   : > { %v1897_v5 = vld [vmem:[#allocation5 + $0x1a0] sm:$0xff]  ;;  %v2305_v6 = vpop.f32.mrf.mxu0  ;;  %11887 = vmatprep.subr.mxu1 %v3692_v33 }
 0x1e7   : > { %2006 = vst.msk [vmem:[#allocation5 + $0x1a8] sm:$0xff] %vm238_vm8, %v1952_v16  ;;  %2675 = vst.msk [vmem:[#allocation5 + $0x18] sm:$0xff] %vm238_vm8, %v2621_v29  ;;  %v1951_v44 = vadd.f32 %v1897_v5, %v1836_v4  ;;  %v2620_v45 = vadd.f32 %v2566_v36, %v2305_v6  ;;  %v2576_v36 = vld [vmem:[#allocation5 + $0x60] sm:$0xff]  ;;  %11888 = vmatpush3.msra.mxu1 %v3692_v33 }
 0x1e8   : > { %v11812_v50 = vpop.f32.mrf.mxu0 }
 0x1e9   : > { %2005 = vst.msk [vmem:[#allocation5 + $0x1a0] sm:$0xff] %vm238_vm8, %v1951_v44  ;;  %2674 = vst.msk [vmem:[#allocation5 + $0x10] sm:$0xff] %vm238_vm8, %v2620_v45  ;;  %v2623_v53 = vadd.f32 %v11812_v50, %v2569_v52 }
 0x1ea   : > { %v2315_v59 = vpop.f32.mrf.mxu0 }
 0x1eb   : > { %2677 = vst.msk [vmem:[#allocation5 + $0x28] sm:$0xff] %vm238_vm8, %v2623_v53  ;;  %v2622_v2 = vadd.f32 %v2568_v1, %v2315_v59  ;;  %v2579_v59 = vld [vmem:[#allocation5 + $0x78] sm:$0xff] }
 0x1ec   : > { %v11815_v43 = vpop.f32.mrf.mxu0 }
 0x1ed   : > { %2676 = vst.msk [vmem:[#allocation5 + $0x20] sm:$0xff] %vm238_vm8, %v2622_v2  ;;  %v2625_v63 = vadd.f32 %v11815_v43, %v2571_v46 }
 0x1ee   : > { %v2727_v3 = vld [vmem:[#allocation5 + $0x18] sm:$0xff]  ;;  %v2325_v49 = vpop.f32.mrf.mxu0 }
 0x1ef   : > { %2679 = vst.msk [vmem:[#allocation5 + $0x38] sm:$0xff] %vm238_vm8, %v2625_v63  ;;  %v2624_v7 = vadd.f32 %v2570_v57, %v2325_v49  ;;  %v14485_v48 = vadd.f32 %v14477_v47, %v2727_v3  ;;  %v2578_v57 = vld [vmem:[#allocation5 + $0x70] sm:$0xff] }
 0x1f0   : > { %v11818_v0 = vpop.f32.mrf.mxu0 }
 0x1f1   : > { %2678 = vst.msk [vmem:[#allocation5 + $0x30] sm:$0xff] %vm238_vm8, %v2624_v7  ;;  %v2627_v22 = vadd.f32 %v11818_v0, %v2573_v32  ;;  %v2829_v20 = vsub.f32 0.0, %v14485_v48 }
 0x1f2   : > { %v2729_v38 = vld [vmem:[#allocation5 + $0x28] sm:$0xff]  ;;  %v2335_v41 = vpop.f32.mrf.mxu0 }
 0x1f3   : > { %2681 = vst.msk [vmem:[#allocation5 + $0x48] sm:$0xff] %vm238_vm8, %v2627_v22  ;;  %v2626_v18 = vadd.f32 %v2572_v21, %v2335_v41  ;;  %v14491_v23 = vadd.f32 %v14477_v47, %v2729_v38  ;;  %v2877_v35 = vmul.f32 1.442695, %v2829_v20  ;;  %v2581_v20 = vld [vmem:[#allocation5 + $0x88] sm:$0xff] }
 0x1f4   : > { %v11821_v42 = vpop.f32.mrf.mxu0  ;;  %v2728_v40 = vld [vmem:[#allocation5 + $0x20] sm:$0xff] }
 0x1f5   : > { %2680 = vst.msk [vmem:[#allocation5 + $0x40] sm:$0xff] %vm238_vm8, %v2626_v18  ;;  %v2629_v19 = vadd.f32 %v11821_v42, %v2575_v37  ;;  %v14495_v60 = vadd.f32 %v14477_v47, %v2728_v40  ;;  %v2831_v31 = vsub.f32 0.0, %v14491_v23  ;;  %12617 = vpow2.f32 %v2877_v35 }
 0x1f6   : > { %v2731_v51 = vld [vmem:[#allocation5 + $0x38] sm:$0xff]  ;;  %v2345_v24 = vpop.f32.mrf.mxu0 }
 0x1f7   : > { %2683 = vst.msk [vmem:[#allocation5 + $0x58] sm:$0xff] %vm238_vm8, %v2629_v19  ;;  %v2628_v55 = vadd.f32 %v2574_v54, %v2345_v24  ;;  %v2830_v58 = vsub.f32 0.0, %v14495_v60  ;;  %v2881_v39 = vmul.f32 1.442695, %v2831_v31  ;;  %v14501_v30 = vadd.f32 %v14477_v47, %v2731_v51  ;;  %v2580_v31 = vld [vmem:[#allocation5 + $0x80] sm:$0xff] }
 0x1f8   : > { %v11824_v61 = vpop.f32.mrf.mxu0  ;;  %v2730_v62 = vld [vmem:[#allocation5 + $0x30] sm:$0xff] }
 0x1f9   : > { %2682 = vst.msk [vmem:[#allocation5 + $0x50] sm:$0xff] %vm238_vm8, %v2628_v55  ;;  %v2631_v16 = vadd.f32 %v11824_v61, %v2577_v34  ;;  %v2879_v29 = vmul.f32 1.442695, %v2830_v58  ;;  %12619 = vpow2.f32 %v2881_v39  ;;  %v14508_v4 = vadd.f32 %v14477_v47, %v2730_v62  ;;  %v2583_v58 = vld [vmem:[#allocation5 + $0x98] sm:$0xff] }
 0x1fa   : > { %v2733_v5 = vld [vmem:[#allocation5 + $0x48] sm:$0xff]  ;;  %v2355_v6 = vpop.f32.mrf.mxu0  ;;  %v2833_v44 = vsub.f32 0.0, %v14501_v30  ;;  %v3691_v62 = vld [vmem:[%s18136_s3 + $0x48] sm:$0xff] }
 0x1fb   : > { %2685 = vst.msk [vmem:[#allocation5 + $0x68] sm:$0xff] %vm238_vm8, %v2631_v16  ;;  %v2630_v45 = vadd.f32 %v2576_v36, %v2355_v6  ;;  %12621 = vpow2.f32 %v2879_v29  ;;  %v2832_v50 = vsub.f32 0.0, %v14508_v4  ;;  %v14514_v52 = vadd.f32 %v14477_v47, %v2733_v5  ;;  %11889 = vmatprep.subr.mxu1 %v3691_v62 }
 0x1fc   : > { %v11827_v53 = vpop.f32.mrf.mxu0  ;;  %v2885_v1 = vmul.f32 1.442695, %v2833_v44  ;;  %v2732_v2 = vld [vmem:[#allocation5 + $0x40] sm:$0xff]  ;;  %v2582_v44 = vld [vmem:[#allocation5 + $0x90] sm:$0xff]  ;;  %11890 = vmatpush3.msra.mxu1 %v3691_v62 }
 0x1fd   : > { %2684 = vst.msk [vmem:[#allocation5 + $0x60] sm:$0xff] %vm238_vm8, %v2630_v45  ;;  %v2633_v43 = vadd.f32 %v11827_v53, %v2579_v59  ;;  %v2883_v46 = vmul.f32 1.442695, %v2832_v50  ;;  %v14518_v56 = vadd.f32 %v14477_v47, %v2732_v2  ;;  %v2835_v63 = vsub.f32 0.0, %v14514_v52 }
 0x1fe   : > { %v2735_v3 = vld [vmem:[#allocation5 + $0x58] sm:$0xff]  ;;  %v2365_v49 = vpop.f32.mrf.mxu0  ;;  %12623 = vpow2.f32 %v2885_v1 }
 0x1ff   : > { %2687 = vst.msk [vmem:[#allocation5 + $0x78] sm:$0xff] %vm238_vm8, %v2633_v43  ;;  %v2632_v7 = vadd.f32 %v2578_v57, %v2365_v49  ;;  %12625 = vpow2.f32 %v2883_v46  ;;  %v2834_v0 = vsub.f32 0.0, %v14518_v56  ;;  %v14524_v32 = vadd.f32 %v14477_v47, %v2735_v3  ;;  %v2585_v43 = vld [vmem:[#allocation5 + $0xa8] sm:$0xff] }
 0x200   : > { %v11830_v22 = vpop.f32.mrf.mxu0  ;;  %v2734_v38 = vld [vmem:[#allocation5 + $0x50] sm:$0xff]  ;;  %v2889_v41 = vmul.f32 1.442695, %v2835_v63 }
 0x201   : > { %2686 = vst.msk [vmem:[#allocation5 + $0x70] sm:$0xff] %vm238_vm8, %v2632_v7  ;;  %v2635_v21 = vadd.f32 %v11830_v22, %v2581_v20  ;;  %v2887_v18 = vmul.f32 1.442695, %v2834_v0  ;;  %v14528_v35 = vadd.f32 %v14477_v47, %v2734_v38  ;;  %v2837_v42 = vsub.f32 0.0, %v14524_v32  ;;  %v2584_v20 = vld [vmem:[#allocation5 + $0xa0] sm:$0xff] }
 0x202   : > { %v12618_v37 = vpop.eup %12617  ;;  %v2737_v40 = vld [vmem:[#allocation5 + $0x68] sm:$0xff]  ;;  %v2375_v19 = vpop.f32.mrf.mxu0  ;;  %12627 = vpow2.f32 %v2889_v41 }
 0x203   : > { %2689 = vst.msk [vmem:[#allocation5 + $0x88] sm:$0xff] %vm238_vm8, %v2635_v21  ;;  %v2634_v51 = vadd.f32 %v2580_v31, %v2375_v19  ;;  %v2973_v24 = vadd.f32 1.0, %v12618_v37  ;;  %12629 = vpow2.f32 %v2887_v18  ;;  %v2836_v54 = vsub.f32 0.0, %v14528_v35 }
 0x204   : > { %v11833_v55 = vpop.f32.mrf.mxu0  ;;  %v2893_v39 = vmul.f32 1.442695, %v2837_v42  ;;  %v2736_v61 = vld [vmem:[#allocation5 + $0x60] sm:$0xff]  ;;  %v14534_v34 = vadd.f32 %v14477_v47, %v2737_v40  ;;  %v2587_v40 = vld [vmem:[#allocation5 + $0xb8] sm:$0xff] }
 0x205   : > { %2688 = vst.msk [vmem:[#allocation5 + $0x80] sm:$0xff] %vm238_vm8, %v2634_v51  ;;  %v2637_v33 = vadd.f32 %v11833_v55, %v2583_v58  ;;  %12631 = vrcp.f32 %v2973_v24  ;;  %v2891_v16 = vmul.f32 1.442695, %v2836_v54  ;;  %v14541_v29 = vadd.f32 %v14477_v47, %v2736_v61  ;;  %v3690_v54 = vld [vmem:[%s18136_s3 + $0x40] sm:$0xff] }
 0x206   : > { %v12620_v5 = vpop.eup %12619  ;;  %v2739_v6 = vld [vmem:[#allocation5 + $0x78] sm:$0xff]  ;;  %v2385_v36 = vpop.f32.mrf.mxu0  ;;  %12633 = vpow2.f32 %v2893_v39  ;;  %v2839_v45 = vsub.f32 0.0, %v14534_v34  ;;  %11891 = vmatprep.subr.mxu1 %v3690_v54 }
 0x207   : > { %2691 = vst.msk [vmem:[#allocation5 + $0x98] sm:$0xff] %vm238_vm8, %v2637_v33  ;;  %v2636_v50 = vadd.f32 %v2582_v44, %v2385_v36  ;;  %v2975_v53 = vadd.f32 1.0, %v12620_v5  ;;  %12635 = vpow2.f32 %v2891_v16  ;;  %v2838_v59 = vsub.f32 0.0, %v14541_v29  ;;  %v2586_v16 = vld [vmem:[#allocation5 + $0xb0] sm:$0xff]  ;;  %11892 = vmatpush3.msra.mxu1 %v3690_v54 }
 0x208   : > { %v12622_v1 = vpop.eup %12621  ;;  %v11836_v2 = vpop.f32.mrf.mxu0  ;;  %v2897_v46 = vmul.f32 1.442695, %v2839_v45  ;;  %v2738_v63 = vld [vmem:[#allocation5 + $0x70] sm:$0xff]  ;;  %v14547_v3 = vadd.f32 %v14477_v47, %v2739_v6 }
 0x209   : > { %2690 = vst.msk [vmem:[#allocation5 + $0x90] sm:$0xff] %vm238_vm8, %v2636_v50  ;;  %v2639_v49 = vadd.f32 %v11836_v2, %v2585_v43  ;;  %v2974_v57 = vadd.f32 1.0, %v12622_v1  ;;  %12637 = vrcp.f32 %v2975_v53  ;;  %v2895_v7 = vmul.f32 1.442695, %v2838_v59  ;;  %v2589_v59 = vld [vmem:[#allocation5 + $0xc8] sm:$0xff] }
 0x20a   : > { %v2741_v0 = vld [vmem:[#allocation5 + $0x88] sm:$0xff]  ;;  %v2395_v22 = vpop.f32.mrf.mxu0  ;;  %12639 = vpow2.f32 %v2897_v46  ;;  %v14551_v38 = vadd.f32 %v14477_v47, %v2738_v63  ;;  %v2841_v24 = vsub.f32 0.0, %v14547_v3 }
 0x20b   : > { %v12624_v41 = vpop.eup %12623  ;;  %2693 = vst.msk [vmem:[#allocation5 + $0xa8] sm:$0xff] %vm238_vm8, %v2639_v49  ;;  %v2638_v21 = vadd.f32 %v2584_v20, %v2395_v22  ;;  %12641 = vrcp.f32 %v2974_v57  ;;  %v14555_v18 = vadd.f32 %v14477_v47, %v2741_v0  ;;  %v2588_v20 = vld [vmem:[#allocation5 + $0xc0] sm:$0xff] }
 0x20c   : > { %v12626_v42 = vpop.eup %12625  ;;  %v11839_v37 = vpop.f32.mrf.mxu0  ;;  %v2977_v19 = vadd.f32 1.0, %v12624_v41  ;;  %12643 = vpow2.f32 %v2895_v7  ;;  %v2840_v31 = vsub.f32 0.0, %v14551_v38  ;;  %v2740_v51 = vld [vmem:[#allocation5 + $0x80] sm:$0xff]  ;;  %v2901_v2 = vmul.f32 1.442695, %v2841_v24 }
 0x20d   : > { %2692 = vst.msk [vmem:[#allocation5 + $0xa0] sm:$0xff] %vm238_vm8, %v2638_v21  ;;  %v2641_v55 = vadd.f32 %v11839_v37, %v2587_v40  ;;  %v2976_v58 = vadd.f32 1.0, %v12626_v42  ;;  %v14564_v39 = vadd.f32 %v14477_v47, %v2740_v51  ;;  %v2843_v61 = vsub.f32 0.0, %v14555_v18  ;;  %v2591_v40 = vld [vmem:[#allocation5 + $0xd8] sm:$0xff] }
 0x20e   : > { %v2743_v62 = vld [vmem:[#allocation5 + $0x98] sm:$0xff]  ;;  %v2405_v33 = vpop.f32.mrf.mxu0  ;;  %12645 = vrcp.f32 %v2977_v19  ;;  %v2899_v5 = vmul.f32 1.442695, %v2840_v31 }
 0x20f   : > { %v12628_v6 = vpop.eup %12627  ;;  %2695 = vst.msk [vmem:[#allocation5 + $0xb8] sm:$0xff] %vm238_vm8, %v2641_v55  ;;  %v2640_v36 = vadd.f32 %v2586_v16, %v2405_v33  ;;  %12647 = vrcp.f32 %v2976_v58  ;;  %v2842_v44 = vsub.f32 0.0, %v14564_v39  ;;  %v2905_v45 = vmul.f32 1.442695, %v2843_v61 }
 0x210   : > { %v12630_v50 = vpop.eup %12629  ;;  %v11842_v53 = vpop.f32.mrf.mxu0  ;;  %v2979_v1 = vadd.f32 1.0, %v12628_v6  ;;  %12649 = vpow2.f32 %v2899_v5  ;;  %v2742_v43 = vld [vmem:[#allocation5 + $0x90] sm:$0xff]  ;;  %v14570_v46 = vadd.f32 %v14477_v47, %v2743_v62  ;;  %v3689_v62 = vld [vmem:[%s18136_s3 + $0x38] sm:$0xff] }
 0x211   : > { %2694 = vst.msk [vmem:[#allocation5 + $0xb0] sm:$0xff] %vm238_vm8, %v2640_v36  ;;  %v2643_v63 = vadd.f32 %v11842_v53, %v2589_v59  ;;  %v2978_v49 = vadd.f32 1.0, %v12630_v50  ;;  %v2903_v57 = vmul.f32 1.442695, %v2842_v44  ;;  %12651 = vpow2.f32 %v2905_v45  ;;  %11893 = vmatprep.subr.mxu1 %v3689_v62  ;;  %v2590_v44 = vld [vmem:[#allocation5 + $0xd0] sm:$0xff] }
 0x212   : > { %v12632_v7 = vpop.eup %12631  ;;  %v2745_v0 = vld [vmem:[#allocation5 + $0xa8] sm:$0xff]  ;;  %v2415_v22 = vpop.f32.mrf.mxu0  ;;  %12653 = vrcp.f32 %v2979_v1  ;;  %v14574_v41 = vadd.f32 %v14477_v47, %v2742_v43  ;;  %v2845_v21 = vsub.f32 0.0, %v14570_v46  ;;  %v18249_v45 = vmov 0.0   ;;  %11894 = vmatpush3.msra.mxu1 %v3689_v62 }
 0x213   : > { %v12634_v42 = vpop.eup %12633  ;;  %2697 = vst.msk [vmem:[#allocation5 + $0xc8] sm:$0xff] %vm238_vm8, %v2643_v63  ;;  %v2642_v37 = vadd.f32 %v2588_v20, %v2415_v22  ;;  %v3069_v19 = vmul.f32 %v12632_v7, %v14485_v48  ;;  %12655 = vrcp.f32 %v2978_v49  ;;  %v14580_v31 = vadd.f32 %v14477_v47, %v2745_v0 }
 0x214   : > { %v12636_v51 = vpop.eup %12635  ;;  %v11845_v24 = vpop.f32.mrf.mxu0  ;;  %v2981_v54 = vadd.f32 1.0, %v12634_v42  ;;  %12657 = vpow2.f32 %v2903_v57  ;;  %v2844_v55 = vsub.f32 0.0, %v14574_v41  ;;  %v2909_v58 = vmul.f32 1.442695, %v2845_v21  ;;  %v2744_v61 = vld [vmem:[#allocation5 + $0xa0] sm:$0xff]  ;;  %247 = vst.msk [vmem:[#allocation3] sm:$0xff] %vm246_vm10, %v18249_v45 }
 0x215   : > { %2696 = vst.msk [vmem:[#allocation5 + $0xc0] sm:$0xff] %vm238_vm8, %v2642_v37  ;;  %v2645_v33 = vadd.f32 %v11845_v24, %v2591_v40  ;;  %3118 = vst.msk [vmem:[#allocation4 + $0x18] sm:$0xff] %vm238_vm8, %v3069_v19  ;;  %v2980_v48 = vadd.f32 1.0, %v12636_v51  ;;  %12659 = vpow2.f32 %v2901_v2  ;;  %v14589_v16 = vadd.f32 %v14477_v47, %v2744_v61  ;;  %v2593_v2 = vld [vmem:[#allocation5 + $0xe8] sm:$0xff]  ;;  %v3688_v21 = vld [vmem:[%s18136_s3 + $0x30] sm:$0xff] }
 0x216   : > { %v12638_v5 = vpop.eup %12637  ;;  %v2747_v6 = vld [vmem:[#allocation5 + $0xb8] sm:$0xff]  ;;  %v2425_v36 = vpop.f32.mrf.mxu0  ;;  %3167 = vst.msk [vmem:[#allocation4 + $0x18] sm:$0x1] %vm3166_vm9, %v18249_v45  ;;  %12661 = vrcp.f32 %v2981_v54  ;;  %v2907_v50 = vmul.f32 1.442695, %v2844_v55  ;;  %v2847_v53 = vsub.f32 0.0, %v14580_v31  ;;  %11895 = vmatprep.subr.mxu1 %v3688_v21 }
 0x217   : > { %v12640_v59 = vpop.eup %12639  ;;  %2699 = vst.msk [vmem:[#allocation5 + $0xd8] sm:$0xff] %vm238_vm8, %v2645_v33  ;;  %v2644_v1 = vadd.f32 %v2590_v44, %v2425_v36  ;;  %v3071_v43 = vmul.f32 %v12638_v5, %v14491_v23  ;;  %12663 = vrcp.f32 %v2980_v48  ;;  %v2846_v63 = vsub.f32 0.0, %v14589_v16  ;;  %v3687_v23 = vld [vmem:[%s18136_s3 + $0x28] sm:$0xff]  ;;  %v10665_v51 = vld [vmem:[%s18136_s3 + $0x118] sm:$0xff]  ;;  %v2592_v55 = vld [vmem:[#allocation5 + $0xe0] sm:$0xff]  ;;  %11896 = vmatpush3.msra.mxu1 %v3688_v21 }
 0x218   : > { %v12642_v49 = vpop.eup %12641  ;;  %v11848_v57 = vpop.f32.mrf.mxu0  ;;  %v2983_v7 = vadd.f32 1.0, %v12640_v59  ;;  %12665 = vpow2.f32 %v2907_v50  ;;  %v2746_v0 = vld [vmem:[#allocation5 + $0xb0] sm:$0xff]  ;;  %v14598_v22 = vadd.f32 %v14477_v47, %v2747_v6  ;;  %v2913_v20 = vmul.f32 1.442695, %v2847_v53  ;;  %12029 = vmatprep.subr.mxu0 %v10665_v51  ;;  %v2595_v48 = vld [vmem:[#allocation5 + $0xf8] sm:$0xff]  ;;  %11897 = vmatprep.subr.mxu1 %v3687_v23  ;;  %248 = vst.msk [vmem:[#allocation3 + $0x8] sm:$0xff] %vm246_vm10, %v18249_v45 }
 0x219   : > { %v12644_v42 = vpop.eup %12643  ;;  %2698 = vst.msk [vmem:[#allocation5 + $0xd0] sm:$0xff] %vm238_vm8, %v2644_v1  ;;  %v2647_v37 = vadd.f32 %v11848_v57, %v2593_v2  ;;  %v3070_v40 = vmul.f32 %v12642_v49, %v14495_v60  ;;  %3120 = vst.msk [vmem:[#allocation4 + $0x28] sm:$0xff] %vm238_vm8, %v3071_v43  ;;  %12667 = vpow2.f32 %v2909_v58  ;;  %v2911_v19 = vmul.f32 1.442695, %v2846_v63  ;;  %12030 = vmatpush3.msra.mxu0 %v10665_v51  ;;  %v3686_v1 = vld [vmem:[%s18136_s3 + $0x20] sm:$0xff]  ;;  %v10664_v2 = vld [vmem:[%s18136_s3 + $0x110] sm:$0xff] }
 0x21a   : > { %v2749_v24 = vld [vmem:[#allocation5 + $0xc8] sm:$0xff]  ;;  %v2435_v54 = vpop.f32.mrf.mxu0  ;;  %3183 = vst.msk [vmem:[#allocation4 + $0x29] sm:$0x1] %vm3166_vm9, %v18249_v45  ;;  %v2982_v61 = vadd.f32 1.0, %v12644_v42  ;;  %12669 = vrcp.f32 %v2983_v7  ;;  %v14615_v62 = vadd.f32 %v14477_v47, %v2746_v0  ;;  %v2849_v60 = vsub.f32 0.0, %v14598_v22  ;;  %11898 = vmatpush3.msra.mxu1 %v3687_v23  ;;  %12031 = vmatprep.subr.mxu0 %v10664_v2  ;;  %v10663_v0 = vld [vmem:[%s18136_s3 + $0x108] sm:$0xff] }
 0x21b   : > { %v12646_v58 = vpop.eup %12645  ;;  %2701 = vst.msk [vmem:[#allocation5 + $0xe8] sm:$0xff] %vm238_vm8, %v2647_v37  ;;  %v2646_v33 = vadd.f32 %v2592_v55, %v2435_v54  ;;  %3119 = vst.msk [vmem:[#allocation4 + $0x20] sm:$0xff] %vm238_vm8, %v3070_v40  ;;  %12671 = vpow2.f32 %v2911_v19  ;;  %v14621_v5 = vadd.f32 %v14477_v47, %v2749_v24  ;;  %11899 = vmatprep.subr.mxu1 %v3686_v1  ;;  %v3685_v7 = vld [vmem:[%s18136_s3 + $0x18] sm:$0xff]  ;;  %v2594_v42 = vld [vmem:[#allocation5 + $0xf0] sm:$0xff]  ;;  %12032 = vmatpush3.msra.mxu0 %v10664_v2 }
 0x21c   : > { %v12648_v6 = vpop.eup %12647  ;;  %v11851_v36 = vpop.f32.mrf.mxu0  ;;  %v3073_v44 = vmul.f32 %v12646_v58, %v14501_v30  ;;  %12673 = vrcp.f32 %v2982_v61  ;;  %v2848_v50 = vsub.f32 0.0, %v14615_v62  ;;  %v2917_v53 = vmul.f32 1.442695, %v2849_v60  ;;  %v2748_v59 = vld [vmem:[#allocation5 + $0xc0] sm:$0xff]  ;;  %11900 = vmatpush3.msra.mxu1 %v3686_v1  ;;  %v2597_v51 = vld [vmem:[#allocation5 + $0x108] sm:$0xff]  ;;  %12033 = vmatprep.subr.mxu0 %v10663_v0  ;;  %250 = vst.msk [vmem:[#allocation3 + $0x110] sm:$0xff] %vm246_vm10, %v18249_v45 }
 0x21d   : > { %v12650_v43 = vpop.eup %12649  ;;  %2700 = vst.msk [vmem:[#allocation5 + $0xe0] sm:$0xff] %vm238_vm8, %v2646_v33  ;;  %v2649_v63 = vadd.f32 %v11851_v36, %v2595_v48  ;;  %v3072_v30 = vmul.f32 %v12648_v6, %v14508_v4  ;;  %12675 = vpow2.f32 %v2913_v20  ;;  %v14634_v49 = vadd.f32 %v14477_v47, %v2748_v59  ;;  %v3199_v57 = vld [vmem:[#allocation4 + $0x18] sm:$0xff]  ;;  %11901 = vmatprep.subr.mxu1 %v3685_v7  ;;  %v3684_v33 = vld [vmem:[%s18136_s3 + $0x10] sm:$0xff]  ;;  %v10662_v48 = vld [vmem:[%s18136_s3 + $0x100] sm:$0xff] }
 0x21e   : > { %v12652_v21 = vpop.eup %12651  ;;  %v2445_v23 = vpop.f32.mrf.mxu0  ;;  %3122 = vst.msk [vmem:[#allocation4 + $0x38] sm:$0xff] %vm238_vm8, %v3073_v44  ;;  %v2984_v4 = vadd.f32 1.0, %v12650_v43  ;;  %v2915_v20 = vmul.f32 1.442695, %v2848_v50  ;;  %12677 = vpow2.f32 %v2917_v53  ;;  %v2851_v37 = vsub.f32 0.0, %v14621_v5  ;;  %3232 = vst.msk [vmem:[#allocation3 + $0x10] sm:$0xff] %vm238_vm8, %v3199_v57  ;;  %11902 = vmatpush3.msra.mxu1 %v3685_v7  ;;  %12034 = vmatpush3.msra.mxu0 %v10663_v0 }
 0x21f   : > { %v12654_v40 = vpop.eup %12653  ;;  %2703 = vst.msk [vmem:[#allocation5 + $0xf8] sm:$0xff] %vm238_vm8, %v2649_v63  ;;  %v2648_v19 = vadd.f32 %v2594_v42, %v2445_v23  ;;  %3121 = vst.msk [vmem:[#allocation4 + $0x30] sm:$0xff] %vm238_vm8, %v3072_v30  ;;  %v2987_v24 = vadd.f32 1.0, %v12652_v21  ;;  %v2850_v54 = vsub.f32 0.0, %v14634_v49  ;;  %11903 = vmatprep.subr.mxu1 %v3684_v33  ;;  %12035 = vmatprep.subr.mxu0 %v10662_v48  ;;  %v3683_v50 = vld [vmem:[%s18136_s3 + $0x8] sm:$0xff]  ;;  %v10661_v53 = vld [vmem:[%s18136_s3 + $0xf8] sm:$0xff] }
 0x220   : > { %v12656_v55 = vpop.eup %12655  ;;  %v11854_v61 = vpop.f32.mrf.mxu0  ;;  %3168 = vst.msk [vmem:[#allocation4 + $0x30] sm:$0x1] %vm3166_vm9, %v18249_v45  ;;  %v3075_v60 = vmul.f32 %v12654_v40, %v14514_v52  ;;  %12679 = vrcp.f32 %v2984_v4  ;;  %v2750_v58 = vld [vmem:[#allocation5 + $0xd0] sm:$0xff]  ;;  %v14666_v59 = vld [vmem:[%s13586_s23 + $0x108] sm:$0xff]  ;;  %v2596_v43 = vld [vmem:[#allocation5 + $0x100] sm:$0xff]  ;;  %11904 = vmatpush3.msra.mxu1 %v3684_v33  ;;  %12036 = vmatpush3.msra.mxu0 %v10662_v48 }
 0x221   : > { %v12658_v6 = vpop.eup %12657  ;;  %2702 = vst.msk [vmem:[#allocation5 + $0xf0] sm:$0xff] %vm238_vm8, %v2648_v19  ;;  %v2651_v36 = vadd.f32 %v11854_v61, %v2597_v51  ;;  %v3074_v44 = vmul.f32 %v12656_v55, %v14518_v56  ;;  %12681 = vrcp.f32 %v2987_v24  ;;  %v2919_v52 = vmul.f32 1.442695, %v2850_v54  ;;  %18250 = vst [vmem:[#allocation42_spill] sm:$0xff] %v14666_v59  ;;  %v2599_v23 = vld [vmem:[#allocation5 + $0x118] sm:$0xff]  ;;  %v2598_v40 = vld [vmem:[#allocation5 + $0x110] sm:$0xff]  ;;  %11905 = vmatprep.subr.mxu1 %v3683_v50 }
 0x222   : > { %v12660_v1 = vpop.eup %12659  ;;  %v2455_v2 = vpop.f32.mrf.mxu0  ;;  %v3265_v63 = vld [vmem:[#allocation4 + $0x21] sm:$0xff]  ;;  %v3264_v30 = vld [vmem:[#allocation4 + $0x19] sm:$0xff]  ;;  %3124 = vst.msk [vmem:[#allocation4 + $0x48] sm:$0xff] %vm238_vm8, %v3075_v60  ;;  %v2986_v56 = vadd.f32 1.0, %v12658_v6  ;;  %12683 = vpow2.f32 %v2915_v20  ;;  %v2921_v57 = vmul.f32 1.442695, %v2851_v37  ;;  %v14670_v7 = vadd.f32 %v14477_v47, %v2750_v58  ;;  %12037 = vmatprep.subr.mxu0 %v10661_v53  ;;  %11906 = vmatpush3.msra.mxu1 %v3683_v50 }
 0x223   : > { %5369 = vst.msk [vmem:[#allocation2 + $0x3a] sm:$0xff] %vm354_vm5, %v14666_v59  ;;  %v12662_v0 = vpop.eup %12661  ;;  %v2650_v21 = vadd.f32 %v2596_v43, %v2455_v2  ;;  %3330 = vrot.lane.b32.xlu1 %v3265_v63, %s13326_s17  ;;  %3328 = vrot.lane.b32.xlu0 %v3264_v30, %s13326_s17  ;;  %v2985_v42 = vadd.f32 1.0, %v12660_v1  ;;  %12685 = vpow2.f32 %v2919_v52  ;;  %v3200_v4 = vld [vmem:[#allocation4 + $0x20] sm:$0xff]  ;;  %v10660_v48 = vld [vmem:[%s18136_s3 + $0xf0] sm:$0xff]  ;;  %v10659_v50 = vld [vmem:[%s18136_s3 + $0xe8] sm:$0xff] }
 0x224   : > { %2705 = vst.msk [vmem:[#allocation5 + $0x108] sm:$0xff] %vm238_vm8, %v2651_v36  ;;  %3123 = vst.msk [vmem:[#allocation4 + $0x40] sm:$0xff] %vm238_vm8, %v3074_v44  ;;  %v12664_v20 = vpop.eup %12663  ;;  %v11857_v37 = vpop.f32.mrf.mxu0  ;;  %v3077_v19 = vmul.f32 %v12662_v0, %v14524_v32  ;;  %12687 = vrcp.f32 %v2986_v56  ;;  %v2852_v51 = vsub.f32 0.0, %v14670_v7  ;;  %v2752_v24 = vld [vmem:[#allocation5 + $0xe0] sm:$0xff]  ;;  %v14686_v54 = vld [vmem:[%s13586_s23 + $0x100] sm:$0xff]  ;;  %12038 = vmatpush3.msra.mxu0 %v10661_v53 }
 0x225   : > { %3169 = vst.msk [vmem:[#allocation4 + $0x48] sm:$0x1] %vm3166_vm9, %v18249_v45  ;;  %3184 = vst.msk [vmem:[#allocation4 + $0x41] sm:$0x1] %vm3166_vm9, %v18249_v45  ;;  %v3682_v55 = vld [vmem:[%s18136_s3] sm:$0xff]  ;;  %v12666_v61 = vpop.eup %12665  ;;  %v2653_v60 = vadd.f32 %v11857_v37, %v2599_v23  ;;  %v3076_v32 = vmul.f32 %v12664_v20, %v14528_v35  ;;  %12689 = vrcp.f32 %v2985_v42  ;;  %v14694_v33 = vadd.f32 %v14477_v47, %v2752_v24  ;;  %v3202_v6 = vld [vmem:[#allocation4 + $0x38] sm:$0xff] }
 0x226   : > { %3233 = vst.msk [vmem:[#allocation3 + $0x18] sm:$0xff] %vm238_vm8, %v3200_v4  ;;  %18251 = vst [vmem:[#allocation43_spill] sm:$0xff] %v14686_v54  ;;  %v3458_v58 = vld [vmem:[#allocation4 + $0x22] sm:$0xff]  ;;  %v12668_v36 = vpop.eup %12667  ;;  %v2465_v52 = vpop.f32.mrf.mxu0  ;;  %v3457_v1 = vld [vmem:[#allocation4 + $0x1a] sm:$0xff]  ;;  %v2988_v35 = vadd.f32 1.0, %v12666_v61  ;;  %12691 = vpow2.f32 %v2921_v57  ;;  %11907 = vmatprep.subr.mxu1 %v3682_v55  ;;  %12039 = vmatprep.subr.mxu0 %v10660_v48 }
 0x227   : > { %2704 = vst.msk [vmem:[#allocation5 + $0x100] sm:$0xff] %vm238_vm8, %v2650_v21  ;;  %v2755_v44 = vld [vmem:[#allocation5 + $0xf8] sm:$0xff]  ;;  %3126 = vst.msk [vmem:[#allocation4 + $0x58] sm:$0xff] %vm238_vm8, %v3077_v19  ;;  %v2923_v2 = vmul.f32 1.442695, %v2852_v51  ;;  %v12670_v53 = vpop.eup %12669  ;;  %v2652_v63 = vadd.f32 %v2598_v40, %v2465_v52  ;;  %3523 = vrot.lane.b32.xlu1 %v3458_v58, %s13327_s11  ;;  %3521 = vrot.lane.b32.xlu0 %v3457_v1, %s13327_s11  ;;  %v2989_v30 = vadd.f32 1.0, %v12668_v36 }
 0x228   : > { %5368 = vst.msk [vmem:[#allocation2 + $0x32] sm:$0xff] %vm354_vm5, %v14686_v54  ;;  %v14707_v43 = vadd.f32 %v14477_v47, %v2755_v44  ;;  %v2854_v56 = vsub.f32 0.0, %v14694_v33  ;;  %v3201_v57 = vld [vmem:[#allocation4 + $0x30] sm:$0xff]  ;;  %v12672_v0 = vpop.eup %12671  ;;  %v11860_v21 = vpop.f32.mrf.mxu0  ;;  %v2601_v23 = vld [vmem:[#allocation5 + $0x128] sm:$0xff]  ;;  %v3079_v4 = vmul.f32 %v12670_v53, %v14534_v34  ;;  %12693 = vrcp.f32 %v2988_v35  ;;  %11908 = vmatpush3.msra.mxu1 %v3682_v55  ;;  %12040 = vmatpush3.msra.mxu0 %v10660_v48  ;;  %v10658_v24 = vld [vmem:[%s18136_s3 + $0xe0] sm:$0xff] }
 0x229   : > { %3235 = vst.msk [vmem:[#allocation3 + $0x28] sm:$0xff] %vm238_vm8, %v3202_v6  ;;  %2707 = vst.msk [vmem:[#allocation5 + $0x118] sm:$0xff] %vm238_vm8, %v2653_v60  ;;  %v2600_v42 = vld [vmem:[#allocation5 + $0x120] sm:$0xff]  ;;  %v12674_v20 = vpop.eup %12673  ;;  %v2753_v37 = vld [vmem:[#allocation5 + $0xe8] sm:$0xff]  ;;  %v2655_v19 = vadd.f32 %v11860_v21, %v2601_v23  ;;  %12695 = vrcp.f32 %v2989_v30  ;;  %v2990_v51 = vadd.f32 1.0, %v12672_v0  ;;  %12041 = vmatprep.subr.mxu0 %v10659_v50 }
 0x22a   : > { %3125 = vst.msk [vmem:[#allocation4 + $0x50] sm:$0xff] %vm238_vm8, %v3076_v32  ;;  %3234 = vst.msk [vmem:[#allocation3 + $0x20] sm:$0xff] %vm238_vm8, %v3201_v57  ;;  %v2857_v40 = vsub.f32 0.0, %v14707_v43  ;;  %v14724_v34 = vld [vmem:[%s13586_s23 + $0x110] sm:$0xff]  ;;  %v12676_v61 = vpop.eup %12675  ;;  %v2475_v55 = vpop.f32.mrf.mxu0  ;;  %v3078_v48 = vmul.f32 %v12674_v20, %v14541_v29  ;;  %12697 = vpow2.f32 %v2923_v2  ;;  %v2927_v6 = vmul.f32 1.442695, %v2854_v56  ;;  %12042 = vmatpush3.msra.mxu0 %v10659_v50 }
 0x22b   : > { %3185 = vst.msk [vmem:[#allocation4 + $0x59] sm:$0x1] %vm3166_vm9, %v18249_v45  ;;  %18252 = vst [vmem:[#allocation44_spill] sm:$0xff] %v14724_v34  ;;  %v2757_v60 = vld [vmem:[#allocation5 + $0x108] sm:$0xff]  ;;  %v12678_v36 = vpop.eup %12677  ;;  %v2654_v1 = vadd.f32 %v2600_v42, %v2475_v55  ;;  %12699 = vrcp.f32 %v2990_v51  ;;  %v2603_v50 = vld [vmem:[#allocation5 + $0x138] sm:$0xff]  ;;  %v14741_v30 = vadd.f32 %v14477_v47, %v2753_v37  ;;  %12043 = vmatprep.subr.mxu0 %v10658_v24 }
 0x22c   : > { %2706 = vst.msk [vmem:[#allocation5 + $0x110] sm:$0xff] %vm238_vm8, %v2652_v63  ;;  %v3266_v58 = vld [vmem:[#allocation4 + $0x31] sm:$0xff]  ;;  %v3267_v32 = vld [vmem:[#allocation4 + $0x39] sm:$0xff]  ;;  %3128 = vst.msk [vmem:[#allocation4 + $0x68] sm:$0xff] %vm238_vm8, %v3079_v4  ;;  %v2933_v44 = vmul.f32 1.442695, %v2857_v40  ;;  %v14731_v52 = vadd.f32 %v14477_v47, %v2757_v60  ;;  %v11863_v2 = vpop.f32.mrf.mxu0  ;;  %12701 = vpow2.f32 %v2927_v6  ;;  %12044 = vmatpush3.msra.mxu0 %v10658_v24 }
 0x22d   : > { %5370 = vst.msk [vmem:[#allocation2 + $0x4a] sm:$0xff] %vm354_vm5, %v14724_v34  ;;  %3332 = vrot.lane.b32.xlu0 %v3266_v58, %s13326_s17  ;;  %3334 = vrot.lane.b32.xlu1 %v3267_v32, %s13326_s17  ;;  %v10657_v29 = vld [vmem:[%s18136_s3 + $0xd8] sm:$0xff]  ;;  %v3203_v35 = vld [vmem:[#allocation4 + $0x48] sm:$0xff]  ;;  %v2993_v53 = vadd.f32 1.0, %v12678_v36  ;;  %v2991_v63 = vadd.f32 1.0, %v12676_v61  ;;  %v12680_v56 = vpop.eup %12679  ;;  %v2657_v0 = vadd.f32 %v11863_v2, %v2603_v50  ;;  %v2602_v21 = vld [vmem:[#allocation5 + $0x130] sm:$0xff] }
 0x22e   : > { %2709 = vst.msk [vmem:[#allocation5 + $0x128] sm:$0xff] %vm238_vm8, %v2655_v19  ;;  %3127 = vst.msk [vmem:[#allocation4 + $0x60] sm:$0xff] %vm238_vm8, %v3078_v48  ;;  %12703 = vpow2.f32 %v2933_v44  ;;  %v2859_v57 = vsub.f32 0.0, %v14731_v52  ;;  %v3459_v23 = vld [vmem:[#allocation4 + $0x32] sm:$0xff]  ;;  %v12682_v4 = vpop.eup %12681  ;;  %v2485_v37 = vpop.f32.mrf.mxu0  ;;  %v3460_v40 = vld [vmem:[#allocation4 + $0x3a] sm:$0xff]  ;;  %v3080_v19 = vmul.f32 %v12680_v56, %v14551_v38  ;;  %12045 = vmatprep.subr.mxu0 %v10657_v29  ;;  %v2855_v44 = vsub.f32 0.0, %v14741_v30 }
 0x22f   : > { %3236 = vst.msk [vmem:[#allocation3 + $0x30] sm:$0xff] %vm238_vm8, %v3203_v35  ;;  %2708 = vst.msk [vmem:[#allocation5 + $0x120] sm:$0xff] %vm238_vm8, %v2654_v1  ;;  %v14749_v42 = vld [vmem:[%s13586_s23 + $0x118] sm:$0xff]  ;;  %12705 = vrcp.f32 %v2993_v53  ;;  %v10656_v51 = vld [vmem:[%s18136_s3 + $0xd0] sm:$0xff]  ;;  %v12684_v61 = vpop.eup %12683  ;;  %v2656_v55 = vadd.f32 %v2602_v21, %v2485_v37  ;;  %v3083_v38 = vmul.f32 %v12682_v4, %v14555_v18  ;;  %12046 = vmatpush3.msra.mxu0 %v10657_v29 }
 0x230   : > { %3170 = vst.msk [vmem:[#allocation4 + $0x60] sm:$0x1] %vm3166_vm9, %v18249_v45  ;;  %18253 = vst [vmem:[#allocation45_spill] sm:$0xff] %v14749_v42  ;;  %v2759_v20 = vld [vmem:[#allocation5 + $0x118] sm:$0xff]  ;;  %v2937_v24 = vmul.f32 1.442695, %v2859_v57  ;;  %v12686_v58 = vpop.eup %12685  ;;  %v11866_v48 = vpop.f32.mrf.mxu0  ;;  %12707 = vrcp.f32 %v2991_v63  ;;  %12047 = vmatprep.subr.mxu0 %v10656_v51 }
 0x231   : > { %5371 = vst.msk [vmem:[#allocation2 + $0x52] sm:$0xff] %vm354_vm5, %v14749_v42  ;;  %v14758_v60 = vadd.f32 %v14477_v47, %v2759_v20  ;;  %3525 = vrot.lane.b32.xlu0 %v3459_v23, %s13327_s11  ;;  %3527 = vrot.lane.b32.xlu1 %v3460_v40, %s13327_s11  ;;  %v3204_v47 = vld [vmem:[#allocation4 + $0x50] sm:$0xff]  ;;  %v2751_v32 = vld [vmem:[#allocation5 + $0xd8] sm:$0xff]  ;;  %v2605_v6 = vld [vmem:[#allocation5 + $0x148] sm:$0xff]  ;;  %v2992_v18 = vadd.f32 1.0, %v12684_v61  ;;  %v12688_v1 = vpop.eup %12687  ;;  %v2994_v50 = vadd.f32 1.0, %v12686_v58 }
 0x232   : > { %2711 = vst.msk [vmem:[#allocation5 + $0x138] sm:$0xff] %vm238_vm8, %v2657_v0  ;;  %v2604_v36 = vld [vmem:[#allocation5 + $0x140] sm:$0xff]  ;;  %3129 = vst.msk [vmem:[#allocation4 + $0x70] sm:$0xff] %vm238_vm8, %v3080_v19  ;;  %12709 = vpow2.f32 %v2937_v24  ;;  %v2659_v2 = vadd.f32 %v11866_v48, %v2605_v6  ;;  %v10655_v29 = vld [vmem:[%s18136_s3 + $0xc8] sm:$0xff]  ;;  %v12690_v56 = vpop.eup %12689  ;;  %v2495_v0 = vpop.f32.mrf.mxu0  ;;  %v3082_v4 = vmul.f32 %v12688_v1, %v14564_v39  ;;  %12048 = vmatpush3.msra.mxu0 %v10656_v51  ;;  %v2929_v58 = vmul.f32 1.442695, %v2855_v44 }
 0x233   : > { %251 = vst.msk [vmem:[#allocation3 + $0x118] sm:$0xff] %vm246_vm10, %v18249_v45  ;;  %v2861_v35 = vsub.f32 0.0, %v14758_v60  ;;  %v14784_v53 = vld [vmem:[%s13586_s23 + $0x128] sm:$0xff]  ;;  %v3269_v21 = vld [vmem:[#allocation4 + $0x51] sm:$0xff]  ;;  %12711 = vrcp.f32 %v2992_v18  ;;  %v12692_v20 = vpop.eup %12691  ;;  %v14795_v40 = vld [vmem:[%s18135_s2] ss:$0 sm:$0xff]  ;;  %v2658_v39 = vadd.f32 %v2604_v36, %v2495_v0  ;;  %v3081_v61 = vmul.f32 %v12690_v56, %v14547_v3  ;;  %12049 = vmatprep.subr.mxu0 %v10655_v29 }
 0x234   : > { %3237 = vst.msk [vmem:[#allocation3 + $0x38] sm:$0xff] %vm238_vm8, %v3204_v47  ;;  %2710 = vst.msk [vmem:[#allocation5 + $0x130] sm:$0xff] %vm238_vm8, %v2656_v55  ;;  %v3206_v63 = vld [vmem:[#allocation4 + $0x68] sm:$0xff]  ;;  %v10654_v24 = vld [vmem:[%s18136_s3 + $0xc0] sm:$0xff]  ;;  %v11869_v55 = vpop.f32.mrf.mxu0  ;;  %v2995_v47 = vadd.f32 1.0, %v12692_v20  ;;  %12713 = vrcp.f32 %v2994_v50  ;;  %v14809_v48 = vadd.f32 %v14795_v40, %v2751_v32  ;;  %12050 = vmatpush3.msra.mxu0 %v10655_v29 }
 0x235   : > { %3186 = vst.msk [vmem:[#allocation4 + $0x71] sm:$0x1] %vm3166_vm9, %v18249_v45  ;;  %18254 = vst [vmem:[#allocation46_spill] sm:$0xff] %v14784_v53  ;;  %v2761_v57 = vld [vmem:[#allocation5 + $0x128] sm:$0xff]  ;;  %v3268_v23 = vld [vmem:[#allocation4 + $0x49] sm:$0xff]  ;;  %3338 = vrot.lane.b32.xlu1 %v3269_v21, %s13326_s17  ;;  %v12694_v18 = vpop.eup %12693  ;;  %12051 = vmatprep.subr.mxu0 %v10654_v24 }
 0x236   : > { %3132 = vst.msk [vmem:[#allocation4 + $0x88] sm:$0xff] %vm238_vm8, %v3083_v38  ;;  %3239 = vst.msk [vmem:[#allocation3 + $0x48] sm:$0xff] %vm238_vm8, %v3206_v63  ;;  %v2941_v37 = vmul.f32 1.442695, %v2861_v35  ;;  %v14798_v19 = vadd.f32 %v14795_v40, %v2761_v57  ;;  %3336 = vrot.lane.b32.xlu0 %v3268_v23, %s13326_s17  ;;  %v2607_v51 = vld [vmem:[#allocation5 + $0x158] sm:$0xff]  ;;  %v2606_v38 = vld [vmem:[#allocation5 + $0x150] sm:$0xff]  ;;  %v12696_v32 = vpop.eup %12695  ;;  %v2505_v50 = vpop.f32.mrf.mxu0  ;;  %v3084_v56 = vmul.f32 %v12694_v18, %v14574_v41  ;;  %12052 = vmatpush3.msra.mxu0 %v10654_v24 }
 0x237   : > { %3187 = vst.msk [vmem:[#allocation4 + $0x89] sm:$0x1] %vm3166_vm9, %v18249_v45  ;;  %v14812_v6 = vld [vmem:[%s13586_s23 + $0x120] sm:$0xff]  ;;  %v2661_v35 = vadd.f32 %v11869_v55, %v2607_v51  ;;  %v3461_v63 = vld [vmem:[#allocation4 + $0x4a] sm:$0xff]  ;;  %v12698_v21 = vpop.eup %12697  ;;  %v3085_v20 = vmul.f32 %v12696_v32, %v14570_v46 }
 0x238   : > { %5373 = vst.msk [vmem:[#allocation2 + $0x6a] sm:$0xff] %vm354_vm5, %v14784_v53  ;;  %18255 = vst [vmem:[#allocation47_spill] sm:$0xff] %v14812_v6  ;;  %v3205_v36 = vld [vmem:[#allocation4 + $0x60] sm:$0xff]  ;;  %12715 = vpow2.f32 %v2941_v37  ;;  %v2863_v1 = vsub.f32 0.0, %v14798_v19  ;;  %v3651_v0 = vld [vmem:[#allocation3 + $0x8] sm:$0xff]  ;;  %v12700_v37 = vpop.eup %12699  ;;  %v11872_v41 = vpop.f32.mrf.mxu0  ;;  %v2996_v51 = vadd.f32 1.0, %v12698_v21 }
 0x239   : > { %2713 = vst.msk [vmem:[#allocation5 + $0x148] sm:$0xff] %vm238_vm8, %v2659_v2  ;;  %3131 = vst.msk [vmem:[#allocation4 + $0x80] sm:$0xff] %vm238_vm8, %v3082_v4  ;;  %v2754_v3 = vld [vmem:[#allocation5 + $0xf0] sm:$0xff]  ;;  %v3462_v2 = vld [vmem:[#allocation4 + $0x52] sm:$0xff]  ;;  %12717 = vrcp.f32 %v2995_v47  ;;  %v2660_v4 = vadd.f32 %v2606_v38, %v2505_v50  ;;  %v12702_v38 = vpop.eup %12701 }
 0x23a   : > { %2712 = vst.msk [vmem:[#allocation5 + $0x140] sm:$0xff] %vm238_vm8, %v2658_v39  ;;  %3130 = vst.msk [vmem:[#allocation4 + $0x78] sm:$0xff] %vm238_vm8, %v3081_v61  ;;  %v2763_v44 = vld [vmem:[#allocation5 + $0x138] sm:$0xff]  ;;  %v3650_v57 = vld [vmem:[#allocation3] sm:$0xff]  ;;  %v2945_v23 = vmul.f32 1.442695, %v2863_v1  ;;  %3531 = vrot.lane.b32.xlu1 %v3462_v2, %s13327_s11  ;;  %3529 = vrot.lane.b32.xlu0 %v3461_v63, %s13327_s11  ;;  %12719 = vpow2.f32 %v2929_v58  ;;  %v14833_v55 = vadd.f32 %v14795_v40, %v2754_v3  ;;  %v2515_v24 = vpop.f32.mrf.mxu0 }
 0x23b   : > { %5372 = vst.msk [vmem:[#allocation2 + $0x62] sm:$0xff] %vm354_vm5, %v14812_v6  ;;  %v14824_v29 = vadd.f32 %v14795_v40, %v2763_v44  ;;  %v2609_v39 = vld [vmem:[#allocation5 + $0x168] sm:$0xff]  ;;  %v2853_v61 = vsub.f32 0.0, %v14809_v48  ;;  %11909 = vmatprep.mubr.msk.f32.mxu1 %vm246_vm10, %v3650_v57  ;;  %v3086_v58 = vmul.f32 %v12700_v37, %v14589_v16  ;;  %v12704_v18 = vpop.eup %12703  ;;  %v3270_v1 = vld [vmem:[#allocation4 + $0x61] sm:$0xff]  ;;  %v2998_v2 = vadd.f32 1.0, %v12702_v38  ;;  %v2756_v44 = vld [vmem:[#allocation5 + $0x100] sm:$0xff] }
 0x23c   : > { %3238 = vst.msk [vmem:[#allocation3 + $0x40] sm:$0xff] %vm238_vm8, %v3205_v36  ;;  %2715 = vst.msk [vmem:[#allocation5 + $0x158] sm:$0xff] %vm238_vm8, %v2661_v35  ;;  %12721 = vpow2.f32 %v2945_v23  ;;  %v2663_v46 = vadd.f32 %v11872_v41, %v2609_v39  ;;  %v2608_v36 = vld [vmem:[#allocation5 + $0x160] sm:$0xff]  ;;  %11910 = vmatmul.mubr.msk.f32.vlgmr.msra.gmra.mxu1 %vm246_vm10, %v3651_v0  ;;  %v12706_v63 = vpop.eup %12705  ;;  %v3001_v32 = vadd.f32 1.0, %v12704_v18  ;;  %v11875_v0 = vpop.f32.mrf.mxu0  ;;  %v2611_v21 = vld [vmem:[#allocation5 + $0x178] sm:$0xff] }
 0x23d   : > { %3171 = vst.msk [vmem:[#allocation4 + $0x78] sm:$0x1] %vm3166_vm9, %v18249_v45  ;;  %v2865_v47 = vsub.f32 0.0, %v14824_v29  ;;  %v3271_v35 = vld [vmem:[#allocation4 + $0x69] sm:$0xff]  ;;  %12723 = vrcp.f32 %v2996_v51  ;;  %v2662_v57 = vadd.f32 %v2608_v36, %v2515_v24  ;;  %v3089_v23 = vmul.f32 %v12706_v63, %v14598_v22  ;;  %v12708_v37 = vpop.eup %12707  ;;  %v2758_v41 = vld [vmem:[#allocation5 + $0x110] sm:$0xff] }
 0x23e   : > { %3133 = vst.msk [vmem:[#allocation4 + $0x90] sm:$0xff] %vm238_vm8, %v3084_v56  ;;  %2714 = vst.msk [vmem:[#allocation5 + $0x150] sm:$0xff] %vm238_vm8, %v2660_v4  ;;  %3340 = vrot.lane.b32.xlu0 %v3270_v1, %s13326_s17  ;;  %3342 = vrot.lane.b32.xlu1 %v3271_v35, %s13326_s17  ;;  %12725 = vrcp.f32 %v2998_v2  ;;  %v2925_v4 = vmul.f32 1.442695, %v2853_v61  ;;  %v2665_v51 = vadd.f32 %v11875_v0, %v2611_v21  ;;  %v2610_v38 = vld [vmem:[#allocation5 + $0x170] sm:$0xff]  ;;  %v2525_v22 = vpop.f32.mrf.mxu0  ;;  %v3464_v61 = vld [vmem:[#allocation4 + $0x6a] sm:$0xff] }
 0x23f   : > { %3134 = vst.msk [vmem:[#allocation4 + $0x98] sm:$0xff] %vm238_vm8, %v3085_v20  ;;  %v2949_v50 = vmul.f32 1.442695, %v2865_v47  ;;  %2717 = vst.msk [vmem:[#allocation5 + $0x168] sm:$0xff] %vm238_vm8, %v2663_v46  ;;  %v2856_v20 = vsub.f32 0.0, %v14833_v55  ;;  %12727 = vrcp.f32 %v3001_v32  ;;  %v12710_v46 = vpop.eup %12709  ;;  %v3087_v18 = vmul.f32 %v12708_v37, %v14580_v31  ;;  %v2613_v32 = vld [vmem:[#allocation5 + $0x188] sm:$0xff] }
 0x240   : > { %3172 = vst.msk [vmem:[#allocation4 + $0x90] sm:$0x1] %vm3166_vm9, %v18249_v45  ;;  %v2765_v3 = vld [vmem:[#allocation5 + $0x148] sm:$0xff]  ;;  %v3208_v16 = vld [vmem:[#allocation4 + $0x80] sm:$0xff]  ;;  %v12712_v24 = vpop.eup %12711  ;;  %v3003_v1 = vadd.f32 1.0, %v12710_v46  ;;  %v2664_v63 = vadd.f32 %v2610_v38, %v2525_v22  ;;  %v11878_v31 = vpop.f32.mrf.mxu0 }
 0x241   : > { %v14844_v56 = vadd.f32 %v14795_v40, %v2765_v3  ;;  %3135 = vst.msk [vmem:[#allocation4 + $0xa0] sm:$0xff] %vm238_vm8, %v3086_v58  ;;  %3241 = vst.msk [vmem:[#allocation3 + $0x58] sm:$0xff] %vm238_vm8, %v3208_v16  ;;  %12729 = vpow2.f32 %v2949_v50  ;;  %v3463_v58 = vld [vmem:[#allocation4 + $0x62] sm:$0xff]  ;;  %v14860_v3 = vadd.f32 %v14795_v40, %v2756_v44  ;;  %v3088_v44 = vmul.f32 %v12712_v24, %v14615_v62  ;;  %v12714_v16 = vpop.eup %12713 }
 0x242   : > { %3188 = vst.msk [vmem:[#allocation4 + $0xa1] sm:$0x1] %vm3166_vm9, %v18249_v45  ;;  %3533 = vrot.lane.b32.xlu0 %v3463_v58, %s13327_s11  ;;  %3535 = vrot.lane.b32.xlu1 %v3464_v61, %s13327_s11  ;;  %12731 = vpow2.f32 %v2925_v4  ;;  %v2931_v50 = vmul.f32 1.442695, %v2856_v20  ;;  %v2667_v21 = vadd.f32 %v11878_v31, %v2613_v32  ;;  %v2535_v20 = vpop.f32.mrf.mxu0  ;;  %v3090_v38 = vmul.f32 %v12714_v16, %v14634_v49  ;;  %v2615_v49 = vld [vmem:[#allocation5 + $0x198] sm:$0xff]  ;;  %v2762_v31 = vld [vmem:[#allocation5 + $0x130] sm:$0xff] }
 0x243   : > { %v2867_v39 = vsub.f32 0.0, %v14844_v56  ;;  %2716 = vst.msk [vmem:[#allocation5 + $0x160] sm:$0xff] %vm238_vm8, %v2662_v57  ;;  %v2767_v36 = vld [vmem:[#allocation5 + $0x158] sm:$0xff]  ;;  %3138 = vst.msk [vmem:[#allocation4 + $0xb8] sm:$0xff] %vm238_vm8, %v3089_v23  ;;  %v14874_v57 = vadd.f32 %v14795_v40, %v2758_v41  ;;  %12733 = vrcp.f32 %v3003_v1  ;;  %v2612_v23 = vld [vmem:[#allocation5 + $0x180] sm:$0xff]  ;;  %v2858_v1 = vsub.f32 0.0, %v14860_v3 }
 0x244   : > { %v3207_v47 = vld [vmem:[#allocation4 + $0x78] sm:$0xff]  ;;  %v14864_v2 = vadd.f32 %v14795_v40, %v2767_v36  ;;  %2719 = vst.msk [vmem:[#allocation5 + $0x178] sm:$0xff] %vm238_vm8, %v2665_v51  ;;  %3136 = vst.msk [vmem:[#allocation4 + $0xa8] sm:$0xff] %vm238_vm8, %v3087_v18  ;;  %v3273_v51 = vld [vmem:[#allocation4 + $0x81] sm:$0xff]  ;;  %v2666_v61 = vadd.f32 %v2612_v23, %v2535_v20  ;;  %v11881_v18 = vpop.f32.mrf.mxu0 }
 0x245   : > { %3240 = vst.msk [vmem:[#allocation3 + $0x50] sm:$0xff] %vm238_vm8, %v3207_v47  ;;  %v2953_v35 = vmul.f32 1.442695, %v2867_v39  ;;  %2718 = vst.msk [vmem:[#allocation5 + $0x170] sm:$0xff] %vm238_vm8, %v2664_v63  ;;  %v12716_v39 = vpop.eup %12715  ;;  %v3272_v41 = vld [vmem:[#allocation4 + $0x79] sm:$0xff]  ;;  %v2760_v36 = vld [vmem:[#allocation5 + $0x120] sm:$0xff] }
 0x246   : > { %3189 = vst.msk [vmem:[#allocation4 + $0xb9] sm:$0x1] %vm3166_vm9, %v18249_v45  ;;  %v2869_v0 = vsub.f32 0.0, %v14864_v2  ;;  %3173 = vst.msk [vmem:[#allocation4 + $0xa8] sm:$0x1] %vm3166_vm9, %v18249_v45  ;;  %v3210_v62 = vld [vmem:[#allocation4 + $0x98] sm:$0xff]  ;;  %v12718_v47 = vpop.eup %12717  ;;  %3346 = vrot.lane.b32.xlu1 %v3273_v51, %s13326_s17  ;;  %3344 = vrot.lane.b32.xlu0 %v3272_v41, %s13326_s17 }
 0x247   : > { %v3209_v37 = vld [vmem:[#allocation4 + $0x90] sm:$0xff]  ;;  %12735 = vpow2.f32 %v2953_v35  ;;  %v2769_v4 = vld [vmem:[#allocation5 + $0x168] sm:$0xff]  ;;  %3137 = vst.msk [vmem:[#allocation4 + $0xb0] sm:$0xff] %vm238_vm8, %v3088_v44  ;;  %3243 = vst.msk [vmem:[#allocation3 + $0x68] sm:$0xff] %vm238_vm8, %v3210_v62  ;;  %v3005_v46 = vadd.f32 1.0, %v12716_v39  ;;  %v3091_v24 = vmul.f32 %v12718_v47, %v14621_v5  ;;  %v2860_v35 = vsub.f32 0.0, %v14874_v57  ;;  %v12720_v63 = vpop.eup %12719 }
 0x248   : > { %3242 = vst.msk [vmem:[#allocation3 + $0x60] sm:$0xff] %vm238_vm8, %v3209_v37  ;;  %v2957_v22 = vmul.f32 1.442695, %v2869_v0  ;;  %v14885_v58 = vadd.f32 %v14795_v40, %v2769_v4  ;;  %2721 = vst.msk [vmem:[#allocation5 + $0x188] sm:$0xff] %vm238_vm8, %v2667_v21  ;;  %12737 = vpow2.f32 %v2931_v50  ;;  %v2669_v44 = vadd.f32 %v11881_v18, %v2615_v49  ;;  %v2614_v16 = vld [vmem:[#allocation5 + $0x190] sm:$0xff]  ;;  %v2545_v50 = vpop.f32.mrf.mxu0  ;;  %v2764_v20 = vld [vmem:[#allocation5 + $0x140] sm:$0xff] }
 0x249   : > { %3139 = vst.msk [vmem:[#allocation4 + $0xc0] sm:$0xff] %vm238_vm8, %v3090_v38  ;;  %12739 = vrcp.f32 %v3005_v46  ;;  %2720 = vst.msk [vmem:[#allocation5 + $0x180] sm:$0xff] %vm238_vm8, %v2666_v61  ;;  %v12722_v5 = vpop.eup %12721  ;;  %v3466_v21 = vld [vmem:[#allocation4 + $0x82] sm:$0xff]  ;;  %v3465_v23 = vld [vmem:[#allocation4 + $0x7a] sm:$0xff]  ;;  %v2999_v37 = vadd.f32 1.0, %v12720_v63  ;;  %v14900_v62 = vadd.f32 %v14795_v40, %v2760_v36  ;;  %v2668_v38 = vadd.f32 %v2614_v16, %v2545_v50 }
 0x24a   : > { %v2871_v32 = vsub.f32 0.0, %v14885_v58  ;;  %3174 = vst.msk [vmem:[#allocation4 + $0xc0] sm:$0x1] %vm3166_vm9, %v18249_v45  ;;  %12741 = vpow2.f32 %v2957_v22  ;;  %v12724_v39 = vpop.eup %12723  ;;  %v3007_v4 = vadd.f32 1.0, %v12722_v5  ;;  %3539 = vrot.lane.b32.xlu1 %v3466_v21, %s13327_s11  ;;  %3537 = vrot.lane.b32.xlu0 %v3465_v23, %s13327_s11  ;;  %v2617_v47 = vld [vmem:[#allocation5 + $0x1a8] sm:$0xff]  ;;  %v11884_v46 = vpop.f32.mrf.mxu0  ;;  %v2616_v22 = vld [vmem:[#allocation5 + $0x1a0] sm:$0xff] }
 0x24b   : > { %v2771_v0 = vld [vmem:[#allocation5 + $0x178] sm:$0xff]  ;;  %3140 = vst.msk [vmem:[#allocation4 + $0xc8] sm:$0xff] %vm238_vm8, %v3091_v24  ;;  %2723 = vst.msk [vmem:[#allocation5 + $0x198] sm:$0xff] %vm238_vm8, %v2669_v44  ;;  %v3092_v36 = vmul.f32 %v12724_v39, %v14670_v7  ;;  %12743 = vrcp.f32 %v2999_v37  ;;  %v2935_v61 = vmul.f32 1.442695, %v2858_v1  ;;  %v12726_v24 = vpop.eup %12725  ;;  %v2766_v63 = vld [vmem:[#allocation5 + $0x150] sm:$0xff]  ;;  %v2671_v44 = vadd.f32 %v11884_v46, %v2617_v47 }
 0x24c   : > { %v2961_v51 = vmul.f32 1.442695, %v2871_v32  ;;  %v14903_v41 = vadd.f32 %v14795_v40, %v2771_v0  ;;  %v2939_v18 = vmul.f32 1.442695, %v2860_v35  ;;  %12745 = vrcp.f32 %v3007_v4  ;;  %2722 = vst.msk [vmem:[#allocation5 + $0x190] sm:$0xff] %vm238_vm8, %v2668_v38  ;;  %v3274_v16 = vld [vmem:[#allocation4 + $0x91] sm:$0xff]  ;;  %v12728_v7 = vpop.eup %12727  ;;  %v2555_v50 = vpop.f32.mrf.mxu0 }
 0x24d   : > { %v3211_v49 = vld [vmem:[#allocation4 + $0xa8] sm:$0xff]  ;;  %v3275_v5 = vld [vmem:[#allocation4 + $0x99] sm:$0xff]  ;;  %v14912_v0 = vadd.f32 %v14795_v40, %v2762_v31  ;;  %v2768_v1 = vld [vmem:[#allocation5 + $0x160] sm:$0xff]  ;;  %3141 = vst.msk [vmem:[#allocation4 + $0xd0] sm:$0xff] %vm238_vm8, %v3092_v36  ;;  %v3094_v21 = vmul.f32 %v12726_v24, %v14694_v33  ;;  %v2862_v23 = vsub.f32 0.0, %v14900_v62  ;;  %v14919_v37 = vadd.f32 %v14795_v40, %v2764_v20 }
 0x24e   : > { %v2873_v32 = vsub.f32 0.0, %v14903_v41  ;;  %3244 = vst.msk [vmem:[#allocation3 + $0x70] sm:$0xff] %vm238_vm8, %v3211_v49  ;;  %12747 = vpow2.f32 %v2961_v51  ;;  %v3212_v39 = vld [vmem:[#allocation4 + $0xb0] sm:$0xff]  ;;  %v12730_v4 = vpop.eup %12729  ;;  %2725 = vst.msk [vmem:[#allocation5 + $0x1a8] sm:$0xff] %vm238_vm8, %v2671_v44  ;;  %v2670_v51 = vadd.f32 %v2616_v22, %v2555_v50  ;;  %3348 = vrot.lane.b32.xlu0 %v3274_v16, %s13326_s17  ;;  %3350 = vrot.lane.b32.xlu1 %v3275_v5, %s13326_s17  ;;  %v2770_v47 = vld [vmem:[#allocation5 + $0x170] sm:$0xff] }
 0x24f   : > { %v2773_v35 = vld [vmem:[#allocation5 + $0x188] sm:$0xff]  ;;  %3190 = vst.msk [vmem:[#allocation4 + $0xd1] sm:$0x1] %vm3166_vm9, %v18249_v45  ;;  %v3097_v33 = vmul.f32 %v12728_v7, %v14707_v43  ;;  %v3009_v20 = vadd.f32 1.0, %v12730_v4  ;;  %12749 = vpow2.f32 %v2935_v61  ;;  %v14933_v46 = vadd.f32 %v14795_v40, %v2766_v63  ;;  %v12732_v36 = vpop.eup %12731 }
 0x250   : > { %v2965_v31 = vmul.f32 1.442695, %v2873_v32  ;;  %v14922_v38 = vadd.f32 %v14795_v40, %v2773_v35  ;;  %3245 = vst.msk [vmem:[#allocation3 + $0x78] sm:$0xff] %vm238_vm8, %v3212_v39  ;;  %3143 = vst.msk [vmem:[#allocation4 + $0xe0] sm:$0xff] %vm238_vm8, %v3094_v21  ;;  %v2864_v43 = vsub.f32 0.0, %v14912_v0  ;;  %v14940_v24 = vadd.f32 %v14795_v40, %v2768_v1  ;;  %v12734_v32 = vpop.eup %12733  ;;  %v3467_v63 = vld [vmem:[#allocation4 + $0x92] sm:$0xff] }
 0x251   : > { %v3213_v22 = vld [vmem:[#allocation4 + $0xc0] sm:$0xff]  ;;  %2724 = vst.msk [vmem:[#allocation5 + $0x1a0] sm:$0xff] %vm238_vm8, %v2670_v51  ;;  %3146 = vst.msk [vmem:[#allocation4 + $0xf8] sm:$0xff] %vm238_vm8, %v3097_v33  ;;  %v2997_v16 = vadd.f32 1.0, %v12732_v36  ;;  %v2943_v5 = vmul.f32 1.442695, %v2862_v23  ;;  %v3099_v1 = vmul.f32 %v12734_v32, %v14731_v52  ;;  %v14949_v39 = vadd.f32 %v14795_v40, %v2770_v47 }
 0x252   : > { %12751 = vpow2.f32 %v2965_v31  ;;  %v2875_v49 = vsub.f32 0.0, %v14922_v38  ;;  %3246 = vst.msk [vmem:[#allocation3 + $0x80] sm:$0xff] %vm238_vm8, %v3213_v22  ;;  %v3214_v61 = vld [vmem:[#allocation4 + $0xc8] sm:$0xff]  ;;  %v3468_v44 = vld [vmem:[#allocation4 + $0x9a] sm:$0xff]  ;;  %v2866_v7 = vsub.f32 0.0, %v14919_v37  ;;  %v2772_v21 = vld [vmem:[#allocation5 + $0x180] sm:$0xff]  ;;  %3541 = vrot.lane.b32.xlu0 %v3467_v63, %s13327_s11 }
 0x253   : > { %12753 = vrcp.f32 %v3009_v20  ;;  %3247 = vst.msk [vmem:[#allocation3 + $0x88] sm:$0xff] %vm238_vm8, %v3214_v61  ;;  %3543 = vrot.lane.b32.xlu1 %v3468_v44, %s13327_s11  ;;  %v2868_v23 = vsub.f32 0.0, %v14933_v46  ;;  %v2774_v51 = vld [vmem:[#allocation5 + $0x190] sm:$0xff]  ;;  %3148 = vst.msk [vmem:[#allocation4 + $0x108] sm:$0xff] %vm238_vm8, %v3099_v1  ;;  %v2947_v33 = vmul.f32 1.442695, %v2864_v43  ;;  %v14957_v47 = vadd.f32 %v14795_v40, %v2772_v21 }
 0x254   : > { %v12736_v35 = vpop.eup %12735  ;;  %v2969_v50 = vmul.f32 1.442695, %v2875_v49  ;;  %12755 = vpow2.f32 %v2939_v18  ;;  %v2870_v20 = vsub.f32 0.0, %v14940_v24  ;;  %v3277_v18 = vld [vmem:[#allocation4 + $0xb1] sm:$0xff]  ;;  %v3276_v36 = vld [vmem:[#allocation4 + $0xa9] sm:$0xff]  ;;  %v2872_v32 = vsub.f32 0.0, %v14949_v39 }
 0x255   : > { %v3011_v4 = vadd.f32 1.0, %v12736_v35  ;;  %12757 = vrcp.f32 %v2997_v16  ;;  %v12738_v31 = vpop.eup %12737  ;;  %3177 = vst.msk [vmem:[#allocation4 + $0x108] sm:$0x1] %vm3166_vm9, %v18249_v45  ;;  %v2951_v61 = vmul.f32 1.442695, %v2866_v7  ;;  %v14964_v35 = vadd.f32 %v14795_v40, %v2774_v51  ;;  %v3469_v7 = vld [vmem:[#allocation4 + $0xaa] sm:$0xff] }
 0x256   : > { %12759 = vpow2.f32 %v2969_v50  ;;  %v12740_v22 = vpop.eup %12739  ;;  %v3000_v52 = vadd.f32 1.0, %v12738_v31  ;;  %3352 = vrot.lane.b32.xlu0 %v3276_v36, %s13326_s17  ;;  %v2955_v16 = vmul.f32 1.442695, %v2868_v23  ;;  %v2959_v1 = vmul.f32 1.442695, %v2870_v20  ;;  %v3279_v36 = vld [vmem:[#allocation4 + $0xc9] sm:$0xff] }
 0x257   : > { %12761 = vrcp.f32 %v3011_v4  ;;  %v12742_v49 = vpop.eup %12741  ;;  %3354 = vrot.lane.b32.xlu1 %v3277_v18, %s13326_s17  ;;  %v3101_v43 = vmul.f32 %v12740_v22, %v14758_v60  ;;  %v3216_v63 = vld [vmem:[#allocation4 + $0xe0] sm:$0xff]  ;;  %v2874_v40 = vsub.f32 0.0, %v14957_v47  ;;  %v2963_v51 = vmul.f32 1.442695, %v2872_v32  ;;  %v14985_v32 = vld [vmem:[%s13586_s23 + $0x130] sm:$0xff] }
 0x258   : > { %12763 = vpow2.f32 %v2943_v5  ;;  %v3013_v44 = vadd.f32 1.0, %v12742_v49  ;;  %3249 = vst.msk [vmem:[#allocation3 + $0x98] sm:$0xff] %vm238_vm8, %v3216_v63  ;;  %v3218_v50 = vld [vmem:[#allocation4 + $0xf8] sm:$0xff]  ;;  %v12744_v21 = vpop.eup %12743  ;;  %18256 = vst [vmem:[#allocation48_spill] sm:$0xff] %v14985_v32 }
 0x259   : > { %12765 = vrcp.f32 %v3000_v52  ;;  %3150 = vst.msk [vmem:[#allocation4 + $0x118] sm:$0xff] %vm238_vm8, %v3101_v43  ;;  %3251 = vst.msk [vmem:[#allocation3 + $0xa8] sm:$0xff] %vm238_vm8, %v3218_v50  ;;  %v12746_v60 = vpop.eup %12745  ;;  %v3470_v5 = vld [vmem:[#allocation4 + $0xb2] sm:$0xff]  ;;  %v3095_v4 = vmul.f32 %v12744_v21, %v14741_v30  ;;  %v2876_v30 = vsub.f32 0.0, %v14964_v35  ;;  %v2967_v49 = vmul.f32 1.442695, %v2874_v40 }
 0x25a   : > { %12767 = vpow2.f32 %v2947_v33  ;;  %3193 = vst.msk [vmem:[#allocation4 + $0x119] sm:$0x1] %vm3166_vm9, %v18249_v45  ;;  %3545 = vrot.lane.b32.xlu0 %v3469_v7, %s13327_s11  ;;  %v3103_v31 = vmul.f32 %v12746_v60, %v14798_v19  ;;  %v3278_v19 = vld [vmem:[#allocation4 + $0xc1] sm:$0xff]  ;;  %v10621_v63 = vld [vmem:[%s18136_s3 + $0xb8] sm:$0xff]  ;;  %v3472_v7 = vld [vmem:[#allocation4 + $0xca] sm:$0xff] }
 0x25b   : > { %12769 = vrcp.f32 %v3013_v44  ;;  %v12748_v23 = vpop.eup %12747  ;;  %3547 = vrot.lane.b32.xlu1 %v3470_v5, %s13327_s11  ;;  %3144 = vst.msk [vmem:[#allocation4 + $0xe8] sm:$0xff] %vm238_vm8, %v3095_v4  ;;  %v2971_v50 = vmul.f32 1.442695, %v2876_v30  ;;  %11957 = vmatprep.subr.mxu1 %v10621_v63  ;;  %v3471_v5 = vld [vmem:[#allocation4 + $0xc2] sm:$0xff] }
 0x25c   : > { %12771 = vpow2.f32 %v2951_v61  ;;  %v3015_v33 = vadd.f32 1.0, %v12748_v23  ;;  %v12750_v20 = vpop.eup %12749  ;;  %3191 = vst.msk [vmem:[#allocation4 + $0xe9] sm:$0x1] %vm3166_vm9, %v18249_v45  ;;  %v3219_v22 = vld [vmem:[#allocation4 + $0x108] sm:$0xff]  ;;  %11958 = vmatpush3.msra.mxu1 %v10621_v63  ;;  %v15000_v23 = vld [vmem:[%s13586_s23 + $0x138] sm:$0xff] }
 0x25d   : > { %12773 = vpow2.f32 %v2955_v16  ;;  %3152 = vst.msk [vmem:[#allocation4 + $0x128] sm:$0xff] %vm238_vm8, %v3103_v31  ;;  %v3002_v52 = vadd.f32 1.0, %v12750_v20  ;;  %3252 = vst.msk [vmem:[#allocation3 + $0xb0] sm:$0xff] %vm238_vm8, %v3219_v22  ;;  %v10620_v31 = vld [vmem:[%s18136_s3 + $0xb0] sm:$0xff] }
 0x25e   : > { %12775 = vpow2.f32 %v2959_v1  ;;  %3356 = vrot.lane.b32.xlu0 %v3278_v19, %s13326_s17  ;;  %5374 = vst.msk [vmem:[#allocation2 + $0x7a] sm:$0xff] %vm354_vm5, %v14985_v32  ;;  %18257 = vst [vmem:[#allocation49_spill] sm:$0xff] %v15000_v23  ;;  %11959 = vmatprep.subr.mxu1 %v10620_v31 }
 0x25f   : > { %v12752_v18 = vpop.eup %12751  ;;  %12777 = vrcp.f32 %v3015_v33  ;;  %3358 = vrot.lane.b32.xlu1 %v3279_v36, %s13326_s17  ;;  %5375 = vst.msk [vmem:[#allocation2 + $0x82] sm:$0xff] %vm354_vm5, %v15000_v23  ;;  %11960 = vmatpush3.msra.mxu1 %v10620_v31 }
 0x260   : > { %v12754_v43 = vpop.eup %12753  ;;  %v3017_v61 = vadd.f32 1.0, %v12752_v18  ;;  %12779 = vpow2.f32 %v2963_v51 }
 0x261   : > { %v12756_v44 = vpop.eup %12755  ;;  %12781 = vrcp.f32 %v3002_v52  ;;  %v3105_v16 = vmul.f32 %v12754_v43, %v14824_v29 }
 0x262   : > { %v12758_v21 = vpop.eup %12757  ;;  %12783 = vrcp.f32 %v3017_v61  ;;  %v3004_v1 = vadd.f32 1.0, %v12756_v44  ;;  %3549 = vrot.lane.b32.xlu0 %v3471_v5, %s13327_s11  ;;  %v3281_v18 = vld [vmem:[#allocation4 + $0xe1] sm:$0xff] }
 0x263   : > { %v12760_v60 = vpop.eup %12759  ;;  %v3093_v4 = vmul.f32 %v12758_v21, %v14809_v48  ;;  %3154 = vst.msk [vmem:[#allocation4 + $0x138] sm:$0xff] %vm238_vm8, %v3105_v16  ;;  %12785 = vpow2.f32 %v2967_v49  ;;  %3551 = vrot.lane.b32.xlu1 %v3472_v7, %s13327_s11  ;;  %v3474_v63 = vld [vmem:[#allocation4 + $0xe2] sm:$0xff] }
 0x264   : > { %v12762_v40 = vpop.eup %12761  ;;  %v3019_v29 = vadd.f32 1.0, %v12760_v60  ;;  %12787 = vrcp.f32 %v3004_v1  ;;  %3179 = vst.msk [vmem:[#allocation4 + $0x138] sm:$0x1] %vm3166_vm9, %v18249_v45  ;;  %v3222_v33 = vld [vmem:[#allocation4 + $0x128] sm:$0xff] }
 0x265   : > { %v12764_v48 = vpop.eup %12763  ;;  %3142 = vst.msk [vmem:[#allocation4 + $0xd8] sm:$0xff] %vm238_vm8, %v3093_v4  ;;  %v3107_v51 = vmul.f32 %v12762_v40, %v14844_v56  ;;  %12789 = vpow2.f32 %v2971_v50  ;;  %3255 = vst.msk [vmem:[#allocation3 + $0xc8] sm:$0xff] %vm238_vm8, %v3222_v33  ;;  %v15032_v4 = vld [vmem:[%s13586_s23 + $0x148] sm:$0xff] }
 0x266   : > { %v12766_v30 = vpop.eup %12765  ;;  %12791 = vrcp.f32 %v3019_v29  ;;  %3175 = vst.msk [vmem:[#allocation4 + $0xd8] sm:$0x1] %vm3166_vm9, %v18249_v45  ;;  %v3006_v20 = vadd.f32 1.0, %v12764_v48  ;;  %18259 = vst [vmem:[#allocation51_spill] sm:$0xff] %v15032_v4  ;;  %v10619_v40 = vld [vmem:[%s18136_s3 + $0xa8] sm:$0xff] }
 0x267   : > { %v12768_v22 = vpop.eup %12767  ;;  %v3096_v19 = vmul.f32 %v12766_v30, %v14833_v55  ;;  %3156 = vst.msk [vmem:[#allocation4 + $0x148] sm:$0xff] %vm238_vm8, %v3107_v51  ;;  %3362 = vrot.lane.b32.xlu1 %v3281_v18, %s13326_s17  ;;  %11961 = vmatprep.subr.mxu1 %v10619_v40 }
 0x268   : > { %v12770_v56 = vpop.eup %12769  ;;  %12793 = vrcp.f32 %v3006_v20  ;;  %v3008_v36 = vadd.f32 1.0, %v12768_v22  ;;  %3195 = vst.msk [vmem:[#allocation4 + $0x149] sm:$0x1] %vm3166_vm9, %v18249_v45  ;;  %11962 = vmatpush3.msra.mxu1 %v10619_v40 }
 0x269   : > { %v12772_v52 = vpop.eup %12771  ;;  %3145 = vst.msk [vmem:[#allocation4 + $0xf0] sm:$0xff] %vm238_vm8, %v3096_v19  ;;  %v3109_v49 = vmul.f32 %v12770_v56, %v14864_v2  ;;  %v15024_v2 = vld [vmem:[%s13586_s23 + $0x140] sm:$0xff] }
 0x26a   : > { %v12774_v43 = vpop.eup %12773  ;;  %3176 = vst.msk [vmem:[#allocation4 + $0xf0] sm:$0x1] %vm3166_vm9, %v18249_v45  ;;  %12795 = vrcp.f32 %v3008_v36  ;;  %v3010_v55 = vadd.f32 1.0, %v12772_v52  ;;  %18258 = vst [vmem:[#allocation50_spill] sm:$0xff] %v15024_v2 }
 0x26b   : > { %v12776_v61 = vpop.eup %12775  ;;  %v3012_v44 = vadd.f32 1.0, %v12774_v43  ;;  %3158 = vst.msk [vmem:[#allocation4 + $0x158] sm:$0xff] %vm238_vm8, %v3109_v49  ;;  %v3223_v16 = vld [vmem:[#allocation4 + $0x138] sm:$0xff]  ;;  %3555 = vrot.lane.b32.xlu1 %v3474_v63, %s13327_s11  ;;  %v15058_v43 = vld [vmem:[%s13586_s23 + $0x150] sm:$0xff] }
 0x26c   : > { %v12778_v50 = vpop.eup %12777  ;;  %v3280_v21 = vld [vmem:[#allocation4 + $0xd9] sm:$0xff]  ;;  %12797 = vrcp.f32 %v3010_v55  ;;  %v3014_v1 = vadd.f32 1.0, %v12776_v61  ;;  %3256 = vst.msk [vmem:[#allocation3 + $0xd0] sm:$0xff] %vm238_vm8, %v3223_v16  ;;  %18260 = vst [vmem:[#allocation52_spill] sm:$0xff] %v15058_v43 }
 0x26d   : > { %v12780_v60 = vpop.eup %12779  ;;  %3360 = vrot.lane.b32.xlu0 %v3280_v21, %s13326_s17  ;;  %12799 = vrcp.f32 %v3012_v44  ;;  %v3111_v5 = vmul.f32 %v12778_v50, %v14885_v58  ;;  %v3215_v7 = vld [vmem:[#allocation4 + $0xd8] sm:$0xff]  ;;  %5376 = vst.msk [vmem:[#allocation2 + $0x92] sm:$0xff] %vm354_vm5, %v15024_v2  ;;  %5377 = vst.msk [vmem:[#allocation2 + $0x9a] sm:$0xff] %vm354_vm5, %v15032_v4 }
 0x26e   : > { %v12782_v29 = vpop.eup %12781  ;;  %12801 = vrcp.f32 %v3014_v1  ;;  %v3016_v31 = vadd.f32 1.0, %v12780_v60  ;;  %3248 = vst.msk [vmem:[#allocation3 + $0x90] sm:$0xff] %vm238_vm8, %v3215_v7  ;;  %v3473_v33 = vld [vmem:[#allocation4 + $0xda] sm:$0xff] }
 0x26f   : > { %v12784_v58 = vpop.eup %12783  ;;  %v3098_v48 = vmul.f32 %v12782_v29, %v14860_v3  ;;  %3160 = vst.msk [vmem:[#allocation4 + $0x168] sm:$0xff] %vm238_vm8, %v3111_v5  ;;  %v15071_v21 = vld [vmem:[%s13586_s23 + $0x158] sm:$0xff] }
 0x270   : > { %v12786_v51 = vpop.eup %12785  ;;  %12803 = vrcp.f32 %v3016_v31  ;;  %v3113_v30 = vmul.f32 %v12784_v58, %v14903_v41  ;;  %3181 = vst.msk [vmem:[#allocation4 + $0x168] sm:$0x1] %vm3166_vm9, %v18249_v45  ;;  %v3282_v52 = vld [vmem:[#allocation4 + $0xf1] sm:$0xff]  ;;  %18261 = vst [vmem:[#allocation53_spill] sm:$0xff] %v15071_v21 }
 0x271   : > { %v12788_v20 = vpop.eup %12787  ;;  %3553 = vrot.lane.b32.xlu0 %v3473_v33, %s13327_s11  ;;  %3147 = vst.msk [vmem:[#allocation4 + $0x100] sm:$0xff] %vm238_vm8, %v3098_v48  ;;  %v3018_v22 = vadd.f32 1.0, %v12786_v51  ;;  %v3217_v18 = vld [vmem:[#allocation4 + $0xf0] sm:$0xff]  ;;  %v10617_v1 = vld [vmem:[%s18136_s3 + $0x98] sm:$0xff]  ;;  %v15091_v48 = vld [vmem:[%s13586_s23 + $0x160] sm:$0xff] }
 0x272   : > { %v12790_v3 = vpop.eup %12789  ;;  %3192 = vst.msk [vmem:[#allocation4 + $0x101] sm:$0x1] %vm3166_vm9, %v18249_v45  ;;  %v3100_v19 = vmul.f32 %v12788_v20, %v14874_v57  ;;  %v3226_v41 = vld [vmem:[#allocation4 + $0x158] sm:$0xff]  ;;  %v10618_v57 = vld [vmem:[%s18136_s3 + $0xa0] sm:$0xff]  ;;  %18262 = vst [vmem:[#allocation54_spill] sm:$0xff] %v15091_v48 }
 0x273   : > { %3162 = vst.msk [vmem:[#allocation4 + $0x178] sm:$0xff] %vm238_vm8, %v3113_v30  ;;  %3250 = vst.msk [vmem:[#allocation3 + $0xa0] sm:$0xff] %vm238_vm8, %v3217_v18  ;;  %v12792_v56 = vpop.eup %12791  ;;  %12805 = vrcp.f32 %v3018_v22  ;;  %v3020_v36 = vadd.f32 1.0, %v12790_v3  ;;  %11963 = vmatprep.subr.mxu1 %v10618_v57  ;;  %v3475_v63 = vld [vmem:[#allocation4 + $0xf2] sm:$0xff] }
 0x274   : > { %3197 = vst.msk [vmem:[#allocation4 + $0x179] sm:$0x1] %vm3166_vm9, %v18249_v45  ;;  %v3115_v49 = vmul.f32 %v12792_v56, %v14922_v38  ;;  %11964 = vmatpush3.msra.mxu1 %v10618_v57 }
 0x275   : > { %3259 = vst.msk [vmem:[#allocation3 + $0xe8] sm:$0xff] %vm238_vm8, %v3226_v41  ;;  %3149 = vst.msk [vmem:[#allocation4 + $0x110] sm:$0xff] %vm238_vm8, %v3100_v19  ;;  %v12794_v55 = vpop.eup %12793  ;;  %3364 = vrot.lane.b32.xlu0 %v3282_v52, %s13326_s17  ;;  %12807 = vrcp.f32 %v3020_v36  ;;  %11965 = vmatprep.subr.mxu1 %v10617_v1  ;;  %v15127_v36 = vld [vmem:[%s13586_s23 + $0x170] sm:$0xff] }
 0x276   : > { %5378 = vst.msk [vmem:[#allocation2 + $0xaa] sm:$0xff] %vm354_vm5, %v15058_v43  ;;  %v3102_v61 = vmul.f32 %v12794_v55, %v14900_v62  ;;  %5379 = vst.msk [vmem:[#allocation2 + $0xb2] sm:$0xff] %vm354_vm5, %v15071_v21  ;;  %11966 = vmatpush3.msra.mxu1 %v10617_v1  ;;  %v15139_v55 = vld [vmem:[%s13586_s23 + $0x178] sm:$0xff]  ;;  %v15153_v1 = vld [vmem:[%s13586_s23 + $0x188] sm:$0xff] }
 0x277   : > { %3164 = vst.msk [vmem:[#allocation4 + $0x188] sm:$0xff] %vm238_vm8, %v3115_v49  ;;  %v12796_v38 = vpop.eup %12795  ;;  %v3227_v44 = vld [vmem:[#allocation4 + $0x168] sm:$0xff]  ;;  %18264 = vst [vmem:[#allocation56_spill] sm:$0xff] %v15127_v36 }
 0x278   : > { %v3283_v16 = vld [vmem:[#allocation4 + $0xf9] sm:$0xff]  ;;  %3151 = vst.msk [vmem:[#allocation4 + $0x120] sm:$0xff] %vm238_vm8, %v3102_v61  ;;  %v3104_v50 = vmul.f32 %v12796_v38, %v14912_v0  ;;  %3260 = vst.msk [vmem:[#allocation3 + $0xf0] sm:$0xff] %vm238_vm8, %v3227_v44 }
 0x279   : > { %v12798_v62 = vpop.eup %12797  ;;  %3366 = vrot.lane.b32.xlu1 %v3283_v16, %s13326_s17  ;;  %3557 = vrot.lane.b32.xlu0 %v3475_v63, %s13327_s11  ;;  %3178 = vst.msk [vmem:[#allocation4 + $0x120] sm:$0x1] %vm3166_vm9, %v18249_v45  ;;  %v3476_v7 = vld [vmem:[#allocation4 + $0xfa] sm:$0xff]  ;;  %18265 = vst [vmem:[#allocation57_spill] sm:$0xff] %v15139_v55 }
 0x27a   : > { %v12800_v0 = vpop.eup %12799  ;;  %3153 = vst.msk [vmem:[#allocation4 + $0x130] sm:$0xff] %vm238_vm8, %v3104_v50  ;;  %v3106_v60 = vmul.f32 %v12798_v62, %v14919_v37  ;;  %v15100_v37 = vld [vmem:[%s13586_s23 + $0x168] sm:$0xff]  ;;  %v10614_v61 = vld [vmem:[%s18136_s3 + $0x80] sm:$0xff]  ;;  %18267 = vst [vmem:[#allocation59_spill] sm:$0xff] %v15153_v1 }
 0x27b   : > { %v12802_v5 = vpop.eup %12801  ;;  %3194 = vst.msk [vmem:[#allocation4 + $0x131] sm:$0x1] %vm3166_vm9, %v18249_v45  ;;  %v3108_v40 = vmul.f32 %v12800_v0, %v14933_v46  ;;  %18263 = vst [vmem:[#allocation55_spill] sm:$0xff] %v15100_v37  ;;  %v10616_v46 = vld [vmem:[%s18136_s3 + $0x90] sm:$0xff]  ;;  %v15150_v50 = vld [vmem:[%s13586_s23 + $0x180] sm:$0xff] }
 0x27c   : > { %v3284_v29 = vld [vmem:[#allocation4 + $0x109] sm:$0xff]  ;;  %3155 = vst.msk [vmem:[#allocation4 + $0x140] sm:$0xff] %vm238_vm8, %v3106_v60  ;;  %v3110_v31 = vmul.f32 %v12802_v5, %v14940_v24  ;;  %11967 = vmatprep.subr.mxu1 %v10616_v46  ;;  %v3285_v20 = vld [vmem:[#allocation4 + $0x111] sm:$0xff]  ;;  %18266 = vst [vmem:[#allocation58_spill] sm:$0xff] %v15150_v50 }
 0x27d   : > { %v3220_v58 = vld [vmem:[#allocation4 + $0x110] sm:$0xff]  ;;  %v12804_v51 = vpop.eup %12803  ;;  %3559 = vrot.lane.b32.xlu1 %v3476_v7, %s13327_s11  ;;  %3368 = vrot.lane.b32.xlu0 %v3284_v29, %s13326_s17  ;;  %3157 = vst.msk [vmem:[#allocation4 + $0x150] sm:$0xff] %vm238_vm8, %v3108_v40  ;;  %v10613_v62 = vld [vmem:[%s18136_s3 + $0x78] sm:$0xff] }
 0x27e   : > { %3253 = vst.msk [vmem:[#allocation3 + $0xb8] sm:$0xff] %vm238_vm8, %v3220_v58  ;;  %v3230_v24 = vld [vmem:[#allocation4 + $0x188] sm:$0xff]  ;;  %3159 = vst.msk [vmem:[#allocation4 + $0x160] sm:$0xff] %vm238_vm8, %v3110_v31  ;;  %v3112_v33 = vmul.f32 %v12804_v51, %v14949_v39  ;;  %11968 = vmatpush3.msra.mxu1 %v10616_v46  ;;  %v3478_v41 = vld [vmem:[#allocation4 + $0x112] sm:$0xff] }
 0x27f   : > { %5380 = vst.msk [vmem:[#allocation2 + $0xc2] sm:$0xff] %vm354_vm5, %v15091_v48  ;;  %5381 = vst.msk [vmem:[#allocation2 + $0xca] sm:$0xff] %vm354_vm5, %v15100_v37  ;;  %v3477_v22 = vld [vmem:[#allocation4 + $0x10a] sm:$0xff]  ;;  %v3286_v56 = vld [vmem:[#allocation4 + $0x121] sm:$0xff] }
 0x280   : > { %3180 = vst.msk [vmem:[#allocation4 + $0x150] sm:$0x1] %vm3166_vm9, %v18249_v45  ;;  %3196 = vst.msk [vmem:[#allocation4 + $0x161] sm:$0x1] %vm3166_vm9, %v18249_v45  ;;  %v12806_v30 = vpop.eup %12805  ;;  %v3221_v18 = vld [vmem:[#allocation4 + $0x120] sm:$0xff]  ;;  %v15168_v40 = vld [vmem:[%s13586_s23 + $0x190] sm:$0xff] }
 0x281   : > { %3263 = vst.msk [vmem:[#allocation3 + $0x108] sm:$0xff] %vm238_vm8, %v3230_v24  ;;  %3161 = vst.msk [vmem:[#allocation4 + $0x170] sm:$0xff] %vm238_vm8, %v3112_v33  ;;  %3370 = vrot.lane.b32.xlu1 %v3285_v20, %s13326_s17  ;;  %3561 = vrot.lane.b32.xlu0 %v3477_v22, %s13327_s11  ;;  %v3114_v39 = vmul.f32 %v12806_v30, %v14957_v47  ;;  %v3479_v49 = vld [vmem:[#allocation4 + $0x122] sm:$0xff]  ;;  %v10612_v29 = vld [vmem:[%s18136_s3 + $0x70] sm:$0xff] }
 0x282   : > { %3254 = vst.msk [vmem:[#allocation3 + $0xc0] sm:$0xff] %vm238_vm8, %v3221_v18  ;;  %v12808_v3 = vpop.eup %12807  ;;  %v3287_v57 = vld [vmem:[#allocation4 + $0x129] sm:$0xff]  ;;  %18268 = vst [vmem:[#allocation60_spill] sm:$0xff] %v15168_v40  ;;  %v15178_v51 = vld [vmem:[%s13586_s23 + $0x198] sm:$0xff] }
 0x283   : > { %3163 = vst.msk [vmem:[#allocation4 + $0x180] sm:$0xff] %vm238_vm8, %v3114_v39  ;;  %v3116_v19 = vmul.f32 %v12808_v3, %v14964_v35  ;;  %v3224_v47 = vld [vmem:[#allocation4 + $0x140] sm:$0xff]  ;;  %v10615_v35 = vld [vmem:[%s18136_s3 + $0x88] sm:$0xff]  ;;  %18269 = vst [vmem:[#allocation61_spill] sm:$0xff] %v15178_v51 }
 0x284   : > { %3182 = vst.msk [vmem:[#allocation4 + $0x180] sm:$0x1] %vm3166_vm9, %v18249_v45  ;;  %11969 = vmatprep.subr.mxu1 %v10615_v35  ;;  %v3480_v63 = vld [vmem:[#allocation4 + $0x12a] sm:$0xff]  ;;  %v3288_v16 = vld [vmem:[#allocation4 + $0x139] sm:$0xff]  ;;  %v3289_v0 = vld [vmem:[#allocation4 + $0x141] sm:$0xff] }
 0x285   : > { %3563 = vrot.lane.b32.xlu1 %v3478_v41, %s13327_s11  ;;  %3372 = vrot.lane.b32.xlu0 %v3286_v56, %s13326_s17  ;;  %3165 = vst.msk [vmem:[#allocation4 + $0x190] sm:$0xff] %vm238_vm8, %v3116_v19  ;;  %3257 = vst.msk [vmem:[#allocation3 + $0xd8] sm:$0xff] %vm238_vm8, %v3224_v47  ;;  %v3481_v60 = vld [vmem:[#allocation4 + $0x13a] sm:$0xff]  ;;  %v3482_v5 = vld [vmem:[#allocation4 + $0x142] sm:$0xff] }
 0x286   : > { %3198 = vst.msk [vmem:[#allocation4 + $0x191] sm:$0x1] %vm3166_vm9, %v18249_v45  ;;  %11970 = vmatpush3.msra.mxu1 %v10615_v35  ;;  %v3290_v7 = vld [vmem:[#allocation4 + $0x151] sm:$0xff]  ;;  %v3291_v58 = vld [vmem:[#allocation4 + $0x159] sm:$0xff]  ;;  %v10611_v46 = vld [vmem:[%s18136_s3 + $0x68] sm:$0xff] }
 0x287   : > { %5382 = vst.msk [vmem:[#allocation2 + $0xda] sm:$0xff] %vm354_vm5, %v15127_v36  ;;  %v3225_v52 = vld [vmem:[#allocation4 + $0x150] sm:$0xff]  ;;  %5383 = vst.msk [vmem:[#allocation2 + $0xe2] sm:$0xff] %vm354_vm5, %v15139_v55  ;;  %11971 = vmatprep.subr.mxu1 %v10614_v61  ;;  %v3484_v30 = vld [vmem:[#allocation4 + $0x15a] sm:$0xff] }
 0x288   : > { %3258 = vst.msk [vmem:[#allocation3 + $0xe0] sm:$0xff] %vm238_vm8, %v3225_v52  ;;  %v3228_v38 = vld [vmem:[#allocation4 + $0x170] sm:$0xff]  ;;  %11972 = vmatpush3.msra.mxu1 %v10614_v61  ;;  %v15190_v22 = vld [vmem:[%s13586_s23 + $0x1a0] sm:$0xff]  ;;  %v15193_v18 = vld [vmem:[%s13586_s23 + $0x1a8] sm:$0xff] }
 0x289   : > { %3374 = vrot.lane.b32.xlu1 %v3287_v57, %s13326_s17  ;;  %3565 = vrot.lane.b32.xlu0 %v3479_v49, %s13327_s11  ;;  %3261 = vst.msk [vmem:[#allocation3 + $0xf8] sm:$0xff] %vm238_vm8, %v3228_v38  ;;  %v3483_v31 = vld [vmem:[#allocation4 + $0x152] sm:$0xff]  ;;  %v3292_v20 = vld [vmem:[#allocation4 + $0x169] sm:$0xff]  ;;  %18270 = vst [vmem:[#allocation62_spill] sm:$0xff] %v15190_v22 }
 0x28a   : > { %5384 = vst.msk [vmem:[#allocation2 + $0xf2] sm:$0xff] %vm354_vm5, %v15150_v50  ;;  %5385 = vst.msk [vmem:[#allocation2 + $0xfa] sm:$0xff] %vm354_vm5, %v15153_v1  ;;  %11973 = vmatprep.subr.mxu1 %v10613_v62  ;;  %v10610_v39 = vld [vmem:[%s18136_s3 + $0x60] sm:$0xff]  ;;  %v3293_v41 = vld [vmem:[#allocation4 + $0x171] sm:$0xff] }
 0x28b   : > { %v3229_v44 = vld [vmem:[#allocation4 + $0x180] sm:$0xff]  ;;  %11974 = vmatpush3.msra.mxu1 %v10613_v62  ;;  %5386 = vst.msk [vmem:[#allocation2 + $0x10a] sm:$0xff] %vm354_vm5, %v15168_v40  ;;  %5387 = vst.msk [vmem:[#allocation2 + $0x112] sm:$0xff] %vm354_vm5, %v15178_v51  ;;  %v3485_v56 = vld [vmem:[#allocation4 + $0x16a] sm:$0xff] }
 0x28c   : > { %3262 = vst.msk [vmem:[#allocation3 + $0x100] sm:$0xff] %vm238_vm8, %v3229_v44  ;;  %11975 = vmatprep.subr.mxu1 %v10612_v29  ;;  %18271 = vst [vmem:[#allocation63_spill] sm:$0xff] %v15193_v18  ;;  %v3486_v52 = vld [vmem:[#allocation4 + $0x172] sm:$0xff]  ;;  %v15216_v57 = vld [vmem:[%s18134_s1 + $0x8] sm:$0xf] }
 0x28d   : > { %3567 = vrot.lane.b32.xlu1 %v3480_v63, %s13327_s11  ;;  %3376 = vrot.lane.b32.xlu0 %v3288_v16, %s13326_s17  ;;  %5388 = vst.msk [vmem:[#allocation2 + $0x122] sm:$0xff] %vm354_vm5, %v15190_v22  ;;  %5389 = vst.msk [vmem:[#allocation2 + $0x12a] sm:$0xff] %vm354_vm5, %v15193_v18  ;;  %v15211_v49 = vld [vmem:[%s13586_s23 + $0x1b0] sm:$0xff]  ;;  %v15236_v16 = vld [vmem:[%s13586_s23 + $0x1b8] sm:$0xff] }
 0x28e   : > { %11976 = vmatpush3.msra.mxu1 %v10612_v29  ;;  %18272 = vst [vmem:[#allocation64_spill] sm:$0xff] %v15211_v49  ;;  %5390 = vst.msk [vmem:[#allocation2 + $0x13a] sm:$0xff] %vm354_vm5, %v15211_v49 }
 0x28f   : > { %11977 = vmatprep.subr.mxu1 %v10611_v46  ;;  %18273 = vst [vmem:[#allocation65_spill] sm:$0xff] %v15236_v16  ;;  %5391 = vst.msk [vmem:[#allocation2 + $0x142] sm:$0xff] %vm354_vm5, %v15236_v16 }
 0x290   : > { %11978 = vmatpush3.msra.mxu1 %v10611_v46  ;;  %v15279_v46 = vld [vmem:[%s13586_s23 + $0x1d0] sm:$0xff] }
 0x291   : > { %3378 = vrot.lane.b32.xlu1 %v3289_v0, %s13326_s17  ;;  %3569 = vrot.lane.b32.xlu0 %v3481_v60, %s13327_s11  ;;  %v15247_v60 = vld [vmem:[%s13586_s23 + $0x1c0] sm:$0xff]  ;;  %18276 = vst [vmem:[#allocation68_spill] sm:$0xff] %v15279_v46  ;;  %5394 = vst.msk [vmem:[#allocation2 + $0x16a] sm:$0xff] %vm354_vm5, %v15279_v46 }
 0x292   : > { %11979 = vmatprep.subr.mxu1 %v10610_v39  ;;  %18274 = vst [vmem:[#allocation66_spill] sm:$0xff] %v15247_v60  ;;  %5392 = vst.msk [vmem:[#allocation2 + $0x152] sm:$0xff] %vm354_vm5, %v15247_v60 }
 0x293   : > { %11980 = vmatpush3.msra.mxu1 %v10610_v39 }
 0x294   : > { %12101 = vmatprep.subr.msk.mxu1 %vm895_vm2, %v15216_v57 }
 0x295   : > { %3571 = vrot.lane.b32.xlu1 %v3482_v5, %s13327_s11  ;;  %3380 = vrot.lane.b32.xlu0 %v3290_v7, %s13326_s17  ;;  %v3331_v24 = vpop.permute.xlu1 %3330  ;;  %v3329_v33 = vpop.permute.xlu0 %3328  ;;  %v15256_v5 = vld [vmem:[%s13586_s23 + $0x1c8] sm:$0xff] }
 0x296   : > { %3426 = vst.msk [vmem:[#allocation3 + $0x18] sm:$0xff] %vm3424_vm11, %v3331_v24  ;;  %3425 = vst.msk [vmem:[#allocation3 + $0x10] sm:$0xff] %vm3424_vm11, %v3329_v33 }
 0x297   : > { %18275 = vst [vmem:[#allocation67_spill] sm:$0xff] %v15256_v5  ;;  %5393 = vst.msk [vmem:[#allocation2 + $0x15a] sm:$0xff] %vm354_vm5, %v15256_v5 }
 0x299   : > { %3382 = vrot.lane.b32.xlu1 %v3291_v58, %s13326_s17  ;;  %3573 = vrot.lane.b32.xlu0 %v3483_v31, %s13327_s11  ;;  %v3524_v3 = vpop.permute.xlu1 %3523  ;;  %v3522_v19 = vpop.permute.xlu0 %3521 }
 0x29a   : > { %3619 = vst.msk [vmem:[#allocation3 + $0x18] sm:$0xff] %vm3617_vm12, %v3524_v3  ;;  %3618 = vst.msk [vmem:[#allocation3 + $0x10] sm:$0xff] %vm3617_vm12, %v3522_v19 }
 0x29d   : > { %3575 = vrot.lane.b32.xlu1 %v3484_v30, %s13327_s11  ;;  %3384 = vrot.lane.b32.xlu0 %v3292_v20, %s13326_s17  ;;  %v15290_v30 = vld [vmem:[%s13586_s23 + $0x1d8] sm:$0xff] }
 0x29e   : > { %18277 = vst [vmem:[#allocation69_spill] sm:$0xff] %v15290_v30  ;;  %5395 = vst.msk [vmem:[#allocation2 + $0x172] sm:$0xff] %vm354_vm5, %v15290_v30 }
 0x29f   : > { %v3333_v47 = vpop.permute.xlu0 %3332  ;;  %v3335_v35 = vpop.permute.xlu1 %3334 }
 0x2a0   : > { %3427 = vst.msk [vmem:[#allocation3 + $0x20] sm:$0xff] %vm3424_vm11, %v3333_v47  ;;  %3428 = vst.msk [vmem:[#allocation3 + $0x28] sm:$0xff] %vm3424_vm11, %v3335_v35 }
 0x2a1   : > { %3386 = vrot.lane.b32.xlu1 %v3293_v41, %s13326_s17  ;;  %3577 = vrot.lane.b32.xlu0 %v3485_v56, %s13327_s11  ;;  %v15223_v63 = vld [vmem:[#allocation3 + $0x10] sm:$0xff]  ;;  %v15225_v44 = vld [vmem:[#allocation3 + $0x18] sm:$0xff]  ;;  %v3294_v41 = vld [vmem:[#allocation4 + $0x181] sm:$0xff] }
 0x2a2   : > { %11912 = vmatprep.mubr.msk.f32.mxu1 %vm246_vm10, %v15223_v63  ;;  %v15312_v56 = vld [vmem:[%s13586_s23 + $0x1e0] sm:$0xff] }
 0x2a3   : > { %v3526_v61 = vpop.permute.xlu0 %3525  ;;  %v3528_v38 = vpop.permute.xlu1 %3527  ;;  %11913 = vmatmul.mubr.msk.f32.gmra.mxu1 %vm246_vm10, %v15225_v44  ;;  %18278 = vst [vmem:[#allocation70_spill] sm:$0xff] %v15312_v56  ;;  %5396 = vst.msk [vmem:[#allocation2 + $0x182] sm:$0xff] %vm354_vm5, %v15312_v56 }
 0x2a4   : > { %3620 = vst.msk [vmem:[#allocation3 + $0x20] sm:$0xff] %vm3617_vm12, %v3526_v61  ;;  %3621 = vst.msk [vmem:[#allocation3 + $0x28] sm:$0xff] %vm3617_vm12, %v3528_v38  ;;  %v3487_v61 = vld [vmem:[#allocation4 + $0x182] sm:$0xff] }
 0x2a5   : > { %3579 = vrot.lane.b32.xlu1 %v3486_v52, %s13327_s11  ;;  %5432 = vrot.lane.b32.xlu0 %v14686_v54, %s13324_s25  ;;  %v3295_v52 = vld [vmem:[#allocation4 + $0x189] sm:$0xff] }
 0x2a6   : > { %v15321_v38 = vld [vmem:[%s13586_s23 + $0x1e8] sm:$0xff] }
 0x2a7   : > { %v3339_v62 = vpop.permute.xlu1 %3338  ;;  %18279 = vst [vmem:[#allocation71_spill] sm:$0xff] %v15321_v38  ;;  %5397 = vst.msk [vmem:[#allocation2 + $0x18a] sm:$0xff] %vm354_vm5, %v15321_v38 }
 0x2a8   : > { %v3337_v0 = vpop.permute.xlu0 %3336  ;;  %3430 = vst.msk [vmem:[#allocation3 + $0x38] sm:$0xff] %vm3424_vm11, %v3339_v62 }
 0x2a9   : > { %5434 = vrot.lane.b32.xlu1 %v14666_v59, %s13324_s25  ;;  %5560 = vrot.lane.b32.xlu0 %v14686_v54, %s13325_s26  ;;  %3429 = vst.msk [vmem:[#allocation3 + $0x30] sm:$0xff] %vm3424_vm11, %v3337_v0 }
 0x2ab   : > { %v15258_v31 = vld [vmem:[#allocation3 + $0x20] sm:$0xff]  ;;  %v15260_v58 = vld [vmem:[#allocation3 + $0x28] sm:$0xff] }
 0x2ac   : > { %v3532_v7 = vpop.permute.xlu1 %3531  ;;  %v3530_v29 = vpop.permute.xlu0 %3529  ;;  %11915 = vmatprep.mubr.msk.f32.mxu1 %vm246_vm10, %v15258_v31  ;;  %12053 = vmatprep.mubr.msk.f32.mxu0 %vm246_vm10, %v15258_v31 }
 0x2ad   : > { %5562 = vrot.lane.b32.xlu1 %v14666_v59, %s13325_s26  ;;  %5436 = vrot.lane.b32.xlu0 %v14724_v34, %s13324_s25  ;;  %3623 = vst.msk [vmem:[#allocation3 + $0x38] sm:$0xff] %vm3617_vm12, %v3532_v7  ;;  %3622 = vst.msk [vmem:[#allocation3 + $0x30] sm:$0xff] %vm3617_vm12, %v3530_v29 }
 0x2ae   : > { %11916 = vmatmul.mubr.msk.f32.gmra.mxu1 %vm246_vm10, %v15260_v58  ;;  %12054 = vmatmul.mubr.msk.f32.vlgmr.msra.gmra.mxu0 %vm246_vm10, %v15260_v58 }
 0x2b0   : > { %v3341_v24 = vpop.permute.xlu0 %3340  ;;  %v3343_v33 = vpop.permute.xlu1 %3342 }
 0x2b1   : > { %5564 = vrot.lane.b32.xlu1 %v14724_v34, %s13325_s26  ;;  %5438 = vrot.lane.b32.xlu0 %v14749_v42, %s13324_s25  ;;  %3431 = vst.msk [vmem:[#allocation3 + $0x40] sm:$0xff] %vm3424_vm11, %v3341_v24  ;;  %3432 = vst.msk [vmem:[#allocation3 + $0x48] sm:$0xff] %vm3424_vm11, %v3343_v33  ;;  %v3488_v24 = vld [vmem:[#allocation4 + $0x18a] sm:$0xff]  ;;  %v10787_v33 = vld [vmem:[%s18134_s1 + $0x18] sm:$0xf] }
 0x2b2   : > { %12186 = vmatprep.subr.msk.mxu0 %vm895_vm2, %v10787_v33 }
 0x2b3   : > { %12187 = vmatpush3.msk.msra.mxu0 %vm895_vm2, %v10787_v33  ;;  %v15386_v33 = vld [vmem:[%s13586_s23 + $0x1f8] sm:$0xff] }
 0x2b4   : > { %v3534_v20 = vpop.permute.xlu0 %3533  ;;  %v3536_v39 = vpop.permute.xlu1 %3535  ;;  %v15292_v3 = vld [vmem:[#allocation3 + $0x30] sm:$0xff]  ;;  %v15294_v19 = vld [vmem:[#allocation3 + $0x38] sm:$0xff]  ;;  %18281 = vst [vmem:[#allocation73_spill] sm:$0xff] %v15386_v33  ;;  %5399 = vst.msk [vmem:[#allocation2 + $0x1a2] sm:$0xff] %vm354_vm5, %v15386_v33 }
 0x2b5   : > { %5566 = vrot.lane.b32.xlu1 %v14749_v42, %s13325_s26  ;;  %5440 = vrot.lane.b32.xlu0 %v14812_v6, %s13324_s25  ;;  %3624 = vst.msk [vmem:[#allocation3 + $0x40] sm:$0xff] %vm3617_vm12, %v3534_v20  ;;  %3625 = vst.msk [vmem:[#allocation3 + $0x48] sm:$0xff] %vm3617_vm12, %v3536_v39  ;;  %v10786_v20 = vld [vmem:[%s18134_s1 + $0x10] sm:$0xff] }
 0x2b6   : > { %11918 = vmatprep.mubr.msk.f32.mxu1 %vm246_vm10, %v15292_v3  ;;  %12056 = vmatprep.mubr.msk.f32.mxu0 %vm246_vm10, %v15292_v3 }
 0x2b7   : > { %11919 = vmatmul.mubr.msk.f32.gmra.mxu1 %vm246_vm10, %v15294_v19  ;;  %12057 = vmatmul.mubr.msk.f32.gmra.mxu0 %vm246_vm10, %v15294_v19 }
 0x2b8   : > { %v3347_v47 = vpop.permute.xlu1 %3346  ;;  %v3345_v35 = vpop.permute.xlu0 %3344  ;;  %12188 = vmatprep.subr.mxu0 %v10786_v20 }
 0x2b9   : > { %5442 = vrot.lane.b32.xlu1 %v14784_v53, %s13324_s25  ;;  %3388 = vrot.lane.b32.xlu0 %v3294_v41, %s13326_s17  ;;  %3434 = vst.msk [vmem:[#allocation3 + $0x58] sm:$0xff] %vm3424_vm11, %v3347_v47  ;;  %3433 = vst.msk [vmem:[#allocation3 + $0x50] sm:$0xff] %vm3424_vm11, %v3345_v35 }
 0x2ba   : > { %12189 = vmatpush3.msra.mxu0 %v10786_v20 }
 0x2bc   : > { %v3540_v62 = vpop.permute.xlu1 %3539  ;;  %v3538_v0 = vpop.permute.xlu0 %3537  ;;  %v15323_v7 = vld [vmem:[#allocation3 + $0x40] sm:$0xff]  ;;  %v15325_v29 = vld [vmem:[#allocation3 + $0x48] sm:$0xff] }
 0x2bd   : > { %3390 = vrot.lane.b32.xlu1 %v3295_v52, %s13326_s17  ;;  %3581 = vrot.lane.b32.xlu0 %v3487_v61, %s13327_s11  ;;  %3627 = vst.msk [vmem:[#allocation3 + $0x58] sm:$0xff] %vm3617_vm12, %v3540_v62  ;;  %3626 = vst.msk [vmem:[#allocation3 + $0x50] sm:$0xff] %vm3617_vm12, %v3538_v0  ;;  %v15375_v62 = vld [vmem:[%s13586_s23 + $0x1f0] sm:$0xff]  ;;  %s18087_s23 = scalar_lea.hbm %s18138_s5, %s11029_s6 }
 0x2be   : > { %11921 = vmatprep.mubr.msk.f32.mxu1 %vm246_vm10, %v15323_v7  ;;  %12059 = vmatprep.mubr.msk.f32.mxu0 %vm246_vm10, %v15323_v7  ;;  %18280 = vst [vmem:[#allocation72_spill] sm:$0xff] %v15375_v62  ;;  %5398 = vst.msk [vmem:[#allocation2 + $0x19a] sm:$0xff] %vm354_vm5, %v15375_v62 }
 0x2bf   : > { %11922 = vmatmul.mubr.msk.f32.gmra.mxu1 %vm246_vm10, %v15325_v29  ;;  %12060 = vmatmul.mubr.msk.f32.gmra.mxu0 %vm246_vm10, %v15325_v29 }
 0x2c0   : > { %v3349_v39 = vpop.permute.xlu0 %3348  ;;  %v3351_v41 = vpop.permute.xlu1 %3350 }
 0x2c1   : > { %3583 = vrot.lane.b32.xlu1 %v3488_v24, %s13327_s11  ;;  %5568 = vrot.lane.b32.xlu0 %v14812_v6, %s13325_s26  ;;  %3435 = vst.msk [vmem:[#allocation3 + $0x60] sm:$0xff] %vm3424_vm11, %v3349_v39  ;;  %3436 = vst.msk [vmem:[#allocation3 + $0x68] sm:$0xff] %vm3424_vm11, %v3351_v41 }
 0x2c4   : > { %v3542_v47 = vpop.permute.xlu0 %3541  ;;  %v15356_v52 = vld [vmem:[#allocation3 + $0x50] sm:$0xff]  ;;  %v15358_v61 = vld [vmem:[#allocation3 + $0x58] sm:$0xff] }
 0x2c5   : > { %5570 = vrot.lane.b32.xlu1 %v14784_v53, %s13325_s26  ;;  %5444 = vrot.lane.b32.xlu0 %v14985_v32, %s13324_s25  ;;  %v3544_v35 = vpop.permute.xlu1 %3543  ;;  %3628 = vst.msk [vmem:[#allocation3 + $0x60] sm:$0xff] %vm3617_vm12, %v3542_v47 }
 0x2c6   : > { %3629 = vst.msk [vmem:[#allocation3 + $0x68] sm:$0xff] %vm3617_vm12, %v3544_v35  ;;  %11924 = vmatprep.mubr.msk.f32.mxu1 %vm246_vm10, %v15356_v52  ;;  %12062 = vmatprep.mubr.msk.f32.mxu0 %vm246_vm10, %v15356_v52 }
 0x2c7   : > { %11925 = vmatmul.mubr.msk.f32.gmra.mxu1 %vm246_vm10, %v15358_v61  ;;  %12063 = vmatmul.mubr.msk.f32.gmra.mxu0 %vm246_vm10, %v15358_v61 }
 0x2c8   : > { %v3353_v24 = vpop.permute.xlu0 %3352 }
 0x2c9   : > { %5572 = vrot.lane.b32.xlu1 %v14985_v32, %s13325_s26  ;;  %5446 = vrot.lane.b32.xlu0 %v15000_v23, %s13324_s25  ;;  %v3355_v0 = vpop.permute.xlu1 %3354  ;;  %3437 = vst.msk [vmem:[#allocation3 + $0x70] sm:$0xff] %vm3424_vm11, %v3353_v24 }
 0x2ca   : > { %3438 = vst.msk [vmem:[#allocation3 + $0x78] sm:$0xff] %vm3424_vm11, %v3355_v0 }
 0x2cc   : > { %v3546_v39 = vpop.permute.xlu0 %3545  ;;  %v15388_v41 = vld [vmem:[#allocation3 + $0x60] sm:$0xff] }
 0x2cd   : > { %5574 = vrot.lane.b32.xlu1 %v15000_v23, %s13325_s26  ;;  %5448 = vrot.lane.b32.xlu0 %v15024_v2, %s13324_s25  ;;  %v3548_v20 = vpop.permute.xlu1 %3547  ;;  %v15390_v47 = vld [vmem:[#allocation3 + $0x68] sm:$0xff]  ;;  %3630 = vst.msk [vmem:[#allocation3 + $0x70] sm:$0xff] %vm3617_vm12, %v3546_v39 }
 0x2ce   : > { %3631 = vst.msk [vmem:[#allocation3 + $0x78] sm:$0xff] %vm3617_vm12, %v3548_v20  ;;  %11927 = vmatprep.mubr.msk.f32.mxu1 %vm246_vm10, %v15388_v41  ;;  %12065 = vmatprep.mubr.msk.f32.mxu0 %vm246_vm10, %v15388_v41 }
 0x2cf   : > { %11928 = vmatmul.mubr.msk.f32.gmra.mxu1 %vm246_vm10, %v15390_v47  ;;  %12066 = vmatmul.mubr.msk.f32.gmra.mxu0 %vm246_vm10, %v15390_v47 }
 0x2d0   : > { %v3357_v35 = vpop.permute.xlu0 %3356 }
 0x2d1   : > { %5450 = vrot.lane.b32.xlu1 %v15032_v4, %s13324_s25  ;;  %5576 = vrot.lane.b32.xlu0 %v15024_v2, %s13325_s26  ;;  %v3359_v0 = vpop.permute.xlu1 %3358  ;;  %3439 = vst.msk [vmem:[#allocation3 + $0x80] sm:$0xff] %vm3424_vm11, %v3357_v35 }
 0x2d2   : > { %3440 = vst.msk [vmem:[#allocation3 + $0x88] sm:$0xff] %vm3424_vm11, %v3359_v0 }
 0x2d4   : > { %v3550_v24 = vpop.permute.xlu0 %3549  ;;  %v15414_v39 = vld [vmem:[#allocation3 + $0x70] sm:$0xff] }
 0x2d5   : > { %5578 = vrot.lane.b32.xlu1 %v15032_v4, %s13325_s26  ;;  %5452 = vrot.lane.b32.xlu0 %v15058_v43, %s13324_s25  ;;  %v3552_v20 = vpop.permute.xlu1 %3551  ;;  %v15416_v23 = vld [vmem:[#allocation3 + $0x78] sm:$0xff]  ;;  %3632 = vst.msk [vmem:[#allocation3 + $0x80] sm:$0xff] %vm3617_vm12, %v3550_v24 }
 0x2d6   : > { %3633 = vst.msk [vmem:[#allocation3 + $0x88] sm:$0xff] %vm3617_vm12, %v3552_v20  ;;  %11930 = vmatprep.mubr.msk.f32.mxu1 %vm246_vm10, %v15414_v39  ;;  %12068 = vmatprep.mubr.msk.f32.mxu0 %vm246_vm10, %v15414_v39 }
 0x2d7   : > { %11931 = vmatmul.mubr.msk.f32.gmra.mxu1 %vm246_vm10, %v15416_v23  ;;  %12069 = vmatmul.mubr.msk.f32.gmra.mxu0 %vm246_vm10, %v15416_v23 }
 0x2d9   : > { %5580 = vrot.lane.b32.xlu1 %v15058_v43, %s13325_s26  ;;  %5454 = vrot.lane.b32.xlu0 %v15071_v21, %s13324_s25  ;;  %v3363_v35 = vpop.permute.xlu1 %3362 }
 0x2da   : > { %3442 = vst.msk [vmem:[#allocation3 + $0x98] sm:$0xff] %vm3424_vm11, %v3363_v35 }
 0x2dc   : > { %v15437_v24 = vld [vmem:[#allocation3 + $0x80] sm:$0xff] }
 0x2dd   : > { %5582 = vrot.lane.b32.xlu1 %v15071_v21, %s13325_s26  ;;  %5456 = vrot.lane.b32.xlu0 %v15091_v48, %s13324_s25  ;;  %v3556_v0 = vpop.permute.xlu1 %3555  ;;  %v15439_v20 = vld [vmem:[#allocation3 + $0x88] sm:$0xff] }
 0x2de   : > { %3635 = vst.msk [vmem:[#allocation3 + $0x98] sm:$0xff] %vm3617_vm12, %v3556_v0  ;;  %11933 = vmatprep.mubr.msk.f32.mxu1 %vm246_vm10, %v15437_v24  ;;  %12071 = vmatprep.mubr.msk.f32.mxu0 %vm246_vm10, %v15437_v24 }
 0x2df   : > { %v3361_v2 = vpop.permute.xlu0 %3360  ;;  %11934 = vmatmul.mubr.msk.f32.gmra.mxu1 %vm246_vm10, %v15439_v20  ;;  %12072 = vmatmul.mubr.msk.f32.gmra.mxu0 %vm246_vm10, %v15439_v20 }
 0x2e0   : > { %3441 = vst.msk [vmem:[#allocation3 + $0x90] sm:$0xff] %vm3424_vm11, %v3361_v2 }
 0x2e1   : > { %5458 = vrot.lane.b32.xlu1 %v15100_v37, %s13324_s25  ;;  %5584 = vrot.lane.b32.xlu0 %v15091_v48, %s13325_s26 }
 0x2e3   : > { %v3554_v35 = vpop.permute.xlu0 %3553 }
 0x2e4   : > { %3634 = vst.msk [vmem:[#allocation3 + $0x90] sm:$0xff] %vm3617_vm12, %v3554_v35 }
 0x2e5   : > { %5586 = vrot.lane.b32.xlu1 %v15100_v37, %s13325_s26  ;;  %5460 = vrot.lane.b32.xlu0 %v15127_v36, %s13324_s25  ;;  %v15465_v0 = vld [vmem:[#allocation3 + $0x98] sm:$0xff] }
 0x2e7   : > { %v3365_v2 = vpop.permute.xlu0 %3364 }
 0x2e8   : > { %3443 = vst.msk [vmem:[#allocation3 + $0xa0] sm:$0xff] %vm3424_vm11, %v3365_v2 }
 0x2e9   : > { %5588 = vrot.lane.b32.xlu1 %v15127_v36, %s13325_s26  ;;  %5462 = vrot.lane.b32.xlu0 %v15139_v55, %s13324_s25 }
 0x2eb   : > { %v3367_v48 = vpop.permute.xlu1 %3366  ;;  %v3558_v21 = vpop.permute.xlu0 %3557  ;;  %v15467_v35 = vld [vmem:[#allocation3 + $0x90] sm:$0xff] }
 0x2ec   : > { %3444 = vst.msk [vmem:[#allocation3 + $0xa8] sm:$0xff] %vm3424_vm11, %v3367_v48  ;;  %11936 = vmatprep.mubr.msk.f32.mxu1 %vm246_vm10, %v15467_v35  ;;  %12074 = vmatprep.mubr.msk.f32.mxu0 %vm246_vm10, %v15467_v35 }
 0x2ed   : > { %3636 = vst.msk [vmem:[#allocation3 + $0xa0] sm:$0xff] %vm3617_vm12, %v3558_v21  ;;  %11937 = vmatmul.mubr.msk.f32.gmra.mxu1 %vm246_vm10, %v15465_v0  ;;  %12075 = vmatmul.mubr.msk.f32.gmra.mxu0 %vm246_vm10, %v15465_v0 }
 0x2ee   : > { %5590 = vrot.lane.b32.xlu1 %v15139_v55, %s13325_s26  ;;  %5464 = vrot.lane.b32.xlu0 %v15150_v50, %s13324_s25 }
 0x2ef   : > { %v3560_v48 = vpop.permute.xlu1 %3559  ;;  %v3369_v21 = vpop.permute.xlu0 %3368 }
 0x2f0   : > { %3637 = vst.msk [vmem:[#allocation3 + $0xa8] sm:$0xff] %vm3617_vm12, %v3560_v48 }
 0x2f1   : > { %3445 = vst.msk [vmem:[#allocation3 + $0xb0] sm:$0xff] %vm3424_vm11, %v3369_v21 }
 0x2f2   : > { %5466 = vrot.lane.b32.xlu1 %v15153_v1, %s13324_s25  ;;  %5592 = vrot.lane.b32.xlu0 %v15150_v50, %s13325_s26 }
 0x2f3   : > { %v3371_v2 = vpop.permute.xlu1 %3370  ;;  %v3562_v36 = vpop.permute.xlu0 %3561 }
 0x2f4   : > { %v15489_v37 = vld [vmem:[#allocation3 + $0xa0] sm:$0xff]  ;;  %3446 = vst.msk [vmem:[#allocation3 + $0xb8] sm:$0xff] %vm3424_vm11, %v3371_v2 }
 0x2f5   : > { %3638 = vst.msk [vmem:[#allocation3 + $0xb0] sm:$0xff] %vm3617_vm12, %v3562_v36  ;;  %11939 = vmatprep.mubr.msk.f32.mxu1 %vm246_vm10, %v15489_v37  ;;  %12077 = vmatprep.mubr.msk.f32.mxu0 %vm246_vm10, %v15489_v37 }
 0x2f6   : > { %5594 = vrot.lane.b32.xlu1 %v15153_v1, %s13325_s26  ;;  %5468 = vrot.lane.b32.xlu0 %v15168_v40, %s13324_s25 }
 0x2f7   : > { %v3564_v48 = vpop.permute.xlu1 %3563  ;;  %v15501_v21 = vld [vmem:[#allocation3 + $0xa8] sm:$0xff]  ;;  %v3373_v55 = vpop.permute.xlu0 %3372 }
 0x2f8   : > { %3639 = vst.msk [vmem:[#allocation3 + $0xb8] sm:$0xff] %vm3617_vm12, %v3564_v48  ;;  %11940 = vmatmul.mubr.msk.f32.gmra.mxu1 %vm246_vm10, %v15501_v21  ;;  %12078 = vmatmul.mubr.msk.f32.gmra.mxu0 %vm246_vm10, %v15501_v21 }
 0x2f9   : > { %3447 = vst.msk [vmem:[#allocation3 + $0xc0] sm:$0xff] %vm3424_vm11, %v3373_v55 }
 0x2fa   : > { %5596 = vrot.lane.b32.xlu1 %v15168_v40, %s13325_s26  ;;  %5470 = vrot.lane.b32.xlu0 %v15178_v51, %s13324_s25 }
 0x2fb   : > { %v3375_v36 = vpop.permute.xlu1 %3374  ;;  %v3566_v2 = vpop.permute.xlu0 %3565 }
 0x2fc   : > { %v15513_v50 = vld [vmem:[#allocation3 + $0xb0] sm:$0xff]  ;;  %3448 = vst.msk [vmem:[#allocation3 + $0xc8] sm:$0xff] %vm3424_vm11, %v3375_v36  ;;  %v11911_v55 = vpop.f32.mrf.mxu1 }
 0x2fd   : > { %3640 = vst.msk [vmem:[#allocation3 + $0xc0] sm:$0xff] %vm3617_vm12, %v3566_v2  ;;  %11942 = vmatprep.mubr.msk.f32.mxu1 %vm246_vm10, %v15513_v50  ;;  %12080 = vmatprep.mubr.msk.f32.mxu0 %vm246_vm10, %v15513_v50 }
 0x2fe   : > { %5598 = vrot.lane.b32.xlu1 %v15178_v51, %s13325_s26  ;;  %5472 = vrot.lane.b32.xlu0 %v15190_v22, %s13324_s25  ;;  %4016 = vst.msk [vmem:[#allocation6 + $0x8] sm:$0xff] %vm354_vm5, %v11911_v55  ;;  %v3856_v36 = vpop.f32.mrf.mxu1 }
 0x2ff   : > { %v3568_v48 = vpop.permute.xlu1 %3567  ;;  %v15525_v40 = vld [vmem:[#allocation3 + $0xb8] sm:$0xff]  ;;  %v3377_v1 = vpop.permute.xlu0 %3376  ;;  %4015 = vst.msk [vmem:[#allocation6] sm:$0xff] %vm354_vm5, %v3856_v36 }
 0x300   : > { %3641 = vst.msk [vmem:[#allocation3 + $0xc8] sm:$0xff] %vm3617_vm12, %v3568_v48  ;;  %11943 = vmatmul.mubr.msk.f32.gmra.mxu1 %vm246_vm10, %v15525_v40  ;;  %12081 = vmatmul.mubr.msk.f32.gmra.mxu0 %vm246_vm10, %v15525_v40 }
 0x301   : > { %3449 = vst.msk [vmem:[#allocation3 + $0xd0] sm:$0xff] %vm3424_vm11, %v3377_v1 }
 0x302   : > { %5474 = vrot.lane.b32.xlu1 %v15193_v18, %s13324_s25  ;;  %5600 = vrot.lane.b32.xlu0 %v15190_v22, %s13325_s26 }
 0x303   : > { %v3379_v2 = vpop.permute.xlu1 %3378  ;;  %v3570_v55 = vpop.permute.xlu0 %3569 }
 0x304   : > { %v15539_v48 = vld [vmem:[#allocation3 + $0xc0] sm:$0xff]  ;;  %3450 = vst.msk [vmem:[#allocation3 + $0xd8] sm:$0xff] %vm3424_vm11, %v3379_v2 }
 0x305   : > { %3642 = vst.msk [vmem:[#allocation3 + $0xd0] sm:$0xff] %vm3617_vm12, %v3570_v55  ;;  %11945 = vmatprep.mubr.msk.f32.mxu1 %vm246_vm10, %v15539_v48  ;;  %12083 = vmatprep.mubr.msk.f32.mxu0 %vm246_vm10, %v15539_v48 }
 0x306   : > { %5602 = vrot.lane.b32.xlu1 %v15193_v18, %s13325_s26  ;;  %5476 = vrot.lane.b32.xlu0 %v15211_v49, %s13324_s25 }
 0x307   : > { %v3572_v1 = vpop.permute.xlu1 %3571  ;;  %v15551_v36 = vld [vmem:[#allocation3 + $0xc8] sm:$0xff]  ;;  %v3381_v22 = vpop.permute.xlu0 %3380 }
 0x308   : > { %3643 = vst.msk [vmem:[#allocation3 + $0xd8] sm:$0xff] %vm3617_vm12, %v3572_v1  ;;  %11946 = vmatmul.mubr.msk.f32.gmra.mxu1 %vm246_vm10, %v15551_v36  ;;  %12084 = vmatmul.mubr.msk.f32.gmra.mxu0 %vm246_vm10, %v15551_v36 }
 0x309   : > { %3451 = vst.msk [vmem:[#allocation3 + $0xe0] sm:$0xff] %vm3424_vm11, %v3381_v22 }
 0x30a   : > { %5604 = vrot.lane.b32.xlu1 %v15211_v49, %s13325_s26  ;;  %5478 = vrot.lane.b32.xlu0 %v15236_v16, %s13324_s25 }
 0x30b   : > { %v3383_v2 = vpop.permute.xlu1 %3382  ;;  %v3574_v55 = vpop.permute.xlu0 %3573 }
 0x30c   : > { %v15563_v18 = vld [vmem:[#allocation3 + $0xd0] sm:$0xff]  ;;  %3452 = vst.msk [vmem:[#allocation3 + $0xe8] sm:$0xff] %vm3424_vm11, %v3383_v2 }
 0x30d   : > { %3644 = vst.msk [vmem:[#allocation3 + $0xe0] sm:$0xff] %vm3617_vm12, %v3574_v55  ;;  %11948 = vmatprep.mubr.msk.f32.mxu1 %vm246_vm10, %v15563_v18  ;;  %12086 = vmatprep.mubr.msk.f32.mxu0 %vm246_vm10, %v15563_v18 }
 0x30e   : > { %5606 = vrot.lane.b32.xlu1 %v15236_v16, %s13325_s26  ;;  %5480 = vrot.lane.b32.xlu0 %v15247_v60, %s13324_s25 }
 0x30f   : > { %v3576_v22 = vpop.permute.xlu1 %3575  ;;  %v15575_v1 = vld [vmem:[#allocation3 + $0xd8] sm:$0xff]  ;;  %v3385_v49 = vpop.permute.xlu0 %3384 }
 0x310   : > { %3645 = vst.msk [vmem:[#allocation3 + $0xe8] sm:$0xff] %vm3617_vm12, %v3576_v22  ;;  %11949 = vmatmul.mubr.msk.f32.gmra.mxu1 %vm246_vm10, %v15575_v1  ;;  %12087 = vmatmul.mubr.msk.f32.gmra.mxu0 %vm246_vm10, %v15575_v1 }
 0x311   : > { %3453 = vst.msk [vmem:[#allocation3 + $0xf0] sm:$0xff] %vm3424_vm11, %v3385_v49 }
 0x312   : > { %5482 = vrot.lane.b32.xlu1 %v15256_v5, %s13324_s25  ;;  %5608 = vrot.lane.b32.xlu0 %v15247_v60, %s13325_s26 }
 0x313   : > { %v3387_v2 = vpop.permute.xlu1 %3386  ;;  %v3578_v55 = vpop.permute.xlu0 %3577 }
 0x314   : > { %v15587_v16 = vld [vmem:[#allocation3 + $0xe0] sm:$0xff]  ;;  %3454 = vst.msk [vmem:[#allocation3 + $0xf8] sm:$0xff] %vm3424_vm11, %v3387_v2 }
 0x315   : > { %3646 = vst.msk [vmem:[#allocation3 + $0xf0] sm:$0xff] %vm3617_vm12, %v3578_v55  ;;  %11951 = vmatprep.mubr.msk.f32.mxu1 %vm246_vm10, %v15587_v16  ;;  %12089 = vmatprep.mubr.msk.f32.mxu0 %vm246_vm10, %v15587_v16 }
 0x316   : > { %5610 = vrot.lane.b32.xlu1 %v15256_v5, %s13325_s26  ;;  %5484 = vrot.lane.b32.xlu0 %v15279_v46, %s13324_s25 }
 0x317   : > { %v3580_v49 = vpop.permute.xlu1 %3579  ;;  %v15599_v22 = vld [vmem:[#allocation3 + $0xe8] sm:$0xff]  ;;  %v5433_v60 = vpop.permute.xlu0 %5432 }
 0x318   : > { %3647 = vst.msk [vmem:[#allocation3 + $0xf8] sm:$0xff] %vm3617_vm12, %v3580_v49  ;;  %11952 = vmatmul.mubr.msk.f32.gmra.mxu1 %vm246_vm10, %v15599_v22  ;;  %12090 = vmatmul.mubr.msk.f32.gmra.mxu0 %vm246_vm10, %v15599_v22 }
 0x319   : > { %5528 = vst.msk [vmem:[#allocation2 + $0x31] sm:$0xff] %vm515_vm6, %v5433_v60 }
 0x31a   : > { %5612 = vrot.lane.b32.xlu1 %v15279_v46, %s13325_s26  ;;  %5486 = vrot.lane.b32.xlu0 %v15290_v30, %s13324_s25 }
 0x31b   : > { %v5435_v2 = vpop.permute.xlu1 %5434  ;;  %v5561_v55 = vpop.permute.xlu0 %5560 }
 0x31c   : > { %v15611_v5 = vld [vmem:[#allocation3 + $0xf0] sm:$0xff]  ;;  %5529 = vst.msk [vmem:[#allocation2 + $0x39] sm:$0xff] %vm515_vm6, %v5435_v2 }
 0x31d   : > { %5656 = vst.msk [vmem:[#allocation2 + $0x30] sm:$0xff] %vm644_vm7, %v5561_v55  ;;  %11954 = vmatprep.mubr.msk.f32.mxu1 %vm246_vm10, %v15611_v5  ;;  %12092 = vmatprep.mubr.msk.f32.mxu0 %vm246_vm10, %v15611_v5 }
 0x31e   : > { %5614 = vrot.lane.b32.xlu1 %v15290_v30, %s13325_s26  ;;  %5488 = vrot.lane.b32.xlu0 %v15312_v56, %s13324_s25 }
 0x31f   : > { %v5563_v60 = vpop.permute.xlu1 %5562  ;;  %v15623_v49 = vld [vmem:[#allocation3 + $0xf8] sm:$0xff]  ;;  %v5437_v46 = vpop.permute.xlu0 %5436 }
 0x320   : > { %5657 = vst.msk [vmem:[#allocation2 + $0x38] sm:$0xff] %vm644_vm7, %v5563_v60  ;;  %11955 = vmatmul.mubr.msk.f32.gmra.mxu1 %vm246_vm10, %v15623_v49  ;;  %12093 = vmatmul.mubr.msk.f32.gmra.mxu0 %vm246_vm10, %v15623_v49  ;;  %v5742_v60 = vld [vmem:[%s18134_s1] sm:$0xff] }
 0x321   : > { %5530 = vst.msk [vmem:[#allocation2 + $0x49] sm:$0xff] %vm515_vm6, %v5437_v46  ;;  %11981 = vmatprep.mubr.msk.f32.mxu1 %vm246_vm10, %v15223_v63  ;;  %v15651_v63 = vld [vmem:[%s18134_s1 + $0x28] sm:$0xf] }
 0x322   : > { %5490 = vrot.lane.b32.xlu1 %v15321_v38, %s13324_s25  ;;  %5616 = vrot.lane.b32.xlu0 %v15312_v56, %s13325_s26 }
 0x323   : > { %v5565_v2 = vpop.permute.xlu1 %5564  ;;  %v5439_v55 = vpop.permute.xlu0 %5438 }
 0x324   : > { %5658 = vst.msk [vmem:[#allocation2 + $0x48] sm:$0xff] %vm644_vm7, %v5565_v2  ;;  %11982 = vmatmul.mubr.msk.f32.vlgmr.msra.gmra.mxu1 %vm246_vm10, %v15225_v44 }
 0x325   : > { %5531 = vst.msk [vmem:[#allocation2 + $0x51] sm:$0xff] %vm515_vm6, %v5439_v55  ;;  %12102 = vmatpush3.msk.msra.mxu1 %vm895_vm2, %v15216_v57  ;;  %11984 = vmatprep.mubr.msk.f32.mxu1 %vm246_vm10, %v15258_v31 }
 0x326   : > { %5618 = vrot.lane.b32.xlu1 %v15321_v38, %s13325_s26  ;;  %12103 = vmatprep.subr.mxu1 %v5742_v60 }
 0x327   : > { %v5567_v46 = vpop.permute.xlu1 %5566  ;;  %v5441_v2 = vpop.permute.xlu0 %5440  ;;  %12104 = vmatpush3.msra.mxu1 %v5742_v60  ;;  %5492 = vrot.lane.b32.xlu0 %v15375_v62, %s13324_s25 }
 0x328   : > { %5659 = vst.msk [vmem:[#allocation2 + $0x50] sm:$0xff] %vm644_vm7, %v5567_v46  ;;  %11985 = vmatmul.mubr.msk.f32.gmra.mxu1 %vm246_vm10, %v15260_v58  ;;  %12271 = vmatprep.subr.msk.mxu1 %vm895_vm2, %v15651_v63 }
 0x329   : > { %5532 = vst.msk [vmem:[#allocation2 + $0x61] sm:$0xff] %vm515_vm6, %v5441_v2  ;;  %11987 = vmatprep.mubr.msk.f32.mxu1 %vm246_vm10, %v15292_v3 }
 0x32a   : > { %5620 = vrot.lane.b32.xlu1 %v15375_v62, %s13325_s26 }
 0x32b   : > { %v5443_v57 = vpop.permute.xlu1 %5442  ;;  %v3389_v44 = vpop.permute.xlu0 %3388  ;;  %5494 = vrot.lane.b32.xlu0 %v15386_v33, %s13324_s25  ;;  %s13267_s25 = scalar_lea.vmem %s13266_s12, 512 }
 0x32c   : > { %5533 = vst.msk [vmem:[#allocation2 + $0x69] sm:$0xff] %vm515_vm6, %v5443_v57  ;;  %11988 = vmatmul.mubr.msk.f32.gmra.mxu1 %vm246_vm10, %v15294_v19  ;;  %p13269_p1 = scmp.lt.s32.totalorder %s13267_s25, %s13261_s10 }
 0x32d   : > { %3455 = vst.msk [vmem:[#allocation3 + $0x100] sm:$0xff] %vm3424_vm11, %v3389_v44  ;;  %11990 = vmatprep.mubr.msk.f32.mxu1 %vm246_vm10, %v15323_v7 }
 0x32e   : > { %5622 = vrot.lane.b32.xlu1 %v15386_v33, %s13325_s26  ;;  %p13270_p2 = por %p13269_p1, %p13268_p0 }
 0x32f   : > { %v3391_v31 = vpop.permute.xlu1 %3390  ;;  %v3582_v58 = vpop.permute.xlu0 %3581 }
 0x330   : > { %3456 = vst.msk [vmem:[#allocation3 + $0x108] sm:$0xff] %vm3424_vm11, %v3391_v31  ;;  %11991 = vmatmul.mubr.msk.f32.gmra.mxu1 %vm246_vm10, %v15325_v29  ;;  %p13271_p3 = pnand %p13270_p2, %p13264_p13 }
 0x331   : > { %3648 = vst.msk [vmem:[#allocation3 + $0x100] sm:$0xff] %vm3617_vm12, %v3582_v58  ;;  %11993 = vmatprep.mubr.msk.f32.mxu1 %vm246_vm10, %v15356_v52  ;;  %v4540_v52 = vld [vmem:[#allocation3 + $0x110] sm:$0xff] }
 0x333   : > { %v3584_v3 = vpop.permute.xlu1 %3583  ;;  %v5569_v19 = vpop.permute.xlu0 %5568 }
 0x334   : > { %3649 = vst.msk [vmem:[#allocation3 + $0x108] sm:$0xff] %vm3617_vm12, %v3584_v3  ;;  %11994 = vmatmul.mubr.msk.f32.gmra.mxu1 %vm246_vm10, %v15358_v61 }
 0x335   : > { %5660 = vst.msk [vmem:[#allocation2 + $0x60] sm:$0xff] %vm644_vm7, %v5569_v19  ;;  %11996 = vmatprep.mubr.msk.f32.mxu1 %vm246_vm10, %v15388_v41 }
 0x337   : > { %v5571_v29 = vpop.permute.xlu1 %5570  ;;  %v5445_v55 = vpop.permute.xlu0 %5444 }
 0x338   : > { %v15689_v7 = vld [vmem:[#allocation3 + $0x100] sm:$0xff]  ;;  %11997 = vmatmul.mubr.msk.f32.gmra.mxu1 %vm246_vm10, %v15390_v47  ;;  %5661 = vst.msk [vmem:[#allocation2 + $0x68] sm:$0xff] %vm644_vm7, %v5571_v29  ;;  %v4541_v47 = vld [vmem:[#allocation3 + $0x118] sm:$0xff] }
 0x339   : > { %12095 = vmatprep.mubr.msk.f32.mxu0 %vm246_vm10, %v15689_v7  ;;  %5534 = vst.msk [vmem:[#allocation2 + $0x79] sm:$0xff] %vm515_vm6, %v5445_v55  ;;  %11999 = vmatprep.mubr.msk.f32.mxu1 %vm246_vm10, %v15414_v39  ;;  %v15710_v39 = vld [vmem:[#allocation2 + $0x18] sm:$0xff] }
 0x33b   : > { %v15699_v61 = vld [vmem:[#allocation3 + $0x108] sm:$0xff]  ;;  %v5573_v41 = vpop.permute.xlu1 %5572  ;;  %v5447_v60 = vpop.permute.xlu0 %5446 }
 0x33c   : > { %12000 = vmatmul.mubr.msk.f32.gmra.mxu1 %vm246_vm10, %v15416_v23  ;;  %12096 = vmatmul.mubr.msk.f32.gmra.mxu0 %vm246_vm10, %v15699_v61  ;;  %5662 = vst.msk [vmem:[#allocation2 + $0x78] sm:$0xff] %vm644_vm7, %v5573_v41  ;;  %v15721_v23 = vld [vmem:[#allocation2 + $0x20] sm:$0xff] }
 0x33d   : > { %5535 = vst.msk [vmem:[#allocation2 + $0x81] sm:$0xff] %vm515_vm6, %v5447_v60  ;;  %12002 = vmatprep.mubr.msk.f32.mxu1 %vm246_vm10, %v15437_v24  ;;  %12098 = vmatprep.mubr.msk.f32.mxu0 %vm246_vm10, %v4540_v52  ;;  %v15723_v24 = vld [vmem:[#allocation2 + $0x28] sm:$0xff] }
 0x33f   : > { %v5575_v46 = vpop.permute.xlu1 %5574  ;;  %v5449_v2 = vpop.permute.xlu0 %5448 }
 0x340   : > { %12003 = vmatmul.mubr.msk.f32.gmra.mxu1 %vm246_vm10, %v15439_v20  ;;  %12099 = vmatmul.mubr.msk.f32.gmra.mxu0 %vm246_vm10, %v4541_v47  ;;  %5663 = vst.msk [vmem:[#allocation2 + $0x80] sm:$0xff] %vm644_vm7, %v5575_v46  ;;  %v15735_v20 = vld [vmem:[#allocation2 + $0x30] sm:$0xff] }
 0x341   : > { %5536 = vst.msk [vmem:[#allocation2 + $0x91] sm:$0xff] %vm515_vm6, %v5449_v2  ;;  %12005 = vmatprep.mubr.msk.f32.mxu1 %vm246_vm10, %v15467_v35  ;;  %12190 = vmatprep.mubr.msk.f32.mxu0 %vm230_vm3, %v15710_v39  ;;  %v15737_v35 = vld [vmem:[#allocation2 + $0x38] sm:$0xff] }
 0x343   : > { %v5451_v57 = vpop.permute.xlu1 %5450  ;;  %v5577_v44 = vpop.permute.xlu0 %5576 }
 0x344   : > { %12006 = vmatmul.mubr.msk.f32.gmra.mxu1 %vm246_vm10, %v15465_v0  ;;  %12191 = vmatmul.mubr.msk.f32.vlgmr.msra.gmra.mxu0 %vm230_vm3, %v15721_v23  ;;  %5537 = vst.msk [vmem:[#allocation2 + $0x99] sm:$0xff] %vm515_vm6, %v5451_v57  ;;  %v15751_v0 = vld [vmem:[#allocation2 + $0x40] sm:$0xff] }
 0x345   : > { %5664 = vst.msk [vmem:[#allocation2 + $0x90] sm:$0xff] %vm644_vm7, %v5577_v44  ;;  %12008 = vmatprep.mubr.msk.f32.mxu1 %vm246_vm10, %v15489_v37  ;;  %12193 = vmatprep.mubr.msk.f32.mxu0 %vm230_vm3, %v15723_v24  ;;  %v15749_v37 = vld [vmem:[#allocation2 + $0x48] sm:$0xff] }
 0x347   : > { %v5579_v31 = vpop.permute.xlu1 %5578  ;;  %v5453_v58 = vpop.permute.xlu0 %5452 }
 0x348   : > { %12009 = vmatmul.mubr.msk.f32.gmra.mxu1 %vm246_vm10, %v15501_v21  ;;  %12194 = vmatmul.mubr.msk.f32.gmra.mxu0 %vm230_vm3, %v15735_v20  ;;  %5665 = vst.msk [vmem:[#allocation2 + $0x98] sm:$0xff] %vm644_vm7, %v5579_v31  ;;  %v15765_v21 = vld [vmem:[#allocation2 + $0x58] sm:$0xff]  ;;  %v5689_v31 = vld [vmem:[#allocation2 + $0x8] sm:$0xff] }
 0x349   : > { %5538 = vst.msk [vmem:[#allocation2 + $0xa9] sm:$0xff] %vm515_vm6, %v5453_v58  ;;  %12011 = vmatprep.mubr.msk.f32.mxu1 %vm246_vm10, %v15513_v50  ;;  %12196 = vmatprep.mubr.msk.f32.mxu0 %vm230_vm3, %v15737_v35  ;;  %v15763_v50 = vld [vmem:[#allocation2 + $0x50] sm:$0xff] }
 0x34a   : > { %v5690_v58 = vld [vmem:[#allocation2 + $0x10] sm:$0xff] }
 0x34b   : > { %v5581_v3 = vpop.permute.xlu1 %5580  ;;  %v5455_v19 = vpop.permute.xlu0 %5454 }
 0x34c   : > { %12012 = vmatmul.mubr.msk.f32.gmra.mxu1 %vm246_vm10, %v15525_v40  ;;  %12197 = vmatmul.mubr.msk.f32.gmra.mxu0 %vm230_vm3, %v15751_v0  ;;  %5666 = vst.msk [vmem:[#allocation2 + $0xa8] sm:$0xff] %vm644_vm7, %v5581_v3  ;;  %v15777_v40 = vld [vmem:[#allocation2 + $0x60] sm:$0xff] }
 0x34d   : > { %5539 = vst.msk [vmem:[#allocation2 + $0xb1] sm:$0xff] %vm515_vm6, %v5455_v19  ;;  %12014 = vmatprep.mubr.msk.f32.mxu1 %vm246_vm10, %v15539_v48  ;;  %12199 = vmatprep.mubr.msk.f32.mxu0 %vm230_vm3, %v15749_v37  ;;  %v15779_v48 = vld [vmem:[#allocation2 + $0x68] sm:$0xff] }
 0x34f   : > { %v5583_v29 = vpop.permute.xlu1 %5582  ;;  %v5457_v55 = vpop.permute.xlu0 %5456  ;;  %v15821_v57 = vld [vmem:[#allocation2 + $0x98] sm:$0xff] }
 0x350   : > { %12015 = vmatmul.mubr.msk.f32.gmra.mxu1 %vm246_vm10, %v15551_v36  ;;  %12200 = vmatmul.mubr.msk.f32.gmra.mxu0 %vm230_vm3, %v15763_v50  ;;  %5667 = vst.msk [vmem:[#allocation2 + $0xb0] sm:$0xff] %vm644_vm7, %v5583_v29  ;;  %v15793_v36 = vld [vmem:[#allocation2 + $0x78] sm:$0xff] }
 0x351   : > { %5540 = vst.msk [vmem:[#allocation2 + $0xc1] sm:$0xff] %vm515_vm6, %v5457_v55  ;;  %12017 = vmatprep.mubr.msk.f32.mxu1 %vm246_vm10, %v15563_v18  ;;  %12202 = vmatprep.mubr.msk.f32.mxu0 %vm230_vm3, %v15765_v21  ;;  %v15791_v18 = vld [vmem:[#allocation2 + $0x70] sm:$0xff] }
 0x353   : > { %v5459_v52 = vpop.permute.xlu1 %5458  ;;  %v5585_v41 = vpop.permute.xlu0 %5584  ;;  %v15834_v3 = vld [vmem:[#allocation2 + $0xa8] sm:$0xff] }
 0x354   : > { %12018 = vmatmul.mubr.msk.f32.gmra.mxu1 %vm246_vm10, %v15575_v1  ;;  %12203 = vmatmul.mubr.msk.f32.gmra.mxu0 %vm230_vm3, %v15777_v40  ;;  %5541 = vst.msk [vmem:[#allocation2 + $0xc9] sm:$0xff] %vm515_vm6, %v5459_v52  ;;  %v15807_v1 = vld [vmem:[#allocation2 + $0x88] sm:$0xff]  ;;  %v15851_v52 = vld [vmem:[#allocation2 + $0xb8] sm:$0xff] }
 0x355   : > { %5668 = vst.msk [vmem:[#allocation2 + $0xc0] sm:$0xff] %vm644_vm7, %v5585_v41  ;;  %12020 = vmatprep.mubr.msk.f32.mxu1 %vm246_vm10, %v15587_v16  ;;  %12205 = vmatprep.mubr.msk.f32.mxu0 %vm230_vm3, %v15779_v48  ;;  %v15805_v16 = vld [vmem:[#allocation2 + $0x80] sm:$0xff] }
 0x357   : > { %v5587_v60 = vpop.permute.xlu1 %5586  ;;  %v5461_v47 = vpop.permute.xlu0 %5460  ;;  %v15845_v55 = vld [vmem:[#allocation2 + $0xb0] sm:$0xff] }
 0x358   : > { %12021 = vmatmul.mubr.msk.f32.gmra.mxu1 %vm246_vm10, %v15599_v22  ;;  %12206 = vmatmul.mubr.msk.f32.gmra.mxu0 %vm230_vm3, %v15791_v18  ;;  %5669 = vst.msk [vmem:[#allocation2 + $0xc8] sm:$0xff] %vm644_vm7, %v5587_v60  ;;  %v5688_v22 = vld [vmem:[#allocation2] sm:$0xff] }
 0x359   : > { %5542 = vst.msk [vmem:[#allocation2 + $0xd9] sm:$0xff] %vm515_vm6, %v5461_v47  ;;  %12023 = vmatprep.mubr.msk.f32.mxu1 %vm246_vm10, %v15611_v5  ;;  %12208 = vmatprep.mubr.msk.f32.mxu0 %vm230_vm3, %v15793_v36  ;;  %v15819_v5 = vld [vmem:[#allocation2 + $0x90] sm:$0xff] }
 0x35b   : > { %v5589_v46 = vpop.permute.xlu1 %5588  ;;  %v5463_v2 = vpop.permute.xlu0 %5462 }
 0x35c   : > { %12024 = vmatmul.mubr.msk.f32.gmra.mxu1 %vm246_vm10, %v15623_v49  ;;  %12209 = vmatmul.mubr.msk.f32.gmra.mxu0 %vm230_vm3, %v15805_v16  ;;  %5670 = vst.msk [vmem:[#allocation2 + $0xd8] sm:$0xff] %vm644_vm7, %v5589_v46  ;;  %v15862_v60 = vld [vmem:[#allocation2 + $0xc0] sm:$0xff] }
 0x35d   : > { %5543 = vst.msk [vmem:[#allocation2 + $0xe1] sm:$0xff] %vm515_vm6, %v5463_v2  ;;  %12026 = vmatprep.mubr.msk.f32.mxu1 %vm246_vm10, %v15689_v7  ;;  %12211 = vmatprep.mubr.msk.f32.mxu0 %vm230_vm3, %v15807_v1  ;;  %v15830_v7 = vld [vmem:[#allocation2 + $0xa0] sm:$0xff]  ;;  %v15877_v2 = vld [vmem:[#allocation2 + $0xd0] sm:$0xff] }
 0x360   : > { %12027 = vmatmul.mubr.msk.f32.gmra.mxu1 %vm246_vm10, %v15699_v61  ;;  %12212 = vmatmul.mubr.msk.f32.gmra.mxu0 %vm230_vm3, %v15819_v5  ;;  %v5591_v49 = vpop.permute.xlu1 %5590  ;;  %v5465_v44 = vpop.permute.xlu0 %5464  ;;  %v10843_v61 = vld [vmem:[%s18134_s1 + $0x20] sm:$0xff] }
 0x361   : > { %12105 = vmatprep.mubr.msk.f32.mxu1 %vm230_vm3, %v5688_v22  ;;  %12214 = vmatprep.mubr.msk.f32.mxu0 %vm230_vm3, %v15821_v57  ;;  %5671 = vst.msk [vmem:[#allocation2 + $0xe0] sm:$0xff] %vm644_vm7, %v5591_v49 }
 0x362   : > { %5544 = vst.msk [vmem:[#allocation2 + $0xf1] sm:$0xff] %vm515_vm6, %v5465_v44 }
 0x363   : > { %v11914_v41 = vpop.f32.mrf.mxu1  ;;  %v15880_v49 = vld [vmem:[#allocation2 + $0xd8] sm:$0xff] }
 0x364   : > { %12106 = vmatmul.mubr.msk.f32.vlgmr.msra.gmra.mxu1 %vm230_vm3, %v5689_v31  ;;  %12215 = vmatmul.mubr.msk.f32.gmra.mxu0 %vm230_vm3, %v15830_v7  ;;  %v5467_v19 = vpop.permute.xlu1 %5466  ;;  %v5593_v29 = vpop.permute.xlu0 %5592  ;;  %4018 = vst.msk [vmem:[#allocation6 + $0x18] sm:$0xff] %vm354_vm5, %v11914_v41 }
 0x365   : > { %12272 = vmatpush3.msk.msra.mxu1 %vm895_vm2, %v15651_v63  ;;  %12108 = vmatprep.mubr.msk.f32.mxu1 %vm230_vm3, %v5690_v58  ;;  %5545 = vst.msk [vmem:[#allocation2 + $0xf9] sm:$0xff] %vm515_vm6, %v5467_v19  ;;  %v3866_v46 = vpop.f32.mrf.mxu1  ;;  %v15894_v19 = vld [vmem:[#allocation2 + $0xe8] sm:$0xff] }
 0x366   : > { %5672 = vst.msk [vmem:[#allocation2 + $0xf0] sm:$0xff] %vm644_vm7, %v5593_v29  ;;  %12217 = vmatprep.mubr.msk.f32.mxu0 %vm230_vm3, %v15834_v3  ;;  %12273 = vmatprep.subr.mxu1 %v10843_v61 }
 0x367   : > { %12274 = vmatpush3.msra.mxu1 %v10843_v61  ;;  %4017 = vst.msk [vmem:[#allocation6 + $0x10] sm:$0xff] %vm354_vm5, %v3866_v46 }
 0x368   : > { %12109 = vmatmul.mubr.msk.f32.gmra.mxu1 %vm230_vm3, %v15710_v39  ;;  %12218 = vmatmul.mubr.msk.f32.gmra.mxu0 %vm230_vm3, %v15845_v55  ;;  %v5595_v63 = vpop.permute.xlu1 %5594  ;;  %v5469_v47 = vpop.permute.xlu0 %5468  ;;  %v15865_v39 = vld [vmem:[#allocation2 + $0xc8] sm:$0xff]  ;;  %v15892_v44 = vld [vmem:[#allocation2 + $0xe0] sm:$0xff] }
 0x369   : > { %12111 = vmatprep.mubr.msk.f32.mxu1 %vm230_vm3, %v15721_v23  ;;  %12220 = vmatprep.mubr.msk.f32.mxu0 %vm230_vm3, %v15851_v52  ;;  %5673 = vst.msk [vmem:[#allocation2 + $0xf8] sm:$0xff] %vm644_vm7, %v5595_v63 }
 0x36a   : > { %5546 = vst.msk [vmem:[#allocation2 + $0x109] sm:$0xff] %vm515_vm6, %v5469_v47 }
 0x36c   : > { %12112 = vmatmul.mubr.msk.f32.gmra.mxu1 %vm230_vm3, %v15723_v24  ;;  %12221 = vmatmul.mubr.msk.f32.gmra.mxu0 %vm230_vm3, %v15862_v60  ;;  %v5597_v23 = vpop.permute.xlu1 %5596  ;;  %v5471_v22 = vpop.permute.xlu0 %5470 }
 0x36d   : > { %12114 = vmatprep.mubr.msk.f32.mxu1 %vm230_vm3, %v15735_v20  ;;  %12223 = vmatprep.mubr.msk.f32.mxu0 %vm230_vm3, %v15865_v39  ;;  %5674 = vst.msk [vmem:[#allocation2 + $0x108] sm:$0xff] %vm644_vm7, %v5597_v23  ;;  %v15907_v29 = vld [vmem:[#allocation2 + $0xf0] sm:$0xff]  ;;  %v15922_v23 = vld [vmem:[#allocation2 + $0x100] sm:$0xff] }
 0x36e   : > { %5547 = vst.msk [vmem:[#allocation2 + $0x111] sm:$0xff] %vm515_vm6, %v5471_v22  ;;  %v11917_v24 = vpop.f32.mrf.mxu1 }
 0x36f   : > { %4020 = vst.msk [vmem:[#allocation6 + $0x28] sm:$0xff] %vm354_vm5, %v11917_v24 }
 0x370   : > { %12115 = vmatmul.mubr.msk.f32.gmra.mxu1 %vm230_vm3, %v15737_v35  ;;  %12224 = vmatmul.mubr.msk.f32.gmra.mxu0 %vm230_vm3, %v15877_v2  ;;  %v5599_v31 = vpop.permute.xlu1 %5598  ;;  %v5473_v58 = vpop.permute.xlu0 %5472  ;;  %v15909_v47 = vld [vmem:[#allocation2 + $0xf8] sm:$0xff] }
 0x371   : > { %12117 = vmatprep.mubr.msk.f32.mxu1 %vm230_vm3, %v15751_v0  ;;  %12226 = vmatprep.mubr.msk.f32.mxu0 %vm230_vm3, %v15880_v49  ;;  %v3876_v61 = vpop.f32.mrf.mxu1  ;;  %5675 = vst.msk [vmem:[#allocation2 + $0x110] sm:$0xff] %vm644_vm7, %v5599_v31 }
 0x372   : > { %5548 = vst.msk [vmem:[#allocation2 + $0x121] sm:$0xff] %vm515_vm6, %v5473_v58 }
 0x373   : > { %4019 = vst.msk [vmem:[#allocation6 + $0x20] sm:$0xff] %vm354_vm5, %v3876_v61 }
 0x374   : > { %12118 = vmatmul.mubr.msk.f32.gmra.mxu1 %vm230_vm3, %v15749_v37  ;;  %12227 = vmatmul.mubr.msk.f32.gmra.mxu0 %vm230_vm3, %v15892_v44  ;;  %v5475_v41 = vpop.permute.xlu1 %5474  ;;  %v5601_v63 = vpop.permute.xlu0 %5600  ;;  %v15926_v58 = vld [vmem:[#allocation2 + $0x108] sm:$0xff] }
 0x375   : > { %12120 = vmatprep.mubr.msk.f32.mxu1 %vm230_vm3, %v15763_v50  ;;  %12229 = vmatprep.mubr.msk.f32.mxu0 %vm230_vm3, %v15894_v19  ;;  %5549 = vst.msk [vmem:[#allocation2 + $0x129] sm:$0xff] %vm515_vm6, %v5475_v41 }
 0x376   : > { %5676 = vst.msk [vmem:[#allocation2 + $0x120] sm:$0xff] %vm644_vm7, %v5601_v63 }
 0x377   : > { %v11920_v46 = vpop.f32.mrf.mxu1 }
 0x378   : > { %12121 = vmatmul.mubr.msk.f32.gmra.mxu1 %vm230_vm3, %v15765_v21  ;;  %12230 = vmatmul.mubr.msk.f32.gmra.mxu0 %vm230_vm3, %v15907_v29  ;;  %4022 = vst.msk [vmem:[#allocation6 + $0x38] sm:$0xff] %vm354_vm5, %v11920_v46  ;;  %v5603_v22 = vpop.permute.xlu1 %5602  ;;  %v5477_v24 = vpop.permute.xlu0 %5476  ;;  %v15937_v61 = vld [vmem:[#allocation2 + $0x110] sm:$0xff]  ;;  %v15941_v46 = vld [vmem:[#allocation2 + $0x118] sm:$0xff] }
 0x379   : > { %12123 = vmatprep.mubr.msk.f32.mxu1 %vm230_vm3, %v15777_v40  ;;  %12232 = vmatprep.mubr.msk.f32.mxu0 %vm230_vm3, %v15909_v47  ;;  %v3886_v31 = vpop.f32.mrf.mxu1  ;;  %5677 = vst.msk [vmem:[#allocation2 + $0x128] sm:$0xff] %vm644_vm7, %v5603_v22 }
 0x37a   : > { %5550 = vst.msk [vmem:[#allocation2 + $0x139] sm:$0xff] %vm515_vm6, %v5477_v24 }
 0x37b   : > { %4021 = vst.msk [vmem:[#allocation6 + $0x30] sm:$0xff] %vm354_vm5, %v3886_v31 }
 0x37c   : > { %12124 = vmatmul.mubr.msk.f32.gmra.mxu1 %vm230_vm3, %v15779_v48  ;;  %12233 = vmatmul.mubr.msk.f32.gmra.mxu0 %vm230_vm3, %v15922_v23  ;;  %v5605_v41 = vpop.permute.xlu1 %5604  ;;  %v5479_v63 = vpop.permute.xlu0 %5478 }
 0x37d   : > { %12126 = vmatprep.mubr.msk.f32.mxu1 %vm230_vm3, %v15791_v18  ;;  %12235 = vmatprep.mubr.msk.f32.mxu0 %vm230_vm3, %v15926_v58  ;;  %5678 = vst.msk [vmem:[#allocation2 + $0x138] sm:$0xff] %vm644_vm7, %v5605_v41  ;;  %v15952_v24 = vld [vmem:[#allocation2 + $0x120] sm:$0xff] }
 0x37e   : > { %5551 = vst.msk [vmem:[#allocation2 + $0x141] sm:$0xff] %vm515_vm6, %v5479_v63 }
 0x37f   : > { %v11923_v22 = vpop.f32.mrf.mxu1 }
 0x380   : > { %12127 = vmatmul.mubr.msk.f32.gmra.mxu1 %vm230_vm3, %v15793_v36  ;;  %12236 = vmatmul.mubr.msk.f32.gmra.mxu0 %vm230_vm3, %v15937_v61  ;;  %4024 = vst.msk [vmem:[#allocation6 + $0x48] sm:$0xff] %vm354_vm5, %v11923_v22  ;;  %v5607_v31 = vpop.permute.xlu1 %5606  ;;  %v5481_v41 = vpop.permute.xlu0 %5480  ;;  %v15956_v33 = vld [vmem:[#allocation2 + $0x128] sm:$0xff]  ;;  %v15967_v22 = vld [vmem:[#allocation2 + $0x130] sm:$0xff] }
 0x381   : > { %12129 = vmatprep.mubr.msk.f32.mxu1 %vm230_vm3, %v15805_v16  ;;  %12238 = vmatprep.mubr.msk.f32.mxu0 %vm230_vm3, %v15941_v46  ;;  %v3896_v63 = vpop.f32.mrf.mxu1  ;;  %5679 = vst.msk [vmem:[#allocation2 + $0x140] sm:$0xff] %vm644_vm7, %v5607_v31 }
 0x382   : > { %5552 = vst.msk [vmem:[#allocation2 + $0x151] sm:$0xff] %vm515_vm6, %v5481_v41 }
 0x383   : > { %4023 = vst.msk [vmem:[#allocation6 + $0x40] sm:$0xff] %vm354_vm5, %v3896_v63 }
 0x384   : > { %12130 = vmatmul.mubr.msk.f32.gmra.mxu1 %vm230_vm3, %v15807_v1  ;;  %12239 = vmatmul.mubr.msk.f32.gmra.mxu0 %vm230_vm3, %v15952_v24  ;;  %v5483_v31 = vpop.permute.xlu1 %5482  ;;  %v5609_v41 = vpop.permute.xlu0 %5608  ;;  %v15971_v63 = vld [vmem:[#allocation2 + $0x138] sm:$0xff] }
 0x385   : > { %12132 = vmatprep.mubr.msk.f32.mxu1 %vm230_vm3, %v15819_v5  ;;  %12241 = vmatprep.mubr.msk.f32.mxu0 %vm230_vm3, %v15956_v33  ;;  %5553 = vst.msk [vmem:[#allocation2 + $0x159] sm:$0xff] %vm515_vm6, %v5483_v31  ;;  %v15986_v30 = vld [vmem:[#allocation2 + $0x148] sm:$0xff] }
 0x386   : > { %5680 = vst.msk [vmem:[#allocation2 + $0x150] sm:$0xff] %vm644_vm7, %v5609_v41 }
 0x387   : > { %v11926_v62 = vpop.f32.mrf.mxu1 }
 0x388   : > { %12133 = vmatmul.mubr.msk.f32.gmra.mxu1 %vm230_vm3, %v15821_v57  ;;  %12242 = vmatmul.mubr.msk.f32.gmra.mxu0 %vm230_vm3, %v15967_v22  ;;  %4026 = vst.msk [vmem:[#allocation6 + $0x58] sm:$0xff] %vm354_vm5, %v11926_v62  ;;  %v5611_v38 = vpop.permute.xlu1 %5610  ;;  %v5485_v56 = vpop.permute.xlu0 %5484  ;;  %v15982_v31 = vld [vmem:[#allocation2 + $0x140] sm:$0xff] }
 0x389   : > { %12135 = vmatprep.mubr.msk.f32.mxu1 %vm230_vm3, %v15830_v7  ;;  %12244 = vmatprep.mubr.msk.f32.mxu0 %vm230_vm3, %v15971_v63  ;;  %v3906_v41 = vpop.f32.mrf.mxu1  ;;  %5681 = vst.msk [vmem:[#allocation2 + $0x158] sm:$0xff] %vm644_vm7, %v5611_v38 }
 0x38a   : > { %5554 = vst.msk [vmem:[#allocation2 + $0x169] sm:$0xff] %vm515_vm6, %v5485_v56 }
 0x38b   : > { %4025 = vst.msk [vmem:[#allocation6 + $0x50] sm:$0xff] %vm354_vm5, %v3906_v41 }
 0x38c   : > { %12136 = vmatmul.mubr.msk.f32.gmra.mxu1 %vm230_vm3, %v15834_v3  ;;  %12245 = vmatmul.mubr.msk.f32.gmra.mxu0 %vm230_vm3, %v15982_v31  ;;  %v5613_v62 = vpop.permute.xlu1 %5612  ;;  %v5487_v51 = vpop.permute.xlu0 %5486  ;;  %v16010_v32 = vld [vmem:[#allocation2 + $0x160] sm:$0xff] }
 0x38d   : > { %12138 = vmatprep.mubr.msk.f32.mxu1 %vm230_vm3, %v15845_v55  ;;  %12247 = vmatprep.mubr.msk.f32.mxu0 %vm230_vm3, %v15986_v30  ;;  %v15997_v38 = vld [vmem:[#allocation2 + $0x150] sm:$0xff]  ;;  %5682 = vst.msk [vmem:[#allocation2 + $0x168] sm:$0xff] %vm644_vm7, %v5613_v62 }
 0x38e   : > { %5555 = vst.msk [vmem:[#allocation2 + $0x171] sm:$0xff] %vm515_vm6, %v5487_v51 }
 0x38f   : > { %v11929_v56 = vpop.f32.mrf.mxu1 }
 0x390   : > { %12139 = vmatmul.mubr.msk.f32.gmra.mxu1 %vm230_vm3, %v15851_v52  ;;  %12248 = vmatmul.mubr.msk.f32.gmra.mxu0 %vm230_vm3, %v15997_v38  ;;  %4028 = vst.msk [vmem:[#allocation6 + $0x68] sm:$0xff] %vm354_vm5, %v11929_v56  ;;  %v5615_v41 = vpop.permute.xlu1 %5614  ;;  %v5489_v43 = vpop.permute.xlu0 %5488  ;;  %v16008_v4 = vld [vmem:[#allocation2 + $0x158] sm:$0xff] }
 0x391   : > { %12141 = vmatprep.mubr.msk.f32.mxu1 %vm230_vm3, %v15862_v60  ;;  %v3916_v62 = vpop.f32.mrf.mxu1  ;;  %5683 = vst.msk [vmem:[#allocation2 + $0x170] sm:$0xff] %vm644_vm7, %v5615_v41  ;;  %12250 = vmatprep.mubr.msk.f32.mxu0 %vm230_vm3, %v16008_v4 }
 0x392   : > { %5556 = vst.msk [vmem:[#allocation2 + $0x181] sm:$0xff] %vm515_vm6, %v5489_v43 }
 0x393   : > { %4027 = vst.msk [vmem:[#allocation6 + $0x60] sm:$0xff] %vm354_vm5, %v3916_v62 }
 0x394   : > { %12142 = vmatmul.mubr.msk.f32.gmra.mxu1 %vm230_vm3, %v15865_v39  ;;  %12251 = vmatmul.mubr.msk.f32.gmra.mxu0 %vm230_vm3, %v16010_v32  ;;  %v5491_v51 = vpop.permute.xlu1 %5490  ;;  %v5617_v56 = vpop.permute.xlu0 %5616  ;;  %v16023_v6 = vld [vmem:[#allocation2 + $0x168] sm:$0xff] }
 0x395   : > { %12144 = vmatprep.mubr.msk.f32.mxu1 %vm230_vm3, %v15877_v2  ;;  %5557 = vst.msk [vmem:[#allocation2 + $0x189] sm:$0xff] %vm515_vm6, %v5491_v51  ;;  %12253 = vmatprep.mubr.msk.f32.mxu0 %vm230_vm3, %v16023_v6  ;;  %v16031_v41 = vld [vmem:[#allocation2 + $0x178] sm:$0xff] }
 0x396   : > { %5684 = vst.msk [vmem:[#allocation2 + $0x180] sm:$0xff] %vm644_vm7, %v5617_v56 }
 0x397   : > { %v11932_v43 = vpop.f32.mrf.mxu1 }
 0x398   : > { %12145 = vmatmul.mubr.msk.f32.gmra.mxu1 %vm230_vm3, %v15880_v49  ;;  %4030 = vst.msk [vmem:[#allocation6 + $0x78] sm:$0xff] %vm354_vm5, %v11932_v43  ;;  %v5619_v62 = vpop.permute.xlu1 %5618  ;;  %v16036_v53 = vld [vmem:[#allocation2 + $0x170] sm:$0xff] }
 0x399   : > { %12147 = vmatprep.mubr.msk.f32.mxu1 %vm230_vm3, %v15892_v44  ;;  %v5493_v51 = vpop.permute.xlu0 %5492  ;;  %v3926_v34 = vpop.f32.mrf.mxu1  ;;  %5685 = vst.msk [vmem:[#allocation2 + $0x188] sm:$0xff] %vm644_vm7, %v5619_v62  ;;  %12254 = vmatmul.mubr.msk.f32.gmra.mxu0 %vm230_vm3, %v16036_v53 }
 0x39a   : > { %5558 = vst.msk [vmem:[#allocation2 + $0x199] sm:$0xff] %vm515_vm6, %v5493_v51  ;;  %12256 = vmatprep.mubr.msk.f32.mxu0 %vm230_vm3, %v16031_v41 }
 0x39b   : > { %4029 = vst.msk [vmem:[#allocation6 + $0x70] sm:$0xff] %vm354_vm5, %v3926_v34 }
 0x39c   : > { %12148 = vmatmul.mubr.msk.f32.gmra.mxu1 %vm230_vm3, %v15894_v19  ;;  %v5621_v43 = vpop.permute.xlu1 %5620  ;;  %v16057_v51 = vld [vmem:[#allocation2 + $0x190] sm:$0xff] }
 0x39d   : > { %12150 = vmatprep.mubr.msk.f32.mxu1 %vm230_vm3, %v15907_v29  ;;  %v16049_v56 = vld [vmem:[#allocation2 + $0x180] sm:$0xff]  ;;  %v5495_v62 = vpop.permute.xlu0 %5494  ;;  %5686 = vst.msk [vmem:[#allocation2 + $0x198] sm:$0xff] %vm644_vm7, %v5621_v43  ;;  %18282 = vst [vmem:[#allocation74_spill] sm:$0xff] %v16057_v51 }
 0x39e   : > { %12257 = vmatmul.mubr.msk.f32.gmra.mxu0 %vm230_vm3, %v16049_v56  ;;  %5559 = vst.msk [vmem:[#allocation2 + $0x1a1] sm:$0xff] %vm515_vm6, %v5495_v62  ;;  %v16078_v62 = vpop.f32.mrf.mxu0 }
 0x39f   : > { %v11935_v34 = vpop.f32.mrf.mxu1 }
 0x3a0   : > { %12151 = vmatmul.mubr.msk.f32.gmra.mxu1 %vm230_vm3, %v15909_v47  ;;  %4032 = vst.msk [vmem:[#allocation6 + $0x88] sm:$0xff] %vm354_vm5, %v11935_v34  ;;  %v16062_v42 = vld [vmem:[#allocation2 + $0x188] sm:$0xff]  ;;  %v5623_v54 = vpop.permute.xlu1 %5622  ;;  %v16092_v34 = vld [vmem:[#allocation2 + $0x1b0] sm:$0xff]  ;;  %v16094_v17 = vpop.f32.mrf.mxu0 }
 0x3a1   : > { %12153 = vmatprep.mubr.msk.f32.mxu1 %vm230_vm3, %v15922_v23  ;;  %18283 = vst [vmem:[#allocation75_spill] sm:$0xff] %v16062_v42  ;;  %v3936_v59 = vpop.f32.mrf.mxu1  ;;  %12259 = vmatprep.mubr.msk.f32.mxu0 %vm230_vm3, %v16062_v42  ;;  %5687 = vst.msk [vmem:[#allocation2 + $0x1a0] sm:$0xff] %vm644_vm7, %v5623_v54 }
 0x3a2   : > { %4031 = vst.msk [vmem:[#allocation6 + $0x80] sm:$0xff] %vm354_vm5, %v3936_v59  ;;  %12260 = vmatmul.mubr.msk.f32.gmra.mxu0 %vm230_vm3, %v16057_v51  ;;  %18287 = vst [vmem:[#allocation79_spill] sm:$0xff] %v16092_v34  ;;  %v16102_v15 = vpop.f32.mrf.mxu0 }
 0x3a4   : > { %12154 = vmatmul.mubr.msk.f32.gmra.mxu1 %vm230_vm3, %v15926_v58  ;;  %v16074_v43 = vld [vmem:[#allocation2 + $0x198] sm:$0xff]  ;;  %v16116_v12 = vpop.f32.mrf.mxu0 }
 0x3a5   : > { %12156 = vmatprep.mubr.msk.f32.mxu1 %vm230_vm3, %v15937_v61  ;;  %18284 = vst [vmem:[#allocation76_spill] sm:$0xff] %v16074_v43  ;;  %12262 = vmatprep.mubr.msk.f32.mxu0 %vm230_vm3, %v16074_v43  ;;  %v16082_v59 = vld [vmem:[#allocation2 + $0x1a8] sm:$0xff] }
 0x3a6   : > { %18285 = vst [vmem:[#allocation77_spill] sm:$0xff] %v16082_v59 }
 0x3a8   : > { %12157 = vmatmul.mubr.msk.f32.gmra.mxu1 %vm230_vm3, %v15941_v46  ;;  %v16086_v54 = vld [vmem:[#allocation2 + $0x1a0] sm:$0xff] }
 0x3a9   : > { %12159 = vmatprep.mubr.msk.f32.mxu1 %vm230_vm3, %v15952_v24  ;;  %18286 = vst [vmem:[#allocation78_spill] sm:$0xff] %v16086_v54  ;;  %12263 = vmatmul.mubr.msk.f32.gmra.mxu0 %vm230_vm3, %v16086_v54 }
 0x3aa   : > { %12265 = vmatprep.mubr.msk.f32.mxu0 %vm230_vm3, %v16082_v59 }
 0x3ac   : > { %12160 = vmatmul.mubr.msk.f32.gmra.mxu1 %vm230_vm3, %v15956_v33 }
 0x3ad   : > { %12162 = vmatprep.mubr.msk.f32.mxu1 %vm230_vm3, %v15967_v22  ;;  %v11938_v14 = vpop.f32.mrf.mxu1  ;;  %12266 = vmatmul.mubr.msk.f32.gmra.mxu0 %vm230_vm3, %v16092_v34 }
 0x3ae   : > { %4034 = vst.msk [vmem:[#allocation6 + $0x98] sm:$0xff] %vm354_vm5, %v11938_v14  ;;  %12268 = vmatprep.mubr.msk.f32.mxu0 %vm230_vm3, %v16098_v28  ;;  %v16120_v14 = vpop.f32.mrf.mxu0 }
 0x3af   : > { %v3946_v27 = vpop.f32.mrf.mxu1 }
 0x3b0   : > { %12163 = vmatmul.mubr.msk.f32.gmra.mxu1 %vm230_vm3, %v15971_v63  ;;  %4033 = vst.msk [vmem:[#allocation6 + $0x90] sm:$0xff] %vm354_vm5, %v3946_v27  ;;  %v16126_v26 = vpop.f32.mrf.mxu0 }
 0x3b1   : > { %12165 = vmatprep.mubr.msk.f32.mxu1 %vm230_vm3, %v15982_v31  ;;  %12269 = vmatmul.mubr.msk.f32.gmra.mxu0 %vm230_vm3, %v16109_v13 }
 0x3b2   : > { %v16133_v27 = vpop.f32.mrf.mxu0 }
 0x3b4   : > { %12166 = vmatmul.mubr.msk.f32.gmra.mxu1 %vm230_vm3, %v15986_v30  ;;  %v16140_v10 = vpop.f32.mrf.mxu0 }
 0x3b5   : > { %12168 = vmatprep.mubr.msk.f32.mxu1 %vm230_vm3, %v15997_v38 }
 0x3b6   : > { %v16142_v9 = vpop.f32.mrf.mxu0 }
 0x3b8   : > { %v11941_v11 = vpop.f32.mrf.mxu1  ;;  %12169 = vmatmul.mubr.msk.f32.gmra.mxu1 %vm230_vm3, %v16008_v4 }
 0x3b9   : > { %4036 = vst.msk [vmem:[#allocation6 + $0xa8] sm:$0xff] %vm354_vm5, %v11941_v11  ;;  %12171 = vmatprep.mubr.msk.f32.mxu1 %vm230_vm3, %v16010_v32 }
 0x3ba   : > { %v3956_v25 = vpop.f32.mrf.mxu1 }
 0x3bb   : > { %4035 = vst.msk [vmem:[#allocation6 + $0xa0] sm:$0xff] %vm354_vm5, %v3956_v25  ;;  %v16150_v25 = vpop.f32.mrf.mxu0 }
 0x3bc   : > { %12172 = vmatmul.mubr.msk.f32.gmra.mxu1 %vm230_vm3, %v16023_v6 }
 0x3bd   : > { %12174 = vmatprep.mubr.msk.f32.mxu1 %vm230_vm3, %v16036_v53  ;;  %v16156_v45 = vpop.f32.mrf.mxu0 }
 0x3c0   : > { %v11944_v8 = vpop.f32.mrf.mxu1  ;;  %12175 = vmatmul.mubr.msk.f32.gmra.mxu1 %vm230_vm3, %v16031_v41 }
 0x3c1   : > { %4038 = vst.msk [vmem:[#allocation6 + $0xb8] sm:$0xff] %vm354_vm5, %v11944_v8  ;;  %12177 = vmatprep.mubr.msk.f32.mxu1 %vm230_vm3, %v16049_v56  ;;  %v16163_v8 = vpop.f32.mrf.mxu0 }
 0x3c2   : > { %v3966_v11 = vpop.f32.mrf.mxu1 }
 0x3c3   : > { %4037 = vst.msk [vmem:[#allocation6 + $0xb0] sm:$0xff] %vm354_vm5, %v3966_v11  ;;  %v16166_v28 = vpop.f32.mrf.mxu0 }
 0x3c4   : > { %12178 = vmatmul.mubr.msk.f32.gmra.mxu1 %vm230_vm3, %v16062_v42  ;;  %v4420_v42 = vld [vmem:[#allocation6 + $0x38] sm:$0xff] }
 0x3c5   : > { %12180 = vmatprep.mubr.msk.f32.mxu1 %vm230_vm3, %v16057_v51  ;;  %v16172_v34 = vpop.f32.mrf.mxu0 }
 0x3c8   : > { %v11947_v13 = vpop.f32.mrf.mxu1  ;;  %12181 = vmatmul.mubr.msk.f32.gmra.mxu1 %vm230_vm3, %v16074_v43 }
 0x3c9   : > { %4040 = vst.msk [vmem:[#allocation6 + $0xc8] sm:$0xff] %vm354_vm5, %v11947_v13  ;;  %12183 = vmatprep.mubr.msk.f32.mxu1 %vm230_vm3, %v16086_v54  ;;  %v16179_v13 = vpop.f32.mrf.mxu0 }
 0x3ca   : > { %v3976_v11 = vpop.f32.mrf.mxu1 }
 0x3cb   : > { %4039 = vst.msk [vmem:[#allocation6 + $0xc0] sm:$0xff] %vm354_vm5, %v3976_v11 }
 0x3cc   : > { %12184 = vmatmul.mubr.msk.f32.gmra.mxu1 %vm230_vm3, %v16082_v59 }
 0x3cd   : > { %12275 = vmatprep.mubr.msk.f32.mxu1 %vm230_vm3, %v15735_v20  ;;  %v16186_v20 = vpop.f32.mrf.mxu0 }
 0x3cf   : > { %v16188_v59 = vpop.f32.mrf.mxu0 }
 0x3d0   : > { %v11950_v43 = vpop.f32.mrf.mxu1  ;;  %12276 = vmatmul.mubr.msk.f32.vlgmr.msra.gmra.mxu1 %vm230_vm3, %v15737_v35 }
 0x3d1   : > { %4042 = vst.msk [vmem:[#allocation6 + $0xd8] sm:$0xff] %vm354_vm5, %v11950_v43  ;;  %12278 = vmatprep.mubr.msk.f32.mxu1 %vm230_vm3, %v15751_v0 }
 0x3d2   : > { %v3986_v11 = vpop.f32.mrf.mxu1 }
 0x3d3   : > { %4041 = vst.msk [vmem:[#allocation6 + $0xd0] sm:$0xff] %vm354_vm5, %v3986_v11 }
 0x3d4   : > { %12279 = vmatmul.mubr.msk.f32.gmra.mxu1 %vm230_vm3, %v15749_v37  ;;  %v16196_v37 = vpop.f32.mrf.mxu0 }
 0x3d5   : > { %12281 = vmatprep.mubr.msk.f32.mxu1 %vm230_vm3, %v15763_v50 }
 0x3d6   : > { %v16202_v50 = vpop.f32.mrf.mxu0 }
 0x3d8   : > { %v11953_v35 = vpop.f32.mrf.mxu1  ;;  %12282 = vmatmul.mubr.msk.f32.gmra.mxu1 %vm230_vm3, %v15765_v21  ;;  %v16209_v21 = vpop.f32.mrf.mxu0 }
 0x3d9   : > { %4044 = vst.msk [vmem:[#allocation6 + $0xe8] sm:$0xff] %vm354_vm5, %v11953_v35  ;;  %12284 = vmatprep.mubr.msk.f32.mxu1 %vm230_vm3, %v15777_v40 }
 0x3da   : > { %v3996_v0 = vpop.f32.mrf.mxu1 }
 0x3db   : > { %4043 = vst.msk [vmem:[#allocation6 + $0xe0] sm:$0xff] %vm354_vm5, %v3996_v0  ;;  %v4413_v0 = vld [vmem:[#allocation6] sm:$0xff] }
 0x3dc   : > { %12285 = vmatmul.mubr.msk.f32.gmra.mxu1 %vm230_vm3, %v15779_v48  ;;  %v16212_v48 = vpop.f32.mrf.mxu0 }
 0x3dd   : > { %12287 = vmatprep.mubr.msk.f32.mxu1 %vm230_vm3, %v15791_v18  ;;  %v4414_v18 = vld [vmem:[#allocation6 + $0x8] sm:$0xff] }
 0x3e0   : > { %v11956_v43 = vpop.f32.mrf.mxu1  ;;  %12288 = vmatmul.mubr.msk.f32.gmra.mxu1 %vm230_vm3, %v15793_v36 }
 0x3e1   : > { %4046 = vst.msk [vmem:[#allocation6 + $0xf8] sm:$0xff] %vm354_vm5, %v11956_v43  ;;  %12290 = vmatprep.mubr.msk.f32.mxu1 %vm230_vm3, %v15805_v16  ;;  %v16219_v43 = vpop.f32.mrf.mxu0 }
 0x3e2   : > { %v4006_v40 = vpop.f32.mrf.mxu1 }
 0x3e3   : > { %4045 = vst.msk [vmem:[#allocation6 + $0xf0] sm:$0xff] %vm354_vm5, %v4006_v40  ;;  %v4416_v40 = vld [vmem:[#allocation6 + $0x18] sm:$0xff] }
 0x3e4   : > { %v11983_v11 = vpop.f32.mrf.mxu1  ;;  %12291 = vmatmul.mubr.msk.f32.gmra.mxu1 %vm230_vm3, %v15807_v1  ;;  %v16226_v1 = vpop.f32.mrf.mxu0 }
 0x3e5   : > { %v4446_v35 = vadd.f32 %v11983_v11, %v4414_v18  ;;  %12293 = vmatprep.mubr.msk.f32.mxu1 %vm230_vm3, %v15819_v5  ;;  %v4415_v11 = vld [vmem:[#allocation6 + $0x10] sm:$0xff] }
 0x3e6   : > { %v4254_v36 = vpop.f32.mrf.mxu1 }
 0x3e7   : > { %4478 = vst.msk [vmem:[#allocation6 + $0x8] sm:$0xff] %vm354_vm5, %v4446_v35  ;;  %v4445_v16 = vadd.f32 %v4413_v0, %v4254_v36  ;;  %v4418_v36 = vld [vmem:[#allocation6 + $0x28] sm:$0xff] }
 0x3e8   : > { %v11986_v54 = vpop.f32.mrf.mxu1  ;;  %12294 = vmatmul.mubr.msk.f32.gmra.mxu1 %vm230_vm3, %v15821_v57 }
 0x3e9   : > { %4477 = vst.msk [vmem:[#allocation6] sm:$0xff] %vm354_vm5, %v4445_v16  ;;  %v4448_v51 = vadd.f32 %v11986_v54, %v4416_v40  ;;  %12296 = vmatprep.mubr.msk.f32.mxu1 %vm230_vm3, %v15830_v7  ;;  %v16234_v54 = vpop.f32.mrf.mxu0  ;;  %v4417_v16 = vld [vmem:[#allocation6 + $0x20] sm:$0xff] }
 0x3ea   : > { %v4264_v5 = vpop.f32.mrf.mxu1 }
 0x3eb   : > { %4480 = vst.msk [vmem:[#allocation6 + $0x18] sm:$0xff] %vm354_vm5, %v4448_v51  ;;  %v4447_v18 = vadd.f32 %v4415_v11, %v4264_v5  ;;  %v16238_v5 = vpop.f32.mrf.mxu0 }
 0x3ec   : > { %v11989_v35 = vpop.f32.mrf.mxu1  ;;  %12297 = vmatmul.mubr.msk.f32.gmra.mxu1 %vm230_vm3, %v15834_v3 }
 0x3ed   : > { %4479 = vst.msk [vmem:[#allocation6 + $0x10] sm:$0xff] %vm354_vm5, %v4447_v18  ;;  %v4450_v57 = vadd.f32 %v11989_v35, %v4418_v36  ;;  %12299 = vmatprep.mubr.msk.f32.mxu1 %vm230_vm3, %v15845_v55  ;;  %v4419_v36 = vld [vmem:[#allocation6 + $0x30] sm:$0xff] }
 0x3ee   : > { %v4877_v7 = vld [vmem:[#allocation6 + $0x8] sm:$0xff]  ;;  %v4274_v0 = vpop.f32.mrf.mxu1 }
 0x3ef   : > { %v4909_v40 = vadd.f32 %v16078_v62, %v4877_v7  ;;  %4482 = vst.msk [vmem:[#allocation6 + $0x28] sm:$0xff] %vm354_vm5, %v4450_v57  ;;  %v4449_v51 = vadd.f32 %v4417_v16, %v4274_v0  ;;  %v16250_v7 = vpop.f32.mrf.mxu0  ;;  %v4422_v16 = vld [vmem:[#allocation6 + $0x48] sm:$0xff] }
 0x3f0   : > { %v4876_v11 = vld [vmem:[#allocation6] sm:$0xff]  ;;  %v11992_v3 = vpop.f32.mrf.mxu1  ;;  %12300 = vmatmul.mubr.msk.f32.gmra.mxu1 %vm230_vm3, %v15851_v52 }
 0x3f1   : > { %4941 = vst.msk [vmem:[#allocation6 + $0x8] sm:$0xff] %vm354_vm5, %v4909_v40  ;;  %v4908_v55 = vadd.f32 %v4876_v11, %v16094_v17  ;;  %4481 = vst.msk [vmem:[#allocation6 + $0x20] sm:$0xff] %vm354_vm5, %v4449_v51  ;;  %v4452_v18 = vadd.f32 %v11992_v3, %v4420_v42  ;;  %12302 = vmatprep.mubr.msk.f32.mxu1 %vm230_vm3, %v15862_v60  ;;  %v4421_v11 = vld [vmem:[#allocation6 + $0x40] sm:$0xff] }
 0x3f2   : > { %v4879_v62 = vld [vmem:[#allocation6 + $0x18] sm:$0xff]  ;;  %v4284_v35 = vpop.f32.mrf.mxu1 }
 0x3f3   : > { %4940 = vst.msk [vmem:[#allocation6] sm:$0xff] %vm354_vm5, %v4908_v55  ;;  %v4911_v57 = vadd.f32 %v16102_v15, %v4879_v62  ;;  %4484 = vst.msk [vmem:[#allocation6 + $0x38] sm:$0xff] %vm354_vm5, %v4452_v18  ;;  %v4451_v52 = vadd.f32 %v4419_v36, %v4284_v35  ;;  %v16259_v15 = vpop.f32.mrf.mxu0  ;;  %v4424_v18 = vld [vmem:[#allocation6 + $0x58] sm:$0xff] }
 0x3f4   : > { %v4878_v0 = vld [vmem:[#allocation6 + $0x10] sm:$0xff]  ;;  %v11995_v17 = vpop.f32.mrf.mxu1  ;;  %12303 = vmatmul.mubr.msk.f32.gmra.mxu1 %vm230_vm3, %v15865_v39 }
 0x3f5   : > { %4943 = vst.msk [vmem:[#allocation6 + $0x18] sm:$0xff] %vm354_vm5, %v4911_v57  ;;  %v4910_v42 = vadd.f32 %v4878_v0, %v16116_v12  ;;  %4483 = vst.msk [vmem:[#allocation6 + $0x30] sm:$0xff] %vm354_vm5, %v4451_v52  ;;  %v4454_v60 = vadd.f32 %v11995_v17, %v4422_v16  ;;  %12305 = vmatprep.mubr.msk.f32.mxu1 %vm230_vm3, %v15877_v2  ;;  %v4423_v57 = vld [vmem:[#allocation6 + $0x50] sm:$0xff]  ;;  %v4426_v17 = vld [vmem:[#allocation6 + $0x68] sm:$0xff] }
 0x3f6   : > { %v4881_v40 = vld [vmem:[#allocation6 + $0x28] sm:$0xff]  ;;  %v4294_v51 = vpop.f32.mrf.mxu1 }
 0x3f7   : > { %4942 = vst.msk [vmem:[#allocation6 + $0x10] sm:$0xff] %vm354_vm5, %v4910_v42  ;;  %v4913_v3 = vadd.f32 %v16120_v14, %v4881_v40  ;;  %4486 = vst.msk [vmem:[#allocation6 + $0x48] sm:$0xff] %vm354_vm5, %v4454_v60  ;;  %v4453_v39 = vadd.f32 %v4421_v11, %v4294_v51  ;;  %v16271_v14 = vpop.f32.mrf.mxu0  ;;  %v4425_v40 = vld [vmem:[#allocation6 + $0x60] sm:$0xff] }
 0x3f8   : > { %v4880_v55 = vld [vmem:[#allocation6 + $0x20] sm:$0xff]  ;;  %v11998_v12 = vpop.f32.mrf.mxu1  ;;  %12306 = vmatmul.mubr.msk.f32.gmra.mxu1 %vm230_vm3, %v15880_v49 }
 0x3f9   : > { %4945 = vst.msk [vmem:[#allocation6 + $0x28] sm:$0xff] %vm354_vm5, %v4913_v3  ;;  %v4912_v2 = vadd.f32 %v4880_v55, %v16126_v26  ;;  %4485 = vst.msk [vmem:[#allocation6 + $0x40] sm:$0xff] %vm354_vm5, %v4453_v39  ;;  %v4456_v62 = vadd.f32 %v11998_v12, %v4424_v18  ;;  %12308 = vmatprep.mubr.msk.f32.mxu1 %vm230_vm3, %v15892_v44  ;;  %v4428_v39 = vld [vmem:[#allocation6 + $0x78] sm:$0xff] }
 0x3fa   : > { %v4883_v35 = vld [vmem:[#allocation6 + $0x38] sm:$0xff]  ;;  %v4304_v36 = vpop.f32.mrf.mxu1 }
 0x3fb   : > { %4944 = vst.msk [vmem:[#allocation6 + $0x20] sm:$0xff] %vm354_vm5, %v4912_v2  ;;  %v4915_v52 = vadd.f32 %v16133_v27, %v4883_v35  ;;  %4488 = vst.msk [vmem:[#allocation6 + $0x58] sm:$0xff] %vm354_vm5, %v4456_v62  ;;  %v4455_v49 = vadd.f32 %v4423_v57, %v4304_v36  ;;  %v4427_v2 = vld [vmem:[#allocation6 + $0x70] sm:$0xff]  ;;  %v4430_v57 = vld [vmem:[#allocation6 + $0x88] sm:$0xff] }
 0x3fc   : > { %v4882_v0 = vld [vmem:[#allocation6 + $0x30] sm:$0xff]  ;;  %v12001_v26 = vpop.f32.mrf.mxu1  ;;  %v16276_v16 = vpop.f32.mrf.mxu0  ;;  %12309 = vmatmul.mubr.msk.f32.gmra.mxu1 %vm230_vm3, %v15894_v19 }
 0x3fd   : > { %4947 = vst.msk [vmem:[#allocation6 + $0x38] sm:$0xff] %vm354_vm5, %v4915_v52  ;;  %v4914_v44 = vadd.f32 %v4882_v0, %v16140_v10  ;;  %4487 = vst.msk [vmem:[#allocation6 + $0x50] sm:$0xff] %vm354_vm5, %v4455_v49  ;;  %v4458_v42 = vadd.f32 %v12001_v26, %v4426_v17  ;;  %12311 = vmatprep.mubr.msk.f32.mxu1 %vm230_vm3, %v15907_v29  ;;  %v4429_v26 = vld [vmem:[#allocation6 + $0x80] sm:$0xff] }
 0x3fe   : > { %v4885_v27 = vld [vmem:[#allocation6 + $0x48] sm:$0xff]  ;;  %v4314_v60 = vpop.f32.mrf.mxu1  ;;  %v16285_v51 = vpop.f32.mrf.mxu0 }
 0x3ff   : > { %4946 = vst.msk [vmem:[#allocation6 + $0x30] sm:$0xff] %vm354_vm5, %v4914_v44  ;;  %v4917_v11 = vadd.f32 %v16142_v9, %v4885_v27  ;;  %4490 = vst.msk [vmem:[#allocation6 + $0x68] sm:$0xff] %vm354_vm5, %v4458_v42  ;;  %v4457_v19 = vadd.f32 %v4425_v40, %v4314_v60  ;;  %v4432_v27 = vld [vmem:[#allocation6 + $0x98] sm:$0xff] }
 0x400   : > { %v4884_v3 = vld [vmem:[#allocation6 + $0x40] sm:$0xff]  ;;  %v12004_v10 = vpop.f32.mrf.mxu1  ;;  %v16290_v55 = vpop.f32.mrf.mxu0  ;;  %12312 = vmatmul.mubr.msk.f32.gmra.mxu1 %vm230_vm3, %v15909_v47 }
 0x401   : > { %4949 = vst.msk [vmem:[#allocation6 + $0x48] sm:$0xff] %vm354_vm5, %v4917_v11  ;;  %v4916_v29 = vadd.f32 %v4884_v3, %v16150_v25  ;;  %4489 = vst.msk [vmem:[#allocation6 + $0x60] sm:$0xff] %vm354_vm5, %v4457_v19  ;;  %v4460_v12 = vadd.f32 %v12004_v10, %v4428_v39  ;;  %12314 = vmatprep.mubr.msk.f32.mxu1 %vm230_vm3, %v15922_v23  ;;  %v4431_v19 = vld [vmem:[#allocation6 + $0x90] sm:$0xff] }
 0x402   : > { %v4887_v9 = vld [vmem:[#allocation6 + $0x58] sm:$0xff]  ;;  %v4324_v18 = vpop.f32.mrf.mxu1  ;;  %v16299_v62 = vpop.f32.mrf.mxu0 }
 0x403   : > { %4948 = vst.msk [vmem:[#allocation6 + $0x40] sm:$0xff] %vm354_vm5, %v4916_v29  ;;  %v4919_v35 = vadd.f32 %v16156_v45, %v4887_v9  ;;  %4492 = vst.msk [vmem:[#allocation6 + $0x78] sm:$0xff] %vm354_vm5, %v4460_v12  ;;  %v4459_v47 = vadd.f32 %v4427_v2, %v4324_v18  ;;  %v4434_v29 = vld [vmem:[#allocation6 + $0xa8] sm:$0xff]  ;;  %v4433_v2 = vld [vmem:[#allocation6 + $0xa0] sm:$0xff] }
 0x404   : > { %v4886_v36 = vld [vmem:[#allocation6 + $0x50] sm:$0xff]  ;;  %v12007_v25 = vpop.f32.mrf.mxu1  ;;  %v16304_v52 = vpop.f32.mrf.mxu0  ;;  %12315 = vmatmul.mubr.msk.f32.gmra.mxu1 %vm230_vm3, %v15926_v58 }
 0x405   : > { %4951 = vst.msk [vmem:[#allocation6 + $0x58] sm:$0xff] %vm354_vm5, %v4919_v35  ;;  %v4918_v23 = vadd.f32 %v4886_v36, %v16163_v8  ;;  %4491 = vst.msk [vmem:[#allocation6 + $0x70] sm:$0xff] %vm354_vm5, %v4459_v47  ;;  %v4462_v49 = vadd.f32 %v12007_v25, %v4430_v57  ;;  %12317 = vmatprep.mubr.msk.f32.mxu1 %vm230_vm3, %v15937_v61  ;;  %v4436_v25 = vld [vmem:[#allocation6 + $0xb8] sm:$0xff] }
 0x406   : > { %v4889_v45 = vld [vmem:[#allocation6 + $0x68] sm:$0xff]  ;;  %v4334_v0 = vpop.f32.mrf.mxu1  ;;  %v16313_v17 = vpop.f32.mrf.mxu0 }
 0x407   : > { %4950 = vst.msk [vmem:[#allocation6 + $0x50] sm:$0xff] %vm354_vm5, %v4918_v23  ;;  %v4921_v44 = vadd.f32 %v16166_v28, %v4889_v45  ;;  %4494 = vst.msk [vmem:[#allocation6 + $0x88] sm:$0xff] %vm354_vm5, %v4462_v49  ;;  %v4461_v58 = vadd.f32 %v4429_v26, %v4334_v0  ;;  %v4435_v45 = vld [vmem:[#allocation6 + $0xb0] sm:$0xff] }
 0x408   : > { %v4888_v42 = vld [vmem:[#allocation6 + $0x60] sm:$0xff]  ;;  %v12010_v8 = vpop.f32.mrf.mxu1  ;;  %v16318_v60 = vpop.f32.mrf.mxu0  ;;  %12318 = vmatmul.mubr.msk.f32.gmra.mxu1 %vm230_vm3, %v15941_v46 }
 0x409   : > { %4953 = vst.msk [vmem:[#allocation6 + $0x68] sm:$0xff] %vm354_vm5, %v4921_v44  ;;  %v4920_v61 = vadd.f32 %v4888_v42, %v16172_v34  ;;  %4493 = vst.msk [vmem:[#allocation6 + $0x80] sm:$0xff] %vm354_vm5, %v4461_v58  ;;  %v4464_v40 = vadd.f32 %v12010_v8, %v4432_v27  ;;  %12320 = vmatprep.mubr.msk.f32.mxu1 %vm230_vm3, %v15952_v24  ;;  %v4438_v58 = vld [vmem:[#allocation6 + $0xc8] sm:$0xff] }
 0x40a   : > { %v4891_v28 = vld [vmem:[#allocation6 + $0x78] sm:$0xff]  ;;  %v4344_v11 = vpop.f32.mrf.mxu1  ;;  %v16327_v3 = vpop.f32.mrf.mxu0 }
 0x40b   : > { %4952 = vst.msk [vmem:[#allocation6 + $0x60] sm:$0xff] %vm354_vm5, %v4920_v61  ;;  %v4923_v10 = vadd.f32 %v16179_v13, %v4891_v28  ;;  %4496 = vst.msk [vmem:[#allocation6 + $0x98] sm:$0xff] %vm354_vm5, %v4464_v40  ;;  %v4463_v46 = vadd.f32 %v4431_v19, %v4344_v11  ;;  %v4437_v61 = vld [vmem:[#allocation6 + $0xc0] sm:$0xff]  ;;  %v4440_v19 = vld [vmem:[#allocation6 + $0xd8] sm:$0xff] }
 0x40c   : > { %v4890_v39 = vld [vmem:[#allocation6 + $0x70] sm:$0xff]  ;;  %v12013_v34 = vpop.f32.mrf.mxu1  ;;  %v16332_v12 = vpop.f32.mrf.mxu0  ;;  %12321 = vmatmul.mubr.msk.f32.gmra.mxu1 %vm230_vm3, %v15956_v33 }
 0x40d   : > { %4955 = vst.msk [vmem:[#allocation6 + $0x78] sm:$0xff] %vm354_vm5, %v4923_v10  ;;  %v4922_v24 = vadd.f32 %v4890_v39, %v16186_v20  ;;  %4495 = vst.msk [vmem:[#allocation6 + $0x90] sm:$0xff] %vm354_vm5, %v4463_v46  ;;  %v4466_v9 = vadd.f32 %v12013_v34, %v4434_v29  ;;  %12323 = vmatprep.mubr.msk.f32.mxu1 %vm230_vm3, %v15967_v22  ;;  %v4439_v34 = vld [vmem:[#allocation6 + $0xd0] sm:$0xff] }
 0x40e   : > { %v4893_v13 = vld [vmem:[#allocation6 + $0x88] sm:$0xff]  ;;  %v4354_v18 = vpop.f32.mrf.mxu1  ;;  %v16341_v35 = vpop.f32.mrf.mxu0 }
 0x40f   : > { %4954 = vst.msk [vmem:[#allocation6 + $0x70] sm:$0xff] %vm354_vm5, %v4922_v24  ;;  %v4925_v47 = vadd.f32 %v16188_v59, %v4893_v13  ;;  %4498 = vst.msk [vmem:[#allocation6 + $0xa8] sm:$0xff] %vm354_vm5, %v4466_v9  ;;  %v4465_v33 = vadd.f32 %v4433_v2, %v4354_v18  ;;  %v4442_v13 = vld [vmem:[#allocation6 + $0xe8] sm:$0xff] }
 0x410   : > { %v4892_v36 = vld [vmem:[#allocation6 + $0x80] sm:$0xff]  ;;  %v12016_v20 = vpop.f32.mrf.mxu1  ;;  %v16346_v57 = vpop.f32.mrf.mxu0  ;;  %12324 = vmatmul.mubr.msk.f32.gmra.mxu1 %vm230_vm3, %v15971_v63 }
 0x411   : > { %4957 = vst.msk [vmem:[#allocation6 + $0x88] sm:$0xff] %vm354_vm5, %v4925_v47  ;;  %v4924_v22 = vadd.f32 %v4892_v36, %v16196_v37  ;;  %4497 = vst.msk [vmem:[#allocation6 + $0xa0] sm:$0xff] %vm354_vm5, %v4465_v33  ;;  %v4468_v23 = vadd.f32 %v12016_v20, %v4436_v25  ;;  %12326 = vmatprep.mubr.msk.f32.mxu1 %vm230_vm3, %v15982_v31  ;;  %v4441_v33 = vld [vmem:[#allocation6 + $0xe0] sm:$0xff] }
 0x412   : > { %v4895_v59 = vld [vmem:[#allocation6 + $0x98] sm:$0xff]  ;;  %v4364_v49 = vpop.f32.mrf.mxu1  ;;  %v16355_v0 = vpop.f32.mrf.mxu0 }
 0x413   : > { %4956 = vst.msk [vmem:[#allocation6 + $0x80] sm:$0xff] %vm354_vm5, %v4924_v22  ;;  %v4927_v26 = vadd.f32 %v16202_v50, %v4895_v59  ;;  %4500 = vst.msk [vmem:[#allocation6 + $0xb8] sm:$0xff] %vm354_vm5, %v4468_v23  ;;  %v4467_v63 = vadd.f32 %v4435_v45, %v4364_v49  ;;  %v4444_v22 = vld [vmem:[#allocation6 + $0xf8] sm:$0xff]  ;;  %v4443_v45 = vld [vmem:[#allocation6 + $0xf0] sm:$0xff] }
 0x414   : > { %v4894_v44 = vld [vmem:[#allocation6 + $0x90] sm:$0xff]  ;;  %v12019_v37 = vpop.f32.mrf.mxu1  ;;  %v16360_v42 = vpop.f32.mrf.mxu0  ;;  %12327 = vmatmul.mubr.msk.f32.gmra.mxu1 %vm230_vm3, %v15986_v30 }
 0x415   : > { %4959 = vst.msk [vmem:[#allocation6 + $0x98] sm:$0xff] %vm354_vm5, %v4927_v26  ;;  %v4926_v31 = vadd.f32 %v4894_v44, %v16209_v21  ;;  %4499 = vst.msk [vmem:[#allocation6 + $0xb0] sm:$0xff] %vm354_vm5, %v4467_v63  ;;  %v4470_v8 = vadd.f32 %v12019_v37, %v4438_v58  ;;  %12329 = vmatprep.mubr.msk.f32.mxu1 %vm230_vm3, %v15997_v38  ;;  %v18290_v37 = vld [vmem:[#allocation75_spill] sm:$0xff] }
 0x416   : > { %v4897_v50 = vld [vmem:[#allocation6 + $0xa8] sm:$0xff]  ;;  %v4374_v27 = vpop.f32.mrf.mxu1  ;;  %v16369_v40 = vpop.f32.mrf.mxu0 }
 0x417   : > { %4958 = vst.msk [vmem:[#allocation6 + $0x90] sm:$0xff] %vm354_vm5, %v4926_v31  ;;  %v4929_v28 = vadd.f32 %v16212_v48, %v4897_v50  ;;  %4502 = vst.msk [vmem:[#allocation6 + $0xc8] sm:$0xff] %vm354_vm5, %v4470_v8  ;;  %v4469_v30 = vadd.f32 %v4437_v61, %v4374_v27  ;;  %v18291_v31 = vld [vmem:[#allocation74_spill] sm:$0xff] }
 0x418   : > { %v4896_v11 = vld [vmem:[#allocation6 + $0xa0] sm:$0xff]  ;;  %v12022_v21 = vpop.f32.mrf.mxu1  ;;  %v16374_v10 = vpop.f32.mrf.mxu0  ;;  %12330 = vmatmul.mubr.msk.f32.gmra.mxu1 %vm230_vm3, %v16008_v4 }
 0x419   : > { %4961 = vst.msk [vmem:[#allocation6 + $0xa8] sm:$0xff] %vm354_vm5, %v4929_v28  ;;  %v4928_v38 = vadd.f32 %v4896_v11, %v16219_v43  ;;  %4501 = vst.msk [vmem:[#allocation6 + $0xc0] sm:$0xff] %vm354_vm5, %v4469_v30  ;;  %v4472_v46 = vadd.f32 %v12022_v21, %v4440_v19  ;;  %12332 = vmatprep.mubr.msk.f32.mxu1 %vm230_vm3, %v16010_v32  ;;  %v18293_v21 = vld [vmem:[#allocation78_spill] sm:$0xff] }
 0x41a   : > { %v4899_v48 = vld [vmem:[#allocation6 + $0xb8] sm:$0xff]  ;;  %v4384_v39 = vpop.f32.mrf.mxu1  ;;  %v16383_v29 = vpop.f32.mrf.mxu0 }
 0x41b   : > { %4960 = vst.msk [vmem:[#allocation6 + $0xa0] sm:$0xff] %vm354_vm5, %v4928_v38  ;;  %v4931_v24 = vadd.f32 %v16226_v1, %v4899_v48  ;;  %4504 = vst.msk [vmem:[#allocation6 + $0xd8] sm:$0xff] %vm354_vm5, %v4472_v46  ;;  %v4471_v4 = vadd.f32 %v4439_v34, %v4384_v39 }
 0x41c   : > { %v4898_v9 = vld [vmem:[#allocation6 + $0xb0] sm:$0xff]  ;;  %v12025_v43 = vpop.f32.mrf.mxu1  ;;  %12333 = vmatmul.mubr.msk.f32.gmra.mxu1 %vm230_vm3, %v16023_v6  ;;  %v16390_v18 = vpop.f32.mrf.mxu0 }
 0x41d   : > { %4963 = vst.msk [vmem:[#allocation6 + $0xb8] sm:$0xff] %vm354_vm5, %v4931_v24  ;;  %v4930_v32 = vadd.f32 %v4898_v9, %v16234_v54  ;;  %4503 = vst.msk [vmem:[#allocation6 + $0xd0] sm:$0xff] %vm354_vm5, %v4471_v4  ;;  %v4474_v2 = vadd.f32 %v12025_v43, %v4442_v13  ;;  %12335 = vmatprep.mubr.msk.f32.mxu1 %vm230_vm3, %v16036_v53  ;;  %v18294_v24 = vld [vmem:[#allocation77_spill] sm:$0xff]  ;;  %v18295_v43 = vld [vmem:[#allocation79_spill] sm:$0xff] }
 0x41e   : > { %v4901_v1 = vld [vmem:[#allocation6 + $0xc8] sm:$0xff]  ;;  %v4394_v47 = vpop.f32.mrf.mxu1  ;;  %v16397_v36 = vpop.f32.mrf.mxu0 }
 0x41f   : > { %4962 = vst.msk [vmem:[#allocation6 + $0xb0] sm:$0xff] %vm354_vm5, %v4930_v32  ;;  %v4933_v6 = vadd.f32 %v16238_v5, %v4901_v1  ;;  %4506 = vst.msk [vmem:[#allocation6 + $0xe8] sm:$0xff] %vm354_vm5, %v4474_v2  ;;  %v4473_v20 = vadd.f32 %v4441_v33, %v4394_v47 }
 0x420   : > { %v4900_v25 = vld [vmem:[#allocation6 + $0xc0] sm:$0xff]  ;;  %v12028_v54 = vpop.f32.mrf.mxu1  ;;  %12336 = vmatmul.mubr.msk.f32.gmra.mxu1 %vm230_vm3, %v16031_v41  ;;  %v16404_v23 = vpop.f32.mrf.mxu0 }
 0x421   : > { %4965 = vst.msk [vmem:[#allocation6 + $0xc8] sm:$0xff] %vm354_vm5, %v4933_v6  ;;  %v4932_v53 = vadd.f32 %v4900_v25, %v16250_v7  ;;  %4505 = vst.msk [vmem:[#allocation6 + $0xe0] sm:$0xff] %vm354_vm5, %v4473_v20  ;;  %v4476_v59 = vadd.f32 %v12028_v54, %v4444_v22  ;;  %12338 = vmatprep.mubr.msk.f32.mxu1 %vm230_vm3, %v16049_v56  ;;  %v18297_v6 = vld [vmem:[#allocation81_spill] sm:$0xff]  ;;  %v7067_v20 = vld [vmem:[#allocation2 + $0x1c8] sm:$0xff] }
 0x422   : > { %v4903_v5 = vld [vmem:[#allocation6 + $0xd8] sm:$0xff]  ;;  %v4404_v49 = vpop.f32.mrf.mxu1  ;;  %v16411_v26 = vpop.f32.mrf.mxu0  ;;  %v7068_v54 = vld [vmem:[#allocation2 + $0x1d0] sm:$0xff] }
 0x423   : > { %4964 = vst.msk [vmem:[#allocation6 + $0xc0] sm:$0xff] %vm354_vm5, %v4932_v53  ;;  %v4935_v41 = vadd.f32 %v16259_v15, %v4903_v5  ;;  %4508 = vst.msk [vmem:[#allocation6 + $0xf8] sm:$0xff] %vm354_vm5, %v4476_v59  ;;  %v4475_v63 = vadd.f32 %v4443_v45, %v4404_v49  ;;  %v7069_v45 = vld [vmem:[#allocation2 + $0x1d8] sm:$0xff] }
 0x424   : > { %v4902_v44 = vld [vmem:[#allocation6 + $0xd0] sm:$0xff]  ;;  %v12107_v7 = vpop.f32.mrf.mxu1  ;;  %12339 = vmatmul.mubr.msk.f32.gmra.mxu1 %vm230_vm3, %v18290_v37  ;;  %v16418_v58 = vpop.f32.mrf.mxu0 }
 0x425   : > { %4967 = vst.msk [vmem:[#allocation6 + $0xd8] sm:$0xff] %vm354_vm5, %v4935_v41  ;;  %v4934_v56 = vadd.f32 %v4902_v44, %v16271_v14  ;;  %4507 = vst.msk [vmem:[#allocation6 + $0xf0] sm:$0xff] %vm354_vm5, %v4475_v63  ;;  %12341 = vmatprep.mubr.msk.f32.mxu1 %vm230_vm3, %v18291_v31  ;;  %v18292_v14 = vld [vmem:[#allocation76_spill] sm:$0xff] }
 0x426   : > { %6245 = vst.msk [vmem:[#allocation5 + $0x8] sm:$0xff] %vm238_vm8, %v12107_v7  ;;  %v4905_v15 = vld [vmem:[#allocation6 + $0xe8] sm:$0xff]  ;;  %v5975_v8 = vpop.f32.mrf.mxu1  ;;  %v16426_v50 = vpop.f32.mrf.mxu0 }
 0x427   : > { %4966 = vst.msk [vmem:[#allocation6 + $0xd0] sm:$0xff] %vm354_vm5, %v4934_v56  ;;  %v4937_v27 = vadd.f32 %v16276_v16, %v4905_v15 }
 0x428   : > { %6244 = vst.msk [vmem:[#allocation5] sm:$0xff] %vm238_vm8, %v5975_v8  ;;  %v4904_v61 = vld [vmem:[#allocation6 + $0xe0] sm:$0xff]  ;;  %v12110_v28 = vpop.f32.mrf.mxu1  ;;  %12342 = vmatmul.mubr.msk.f32.gmra.mxu1 %vm230_vm3, %v18292_v14  ;;  %v16433_v30 = vpop.f32.mrf.mxu0 }
 0x429   : > { %4969 = vst.msk [vmem:[#allocation6 + $0xe8] sm:$0xff] %vm354_vm5, %v4937_v27  ;;  %v4936_v11 = vadd.f32 %v4904_v61, %v16285_v51  ;;  %12344 = vmatprep.mubr.msk.f32.mxu1 %vm230_vm3, %v18293_v21 }
 0x42a   : > { %6247 = vst.msk [vmem:[#allocation5 + $0x18] sm:$0xff] %vm238_vm8, %v12110_v28  ;;  %v4907_v19 = vld [vmem:[#allocation6 + $0xf8] sm:$0xff]  ;;  %v5985_v16 = vpop.f32.mrf.mxu1  ;;  %v16440_v38 = vpop.f32.mrf.mxu0 }
 0x42b   : > { %4968 = vst.msk [vmem:[#allocation6 + $0xe0] sm:$0xff] %vm354_vm5, %v4936_v11  ;;  %v4939_v46 = vadd.f32 %v16290_v55, %v4907_v19 }
 0x42c   : > { %6246 = vst.msk [vmem:[#allocation5 + $0x10] sm:$0xff] %vm238_vm8, %v5985_v16  ;;  %v4906_v48 = vld [vmem:[#allocation6 + $0xf0] sm:$0xff]  ;;  %v12113_v34 = vpop.f32.mrf.mxu1  ;;  %12345 = vmatmul.mubr.msk.f32.gmra.mxu1 %vm230_vm3, %v18294_v24  ;;  %v16447_v51 = vpop.f32.mrf.mxu0 }
 0x42d   : > { %v6855_v39 = vld [vmem:[#allocation5 + $0x8] sm:$0xff]  ;;  %4971 = vst.msk [vmem:[#allocation6 + $0xf8] sm:$0xff] %vm354_vm5, %v4939_v46  ;;  %v4938_v4 = vadd.f32 %v4906_v48, %v16299_v62  ;;  %12347 = vmatprep.mubr.msk.f32.mxu1 %vm230_vm3, %v18295_v43 }
 0x42e   : > { %v6909_v9 = vadd.f32 %v16304_v52, %v6855_v39  ;;  %6249 = vst.msk [vmem:[#allocation5 + $0x28] sm:$0xff] %vm238_vm8, %v12113_v34  ;;  %v5995_v13 = vpop.f32.mrf.mxu1  ;;  %v16455_v32 = vpop.f32.mrf.mxu0  ;;  %v18296_v52 = vld [vmem:[#allocation80_spill] sm:$0xff] }
 0x42f   : > { %v6854_v55 = vld [vmem:[#allocation5] sm:$0xff]  ;;  %4970 = vst.msk [vmem:[#allocation6 + $0xf0] sm:$0xff] %vm354_vm5, %v4938_v4 }
 0x430   : > { %6963 = vst.msk [vmem:[#allocation5 + $0x8] sm:$0xff] %vm238_vm8, %v6909_v9  ;;  %v6908_v2 = vadd.f32 %v6854_v55, %v16313_v17  ;;  %6248 = vst.msk [vmem:[#allocation5 + $0x20] sm:$0xff] %vm238_vm8, %v5995_v13  ;;  %v12116_v1 = vpop.f32.mrf.mxu1  ;;  %12348 = vmatmul.mubr.msk.f32.gmra.mxu1 %vm230_vm3, %v18296_v52  ;;  %v16463_v47 = vpop.f32.mrf.mxu0 }
 0x431   : > { %v6857_v62 = vld [vmem:[#allocation5 + $0x18] sm:$0xff]  ;;  %6251 = vst.msk [vmem:[#allocation5 + $0x38] sm:$0xff] %vm238_vm8, %v12116_v1  ;;  %12350 = vmatprep.mubr.msk.f32.mxu1 %vm230_vm3, %v18297_v6 }
 0x432   : > { %6962 = vst.msk [vmem:[#allocation5] sm:$0xff] %vm238_vm8, %v6908_v2  ;;  %v6911_v33 = vadd.f32 %v16318_v60, %v6857_v62  ;;  %v6005_v25 = vpop.f32.mrf.mxu1  ;;  %v16470_v22 = vpop.f32.mrf.mxu0 }
 0x433   : > { %v6856_v17 = vld [vmem:[#allocation5 + $0x10] sm:$0xff]  ;;  %6250 = vst.msk [vmem:[#allocation5 + $0x30] sm:$0xff] %vm238_vm8, %v6005_v25 }
 0x434   : > { %6965 = vst.msk [vmem:[#allocation5 + $0x18] sm:$0xff] %vm238_vm8, %v6911_v33  ;;  %v6910_v53 = vadd.f32 %v6856_v17, %v16327_v3  ;;  %v12119_v5 = vpop.f32.mrf.mxu1  ;;  %12351 = vmatmul.mubr.msk.f32.gmra.mxu1 %vm230_vm3, %v7067_v20  ;;  %v16476_v60 = vpop.f32.mrf.mxu0 }
 0x435   : > { %v6859_v59 = vld [vmem:[#allocation5 + $0x28] sm:$0xff]  ;;  %6253 = vst.msk [vmem:[#allocation5 + $0x48] sm:$0xff] %vm238_vm8, %v12119_v5  ;;  %12353 = vmatprep.mubr.msk.f32.mxu1 %vm230_vm3, %v7068_v54 }
 0x436   : > { %6964 = vst.msk [vmem:[#allocation5 + $0x10] sm:$0xff] %vm238_vm8, %v6910_v53  ;;  %v6913_v49 = vadd.f32 %v16332_v12, %v6859_v59  ;;  %v6015_v63 = vpop.f32.mrf.mxu1  ;;  %v16482_v3 = vpop.f32.mrf.mxu0 }
 0x437   : > { %v6858_v41 = vld [vmem:[#allocation5 + $0x20] sm:$0xff]  ;;  %6252 = vst.msk [vmem:[#allocation5 + $0x40] sm:$0xff] %vm238_vm8, %v6015_v63 }
 0x438   : > { %6967 = vst.msk [vmem:[#allocation5 + $0x28] sm:$0xff] %vm238_vm8, %v6913_v49  ;;  %v6912_v44 = vadd.f32 %v6858_v41, %v16341_v35  ;;  %v6861_v7 = vld [vmem:[#allocation5 + $0x38] sm:$0xff]  ;;  %v12122_v37 = vpop.f32.mrf.mxu1  ;;  %12354 = vmatmul.mubr.msk.f32.gmra.mxu1 %vm230_vm3, %v7069_v45  ;;  %v16488_v12 = vpop.f32.mrf.mxu0 }
 0x439   : > { %v6915_v56 = vadd.f32 %v16346_v57, %v6861_v7  ;;  %6255 = vst.msk [vmem:[#allocation5 + $0x58] sm:$0xff] %vm238_vm8, %v12122_v37 }
 0x43a   : > { %6966 = vst.msk [vmem:[#allocation5 + $0x20] sm:$0xff] %vm238_vm8, %v6912_v44  ;;  %v6860_v31 = vld [vmem:[#allocation5 + $0x30] sm:$0xff]  ;;  %v6025_v15 = vpop.f32.mrf.mxu1  ;;  %v16493_v8 = vpop.f32.mrf.mxu0 }
 0x43b   : > { %6969 = vst.msk [vmem:[#allocation5 + $0x38] sm:$0xff] %vm238_vm8, %v6915_v56  ;;  %v6914_v35 = vadd.f32 %v6860_v31, %v16355_v0  ;;  %6254 = vst.msk [vmem:[#allocation5 + $0x50] sm:$0xff] %vm238_vm8, %v6025_v15 }
 0x43c   : > { %v6863_v27 = vld [vmem:[#allocation5 + $0x48] sm:$0xff]  ;;  %v12125_v61 = vpop.f32.mrf.mxu1  ;;  %v16498_v28 = vpop.f32.mrf.mxu0 }
 0x43d   : > { %6968 = vst.msk [vmem:[#allocation5 + $0x30] sm:$0xff] %vm238_vm8, %v6914_v35  ;;  %v6917_v57 = vadd.f32 %v16360_v42, %v6863_v27  ;;  %6257 = vst.msk [vmem:[#allocation5 + $0x68] sm:$0xff] %vm238_vm8, %v12125_v61 }
 0x43e   : > { %v6862_v14 = vld [vmem:[#allocation5 + $0x40] sm:$0xff]  ;;  %v6035_v11 = vpop.f32.mrf.mxu1  ;;  %v16503_v21 = vpop.f32.mrf.mxu0 }
 0x43f   : > { %6971 = vst.msk [vmem:[#allocation5 + $0x48] sm:$0xff] %vm238_vm8, %v6917_v57  ;;  %v6916_v0 = vadd.f32 %v6862_v14, %v16369_v40  ;;  %6256 = vst.msk [vmem:[#allocation5 + $0x60] sm:$0xff] %vm238_vm8, %v6035_v11 }
 0x440   : > { %v6865_v19 = vld [vmem:[#allocation5 + $0x58] sm:$0xff]  ;;  %v12128_v16 = vpop.f32.mrf.mxu1  ;;  %v16508_v46 = vpop.f32.mrf.mxu0 }
 0x441   : > { %6970 = vst.msk [vmem:[#allocation5 + $0x40] sm:$0xff] %vm238_vm8, %v6916_v0  ;;  %v6919_v42 = vadd.f32 %v16374_v10, %v6865_v19  ;;  %6259 = vst.msk [vmem:[#allocation5 + $0x78] sm:$0xff] %vm238_vm8, %v12128_v16 }
 0x442   : > { %v6864_v48 = vld [vmem:[#allocation5 + $0x50] sm:$0xff]  ;;  %v6045_v39 = vpop.f32.mrf.mxu1  ;;  %v16516_v4 = vpop.f32.mrf.mxu0 }
 0x443   : > { %6973 = vst.msk [vmem:[#allocation5 + $0x58] sm:$0xff] %vm238_vm8, %v6919_v42  ;;  %v6918_v34 = vadd.f32 %v6864_v48, %v16383_v29  ;;  %6258 = vst.msk [vmem:[#allocation5 + $0x70] sm:$0xff] %vm238_vm8, %v6045_v39 }
 0x444   : > { %v6867_v40 = vld [vmem:[#allocation5 + $0x68] sm:$0xff]  ;;  %v12131_v24 = vpop.f32.mrf.mxu1  ;;  %v16524_v2 = vpop.f32.mrf.mxu0 }
 0x445   : > { %6972 = vst.msk [vmem:[#allocation5 + $0x50] sm:$0xff] %vm238_vm8, %v6918_v34  ;;  %v6921_v9 = vadd.f32 %v16390_v18, %v6867_v40  ;;  %6261 = vst.msk [vmem:[#allocation5 + $0x88] sm:$0xff] %vm238_vm8, %v12131_v24 }
 0x446   : > { %v6866_v10 = vld [vmem:[#allocation5 + $0x60] sm:$0xff]  ;;  %v6055_v43 = vpop.f32.mrf.mxu1  ;;  %v16532_v6 = vpop.f32.mrf.mxu0 }
 0x447   : > { %6975 = vst.msk [vmem:[#allocation5 + $0x68] sm:$0xff] %vm238_vm8, %v6921_v9  ;;  %v6920_v55 = vadd.f32 %v6866_v10, %v16397_v36  ;;  %6260 = vst.msk [vmem:[#allocation5 + $0x80] sm:$0xff] %vm238_vm8, %v6055_v43 }
 0x448   : > { %v6869_v29 = vld [vmem:[#allocation5 + $0x78] sm:$0xff]  ;;  %v12134_v13 = vpop.f32.mrf.mxu1  ;;  %v16540_v53 = vpop.f32.mrf.mxu0 }
 0x449   : > { %6974 = vst.msk [vmem:[#allocation5 + $0x60] sm:$0xff] %vm238_vm8, %v6920_v55  ;;  %v6923_v62 = vadd.f32 %v16404_v23, %v6869_v29  ;;  %6263 = vst.msk [vmem:[#allocation5 + $0x98] sm:$0xff] %vm238_vm8, %v12134_v13 }
 0x44a   : > { %v6868_v18 = vld [vmem:[#allocation5 + $0x70] sm:$0xff]  ;;  %v6065_v1 = vpop.f32.mrf.mxu1  ;;  %v16548_v41 = vpop.f32.mrf.mxu0 }
 0x44b   : > { %6977 = vst.msk [vmem:[#allocation5 + $0x78] sm:$0xff] %vm238_vm8, %v6923_v62  ;;  %v6922_v52 = vadd.f32 %v6868_v18, %v16411_v26  ;;  %6262 = vst.msk [vmem:[#allocation5 + $0x90] sm:$0xff] %vm238_vm8, %v6065_v1 }
 0x44c   : > { %v6871_v36 = vld [vmem:[#allocation5 + $0x88] sm:$0xff]  ;;  %v12137_v33 = vpop.f32.mrf.mxu1  ;;  %v16553_v7 = vpop.f32.mrf.mxu0 }
 0x44d   : > { %6976 = vst.msk [vmem:[#allocation5 + $0x70] sm:$0xff] %vm238_vm8, %v6922_v52  ;;  %v6925_v20 = vadd.f32 %v16418_v58, %v6871_v36  ;;  %6265 = vst.msk [vmem:[#allocation5 + $0xa8] sm:$0xff] %vm238_vm8, %v12137_v33 }
 0x44e   : > { %v6870_v23 = vld [vmem:[#allocation5 + $0x80] sm:$0xff]  ;;  %v6075_v17 = vpop.f32.mrf.mxu1  ;;  %v16561_v35 = vpop.f32.mrf.mxu0 }
 0x44f   : > { %6979 = vst.msk [vmem:[#allocation5 + $0x88] sm:$0xff] %vm238_vm8, %v6925_v20  ;;  %v6924_v25 = vadd.f32 %v6870_v23, %v16426_v50  ;;  %6264 = vst.msk [vmem:[#allocation5 + $0xa0] sm:$0xff] %vm238_vm8, %v6075_v17 }
 0x450   : > { %v6873_v26 = vld [vmem:[#allocation5 + $0x98] sm:$0xff]  ;;  %v12140_v54 = vpop.f32.mrf.mxu1  ;;  %v16569_v11 = vpop.f32.mrf.mxu0 }
 0x451   : > { %6978 = vst.msk [vmem:[#allocation5 + $0x80] sm:$0xff] %vm238_vm8, %v6924_v25  ;;  %v6927_v59 = vadd.f32 %v16433_v30, %v6873_v26  ;;  %6267 = vst.msk [vmem:[#allocation5 + $0xb8] sm:$0xff] %vm238_vm8, %v12140_v54 }
 0x452   : > { %v6872_v58 = vld [vmem:[#allocation5 + $0x90] sm:$0xff]  ;;  %v6085_v5 = vpop.f32.mrf.mxu1  ;;  %v16577_v48 = vpop.f32.mrf.mxu0 }
 0x453   : > { %6981 = vst.msk [vmem:[#allocation5 + $0x98] sm:$0xff] %vm238_vm8, %v6927_v59  ;;  %v6926_v49 = vadd.f32 %v6872_v58, %v16440_v38  ;;  %6266 = vst.msk [vmem:[#allocation5 + $0xb0] sm:$0xff] %vm238_vm8, %v6085_v5 }
 0x454   : > { %v6875_v50 = vld [vmem:[#allocation5 + $0xa8] sm:$0xff]  ;;  %v12143_v45 = vpop.f32.mrf.mxu1  ;;  %v16585_v9 = vpop.f32.mrf.mxu0 }
 0x455   : > { %6980 = vst.msk [vmem:[#allocation5 + $0x90] sm:$0xff] %vm238_vm8, %v6926_v49  ;;  %v6929_v63 = vadd.f32 %v16447_v51, %v6875_v50  ;;  %6269 = vst.msk [vmem:[#allocation5 + $0xc8] sm:$0xff] %vm238_vm8, %v12143_v45 }
 0x456   : > { %v6874_v30 = vld [vmem:[#allocation5 + $0xa0] sm:$0xff]  ;;  %v6095_v44 = vpop.f32.mrf.mxu1  ;;  %v6785_v13 = vpop.f32.mrf.mxu0 }
 0x457   : > { %6983 = vst.msk [vmem:[#allocation5 + $0xa8] sm:$0xff] %vm238_vm8, %v6929_v63  ;;  %v6928_v38 = vadd.f32 %v6874_v30, %v16455_v32  ;;  %6268 = vst.msk [vmem:[#allocation5 + $0xc0] sm:$0xff] %vm238_vm8, %v6095_v44 }
 0x458   : > { %v6877_v37 = vld [vmem:[#allocation5 + $0xb8] sm:$0xff]  ;;  %v12146_v56 = vpop.f32.mrf.mxu1 }
 0x459   : > { %6982 = vst.msk [vmem:[#allocation5 + $0xa0] sm:$0xff] %vm238_vm8, %v6928_v38  ;;  %v6931_v31 = vadd.f32 %v16463_v47, %v6877_v37  ;;  %6271 = vst.msk [vmem:[#allocation5 + $0xd8] sm:$0xff] %vm238_vm8, %v12146_v56  ;;  %v12255_v1 = vpop.f32.mrf.mxu0 }
 0x45a   : > { %v6876_v51 = vld [vmem:[#allocation5 + $0xb0] sm:$0xff]  ;;  %v6105_v15 = vpop.f32.mrf.mxu1 }
 0x45b   : > { %6985 = vst.msk [vmem:[#allocation5 + $0xb8] sm:$0xff] %vm238_vm8, %v6931_v31  ;;  %v6930_v27 = vadd.f32 %v6876_v51, %v16470_v22  ;;  %6270 = vst.msk [vmem:[#allocation5 + $0xd0] sm:$0xff] %vm238_vm8, %v6105_v15  ;;  %v6795_v23 = vpop.f32.mrf.mxu0 }
 0x45c   : > { %v6879_v32 = vld [vmem:[#allocation5 + $0xc8] sm:$0xff]  ;;  %v12149_v61 = vpop.f32.mrf.mxu1 }
 0x45d   : > { %6984 = vst.msk [vmem:[#allocation5 + $0xb0] sm:$0xff] %vm238_vm8, %v6930_v27  ;;  %v6933_v57 = vadd.f32 %v16476_v60, %v6879_v32  ;;  %6273 = vst.msk [vmem:[#allocation5 + $0xe8] sm:$0xff] %vm238_vm8, %v12149_v61 }
 0x45e   : > { %v6878_v47 = vld [vmem:[#allocation5 + $0xc0] sm:$0xff]  ;;  %v6115_v14 = vpop.f32.mrf.mxu1  ;;  %v12258_v59 = vpop.f32.mrf.mxu0 }
 0x45f   : > { %6987 = vst.msk [vmem:[#allocation5 + $0xc8] sm:$0xff] %vm238_vm8, %v6933_v57  ;;  %v6932_v0 = vadd.f32 %v6878_v47, %v16482_v3  ;;  %6272 = vst.msk [vmem:[#allocation5 + $0xe0] sm:$0xff] %vm238_vm8, %v6115_v14 }
 0x460   : > { %v6881_v22 = vld [vmem:[#allocation5 + $0xd8] sm:$0xff]  ;;  %v12152_v19 = vpop.f32.mrf.mxu1 }
 0x461   : > { %6986 = vst.msk [vmem:[#allocation5 + $0xc0] sm:$0xff] %vm238_vm8, %v6932_v0  ;;  %v6935_v16 = vadd.f32 %v16488_v12, %v6881_v22  ;;  %6275 = vst.msk [vmem:[#allocation5 + $0xf8] sm:$0xff] %vm238_vm8, %v12152_v19 }
 0x462   : > { %v6880_v60 = vld [vmem:[#allocation5 + $0xd0] sm:$0xff]  ;;  %v6125_v42 = vpop.f32.mrf.mxu1 }
 0x463   : > { %6989 = vst.msk [vmem:[#allocation5 + $0xd8] sm:$0xff] %vm238_vm8, %v6935_v16  ;;  %v6934_v39 = vadd.f32 %v6880_v60, %v16493_v8  ;;  %6274 = vst.msk [vmem:[#allocation5 + $0xf0] sm:$0xff] %vm238_vm8, %v6125_v42 }
 0x464   : > { %v6883_v3 = vld [vmem:[#allocation5 + $0xe8] sm:$0xff]  ;;  %v12155_v34 = vpop.f32.mrf.mxu1 }
 0x465   : > { %6988 = vst.msk [vmem:[#allocation5 + $0xd0] sm:$0xff] %vm238_vm8, %v6934_v39  ;;  %v6937_v40 = vadd.f32 %v16498_v28, %v6883_v3  ;;  %6277 = vst.msk [vmem:[#allocation5 + $0x108] sm:$0xff] %vm238_vm8, %v12155_v34 }
 0x466   : > { %v6882_v12 = vld [vmem:[#allocation5 + $0xe0] sm:$0xff]  ;;  %v6135_v24 = vpop.f32.mrf.mxu1 }
 0x467   : > { %6991 = vst.msk [vmem:[#allocation5 + $0xe8] sm:$0xff] %vm238_vm8, %v6937_v40  ;;  %v6936_v10 = vadd.f32 %v6882_v12, %v16503_v21  ;;  %6276 = vst.msk [vmem:[#allocation5 + $0x100] sm:$0xff] %vm238_vm8, %v6135_v24 }
 0x468   : > { %v6885_v8 = vld [vmem:[#allocation5 + $0xf8] sm:$0xff]  ;;  %v12158_v43 = vpop.f32.mrf.mxu1 }
 0x469   : > { %6990 = vst.msk [vmem:[#allocation5 + $0xe0] sm:$0xff] %vm238_vm8, %v6936_v10  ;;  %v6939_v55 = vadd.f32 %v16508_v46, %v6885_v8  ;;  %6279 = vst.msk [vmem:[#allocation5 + $0x118] sm:$0xff] %vm238_vm8, %v12158_v43 }
 0x46a   : > { %v6884_v28 = vld [vmem:[#allocation5 + $0xf0] sm:$0xff]  ;;  %v6145_v29 = vpop.f32.mrf.mxu1 }
 0x46b   : > { %6993 = vst.msk [vmem:[#allocation5 + $0xf8] sm:$0xff] %vm238_vm8, %v6939_v55  ;;  %v6938_v62 = vadd.f32 %v6884_v28, %v16516_v4  ;;  %6278 = vst.msk [vmem:[#allocation5 + $0x110] sm:$0xff] %vm238_vm8, %v6145_v29 }
 0x46c   : > { %v6887_v21 = vld [vmem:[#allocation5 + $0x108] sm:$0xff]  ;;  %v12161_v18 = vpop.f32.mrf.mxu1 }
 0x46d   : > { %6992 = vst.msk [vmem:[#allocation5 + $0xf0] sm:$0xff] %vm238_vm8, %v6938_v62  ;;  %v6941_v52 = vadd.f32 %v16524_v2, %v6887_v21  ;;  %6281 = vst.msk [vmem:[#allocation5 + $0x128] sm:$0xff] %vm238_vm8, %v12161_v18 }
 0x46e   : > { %v6886_v46 = vld [vmem:[#allocation5 + $0x100] sm:$0xff]  ;;  %v6155_v36 = vpop.f32.mrf.mxu1 }
 0x46f   : > { %6995 = vst.msk [vmem:[#allocation5 + $0x108] sm:$0xff] %vm238_vm8, %v6941_v52  ;;  %v6940_v33 = vadd.f32 %v6886_v46, %v16532_v6  ;;  %6280 = vst.msk [vmem:[#allocation5 + $0x120] sm:$0xff] %vm238_vm8, %v6155_v36 }
 0x470   : > { %v6889_v4 = vld [vmem:[#allocation5 + $0x118] sm:$0xff]  ;;  %v12164_v20 = vpop.f32.mrf.mxu1 }
 0x471   : > { %6994 = vst.msk [vmem:[#allocation5 + $0x100] sm:$0xff] %vm238_vm8, %v6940_v33  ;;  %v6943_v17 = vadd.f32 %v16540_v53, %v6889_v4  ;;  %6283 = vst.msk [vmem:[#allocation5 + $0x138] sm:$0xff] %vm238_vm8, %v12164_v20  ;;  %v7572_v20 = vld [vmem:[#allocation5] sm:$0xff] }
 0x472   : > { %v6888_v2 = vld [vmem:[#allocation5 + $0x110] sm:$0xff]  ;;  %v6165_v25 = vpop.f32.mrf.mxu1 }
 0x473   : > { %6997 = vst.msk [vmem:[#allocation5 + $0x118] sm:$0xff] %vm238_vm8, %v6943_v17  ;;  %v6942_v26 = vadd.f32 %v6888_v2, %v16548_v41  ;;  %6282 = vst.msk [vmem:[#allocation5 + $0x130] sm:$0xff] %vm238_vm8, %v6165_v25  ;;  %v6805_v41 = vpop.f32.mrf.mxu0 }
 0x474   : > { %v6891_v6 = vld [vmem:[#allocation5 + $0x128] sm:$0xff]  ;;  %v12167_v54 = vpop.f32.mrf.mxu1 }
 0x475   : > { %6996 = vst.msk [vmem:[#allocation5 + $0x110] sm:$0xff] %vm238_vm8, %v6942_v26  ;;  %v6945_v58 = vadd.f32 %v16553_v7, %v6891_v6  ;;  %6285 = vst.msk [vmem:[#allocation5 + $0x148] sm:$0xff] %vm238_vm8, %v12167_v54  ;;  %v12261_v56 = vpop.f32.mrf.mxu0  ;;  %v7575_v26 = vld [vmem:[#allocation5 + $0x18] sm:$0xff] }
 0x476   : > { %v6890_v53 = vld [vmem:[#allocation5 + $0x120] sm:$0xff]  ;;  %v6175_v5 = vpop.f32.mrf.mxu1 }
 0x477   : > { %6999 = vst.msk [vmem:[#allocation5 + $0x128] sm:$0xff] %vm238_vm8, %v6945_v58  ;;  %v6944_v49 = vadd.f32 %v6890_v53, %v16561_v35  ;;  %6284 = vst.msk [vmem:[#allocation5 + $0x140] sm:$0xff] %vm238_vm8, %v6175_v5  ;;  %v6815_v32 = vpop.f32.mrf.mxu0  ;;  %v7574_v5 = vld [vmem:[#allocation5 + $0x10] sm:$0xff] }
 0x478   : > { %v6893_v50 = vld [vmem:[#allocation5 + $0x138] sm:$0xff]  ;;  %v12170_v45 = vpop.f32.mrf.mxu1 }
 0x479   : > { %6998 = vst.msk [vmem:[#allocation5 + $0x120] sm:$0xff] %vm238_vm8, %v6944_v49  ;;  %v6947_v63 = vadd.f32 %v16569_v11, %v6893_v50  ;;  %6287 = vst.msk [vmem:[#allocation5 + $0x158] sm:$0xff] %vm238_vm8, %v12170_v45  ;;  %v12264_v11 = vpop.f32.mrf.mxu0 }
 0x47a   : > { %v6892_v30 = vld [vmem:[#allocation5 + $0x130] sm:$0xff]  ;;  %v6185_v44 = vpop.f32.mrf.mxu1 }
 0x47b   : > { %7001 = vst.msk [vmem:[#allocation5 + $0x138] sm:$0xff] %vm238_vm8, %v6947_v63  ;;  %v6946_v7 = vadd.f32 %v6892_v30, %v16577_v48  ;;  %6286 = vst.msk [vmem:[#allocation5 + $0x150] sm:$0xff] %vm238_vm8, %v6185_v44  ;;  %v6825_v48 = vpop.f32.mrf.mxu0  ;;  %v7576_v44 = vld [vmem:[#allocation5 + $0x20] sm:$0xff] }
 0x47c   : > { %v6895_v38 = vld [vmem:[#allocation5 + $0x148] sm:$0xff]  ;;  %v12173_v37 = vpop.f32.mrf.mxu1 }
 0x47d   : > { %7000 = vst.msk [vmem:[#allocation5 + $0x130] sm:$0xff] %vm238_vm8, %v6946_v7  ;;  %v6949_v31 = vadd.f32 %v16585_v9, %v6895_v38  ;;  %6289 = vst.msk [vmem:[#allocation5 + $0x168] sm:$0xff] %vm238_vm8, %v12173_v37  ;;  %v12267_v40 = vpop.f32.mrf.mxu0  ;;  %v7579_v37 = vld [vmem:[#allocation5 + $0x38] sm:$0xff] }
 0x47e   : > { %v6894_v51 = vld [vmem:[#allocation5 + $0x140] sm:$0xff]  ;;  %v6195_v15 = vpop.f32.mrf.mxu1 }
 0x47f   : > { %7003 = vst.msk [vmem:[#allocation5 + $0x148] sm:$0xff] %vm238_vm8, %v6949_v31  ;;  %v6948_v35 = vadd.f32 %v6894_v51, %v6785_v13  ;;  %6288 = vst.msk [vmem:[#allocation5 + $0x160] sm:$0xff] %vm238_vm8, %v6195_v15  ;;  %v6835_v55 = vpop.f32.mrf.mxu0  ;;  %v7578_v15 = vld [vmem:[#allocation5 + $0x30] sm:$0xff] }
 0x480   : > { %v6897_v27 = vld [vmem:[#allocation5 + $0x158] sm:$0xff]  ;;  %v12176_v61 = vpop.f32.mrf.mxu1 }
 0x481   : > { %7002 = vst.msk [vmem:[#allocation5 + $0x140] sm:$0xff] %vm238_vm8, %v6948_v35  ;;  %v6951_v57 = vadd.f32 %v12255_v1, %v6897_v27  ;;  %6291 = vst.msk [vmem:[#allocation5 + $0x178] sm:$0xff] %vm238_vm8, %v12176_v61  ;;  %v7573_v1 = vld [vmem:[#allocation5 + $0x8] sm:$0xff]  ;;  %v12270_v52 = vpop.f32.mrf.mxu0  ;;  %v16655_v35 = vld [vmem:[%s18135_s2] ss:$0 sm:$0xff] }
 0x482   : > { %v6896_v47 = vld [vmem:[#allocation5 + $0x150] sm:$0xff]  ;;  %v6205_v14 = vpop.f32.mrf.mxu1 }
 0x483   : > { %7005 = vst.msk [vmem:[#allocation5 + $0x158] sm:$0xff] %vm238_vm8, %v6951_v57  ;;  %v6950_v0 = vadd.f32 %v6896_v47, %v6795_v23  ;;  %6290 = vst.msk [vmem:[#allocation5 + $0x170] sm:$0xff] %vm238_vm8, %v6205_v14  ;;  %v6845_v6 = vpop.f32.mrf.mxu0  ;;  %v7581_v57 = vld [vmem:[#allocation5 + $0x48] sm:$0xff] }
 0x484   : > { %v6899_v22 = vld [vmem:[#allocation5 + $0x168] sm:$0xff]  ;;  %v12179_v19 = vpop.f32.mrf.mxu1 }
 0x485   : > { %7004 = vst.msk [vmem:[#allocation5 + $0x150] sm:$0xff] %vm238_vm8, %v6950_v0  ;;  %v6953_v16 = vadd.f32 %v12258_v59, %v6899_v22  ;;  %6293 = vst.msk [vmem:[#allocation5 + $0x188] sm:$0xff] %vm238_vm8, %v12179_v19  ;;  %v7580_v22 = vld [vmem:[#allocation5 + $0x40] sm:$0xff] }
 0x486   : > { %v6898_v60 = vld [vmem:[#allocation5 + $0x160] sm:$0xff]  ;;  %v6215_v42 = vpop.f32.mrf.mxu1 }
 0x487   : > { %7007 = vst.msk [vmem:[#allocation5 + $0x168] sm:$0xff] %vm238_vm8, %v6953_v16  ;;  %v6952_v39 = vadd.f32 %v6898_v60, %v6805_v41  ;;  %6292 = vst.msk [vmem:[#allocation5 + $0x180] sm:$0xff] %vm238_vm8, %v6215_v42  ;;  %v7577_v41 = vld [vmem:[#allocation5 + $0x28] sm:$0xff] }
 0x488   : > { %v6901_v3 = vld [vmem:[#allocation5 + $0x178] sm:$0xff]  ;;  %v12182_v34 = vpop.f32.mrf.mxu1 }
 0x489   : > { %7006 = vst.msk [vmem:[#allocation5 + $0x160] sm:$0xff] %vm238_vm8, %v6952_v39  ;;  %v6955_v12 = vadd.f32 %v12261_v56, %v6901_v3  ;;  %6295 = vst.msk [vmem:[#allocation5 + $0x198] sm:$0xff] %vm238_vm8, %v12182_v34  ;;  %v7583_v39 = vld [vmem:[#allocation5 + $0x58] sm:$0xff] }
 0x48a   : > { %v6900_v24 = vld [vmem:[#allocation5 + $0x170] sm:$0xff]  ;;  %v6225_v9 = vpop.f32.mrf.mxu1 }
 0x48b   : > { %7009 = vst.msk [vmem:[#allocation5 + $0x178] sm:$0xff] %vm238_vm8, %v6955_v12  ;;  %v6954_v10 = vadd.f32 %v6900_v24, %v6815_v32  ;;  %6294 = vst.msk [vmem:[#allocation5 + $0x190] sm:$0xff] %vm238_vm8, %v6225_v9  ;;  %v7582_v9 = vld [vmem:[#allocation5 + $0x50] sm:$0xff] }
 0x48c   : > { %v6903_v8 = vld [vmem:[#allocation5 + $0x188] sm:$0xff]  ;;  %v12185_v43 = vpop.f32.mrf.mxu1 }
 0x48d   : > { %7008 = vst.msk [vmem:[#allocation5 + $0x170] sm:$0xff] %vm238_vm8, %v6954_v10  ;;  %v6957_v28 = vadd.f32 %v12264_v11, %v6903_v8  ;;  %6297 = vst.msk [vmem:[#allocation5 + $0x1a8] sm:$0xff] %vm238_vm8, %v12185_v43 }
 0x48e   : > { %v6902_v29 = vld [vmem:[#allocation5 + $0x180] sm:$0xff]  ;;  %v6235_v13 = vpop.f32.mrf.mxu1 }
 0x48f   : > { %7011 = vst.msk [vmem:[#allocation5 + $0x188] sm:$0xff] %vm238_vm8, %v6957_v28  ;;  %v6956_v62 = vadd.f32 %v6902_v29, %v6825_v48  ;;  %6296 = vst.msk [vmem:[#allocation5 + $0x1a0] sm:$0xff] %vm238_vm8, %v6235_v13 }
 0x490   : > { %v6905_v21 = vld [vmem:[#allocation5 + $0x198] sm:$0xff]  ;;  %v12277_v18 = vpop.f32.mrf.mxu1 }
 0x491   : > { %7010 = vst.msk [vmem:[#allocation5 + $0x180] sm:$0xff] %vm238_vm8, %v6956_v62  ;;  %v6959_v46 = vadd.f32 %v12267_v40, %v6905_v21  ;;  %v7627_v36 = vadd.f32 %v12277_v18, %v7573_v1  ;;  %v7585_v18 = vld [vmem:[#allocation5 + $0x68] sm:$0xff] }
 0x492   : > { %v6904_v33 = vld [vmem:[#allocation5 + $0x190] sm:$0xff]  ;;  %v7303_v4 = vpop.f32.mrf.mxu1  ;;  %v8689_v1 = vld [vmem:[%s18136_s3 + $0x58] sm:$0xff] }
 0x493   : > { %7013 = vst.msk [vmem:[#allocation5 + $0x198] sm:$0xff] %vm238_vm8, %v6959_v46  ;;  %7681 = vst.msk [vmem:[#allocation5 + $0x8] sm:$0xff] %vm238_vm8, %v7627_v36  ;;  %v6958_v23 = vadd.f32 %v6904_v33, %v6835_v55  ;;  %v7626_v17 = vadd.f32 %v7572_v20, %v7303_v4  ;;  %12356 = vmatprep.subr.mxu0 %v8689_v1 }
 0x494   : > { %v6907_v2 = vld [vmem:[#allocation5 + $0x1a8] sm:$0xff]  ;;  %v12280_v25 = vpop.f32.mrf.mxu1  ;;  %12357 = vmatpush3.msra.mxu0 %v8689_v1 }
 0x495   : > { %7012 = vst.msk [vmem:[#allocation5 + $0x190] sm:$0xff] %vm238_vm8, %v6958_v23  ;;  %7680 = vst.msk [vmem:[#allocation5] sm:$0xff] %vm238_vm8, %v7626_v17  ;;  %v6961_v54 = vadd.f32 %v12270_v52, %v6907_v2  ;;  %v7629_v59 = vadd.f32 %v12280_v25, %v7575_v26  ;;  %v8688_v52 = vld [vmem:[%s18136_s3 + $0x50] sm:$0xff]  ;;  %v8687_v2 = vld [vmem:[%s18136_s3 + $0x48] sm:$0xff] }
 0x496   : > { %v6906_v58 = vld [vmem:[#allocation5 + $0x1a0] sm:$0xff]  ;;  %v7313_v53 = vpop.f32.mrf.mxu1  ;;  %12358 = vmatprep.subr.mxu0 %v8688_v52 }
 0x497   : > { %7015 = vst.msk [vmem:[#allocation5 + $0x1a8] sm:$0xff] %vm238_vm8, %v6961_v54  ;;  %7683 = vst.msk [vmem:[#allocation5 + $0x18] sm:$0xff] %vm238_vm8, %v7629_v59  ;;  %v6960_v49 = vadd.f32 %v6906_v58, %v6845_v6  ;;  %v7628_v50 = vadd.f32 %v7574_v5, %v7313_v53  ;;  %v7584_v17 = vld [vmem:[#allocation5 + $0x60] sm:$0xff]  ;;  %v7587_v53 = vld [vmem:[#allocation5 + $0x78] sm:$0xff]  ;;  %12359 = vmatpush3.msra.mxu0 %v8688_v52 }
 0x498   : > { %v12283_v45 = vpop.f32.mrf.mxu1  ;;  %12360 = vmatprep.subr.mxu0 %v8687_v2 }
 0x499   : > { %7014 = vst.msk [vmem:[#allocation5 + $0x1a0] sm:$0xff] %vm238_vm8, %v6960_v49  ;;  %7682 = vst.msk [vmem:[#allocation5 + $0x10] sm:$0xff] %vm238_vm8, %v7628_v50  ;;  %v7631_v63 = vadd.f32 %v12283_v45, %v7577_v41  ;;  %12361 = vmatpush3.msra.mxu0 %v8687_v2 }
 0x49a   : > { %v7323_v30 = vpop.f32.mrf.mxu1 }
 0x49b   : > { %7685 = vst.msk [vmem:[#allocation5 + $0x28] sm:$0xff] %vm238_vm8, %v7631_v63  ;;  %v7630_v7 = vadd.f32 %v7576_v44, %v7323_v30  ;;  %v7586_v30 = vld [vmem:[#allocation5 + $0x70] sm:$0xff] }
 0x49c   : > { %v12286_v38 = vpop.f32.mrf.mxu1 }
 0x49d   : > { %7684 = vst.msk [vmem:[#allocation5 + $0x20] sm:$0xff] %vm238_vm8, %v7630_v7  ;;  %v7633_v56 = vadd.f32 %v12286_v38, %v7579_v37 }
 0x49e   : > { %v7734_v31 = vld [vmem:[#allocation5 + $0x18] sm:$0xff]  ;;  %v7333_v51 = vpop.f32.mrf.mxu1 }
 0x49f   : > { %v16658_v27 = vadd.f32 %v16655_v35, %v7734_v31  ;;  %7687 = vst.msk [vmem:[#allocation5 + $0x38] sm:$0xff] %vm238_vm8, %v7633_v56  ;;  %v7632_v32 = vadd.f32 %v7578_v15, %v7333_v51  ;;  %v7589_v51 = vld [vmem:[#allocation5 + $0x88] sm:$0xff] }
 0x4a0   : > { %v12289_v61 = vpop.f32.mrf.mxu1 }
 0x4a1   : > { %v7830_v47 = vsub.f32 0.0, %v16658_v27  ;;  %7686 = vst.msk [vmem:[#allocation5 + $0x30] sm:$0xff] %vm238_vm8, %v7632_v32  ;;  %v7635_v14 = vadd.f32 %v12289_v61, %v7581_v57  ;;  %v7588_v57 = vld [vmem:[#allocation5 + $0x80] sm:$0xff] }
 0x4a2   : > { %v7736_v11 = vld [vmem:[#allocation5 + $0x28] sm:$0xff]  ;;  %v7343_v0 = vpop.f32.mrf.mxu1 }
 0x4a3   : > { %v7878_v19 = vmul.f32 1.442695, %v7830_v47  ;;  %v16664_v16 = vadd.f32 %v16655_v35, %v7736_v11  ;;  %7689 = vst.msk [vmem:[#allocation5 + $0x48] sm:$0xff] %vm238_vm8, %v7635_v14  ;;  %v7634_v60 = vadd.f32 %v7580_v22, %v7343_v0  ;;  %v8686_v22 = vld [vmem:[%s18136_s3 + $0x40] sm:$0xff] }
 0x4a4   : > { %v7735_v42 = vld [vmem:[#allocation5 + $0x20] sm:$0xff]  ;;  %v12292_v48 = vpop.f32.mrf.mxu1  ;;  %12362 = vmatprep.subr.mxu0 %v8686_v22 }
 0x4a5   : > { %12809 = vpow2.f32 %v7878_v19  ;;  %v7832_v3 = vsub.f32 0.0, %v16664_v16  ;;  %v16669_v34 = vadd.f32 %v16655_v35, %v7735_v42  ;;  %7688 = vst.msk [vmem:[#allocation5 + $0x40] sm:$0xff] %vm238_vm8, %v7634_v60  ;;  %v7637_v40 = vadd.f32 %v12292_v48, %v7583_v39  ;;  %v7591_v48 = vld [vmem:[#allocation5 + $0x98] sm:$0xff]  ;;  %12363 = vmatpush3.msra.mxu0 %v8686_v22  ;;  %v8684_v22 = vld [vmem:[%s18136_s3 + $0x30] sm:$0xff] }
 0x4a6   : > { %v7738_v12 = vld [vmem:[#allocation5 + $0x38] sm:$0xff]  ;;  %v7353_v24 = vpop.f32.mrf.mxu1 }
 0x4a7   : > { %v7882_v10 = vmul.f32 1.442695, %v7832_v3  ;;  %v7831_v8 = vsub.f32 0.0, %v16669_v34  ;;  %v16674_v43 = vadd.f32 %v16655_v35, %v7738_v12  ;;  %7691 = vst.msk [vmem:[#allocation5 + $0x58] sm:$0xff] %vm238_vm8, %v7637_v40  ;;  %v7636_v55 = vadd.f32 %v7582_v9, %v7353_v24 }
 0x4a8   : > { %v7737_v28 = vld [vmem:[#allocation5 + $0x30] sm:$0xff]  ;;  %v12295_v29 = vpop.f32.mrf.mxu1 }
 0x4a9   : > { %12811 = vpow2.f32 %v7882_v10  ;;  %v7880_v13 = vmul.f32 1.442695, %v7831_v8  ;;  %v7834_v62 = vsub.f32 0.0, %v16674_v43  ;;  %v16679_v21 = vadd.f32 %v16655_v35, %v7737_v28  ;;  %7690 = vst.msk [vmem:[#allocation5 + $0x50] sm:$0xff] %vm238_vm8, %v7636_v55  ;;  %v7590_v8 = vld [vmem:[#allocation5 + $0x90] sm:$0xff] }
 0x4aa   : > { %v7740_v46 = vld [vmem:[#allocation5 + $0x48] sm:$0xff]  ;;  %v7639_v36 = vadd.f32 %v12295_v29, %v7585_v18  ;;  %v7363_v33 = vpop.f32.mrf.mxu1 }
 0x4ab   : > { %12813 = vpow2.f32 %v7880_v13  ;;  %v7886_v4 = vmul.f32 1.442695, %v7834_v62  ;;  %v7833_v20 = vsub.f32 0.0, %v16679_v21  ;;  %v16690_v23 = vadd.f32 %v16655_v35, %v7740_v46  ;;  %v7593_v46 = vld [vmem:[#allocation5 + $0xa8] sm:$0xff] }
 0x4ac   : > { %v7739_v25 = vld [vmem:[#allocation5 + $0x40] sm:$0xff]  ;;  %7693 = vst.msk [vmem:[#allocation5 + $0x68] sm:$0xff] %vm238_vm8, %v7639_v36  ;;  %v7638_v26 = vadd.f32 %v7584_v17, %v7363_v33  ;;  %v12298_v6 = vpop.f32.mrf.mxu1 }
 0x4ad   : > { %12815 = vpow2.f32 %v7886_v4  ;;  %v7884_v54 = vmul.f32 1.442695, %v7833_v20  ;;  %v7836_v59 = vsub.f32 0.0, %v16690_v23  ;;  %v16698_v58 = vadd.f32 %v16655_v35, %v7739_v25 }
 0x4ae   : > { %v7742_v5 = vld [vmem:[#allocation5 + $0x58] sm:$0xff]  ;;  %7692 = vst.msk [vmem:[#allocation5 + $0x60] sm:$0xff] %vm238_vm8, %v7638_v26  ;;  %v7641_v49 = vadd.f32 %v12298_v6, %v7587_v53  ;;  %v7373_v50 = vpop.f32.mrf.mxu1  ;;  %v7592_v6 = vld [vmem:[#allocation5 + $0xa0] sm:$0xff] }
 0x4af   : > { %12817 = vpow2.f32 %v7884_v54  ;;  %v7890_v45 = vmul.f32 1.442695, %v7836_v59  ;;  %v7835_v41 = vsub.f32 0.0, %v16698_v58  ;;  %v16703_v63 = vadd.f32 %v16655_v35, %v7742_v5  ;;  %v8685_v5 = vld [vmem:[%s18136_s3 + $0x38] sm:$0xff] }
 0x4b0   : > { %v7741_v44 = vld [vmem:[#allocation5 + $0x50] sm:$0xff]  ;;  %7695 = vst.msk [vmem:[#allocation5 + $0x78] sm:$0xff] %vm238_vm8, %v7641_v49  ;;  %v7640_v7 = vadd.f32 %v7586_v30, %v7373_v50  ;;  %v12301_v38 = vpop.f32.mrf.mxu1  ;;  %12364 = vmatprep.subr.mxu0 %v8685_v5 }
 0x4b1   : > { %12819 = vpow2.f32 %v7890_v45  ;;  %v7888_v37 = vmul.f32 1.442695, %v7835_v41  ;;  %v7838_v56 = vsub.f32 0.0, %v16703_v63  ;;  %v16708_v31 = vadd.f32 %v16655_v35, %v7741_v44  ;;  %v7595_v44 = vld [vmem:[#allocation5 + $0xb8] sm:$0xff]  ;;  %12365 = vmatpush3.msra.mxu0 %v8685_v5 }
 0x4b2   : > { %v12810_v15 = vpop.eup %12809  ;;  %7694 = vst.msk [vmem:[#allocation5 + $0x70] sm:$0xff] %vm238_vm8, %v7640_v7  ;;  %v7643_v32 = vadd.f32 %v12301_v38, %v7589_v51  ;;  %v7383_v61 = vpop.f32.mrf.mxu1  ;;  %12366 = vmatprep.subr.mxu0 %v8684_v22 }
 0x4b3   : > { %v7974_v47 = vadd.f32 1.0, %v12810_v15  ;;  %12821 = vpow2.f32 %v7888_v37  ;;  %v7894_v14 = vmul.f32 1.442695, %v7838_v56  ;;  %v7837_v11 = vsub.f32 0.0, %v16708_v31  ;;  %v7744_v0 = vld [vmem:[#allocation5 + $0x68] sm:$0xff]  ;;  %12367 = vmatpush3.msra.mxu0 %v8684_v22  ;;  %v10984_v22 = vld [vmem:[%s18136_s3 + $0x100] sm:$0xff] }
 0x4b4   : > { %v16716_v19 = vadd.f32 %v16655_v35, %v7744_v0  ;;  %7697 = vst.msk [vmem:[#allocation5 + $0x88] sm:$0xff] %vm238_vm8, %v7643_v32  ;;  %v7642_v60 = vadd.f32 %v7588_v57, %v7383_v61  ;;  %v12304_v42 = vpop.f32.mrf.mxu1 }
 0x4b5   : > { %12823 = vrcp.f32 %v7974_v47  ;;  %v7892_v39 = vmul.f32 1.442695, %v7837_v11  ;;  %v7743_v3 = vld [vmem:[#allocation5 + $0x60] sm:$0xff]  ;;  %v7645_v40 = vadd.f32 %v12304_v42, %v7591_v48  ;;  %v7594_v47 = vld [vmem:[#allocation5 + $0xb0] sm:$0xff]  ;;  %v10987_v42 = vld [vmem:[%s18136_s3 + $0x118] sm:$0xff] }
 0x4b6   : > { %v12812_v12 = vpop.eup %12811  ;;  %12825 = vpow2.f32 %v7894_v14  ;;  %v7840_v24 = vsub.f32 0.0, %v16716_v19  ;;  %v16721_v9 = vadd.f32 %v16655_v35, %v7743_v3  ;;  %7696 = vst.msk [vmem:[#allocation5 + $0x80] sm:$0xff] %vm238_vm8, %v7642_v60  ;;  %v7393_v10 = vpop.f32.mrf.mxu1  ;;  %v8683_v60 = vld [vmem:[%s18136_s3 + $0x28] sm:$0xff]  ;;  %12500 = vmatprep.subr.mxu1 %v10987_v42 }
 0x4b7   : > { %v7976_v55 = vadd.f32 1.0, %v12812_v12  ;;  %12827 = vpow2.f32 %v7892_v39  ;;  %v7746_v28 = vld [vmem:[#allocation5 + $0x78] sm:$0xff]  ;;  %7699 = vst.msk [vmem:[#allocation5 + $0x98] sm:$0xff] %vm238_vm8, %v7645_v40  ;;  %v7644_v29 = vadd.f32 %v7590_v8, %v7393_v10  ;;  %12501 = vmatpush3.msra.mxu1 %v10987_v42  ;;  %12368 = vmatprep.subr.mxu0 %v8683_v60 }
 0x4b8   : > { %v12814_v13 = vpop.eup %12813  ;;  %v7898_v62 = vmul.f32 1.442695, %v7840_v24  ;;  %v7839_v18 = vsub.f32 0.0, %v16721_v9  ;;  %v16727_v1 = vadd.f32 %v16655_v35, %v7746_v28  ;;  %v12307_v52 = vpop.f32.mrf.mxu1  ;;  %12369 = vmatpush3.msra.mxu0 %v8683_v60 }
 0x4b9   : > { %12829 = vrcp.f32 %v7976_v55  ;;  %v7975_v36 = vadd.f32 1.0, %v12814_v13  ;;  %v7745_v33 = vld [vmem:[#allocation5 + $0x70] sm:$0xff]  ;;  %7698 = vst.msk [vmem:[#allocation5 + $0x90] sm:$0xff] %vm238_vm8, %v7644_v29  ;;  %v7647_v4 = vadd.f32 %v12307_v52, %v7593_v46  ;;  %v7597_v55 = vld [vmem:[#allocation5 + $0xc8] sm:$0xff] }
 0x4ba   : > { %v12816_v20 = vpop.eup %12815  ;;  %12831 = vpow2.f32 %v7898_v62  ;;  %v7896_v17 = vmul.f32 1.442695, %v7839_v18  ;;  %v7842_v2 = vsub.f32 0.0, %v16727_v1  ;;  %v16732_v25 = vadd.f32 %v16655_v35, %v7745_v33  ;;  %v7403_v26 = vpop.f32.mrf.mxu1 }
 0x4bb   : > { %12833 = vrcp.f32 %v7975_v36  ;;  %v7978_v54 = vadd.f32 1.0, %v12816_v20  ;;  %v7748_v59 = vld [vmem:[#allocation5 + $0x88] sm:$0xff]  ;;  %7701 = vst.msk [vmem:[#allocation5 + $0xa8] sm:$0xff] %vm238_vm8, %v7647_v4  ;;  %v7646_v53 = vadd.f32 %v7592_v6, %v7403_v26  ;;  %v7596_v4 = vld [vmem:[#allocation5 + $0xc0] sm:$0xff]  ;;  %v8682_v20 = vld [vmem:[%s18136_s3 + $0x20] sm:$0xff] }
 0x4bc   : > { %v12818_v49 = vpop.eup %12817  ;;  %12835 = vpow2.f32 %v7896_v17  ;;  %v7902_v50 = vmul.f32 1.442695, %v7842_v2  ;;  %v7841_v45 = vsub.f32 0.0, %v16732_v25  ;;  %v16740_v41 = vadd.f32 %v16655_v35, %v7748_v59  ;;  %v12310_v30 = vpop.f32.mrf.mxu1  ;;  %v10986_v17 = vld [vmem:[%s18136_s3 + $0x110] sm:$0xff]  ;;  %12370 = vmatprep.subr.mxu0 %v8682_v20 }
 0x4bd   : > { %12837 = vrcp.f32 %v7978_v54  ;;  %v7977_v7 = vadd.f32 1.0, %v12818_v49  ;;  %v7747_v38 = vld [vmem:[#allocation5 + $0x80] sm:$0xff]  ;;  %7700 = vst.msk [vmem:[#allocation5 + $0xa0] sm:$0xff] %vm238_vm8, %v7646_v53  ;;  %v7649_v37 = vadd.f32 %v12310_v30, %v7595_v44  ;;  %12502 = vmatprep.subr.mxu1 %v10986_v17  ;;  %12371 = vmatpush3.msra.mxu0 %v8682_v20  ;;  %v18298_v30 = vmov 0.0  }
 0x4be   : > { %v12820_v56 = vpop.eup %12819  ;;  %12839 = vpow2.f32 %v7902_v50  ;;  %v7900_v51 = vmul.f32 1.442695, %v7841_v45  ;;  %v7844_v15 = vsub.f32 0.0, %v16740_v41  ;;  %v16745_v32 = vadd.f32 %v16655_v35, %v7747_v38  ;;  %v7750_v61 = vld [vmem:[#allocation5 + $0x98] sm:$0xff]  ;;  %v7413_v57 = vpop.f32.mrf.mxu1  ;;  %12503 = vmatpush3.msra.mxu1 %v10986_v17 }
 0x4bf   : > { %12841 = vrcp.f32 %v7977_v7  ;;  %v7980_v14 = vadd.f32 1.0, %v12820_v56  ;;  %v16748_v11 = vadd.f32 %v16655_v35, %v7750_v61  ;;  %7703 = vst.msk [vmem:[#allocation5 + $0xb8] sm:$0xff] %vm238_vm8, %v7649_v37  ;;  %v7648_v0 = vadd.f32 %v7594_v47, %v7413_v57  ;;  %v7599_v50 = vld [vmem:[#allocation5 + $0xd8] sm:$0xff]  ;;  %v8681_v56 = vld [vmem:[%s18136_s3 + $0x18] sm:$0xff] }
 0x4c0   : > { %v12822_v48 = vpop.eup %12821  ;;  %12843 = vpow2.f32 %v7900_v51  ;;  %v7906_v39 = vmul.f32 1.442695, %v7844_v15  ;;  %v7843_v3 = vsub.f32 0.0, %v16745_v32  ;;  %v7749_v40 = vld [vmem:[#allocation5 + $0x90] sm:$0xff]  ;;  %v12313_v12 = vpop.f32.mrf.mxu1  ;;  %v10985_v51 = vld [vmem:[%s18136_s3 + $0x108] sm:$0xff]  ;;  %12372 = vmatprep.subr.mxu0 %v8681_v56 }
 0x4c1   : > { %12845 = vrcp.f32 %v7980_v14  ;;  %v7979_v24 = vadd.f32 1.0, %v12822_v48  ;;  %v7846_v10 = vsub.f32 0.0, %v16748_v11  ;;  %v16763_v8 = vadd.f32 %v16655_v35, %v7749_v40  ;;  %7702 = vst.msk [vmem:[#allocation5 + $0xb0] sm:$0xff] %vm238_vm8, %v7648_v0  ;;  %v7598_v14 = vld [vmem:[#allocation5 + $0xd0] sm:$0xff]  ;;  %12504 = vmatprep.subr.mxu1 %v10985_v51  ;;  %v8680_v0 = vld [vmem:[%s18136_s3 + $0x10] sm:$0xff]  ;;  %12373 = vmatpush3.msra.mxu0 %v8681_v56 }
 0x4c2   : > { %v12824_v28 = vpop.eup %12823  ;;  %12847 = vpow2.f32 %v7906_v39  ;;  %v7904_v29 = vmul.f32 1.442695, %v7843_v3  ;;  %v7752_v13 = vld [vmem:[#allocation5 + $0xa8] sm:$0xff]  ;;  %v7651_v62 = vadd.f32 %v12313_v12, %v7597_v55  ;;  %v7423_v18 = vpop.f32.mrf.mxu1  ;;  %12505 = vmatpush3.msra.mxu1 %v10985_v51  ;;  %12374 = vmatprep.subr.mxu0 %v8680_v0 }
 0x4c3   : > { %v12826_v52 = vpop.eup %12825  ;;  %v8070_v46 = vmul.f32 %v12824_v28, %v16658_v27  ;;  %12849 = vrcp.f32 %v7979_v24  ;;  %v7910_v36 = vmul.f32 1.442695, %v7846_v10  ;;  %v7845_v33 = vsub.f32 0.0, %v16763_v8  ;;  %v7601_v28 = vld [vmem:[#allocation5 + $0xe8] sm:$0xff]  ;;  %12506 = vmatprep.subr.mxu1 %v10984_v22  ;;  %12375 = vmatpush3.msra.mxu0 %v8680_v0  ;;  %v8647_v0 = vld [vmem:[#allocation3 + $0x8] sm:$0xff] }
 0x4c4   : > { %v12828_v2 = vpop.eup %12827  ;;  %v7982_v26 = vadd.f32 1.0, %v12826_v52  ;;  %12851 = vpow2.f32 %v7904_v29  ;;  %v16775_v6 = vadd.f32 %v16655_v35, %v7752_v13  ;;  %v7751_v27 = vld [vmem:[#allocation5 + $0xa0] sm:$0xff]  ;;  %7705 = vst.msk [vmem:[#allocation5 + $0xc8] sm:$0xff] %vm238_vm8, %v7651_v62  ;;  %v7650_v54 = vadd.f32 %v7596_v4, %v7423_v18  ;;  %v12316_v59 = vpop.f32.mrf.mxu1  ;;  %12507 = vmatpush3.msra.mxu1 %v10984_v22  ;;  %v8679_v52 = vld [vmem:[%s18136_s3 + $0x8] sm:$0xff] }
 0x4c5   : > { %8118 = vst.msk [vmem:[#allocation4 + $0x18] sm:$0xff] %vm238_vm8, %v8070_v46  ;;  %v7981_v53 = vadd.f32 1.0, %v12828_v2  ;;  %12853 = vpow2.f32 %v7910_v36  ;;  %v7908_v5 = vmul.f32 1.442695, %v7845_v33  ;;  %v16780_v49 = vadd.f32 %v16655_v35, %v7751_v27  ;;  %v10983_v46 = vld [vmem:[%s18136_s3 + $0xf8] sm:$0xff]  ;;  %12376 = vmatprep.subr.mxu0 %v8679_v52  ;;  %v8678_v2 = vld [vmem:[%s18136_s3] sm:$0xff] }
 0x4c6   : > { %v12830_v45 = vpop.eup %12829  ;;  %8166 = vst.msk [vmem:[#allocation4 + $0x18] sm:$0x1] %vm3166_vm9, %v18298_v30  ;;  %12855 = vrcp.f32 %v7982_v26  ;;  %v7848_v44 = vsub.f32 0.0, %v16775_v6  ;;  %v7754_v7 = vld [vmem:[#allocation5 + $0xb8] sm:$0xff]  ;;  %v7653_v38 = vadd.f32 %v12316_v59, %v7599_v50  ;;  %v7433_v37 = vpop.f32.mrf.mxu1  ;;  %12508 = vmatprep.subr.mxu1 %v10983_v46  ;;  %v10982_v26 = vld [vmem:[%s18136_s3 + $0xf0] sm:$0xff]  ;;  %12377 = vmatpush3.msra.mxu0 %v8679_v52 }
 0x4c7   : > { %7704 = vst.msk [vmem:[#allocation5 + $0xc0] sm:$0xff] %vm238_vm8, %v7650_v54  ;;  %v12832_v15 = vpop.eup %12831  ;;  %v8072_v61 = vmul.f32 %v12830_v45, %v16664_v16  ;;  %12857 = vrcp.f32 %v7981_v53  ;;  %v7847_v57 = vsub.f32 0.0, %v16780_v49  ;;  %v16795_v47 = vadd.f32 %v16655_v35, %v7754_v7  ;;  %12509 = vmatpush3.msra.mxu1 %v10983_v46  ;;  %12378 = vmatprep.subr.mxu0 %v8678_v2  ;;  %v10981_v22 = vld [vmem:[%s18136_s3 + $0xe8] sm:$0xff] }
 0x4c8   : > { %v12834_v60 = vpop.eup %12833  ;;  %v7984_v42 = vadd.f32 1.0, %v12832_v15  ;;  %12859 = vpow2.f32 %v7908_v5  ;;  %v7914_v16 = vmul.f32 1.442695, %v7848_v44  ;;  %v7753_v48 = vld [vmem:[#allocation5 + $0xb0] sm:$0xff]  ;;  %7707 = vst.msk [vmem:[#allocation5 + $0xd8] sm:$0xff] %vm238_vm8, %v7653_v38  ;;  %v7652_v39 = vadd.f32 %v7598_v14, %v7433_v37  ;;  %v12319_v3 = vpop.f32.mrf.mxu1  ;;  %v7603_v5 = vld [vmem:[#allocation5 + $0xf8] sm:$0xff]  ;;  %12510 = vmatprep.subr.mxu1 %v10982_v26  ;;  %12379 = vmatpush3.msra.mxu0 %v8678_v2 }
 0x4c9   : > { %v12836_v40 = vpop.eup %12835  ;;  %8120 = vst.msk [vmem:[#allocation4 + $0x28] sm:$0xff] %vm238_vm8, %v8072_v61  ;;  %v8071_v12 = vmul.f32 %v12834_v60, %v16669_v34  ;;  %v7912_v24 = vmul.f32 1.442695, %v7847_v57  ;;  %v7850_v10 = vsub.f32 0.0, %v16795_v47  ;;  %v16808_v55 = vadd.f32 %v16655_v35, %v7753_v48  ;;  %v7600_v34 = vld [vmem:[#allocation5 + $0xe0] sm:$0xff]  ;;  %v7602_v37 = vld [vmem:[#allocation5 + $0xf0] sm:$0xff]  ;;  %12511 = vmatpush3.msra.mxu1 %v10982_v26 }
 0x4ca   : > { %v12838_v29 = vpop.eup %12837  ;;  %8182 = vst.msk [vmem:[#allocation4 + $0x29] sm:$0x1] %vm3166_vm9, %v18298_v30  ;;  %12861 = vrcp.f32 %v7984_v42  ;;  %v7983_v13 = vadd.f32 1.0, %v12836_v40  ;;  %v7655_v62 = vadd.f32 %v12319_v3, %v7601_v28  ;;  %v7443_v18 = vpop.f32.mrf.mxu1  ;;  %12512 = vmatprep.subr.mxu1 %v10981_v22 }
 0x4cb   : > { %7706 = vst.msk [vmem:[#allocation5 + $0xd0] sm:$0xff] %vm238_vm8, %v7652_v39  ;;  %v12840_v36 = vpop.eup %12839  ;;  %8119 = vst.msk [vmem:[#allocation4 + $0x20] sm:$0xff] %vm238_vm8, %v8071_v12  ;;  %v8074_v33 = vmul.f32 %v12838_v29, %v16674_v43  ;;  %12863 = vpow2.f32 %v7914_v16  ;;  %v7918_v4 = vmul.f32 1.442695, %v7850_v10  ;;  %v7849_v20 = vsub.f32 0.0, %v16808_v55  ;;  %v7756_v17 = vld [vmem:[#allocation5 + $0xc8] sm:$0xff]  ;;  %12513 = vmatpush3.msra.mxu1 %v10981_v22 }
 0x4cc   : > { %v12842_v27 = vpop.eup %12841  ;;  %12865 = vrcp.f32 %v7983_v13  ;;  %v7986_v54 = vadd.f32 1.0, %v12840_v36  ;;  %v16829_v43 = vadd.f32 %v16655_v35, %v7756_v17  ;;  %7709 = vst.msk [vmem:[#allocation5 + $0xe8] sm:$0xff] %vm238_vm8, %v7655_v62  ;;  %v7654_v59 = vadd.f32 %v7600_v34, %v7443_v18  ;;  %v12322_v53 = vpop.f32.mrf.mxu1  ;;  %v10980_v39 = vld [vmem:[%s18136_s3 + $0xe0] sm:$0xff]  ;;  %v7605_v10 = vld [vmem:[#allocation5 + $0x108] sm:$0xff] }
 0x4cd   : > { %v12844_v50 = vpop.eup %12843  ;;  %8122 = vst.msk [vmem:[#allocation4 + $0x38] sm:$0xff] %vm238_vm8, %v8074_v33  ;;  %v8073_v45 = vmul.f32 %v12842_v27, %v16679_v21  ;;  %12867 = vpow2.f32 %v7912_v24  ;;  %v7916_v44 = vmul.f32 1.442695, %v7849_v20  ;;  %v7657_v38 = vadd.f32 %v12322_v53, %v7603_v5  ;;  %v8198_v56 = vld [vmem:[#allocation4 + $0x18] sm:$0xff]  ;;  %v8646_v21 = vld [vmem:[#allocation3] sm:$0xff]  ;;  %12514 = vmatprep.subr.mxu1 %v10980_v39  ;;  %v7604_v33 = vld [vmem:[#allocation5 + $0x100] sm:$0xff] }
 0x4ce   : > { %v7755_v7 = vld [vmem:[#allocation5 + $0xc0] sm:$0xff]  ;;  %v12846_v51 = vpop.eup %12845  ;;  %12869 = vrcp.f32 %v7986_v54  ;;  %v7985_v15 = vadd.f32 1.0, %v12844_v50  ;;  %v7852_v61 = vsub.f32 0.0, %v16829_v43  ;;  %7708 = vst.msk [vmem:[#allocation5 + $0xe0] sm:$0xff] %vm238_vm8, %v7654_v59  ;;  %v7453_v14 = vpop.f32.mrf.mxu1  ;;  %8230 = vst.msk [vmem:[#allocation3 + $0x10] sm:$0xff] %vm238_vm8, %v8198_v56  ;;  %12380 = vmatprep.mubr.msk.f32.mxu0 %vm246_vm10, %v8646_v21  ;;  %12515 = vmatpush3.msra.mxu1 %v10980_v39  ;;  %v7607_v59 = vld [vmem:[#allocation5 + $0x118] sm:$0xff] }
 0x4cf   : > { %v16836_v57 = vadd.f32 %v16655_v35, %v7755_v7  ;;  %v12848_v60 = vpop.eup %12847  ;;  %8121 = vst.msk [vmem:[#allocation4 + $0x30] sm:$0xff] %vm238_vm8, %v8073_v45  ;;  %v8076_v42 = vmul.f32 %v12846_v51, %v16690_v23  ;;  %12871 = vpow2.f32 %v7918_v4  ;;  %v7758_v16 = vld [vmem:[#allocation5 + $0xd8] sm:$0xff]  ;;  %7711 = vst.msk [vmem:[#allocation5 + $0xf8] sm:$0xff] %vm238_vm8, %v7657_v38  ;;  %v7656_v48 = vadd.f32 %v7602_v37, %v7453_v14  ;;  %v7606_v38 = vld [vmem:[#allocation5 + $0x110] sm:$0xff] }
 0x4d0   : > { %v12850_v3 = vpop.eup %12849  ;;  %8167 = vst.msk [vmem:[#allocation4 + $0x30] sm:$0x1] %vm3166_vm9, %v18298_v30  ;;  %12873 = vrcp.f32 %v7985_v15  ;;  %v7988_v40 = vadd.f32 1.0, %v12848_v60  ;;  %v7922_v12 = vmul.f32 1.442695, %v7852_v61  ;;  %v12325_v24 = vpop.f32.mrf.mxu1  ;;  %12381 = vmatmul.mubr.msk.f32.vlgmr.msra.gmra.mxu0 %vm246_vm10, %v8647_v0  ;;  %v16857_v13 = vadd.f32 %v16655_v35, %v7758_v16  ;;  %v10979_v56 = vld [vmem:[%s18136_s3 + $0xd8] sm:$0xff] }
 0x4d1   : > { %v7851_v23 = vsub.f32 0.0, %v16836_v57  ;;  %v12852_v28 = vpop.eup %12851  ;;  %8124 = vst.msk [vmem:[#allocation4 + $0x48] sm:$0xff] %vm238_vm8, %v8076_v42  ;;  %v8075_v29 = vmul.f32 %v12850_v3, %v16698_v58  ;;  %12875 = vpow2.f32 %v7916_v44  ;;  %7710 = vst.msk [vmem:[#allocation5 + $0xf0] sm:$0xff] %vm238_vm8, %v7656_v48  ;;  %v7659_v18 = vadd.f32 %v12325_v24, %v7605_v10  ;;  %12516 = vmatprep.subr.mxu1 %v10979_v56  ;;  %v10978_v0 = vld [vmem:[%s18136_s3 + $0xd0] sm:$0xff]  ;;  %v10977_v24 = vld [vmem:[%s18136_s3 + $0xc8] sm:$0xff] }
 0x4d2   : > { %v7757_v62 = vld [vmem:[#allocation5 + $0xd0] sm:$0xff]  ;;  %v12854_v34 = vpop.eup %12853  ;;  %8168 = vst.msk [vmem:[#allocation4 + $0x48] sm:$0x1] %vm3166_vm9, %v18298_v30  ;;  %12877 = vrcp.f32 %v7988_v40  ;;  %v7987_v52 = vadd.f32 1.0, %v12852_v28  ;;  %v7463_v58 = vpop.f32.mrf.mxu1  ;;  %v7854_v26 = vsub.f32 0.0, %v16857_v13  ;;  %12517 = vmatpush3.msra.mxu1 %v10979_v56 }
 0x4d3   : > { %v7920_v46 = vmul.f32 1.442695, %v7851_v23  ;;  %v16863_v36 = vadd.f32 %v16655_v35, %v7757_v62  ;;  %v8263_v4 = vld [vmem:[#allocation4 + $0x21] sm:$0xff]  ;;  %v8262_v20 = vld [vmem:[#allocation4 + $0x19] sm:$0xff]  ;;  %v12856_v17 = vpop.eup %12855  ;;  %8123 = vst.msk [vmem:[#allocation4 + $0x40] sm:$0xff] %vm238_vm8, %v8075_v29  ;;  %v7990_v2 = vadd.f32 1.0, %v12854_v34  ;;  %12879 = vpow2.f32 %v7922_v12  ;;  %12518 = vmatprep.subr.mxu1 %v10978_v0 }
 0x4d4   : > { %v7760_v27 = vld [vmem:[#allocation5 + $0xe8] sm:$0xff]  ;;  %7713 = vst.msk [vmem:[#allocation5 + $0x108] sm:$0xff] %vm238_vm8, %v7659_v18  ;;  %v7658_v54 = vadd.f32 %v7604_v33, %v7463_v58  ;;  %8328 = vrot.lane.b32.xlu1 %v8263_v4, %s13326_s17  ;;  %8326 = vrot.lane.b32.xlu0 %v8262_v20, %s13326_s17  ;;  %v8199_v53 = vld [vmem:[#allocation4 + $0x20] sm:$0xff]  ;;  %v12858_v5 = vpop.eup %12857  ;;  %v8078_v50 = vmul.f32 %v12856_v17, %v16703_v63  ;;  %12881 = vrcp.f32 %v7987_v52  ;;  %v12328_v7 = vpop.f32.mrf.mxu1  ;;  %v7926_v15 = vmul.f32 1.442695, %v7854_v26 }
 0x4d5   : > { %8183 = vst.msk [vmem:[#allocation4 + $0x41] sm:$0x1] %vm3166_vm9, %v18298_v30  ;;  %v7853_v45 = vsub.f32 0.0, %v16863_v36  ;;  %v16875_v44 = vadd.f32 %v16655_v35, %v7760_v27  ;;  %v8201_v37 = vld [vmem:[#allocation4 + $0x38] sm:$0xff]  ;;  %v12860_v51 = vpop.eup %12859  ;;  %v8077_v63 = vmul.f32 %v12858_v5, %v16708_v31  ;;  %12883 = vrcp.f32 %v7990_v2  ;;  %v7759_v61 = vld [vmem:[#allocation5 + $0xe0] sm:$0xff]  ;;  %v8455_v21 = vld [vmem:[#allocation4 + $0x22] sm:$0xff]  ;;  %12519 = vmatpush3.msra.mxu1 %v10978_v0 }
 0x4d6   : > { %8231 = vst.msk [vmem:[#allocation3 + $0x18] sm:$0xff] %vm238_vm8, %v8199_v53  ;;  %7712 = vst.msk [vmem:[#allocation5 + $0x100] sm:$0xff] %vm238_vm8, %v7658_v54  ;;  %v7661_v14 = vadd.f32 %v12328_v7, %v7607_v59  ;;  %v7989_v22 = vadd.f32 1.0, %v12860_v51  ;;  %12885 = vpow2.f32 %v7920_v46  ;;  %v7762_v42 = vld [vmem:[#allocation5 + $0xf8] sm:$0xff]  ;;  %v7473_v16 = vpop.f32.mrf.mxu1  ;;  %v8454_v48 = vld [vmem:[#allocation4 + $0x1a] sm:$0xff]  ;;  %v16893_v3 = vadd.f32 %v16655_v35, %v7759_v61  ;;  %12520 = vmatprep.subr.mxu1 %v10977_v24 }
 0x4d7   : > { %8233 = vst.msk [vmem:[#allocation3 + $0x28] sm:$0xff] %vm238_vm8, %v8201_v37  ;;  %8126 = vst.msk [vmem:[#allocation4 + $0x58] sm:$0xff] %vm238_vm8, %v8078_v50  ;;  %v7924_v60 = vmul.f32 1.442695, %v7853_v45  ;;  %v7856_v31 = vsub.f32 0.0, %v16875_v44  ;;  %v12862_v39 = vpop.eup %12861  ;;  %12887 = vpow2.f32 %v7926_v15  ;;  %v16896_v40 = vadd.f32 %v16655_v35, %v7762_v42  ;;  %v8200_v23 = vld [vmem:[#allocation4 + $0x30] sm:$0xff]  ;;  %12521 = vmatpush3.msra.mxu1 %v10977_v24 }
 0x4d8   : > { %8125 = vst.msk [vmem:[#allocation4 + $0x50] sm:$0xff] %vm238_vm8, %v8077_v63  ;;  %7715 = vst.msk [vmem:[#allocation5 + $0x118] sm:$0xff] %vm238_vm8, %v7661_v14  ;;  %v7660_v12 = vadd.f32 %v7606_v38, %v7473_v16  ;;  %8520 = vrot.lane.b32.xlu1 %v8455_v21, %s13327_s11  ;;  %8518 = vrot.lane.b32.xlu0 %v8454_v48, %s13327_s11  ;;  %v12864_v10 = vpop.eup %12863  ;;  %v8080_v28 = vmul.f32 %v12862_v39, %v16716_v19  ;;  %12889 = vrcp.f32 %v7989_v22  ;;  %v7761_v62 = vld [vmem:[#allocation5 + $0xf0] sm:$0xff]  ;;  %v12331_v18 = vpop.f32.mrf.mxu1  ;;  %v7609_v33 = vld [vmem:[#allocation5 + $0x128] sm:$0xff] }
 0x4d9   : > { %8184 = vst.msk [vmem:[#allocation4 + $0x59] sm:$0x1] %vm3166_vm9, %v18298_v30  ;;  %v7930_v29 = vmul.f32 1.442695, %v7856_v31  ;;  %v12866_v34 = vpop.eup %12865  ;;  %v7992_v52 = vadd.f32 1.0, %v12864_v10  ;;  %12891 = vpow2.f32 %v7924_v60  ;;  %v7855_v46 = vsub.f32 0.0, %v16893_v3 }
 0x4da   : > { %8232 = vst.msk [vmem:[#allocation3 + $0x20] sm:$0xff] %vm238_vm8, %v8200_v23  ;;  %v7858_v58 = vsub.f32 0.0, %v16896_v40  ;;  %7714 = vst.msk [vmem:[#allocation5 + $0x110] sm:$0xff] %vm238_vm8, %v7660_v12  ;;  %v8264_v4 = vld [vmem:[#allocation4 + $0x31] sm:$0xff]  ;;  %v8202_v20 = vld [vmem:[#allocation4 + $0x48] sm:$0xff]  ;;  %v12868_v19 = vpop.eup %12867  ;;  %v8079_v17 = vmul.f32 %v12866_v34, %v16721_v9  ;;  %v16912_v2 = vadd.f32 %v16655_v35, %v7761_v62  ;;  %v7663_v27 = vadd.f32 %v12331_v18, %v7609_v33  ;;  %v7483_v54 = vpop.f32.mrf.mxu1 }
 0x4db   : > { %8128 = vst.msk [vmem:[#allocation4 + $0x68] sm:$0xff] %vm238_vm8, %v8080_v28  ;;  %12893 = vpow2.f32 %v7930_v29  ;;  %v7764_v26 = vld [vmem:[#allocation5 + $0x108] sm:$0xff]  ;;  %8234 = vst.msk [vmem:[#allocation3 + $0x30] sm:$0xff] %vm238_vm8, %v8202_v20  ;;  %v10976_v53 = vld [vmem:[%s18136_s3 + $0xc0] sm:$0xff]  ;;  %v12870_v5 = vpop.eup %12869  ;;  %v7991_v50 = vadd.f32 1.0, %v12868_v19 }
 0x4dc   : > { %v8265_v59 = vld [vmem:[#allocation4 + $0x39] sm:$0xff]  ;;  %12895 = vrcp.f32 %v7992_v52  ;;  %v7928_v45 = vmul.f32 1.442695, %v7855_v46  ;;  %v7934_v9 = vmul.f32 1.442695, %v7858_v58  ;;  %v7608_v7 = vld [vmem:[#allocation5 + $0x120] sm:$0xff]  ;;  %8330 = vrot.lane.b32.xlu0 %v8264_v4, %s13326_s17  ;;  %v12872_v38 = vpop.eup %12871  ;;  %v8082_v37 = vmul.f32 %v12870_v5, %v16727_v1  ;;  %v12334_v61 = vpop.f32.mrf.mxu1  ;;  %12522 = vmatprep.subr.mxu1 %v10976_v53 }
 0x4dd   : > { %8332 = vrot.lane.b32.xlu1 %v8265_v59, %s13326_s17  ;;  %8127 = vst.msk [vmem:[#allocation4 + $0x60] sm:$0xff] %vm238_vm8, %v8079_v17  ;;  %v7857_v56 = vsub.f32 0.0, %v16912_v2  ;;  %v16924_v51 = vadd.f32 %v16655_v35, %v7764_v26  ;;  %v7763_v63 = vld [vmem:[#allocation5 + $0x100] sm:$0xff]  ;;  %7717 = vst.msk [vmem:[#allocation5 + $0x128] sm:$0xff] %vm238_vm8, %v7663_v27  ;;  %v7662_v15 = vadd.f32 %v7608_v7, %v7483_v54  ;;  %v7611_v14 = vld [vmem:[#allocation5 + $0x138] sm:$0xff]  ;;  %v12874_v21 = vpop.eup %12873  ;;  %12897 = vrcp.f32 %v7991_v50 }
 0x4de   : > { %8169 = vst.msk [vmem:[#allocation4 + $0x60] sm:$0x1] %vm3166_vm9, %v18298_v30  ;;  %v7994_v0 = vadd.f32 1.0, %v12872_v38  ;;  %v16930_v1 = vadd.f32 %v16655_v35, %v7763_v63  ;;  %v7665_v22 = vadd.f32 %v12334_v61, %v7611_v14  ;;  %v12876_v60 = vpop.eup %12875  ;;  %v8081_v31 = vmul.f32 %v12874_v21, %v16732_v25  ;;  %v7493_v39 = vpop.f32.mrf.mxu1  ;;  %v8456_v12 = vld [vmem:[#allocation4 + $0x32] sm:$0xff]  ;;  %v8457_v23 = vld [vmem:[#allocation4 + $0x3a] sm:$0xff]  ;;  %12523 = vmatpush3.msra.mxu1 %v10976_v53  ;;  %v7615_v21 = vld [vmem:[#allocation5 + $0x158] sm:$0xff] }
 0x4df   : > { %8130 = vst.msk [vmem:[#allocation4 + $0x78] sm:$0xff] %vm238_vm8, %v8082_v37  ;;  %12899 = vpow2.f32 %v7928_v45  ;;  %v7932_v42 = vmul.f32 1.442695, %v7857_v56  ;;  %v7860_v16 = vsub.f32 0.0, %v16924_v51  ;;  %v7766_v48 = vld [vmem:[#allocation5 + $0x118] sm:$0xff]  ;;  %7716 = vst.msk [vmem:[#allocation5 + $0x120] sm:$0xff] %vm238_vm8, %v7662_v15  ;;  %v12878_v24 = vpop.eup %12877 }
 0x4e0   : > { %8170 = vst.msk [vmem:[#allocation4 + $0x78] sm:$0x1] %vm3166_vm9, %v18298_v30  ;;  %12901 = vrcp.f32 %v7994_v0  ;;  %v7993_v10 = vadd.f32 1.0, %v12876_v60  ;;  %v7859_v28 = vsub.f32 0.0, %v16930_v1  ;;  %v16940_v25 = vadd.f32 %v16655_v35, %v7766_v48  ;;  %v7610_v29 = vld [vmem:[#allocation5 + $0x130] sm:$0xff]  ;;  %8522 = vrot.lane.b32.xlu0 %v8456_v12, %s13327_s11  ;;  %v8203_v62 = vld [vmem:[#allocation4 + $0x50] sm:$0xff]  ;;  %v12880_v18 = vpop.eup %12879  ;;  %v12337_v33 = vpop.f32.mrf.mxu1 }
 0x4e1   : > { %7719 = vst.msk [vmem:[#allocation5 + $0x138] sm:$0xff] %vm238_vm8, %v7665_v22  ;;  %8524 = vrot.lane.b32.xlu1 %v8457_v23, %s13327_s11  ;;  %8129 = vst.msk [vmem:[#allocation4 + $0x70] sm:$0xff] %vm238_vm8, %v8081_v31  ;;  %v8084_v34 = vmul.f32 %v12878_v24, %v16740_v41  ;;  %12903 = vpow2.f32 %v7934_v9  ;;  %v7938_v52 = vmul.f32 1.442695, %v7860_v16  ;;  %v7765_v46 = vld [vmem:[#allocation5 + $0x110] sm:$0xff]  ;;  %v7664_v58 = vadd.f32 %v7610_v29, %v7493_v39  ;;  %v12882_v35 = vpop.eup %12881  ;;  %v7613_v17 = vld [vmem:[#allocation5 + $0x148] sm:$0xff] }
 0x4e2   : > { %8235 = vst.msk [vmem:[#allocation3 + $0x38] sm:$0xff] %vm238_vm8, %v8203_v62  ;;  %12905 = vrcp.f32 %v7993_v10  ;;  %v7996_v4 = vadd.f32 1.0, %v12880_v18  ;;  %v7936_v20 = vmul.f32 1.442695, %v7859_v28  ;;  %v7862_v19 = vsub.f32 0.0, %v16940_v25  ;;  %v8205_v26 = vld [vmem:[#allocation4 + $0x68] sm:$0xff]  ;;  %v12884_v27 = vpop.eup %12883  ;;  %v7503_v5 = vpop.f32.mrf.mxu1 }
 0x4e3   : > { %8185 = vst.msk [vmem:[#allocation4 + $0x71] sm:$0x1] %vm3166_vm9, %v18298_v30  ;;  %v8083_v41 = vmul.f32 %v12882_v35, %v16745_v32  ;;  %12907 = vpow2.f32 %v7932_v42  ;;  %v16956_v54 = vld [vmem:[%s18135_s2] ss:$0 sm:$0xff]  ;;  %v7667_v53 = vadd.f32 %v12337_v33, %v7613_v17  ;;  %v7612_v50 = vld [vmem:[#allocation5 + $0x140] sm:$0xff]  ;;  %v12886_v7 = vpop.eup %12885  ;;  %v8086_v32 = vmul.f32 %v12884_v27, %v16748_v11  ;;  %v7617_v27 = vld [vmem:[#allocation5 + $0x168] sm:$0xff] }
 0x4e4   : > { %8132 = vst.msk [vmem:[#allocation4 + $0x88] sm:$0xff] %vm238_vm8, %v8084_v34  ;;  %v16959_v59 = vadd.f32 %v16956_v54, %v7765_v46  ;;  %7718 = vst.msk [vmem:[#allocation5 + $0x130] sm:$0xff] %vm238_vm8, %v7664_v58  ;;  %v8267_v45 = vld [vmem:[#allocation4 + $0x51] sm:$0xff]  ;;  %v8266_v9 = vld [vmem:[#allocation4 + $0x49] sm:$0xff]  ;;  %12909 = vrcp.f32 %v7996_v4  ;;  %v7942_v38 = vmul.f32 1.442695, %v7862_v19  ;;  %v7666_v56 = vadd.f32 %v7612_v50, %v7503_v5  ;;  %v12888_v63 = vpop.eup %12887  ;;  %v12340_v11 = vpop.f32.mrf.mxu1 }
 0x4e5   : > { %8237 = vst.msk [vmem:[#allocation3 + $0x48] sm:$0xff] %vm238_vm8, %v8205_v26  ;;  %v7768_v37 = vld [vmem:[#allocation5 + $0x128] sm:$0xff]  ;;  %8336 = vrot.lane.b32.xlu1 %v8267_v45, %s13326_s17  ;;  %8334 = vrot.lane.b32.xlu0 %v8266_v9, %s13326_s17  ;;  %8131 = vst.msk [vmem:[#allocation4 + $0x80] sm:$0xff] %vm238_vm8, %v8083_v41  ;;  %v7995_v15 = vadd.f32 1.0, %v12886_v7  ;;  %12911 = vpow2.f32 %v7938_v52  ;;  %v8204_v0 = vld [vmem:[#allocation4 + $0x60] sm:$0xff]  ;;  %v12890_v22 = vpop.eup %12889  ;;  %v7998_v60 = vadd.f32 1.0, %v12888_v63  ;;  %v7669_v42 = vadd.f32 %v12340_v11, %v7615_v21 }
 0x4e6   : > { %8186 = vst.msk [vmem:[#allocation4 + $0x89] sm:$0x1] %vm3166_vm9, %v18298_v30  ;;  %v7861_v61 = vsub.f32 0.0, %v16959_v59  ;;  %v16971_v14 = vadd.f32 %v16956_v54, %v7768_v37  ;;  %12913 = vpow2.f32 %v7936_v20  ;;  %v7767_v31 = vld [vmem:[#allocation5 + $0x120] sm:$0xff]  ;;  %v12892_v48 = vpop.eup %12891  ;;  %v8085_v39 = vmul.f32 %v12890_v22, %v16763_v8  ;;  %v7513_v10 = vpop.f32.mrf.mxu1  ;;  %v7614_v8 = vld [vmem:[#allocation5 + $0x150] sm:$0xff] }
 0x4e7   : > { %7721 = vst.msk [vmem:[#allocation5 + $0x148] sm:$0xff] %vm238_vm8, %v7667_v53  ;;  %8134 = vst.msk [vmem:[#allocation4 + $0x98] sm:$0xff] %vm238_vm8, %v8086_v32  ;;  %v8459_v16 = vld [vmem:[#allocation4 + $0x52] sm:$0xff]  ;;  %12915 = vrcp.f32 %v7995_v15  ;;  %v8458_v28 = vld [vmem:[#allocation4 + $0x4a] sm:$0xff]  ;;  %v7997_v18 = vadd.f32 1.0, %v12892_v48  ;;  %v16980_v34 = vadd.f32 %v16956_v54, %v7767_v31  ;;  %v7668_v35 = vadd.f32 %v7614_v8, %v7513_v10 }
 0x4e8   : > { %7720 = vst.msk [vmem:[#allocation5 + $0x140] sm:$0xff] %vm238_vm8, %v7666_v56  ;;  %8236 = vst.msk [vmem:[#allocation3 + $0x40] sm:$0xff] %vm238_vm8, %v8204_v0  ;;  %v7940_v12 = vmul.f32 1.442695, %v7861_v61  ;;  %v7864_v23 = vsub.f32 0.0, %v16971_v14  ;;  %v7770_v24 = vld [vmem:[#allocation5 + $0x138] sm:$0xff]  ;;  %v12894_v62 = vpop.eup %12893  ;;  %12917 = vrcp.f32 %v7998_v60  ;;  %v12343_v4 = vpop.f32.mrf.mxu1 }
 0x4e9   : > { %v8206_v29 = vld [vmem:[#allocation4 + $0x78] sm:$0xff]  ;;  %v16983_v52 = vadd.f32 %v16956_v54, %v7770_v24  ;;  %7723 = vst.msk [vmem:[#allocation5 + $0x158] sm:$0xff] %vm238_vm8, %v7669_v42  ;;  %8528 = vrot.lane.b32.xlu1 %v8459_v16, %s13327_s11  ;;  %8526 = vrot.lane.b32.xlu0 %v8458_v28, %s13327_s11  ;;  %v12896_v46 = vpop.eup %12895  ;;  %8133 = vst.msk [vmem:[#allocation4 + $0x90] sm:$0xff] %vm238_vm8, %v8085_v39  ;;  %v8000_v58 = vadd.f32 1.0, %v12894_v62  ;;  %12919 = vpow2.f32 %v7942_v38  ;;  %v7863_v19 = vsub.f32 0.0, %v16980_v34  ;;  %v8269_v45 = vld [vmem:[#allocation4 + $0x69] sm:$0xff] }
 0x4ea   : > { %8238 = vst.msk [vmem:[#allocation3 + $0x50] sm:$0xff] %vm238_vm8, %v8206_v29  ;;  %v7946_v33 = vmul.f32 1.442695, %v7864_v23  ;;  %v8088_v20 = vmul.f32 %v12896_v46, %v16775_v6  ;;  %12921 = vrcp.f32 %v7997_v18  ;;  %v12898_v41 = vpop.eup %12897  ;;  %7722 = vst.msk [vmem:[#allocation5 + $0x150] sm:$0xff] %vm238_vm8, %v7668_v35  ;;  %v7671_v5 = vadd.f32 %v12343_v4, %v7617_v27  ;;  %v7523_v50 = vpop.f32.mrf.mxu1  ;;  %v8268_v6 = vld [vmem:[#allocation4 + $0x61] sm:$0xff]  ;;  %v7616_v11 = vld [vmem:[#allocation5 + $0x160] sm:$0xff] }
 0x4eb   : > { %8171 = vst.msk [vmem:[#allocation4 + $0x90] sm:$0x1] %vm3166_vm9, %v18298_v30  ;;  %v7866_v17 = vsub.f32 0.0, %v16983_v52  ;;  %v7769_v26 = vld [vmem:[#allocation5 + $0x130] sm:$0xff]  ;;  %12923 = vrcp.f32 %v8000_v58  ;;  %v8087_v7 = vmul.f32 %v12898_v41, %v16780_v49  ;;  %v7944_v32 = vmul.f32 1.442695, %v7863_v19 }
 0x4ec   : > { %v16996_v53 = vadd.f32 %v16956_v54, %v7769_v26  ;;  %v12900_v9 = vpop.eup %12899  ;;  %8136 = vst.msk [vmem:[#allocation4 + $0xa8] sm:$0xff] %vm238_vm8, %v8088_v20  ;;  %12925 = vpow2.f32 %v7940_v12  ;;  %7725 = vst.msk [vmem:[#allocation5 + $0x168] sm:$0xff] %vm238_vm8, %v7671_v5  ;;  %v12346_v21 = vpop.f32.mrf.mxu1  ;;  %v7670_v31 = vadd.f32 %v7616_v11, %v7523_v50  ;;  %v8460_v42 = vld [vmem:[#allocation4 + $0x62] sm:$0xff] }
 0x4ed   : > { %v7950_v38 = vmul.f32 1.442695, %v7866_v17  ;;  %8338 = vrot.lane.b32.xlu0 %v8268_v6, %s13326_s17  ;;  %8340 = vrot.lane.b32.xlu1 %v8269_v45, %s13326_s17  ;;  %v12902_v56 = vpop.eup %12901  ;;  %8172 = vst.msk [vmem:[#allocation4 + $0xa8] sm:$0x1] %vm3166_vm9, %v18298_v30  ;;  %v7999_v63 = vadd.f32 1.0, %v12900_v9  ;;  %12927 = vpow2.f32 %v7946_v33  ;;  %v8207_v16 = vld [vmem:[#allocation4 + $0x80] sm:$0xff] }
 0x4ee   : > { %v7772_v37 = vld [vmem:[#allocation5 + $0x148] sm:$0xff]  ;;  %v7865_v15 = vsub.f32 0.0, %v16996_v53  ;;  %v12904_v0 = vpop.eup %12903  ;;  %8135 = vst.msk [vmem:[#allocation4 + $0xa0] sm:$0xff] %vm238_vm8, %v8087_v7  ;;  %v8090_v22 = vmul.f32 %v12902_v56, %v16795_v47  ;;  %12929 = vpow2.f32 %v7944_v32  ;;  %v7533_v28 = vpop.f32.mrf.mxu1  ;;  %v8461_v47 = vld [vmem:[#allocation4 + $0x6a] sm:$0xff]  ;;  %8239 = vst.msk [vmem:[#allocation3 + $0x58] sm:$0xff] %vm238_vm8, %v8207_v16 }
 0x4ef   : > { %v17007_v61 = vadd.f32 %v16956_v54, %v7772_v37  ;;  %v7771_v49 = vld [vmem:[#allocation5 + $0x140] sm:$0xff]  ;;  %v8209_v48 = vld [vmem:[#allocation4 + $0x98] sm:$0xff]  ;;  %v12906_v39 = vpop.eup %12905  ;;  %8187 = vst.msk [vmem:[#allocation4 + $0xa1] sm:$0x1] %vm3166_vm9, %v18298_v30  ;;  %12931 = vrcp.f32 %v7999_v63  ;;  %v8002_v12 = vadd.f32 1.0, %v12904_v0  ;;  %v7619_v46 = vld [vmem:[#allocation5 + $0x178] sm:$0xff] }
 0x4f0   : > { %v17013_v60 = vadd.f32 %v16956_v54, %v7771_v49  ;;  %v7948_v23 = vmul.f32 1.442695, %v7865_v15  ;;  %v7774_v10 = vld [vmem:[#allocation5 + $0x158] sm:$0xff]  ;;  %8241 = vst.msk [vmem:[#allocation3 + $0x68] sm:$0xff] %vm238_vm8, %v8209_v48  ;;  %v12908_v29 = vpop.eup %12907  ;;  %8138 = vst.msk [vmem:[#allocation4 + $0xb8] sm:$0xff] %vm238_vm8, %v8090_v22  ;;  %v8089_v62 = vmul.f32 %v12906_v39, %v16808_v55  ;;  %12933 = vpow2.f32 %v7950_v38  ;;  %v12349_v4 = vpop.f32.mrf.mxu1  ;;  %v7618_v5 = vld [vmem:[#allocation5 + $0x170] sm:$0xff] }
 0x4f1   : > { %v7868_v24 = vsub.f32 0.0, %v17007_v61  ;;  %v17024_v8 = vadd.f32 %v16956_v54, %v7774_v10  ;;  %7724 = vst.msk [vmem:[#allocation5 + $0x160] sm:$0xff] %vm238_vm8, %v7670_v31  ;;  %8530 = vrot.lane.b32.xlu0 %v8460_v42, %s13327_s11  ;;  %8532 = vrot.lane.b32.xlu1 %v8461_v47, %s13327_s11  ;;  %v12910_v58 = vpop.eup %12909  ;;  %12935 = vrcp.f32 %v8002_v12  ;;  %v8001_v33 = vadd.f32 1.0, %v12908_v29  ;;  %v7773_v41 = vld [vmem:[#allocation5 + $0x150] sm:$0xff]  ;;  %v7621_v7 = vld [vmem:[#allocation5 + $0x188] sm:$0xff]  ;;  %v7620_v42 = vld [vmem:[#allocation5 + $0x180] sm:$0xff] }
 0x4f2   : > { %v7867_v18 = vsub.f32 0.0, %v17013_v60  ;;  %8188 = vst.msk [vmem:[#allocation4 + $0xb9] sm:$0x1] %vm3166_vm9, %v18298_v30  ;;  %v7673_v35 = vadd.f32 %v12346_v21, %v7619_v46  ;;  %v8208_v20 = vld [vmem:[#allocation4 + $0x90] sm:$0xff]  ;;  %v12912_v19 = vpop.eup %12911  ;;  %v8092_v17 = vmul.f32 %v12910_v58, %v16829_v43  ;;  %12937 = vpow2.f32 %v7948_v23  ;;  %v7543_v32 = vpop.f32.mrf.mxu1  ;;  %v8271_v43 = vld [vmem:[#allocation4 + $0x81] sm:$0xff]  ;;  %v8270_v38 = vld [vmem:[#allocation4 + $0x79] sm:$0xff] }
 0x4f3   : > { %v7954_v55 = vmul.f32 1.442695, %v7868_v24  ;;  %8137 = vst.msk [vmem:[#allocation4 + $0xb0] sm:$0xff] %vm238_vm8, %v8089_v62  ;;  %v7870_v27 = vsub.f32 0.0, %v17024_v8  ;;  %8240 = vst.msk [vmem:[#allocation3 + $0x60] sm:$0xff] %vm238_vm8, %v8208_v20  ;;  %v12914_v50 = vpop.eup %12913  ;;  %12939 = vrcp.f32 %v8001_v33  ;;  %v8004_v6 = vadd.f32 1.0, %v12912_v19 }
 0x4f4   : > { %v7952_v26 = vmul.f32 1.442695, %v7867_v18  ;;  %v17036_v45 = vadd.f32 %v16956_v54, %v7773_v41  ;;  %7727 = vst.msk [vmem:[#allocation5 + $0x178] sm:$0xff] %vm238_vm8, %v7673_v35  ;;  %v7672_v9 = vadd.f32 %v7618_v5, %v7533_v28  ;;  %v12916_v37 = vpop.eup %12915  ;;  %8140 = vst.msk [vmem:[#allocation4 + $0xc8] sm:$0xff] %vm238_vm8, %v8092_v17  ;;  %v8003_v56 = vadd.f32 1.0, %v12914_v50  ;;  %v7776_v15 = vld [vmem:[#allocation5 + $0x168] sm:$0xff]  ;;  %v12352_v16 = vpop.f32.mrf.mxu1 }
 0x4f5   : > { %12941 = vpow2.f32 %v7954_v55  ;;  %v7958_v63 = vmul.f32 1.442695, %v7870_v27  ;;  %v7675_v49 = vadd.f32 %v12349_v4, %v7621_v7  ;;  %8344 = vrot.lane.b32.xlu1 %v8271_v43, %s13326_s17  ;;  %8342 = vrot.lane.b32.xlu0 %v8270_v38, %s13326_s17  ;;  %v8210_v11 = vld [vmem:[#allocation4 + $0xa8] sm:$0xff]  ;;  %v12918_v21 = vpop.eup %12917  ;;  %v8091_v0 = vmul.f32 %v12916_v37, %v16836_v57  ;;  %v7622_v24 = vld [vmem:[#allocation5 + $0x190] sm:$0xff]  ;;  %v7625_v17 = vld [vmem:[#allocation5 + $0x1a8] sm:$0xff] }
 0x4f6   : > { %12943 = vrcp.f32 %v8004_v6  ;;  %v7869_v22 = vsub.f32 0.0, %v17036_v45  ;;  %v17045_v31 = vadd.f32 %v16956_v54, %v7776_v15  ;;  %7726 = vst.msk [vmem:[#allocation5 + $0x170] sm:$0xff] %vm238_vm8, %v7672_v9  ;;  %v7623_v48 = vld [vmem:[#allocation5 + $0x198] sm:$0xff]  ;;  %8242 = vst.msk [vmem:[#allocation3 + $0x70] sm:$0xff] %vm238_vm8, %v8210_v11  ;;  %v12920_v39 = vpop.eup %12919  ;;  %v8094_v12 = vmul.f32 %v12918_v21, %v16857_v13  ;;  %v7553_v46 = vpop.f32.mrf.mxu1  ;;  %v8462_v58 = vld [vmem:[#allocation4 + $0x7a] sm:$0xff] }
 0x4f7   : > { %12945 = vrcp.f32 %v8003_v56  ;;  %7729 = vst.msk [vmem:[#allocation5 + $0x188] sm:$0xff] %vm238_vm8, %v7675_v49  ;;  %v7674_v57 = vadd.f32 %v7620_v42, %v7543_v32  ;;  %v7677_v23 = vadd.f32 %v12352_v16, %v7623_v48  ;;  %v8463_v10 = vld [vmem:[#allocation4 + $0x82] sm:$0xff]  ;;  %v12922_v28 = vpop.eup %12921  ;;  %8139 = vst.msk [vmem:[#allocation4 + $0xc0] sm:$0xff] %vm238_vm8, %v8091_v0  ;;  %v8006_v47 = vadd.f32 1.0, %v12920_v39  ;;  %v7624_v6 = vld [vmem:[#allocation5 + $0x1a0] sm:$0xff] }
 0x4f8   : > { %12947 = vpow2.f32 %v7952_v26  ;;  %v7956_v29 = vmul.f32 1.442695, %v7869_v22  ;;  %v7872_v62 = vsub.f32 0.0, %v17045_v31  ;;  %v7775_v18 = vld [vmem:[#allocation5 + $0x160] sm:$0xff]  ;;  %v12924_v33 = vpop.eup %12923  ;;  %8142 = vst.msk [vmem:[#allocation4 + $0xd8] sm:$0xff] %vm238_vm8, %v8094_v12  ;;  %v8093_v13 = vmul.f32 %v12922_v28, %v16863_v36  ;;  %v12355_v19 = vpop.f32.mrf.mxu1  ;;  %v8273_v37 = vld [vmem:[#allocation4 + $0x99] sm:$0xff] }
 0x4f9   : > { %8173 = vst.msk [vmem:[#allocation4 + $0xc0] sm:$0x1] %vm3166_vm9, %v18298_v30  ;;  %12949 = vpow2.f32 %v7958_v63  ;;  %v17058_v55 = vadd.f32 %v16956_v54, %v7775_v18  ;;  %v7676_v35 = vadd.f32 %v7622_v24, %v7553_v46  ;;  %8536 = vrot.lane.b32.xlu1 %v8463_v10, %s13327_s11  ;;  %8534 = vrot.lane.b32.xlu0 %v8462_v58, %s13327_s11  ;;  %v12926_v4 = vpop.eup %12925  ;;  %8174 = vst.msk [vmem:[#allocation4 + $0xd8] sm:$0x1] %vm3166_vm9, %v18298_v30  ;;  %v8272_v38 = vld [vmem:[#allocation4 + $0x91] sm:$0xff] }
 0x4fa   : > { %7728 = vst.msk [vmem:[#allocation5 + $0x180] sm:$0xff] %vm238_vm8, %v7674_v57  ;;  %7731 = vst.msk [vmem:[#allocation5 + $0x198] sm:$0xff] %vm238_vm8, %v7677_v23  ;;  %v8096_v20 = vmul.f32 %v12924_v33, %v16875_v44  ;;  %12951 = vrcp.f32 %v8006_v47  ;;  %v7962_v36 = vmul.f32 1.442695, %v7872_v62  ;;  %v12928_v26 = vpop.eup %12927  ;;  %v8005_v27 = vadd.f32 1.0, %v12926_v4  ;;  %v8211_v9 = vld [vmem:[#allocation4 + $0xb0] sm:$0xff]  ;;  %v7563_v43 = vpop.f32.mrf.mxu1 }
 0x4fb   : > { %8141 = vst.msk [vmem:[#allocation4 + $0xd0] sm:$0xff] %vm238_vm8, %v8093_v13  ;;  %12953 = vpow2.f32 %v7956_v29  ;;  %v7871_v41 = vsub.f32 0.0, %v17058_v55  ;;  %v7778_v5 = vld [vmem:[#allocation5 + $0x178] sm:$0xff]  ;;  %7730 = vst.msk [vmem:[#allocation5 + $0x190] sm:$0xff] %vm238_vm8, %v7676_v35  ;;  %v7679_v50 = vadd.f32 %v12355_v19, %v7625_v17  ;;  %v12930_v7 = vpop.eup %12929  ;;  %v8008_v44 = vadd.f32 1.0, %v12928_v26  ;;  %v8464_v23 = vld [vmem:[#allocation4 + $0x92] sm:$0xff] }
 0x4fc   : > { %8144 = vst.msk [vmem:[#allocation4 + $0xe8] sm:$0xff] %vm238_vm8, %v8096_v20  ;;  %12955 = vpow2.f32 %v7962_v36  ;;  %v17074_v32 = vadd.f32 %v16956_v54, %v7778_v5  ;;  %8243 = vst.msk [vmem:[#allocation3 + $0x78] sm:$0xff] %vm238_vm8, %v8211_v9  ;;  %v8213_v56 = vld [vmem:[#allocation4 + $0xc8] sm:$0xff]  ;;  %v12932_v63 = vpop.eup %12931  ;;  %v8007_v15 = vadd.f32 1.0, %v12930_v7  ;;  %v7678_v21 = vadd.f32 %v7624_v6, %v7563_v43  ;;  %v8465_v29 = vld [vmem:[#allocation4 + $0x9a] sm:$0xff] }
 0x4fd   : > { %8189 = vst.msk [vmem:[#allocation4 + $0xd1] sm:$0x1] %vm3166_vm9, %v18298_v30  ;;  %8190 = vst.msk [vmem:[#allocation4 + $0xe9] sm:$0x1] %vm3166_vm9, %v18298_v30  ;;  %12957 = vrcp.f32 %v8005_v27  ;;  %v7960_v49 = vmul.f32 1.442695, %v7871_v41  ;;  %8346 = vrot.lane.b32.xlu0 %v8272_v38, %s13326_s17  ;;  %8348 = vrot.lane.b32.xlu1 %v8273_v37, %s13326_s17  ;;  %v12934_v0 = vpop.eup %12933  ;;  %v8095_v22 = vmul.f32 %v12932_v63, %v16893_v3 }
 0x4fe   : > { %v7777_v11 = vld [vmem:[#allocation5 + $0x170] sm:$0xff]  ;;  %7733 = vst.msk [vmem:[#allocation5 + $0x1a8] sm:$0xff] %vm238_vm8, %v7679_v50  ;;  %8245 = vst.msk [vmem:[#allocation3 + $0x88] sm:$0xff] %vm238_vm8, %v8213_v56  ;;  %12959 = vrcp.f32 %v8008_v44  ;;  %v7874_v42 = vsub.f32 0.0, %v17074_v32  ;;  %v7780_v48 = vld [vmem:[#allocation5 + $0x188] sm:$0xff]  ;;  %v12936_v39 = vpop.eup %12935  ;;  %v8010_v12 = vadd.f32 1.0, %v12934_v0 }
 0x4ff   : > { %v17086_v16 = vadd.f32 %v16956_v54, %v7777_v11  ;;  %12961 = vrcp.f32 %v8007_v15  ;;  %v17089_v57 = vadd.f32 %v16956_v54, %v7780_v48  ;;  %7732 = vst.msk [vmem:[#allocation5 + $0x1a0] sm:$0xff] %vm238_vm8, %v7678_v21  ;;  %v12938_v24 = vpop.eup %12937  ;;  %8143 = vst.msk [vmem:[#allocation4 + $0xe0] sm:$0xff] %vm238_vm8, %v8095_v22  ;;  %v8098_v3 = vmul.f32 %v12936_v39, %v16896_v40  ;;  %v8274_v50 = vld [vmem:[#allocation4 + $0xa9] sm:$0xff]  ;;  %v8467_v38 = vld [vmem:[#allocation4 + $0xb2] sm:$0xff] }
 0x500   : > { %12963 = vpow2.f32 %v7960_v49  ;;  %v7966_v10 = vmul.f32 1.442695, %v7874_v42  ;;  %v8212_v62 = vld [vmem:[#allocation4 + $0xc0] sm:$0xff]  ;;  %v12940_v18 = vpop.eup %12939  ;;  %v8009_v46 = vadd.f32 1.0, %v12938_v24  ;;  %v8214_v40 = vld [vmem:[#allocation4 + $0xd8] sm:$0xff]  ;;  %v8466_v15 = vld [vmem:[#allocation4 + $0xaa] sm:$0xff] }
 0x501   : > { %v7873_v28 = vsub.f32 0.0, %v17086_v16  ;;  %v7779_v47 = vld [vmem:[#allocation5 + $0x180] sm:$0xff]  ;;  %12965 = vrcp.f32 %v8010_v12  ;;  %v7876_v58 = vsub.f32 0.0, %v17089_v57  ;;  %8538 = vrot.lane.b32.xlu0 %v8464_v23, %s13327_s11  ;;  %8540 = vrot.lane.b32.xlu1 %v8465_v29, %s13327_s11  ;;  %8244 = vst.msk [vmem:[#allocation3 + $0x80] sm:$0xff] %vm238_vm8, %v8212_v62  ;;  %8146 = vst.msk [vmem:[#allocation4 + $0xf8] sm:$0xff] %vm238_vm8, %v8098_v3  ;;  %v8097_v35 = vmul.f32 %v12940_v18, %v16912_v2  ;;  %v10943_v11 = vld [vmem:[%s18136_s3 + $0xb8] sm:$0xff] }
 0x502   : > { %v17097_v33 = vadd.f32 %v16956_v54, %v7779_v47  ;;  %v12942_v13 = vpop.eup %12941  ;;  %12967 = vpow2.f32 %v7966_v10  ;;  %v7781_v20 = vld [vmem:[#allocation5 + $0x190] sm:$0xff]  ;;  %8246 = vst.msk [vmem:[#allocation3 + $0x90] sm:$0xff] %vm238_vm8, %v8214_v40  ;;  %v8275_v2 = vld [vmem:[#allocation4 + $0xb1] sm:$0xff]  ;;  %12428 = vmatprep.subr.mxu0 %v10943_v11  ;;  %v8277_v3 = vld [vmem:[#allocation4 + $0xc9] sm:$0xff] }
 0x503   : > { %v7964_v4 = vmul.f32 1.442695, %v7873_v28  ;;  %v12944_v36 = vpop.eup %12943  ;;  %12969 = vrcp.f32 %v8009_v46  ;;  %v8012_v19 = vadd.f32 1.0, %v12942_v13  ;;  %v7970_v17 = vmul.f32 1.442695, %v7876_v58  ;;  %8145 = vst.msk [vmem:[#allocation4 + $0xf0] sm:$0xff] %vm238_vm8, %v8097_v35  ;;  %12429 = vmatpush3.msra.mxu0 %v10943_v11 }
 0x504   : > { %v7875_v26 = vsub.f32 0.0, %v17097_v33  ;;  %v12946_v27 = vpop.eup %12945  ;;  %v8100_v41 = vmul.f32 %v12944_v36, %v16924_v51  ;;  %v17109_v5 = vadd.f32 %v16956_v54, %v7781_v20  ;;  %8175 = vst.msk [vmem:[#allocation4 + $0xf0] sm:$0x1] %vm3166_vm9, %v18298_v30  ;;  %v8276_v24 = vld [vmem:[#allocation4 + $0xc1] sm:$0xff]  ;;  %v8469_v13 = vld [vmem:[#allocation4 + $0xca] sm:$0xff] }
 0x505   : > { %12971 = vpow2.f32 %v7964_v4  ;;  %v12948_v6 = vpop.eup %12947  ;;  %v8099_v9 = vmul.f32 %v12946_v27, %v16930_v1  ;;  %8352 = vrot.lane.b32.xlu1 %v8275_v2, %s13326_s17  ;;  %8350 = vrot.lane.b32.xlu0 %v8274_v50, %s13326_s17  ;;  %v8468_v40 = vld [vmem:[#allocation4 + $0xc2] sm:$0xff] }
 0x506   : > { %12973 = vrcp.f32 %v8012_v19  ;;  %v7968_v7 = vmul.f32 1.442695, %v7875_v26  ;;  %v12950_v44 = vpop.eup %12949  ;;  %8148 = vst.msk [vmem:[#allocation4 + $0x108] sm:$0xff] %vm238_vm8, %v8100_v41  ;;  %v8011_v51 = vadd.f32 1.0, %v12948_v6  ;;  %v7877_v54 = vsub.f32 0.0, %v17109_v5  ;;  %v8215_v49 = vld [vmem:[#allocation4 + $0xe0] sm:$0xff] }
 0x507   : > { %12975 = vpow2.f32 %v7970_v17  ;;  %v12952_v43 = vpop.eup %12951  ;;  %8147 = vst.msk [vmem:[#allocation4 + $0x100] sm:$0xff] %vm238_vm8, %v8099_v9  ;;  %v8014_v1 = vadd.f32 1.0, %v12950_v44  ;;  %8247 = vst.msk [vmem:[#allocation3 + $0x98] sm:$0xff] %vm238_vm8, %v8215_v49  ;;  %v10941_v36 = vld [vmem:[%s18136_s3 + $0xa8] sm:$0xff]  ;;  %v8278_v41 = vld [vmem:[#allocation4 + $0xd9] sm:$0xff] }
 0x508   : > { %8176 = vst.msk [vmem:[#allocation4 + $0x108] sm:$0x1] %vm3166_vm9, %v18298_v30  ;;  %12977 = vpow2.f32 %v7968_v7  ;;  %v12954_v37 = vpop.eup %12953  ;;  %8191 = vst.msk [vmem:[#allocation4 + $0x101] sm:$0x1] %vm3166_vm9, %v18298_v30  ;;  %v8102_v56 = vmul.f32 %v12952_v43, %v16940_v25  ;;  %v7972_v63 = vmul.f32 1.442695, %v7877_v54 }
 0x509   : > { %12979 = vrcp.f32 %v8011_v51  ;;  %v12956_v21 = vpop.eup %12955  ;;  %v8013_v0 = vadd.f32 1.0, %v12954_v37  ;;  %8544 = vrot.lane.b32.xlu1 %v8467_v38, %s13327_s11  ;;  %8542 = vrot.lane.b32.xlu0 %v8466_v15, %s13327_s11  ;;  %v8217_v22 = vld [vmem:[#allocation4 + $0xf8] sm:$0xff]  ;;  %v8279_v27 = vld [vmem:[#allocation4 + $0xe1] sm:$0xff] }
 0x50a   : > { %12981 = vrcp.f32 %v8014_v1  ;;  %v12958_v42 = vpop.eup %12957  ;;  %8150 = vst.msk [vmem:[#allocation4 + $0x118] sm:$0xff] %vm238_vm8, %v8102_v56  ;;  %v8016_v25 = vadd.f32 1.0, %v12956_v21  ;;  %8249 = vst.msk [vmem:[#allocation3 + $0xa8] sm:$0xff] %vm238_vm8, %v8217_v22  ;;  %v8471_v38 = vld [vmem:[#allocation4 + $0xe2] sm:$0xff]  ;;  %v8470_v37 = vld [vmem:[#allocation4 + $0xda] sm:$0xff] }
 0x50b   : > { %12983 = vpow2.f32 %v7972_v63  ;;  %v12960_v48 = vpop.eup %12959  ;;  %v8101_v39 = vmul.f32 %v12958_v42, %v16959_v59  ;;  %8192 = vst.msk [vmem:[#allocation4 + $0x119] sm:$0x1] %vm3166_vm9, %v18298_v30  ;;  %v8216_v10 = vld [vmem:[#allocation4 + $0xf0] sm:$0xff] }
 0x50c   : > { %12985 = vrcp.f32 %v8013_v0  ;;  %v12962_v12 = vpop.eup %12961  ;;  %v8104_v23 = vmul.f32 %v12960_v48, %v16971_v14  ;;  %v10942_v59 = vld [vmem:[%s18136_s3 + $0xb0] sm:$0xff]  ;;  %8248 = vst.msk [vmem:[#allocation3 + $0xa0] sm:$0xff] %vm238_vm8, %v8216_v10 }
 0x50d   : > { %12987 = vrcp.f32 %v8016_v25  ;;  %v12964_v28 = vpop.eup %12963  ;;  %8149 = vst.msk [vmem:[#allocation4 + $0x110] sm:$0xff] %vm238_vm8, %v8101_v39  ;;  %v8103_v47 = vmul.f32 %v12962_v12, %v16980_v34  ;;  %8354 = vrot.lane.b32.xlu0 %v8276_v24, %s13326_s17  ;;  %8356 = vrot.lane.b32.xlu1 %v8277_v3, %s13326_s17  ;;  %v8472_v22 = vld [vmem:[#allocation4 + $0xf2] sm:$0xff] }
 0x50e   : > { %v12966_v14 = vpop.eup %12965  ;;  %8152 = vst.msk [vmem:[#allocation4 + $0x128] sm:$0xff] %vm238_vm8, %v8104_v23  ;;  %v8015_v29 = vadd.f32 1.0, %v12964_v28  ;;  %12430 = vmatprep.subr.mxu0 %v10942_v59  ;;  %v8281_v49 = vld [vmem:[#allocation4 + $0xf9] sm:$0xff] }
 0x50f   : > { %v8218_v62 = vld [vmem:[#allocation4 + $0x108] sm:$0xff]  ;;  %v12968_v18 = vpop.eup %12967  ;;  %8151 = vst.msk [vmem:[#allocation4 + $0x120] sm:$0xff] %vm238_vm8, %v8103_v47  ;;  %v8106_v34 = vmul.f32 %v12966_v14, %v16983_v52  ;;  %12431 = vmatpush3.msra.mxu0 %v10942_v59  ;;  %v8473_v25 = vld [vmem:[#allocation4 + $0xfa] sm:$0xff] }
 0x510   : > { %8250 = vst.msk [vmem:[#allocation3 + $0xb0] sm:$0xff] %vm238_vm8, %v8218_v62  ;;  %v12970_v46 = vpop.eup %12969  ;;  %12989 = vrcp.f32 %v8015_v29  ;;  %v8018_v58 = vadd.f32 1.0, %v12968_v18  ;;  %12432 = vmatprep.subr.mxu0 %v10941_v36 }
 0x511   : > { %8177 = vst.msk [vmem:[#allocation4 + $0x120] sm:$0x1] %vm3166_vm9, %v18298_v30  ;;  %v8105_v4 = vmul.f32 %v12970_v46, %v16996_v53  ;;  %8546 = vrot.lane.b32.xlu0 %v8468_v40, %s13327_s11  ;;  %8548 = vrot.lane.b32.xlu1 %v8469_v13, %s13327_s11  ;;  %v10936_v46 = vld [vmem:[%s18136_s3 + $0x80] sm:$0xff] }
 0x512   : > { %v12972_v35 = vpop.eup %12971  ;;  %8154 = vst.msk [vmem:[#allocation4 + $0x138] sm:$0xff] %vm238_vm8, %v8106_v34  ;;  %12991 = vrcp.f32 %v8018_v58  ;;  %12433 = vmatpush3.msra.mxu0 %v10941_v36  ;;  %v17248_v36 = vld [vmem:[%s18137_s4] ss:$0 sm:$0xff] }
 0x513   : > { %v12974_v52 = vpop.eup %12973  ;;  %8178 = vst.msk [vmem:[#allocation4 + $0x138] sm:$0x1] %vm3166_vm9, %v18298_v30  ;;  %v8017_v20 = vadd.f32 1.0, %v12972_v35  ;;  %v10935_v35 = vld [vmem:[%s18136_s3 + $0x78] sm:$0xff] }
 0x514   : > { %v12976_v19 = vpop.eup %12975  ;;  %8153 = vst.msk [vmem:[#allocation4 + $0x130] sm:$0xff] %vm238_vm8, %v8105_v4  ;;  %v8108_v17 = vmul.f32 %v12974_v52, %v17007_v61  ;;  %v8219_v6 = vld [vmem:[#allocation4 + $0x110] sm:$0xff] }
 0x515   : > { %v12978_v53 = vpop.eup %12977  ;;  %8193 = vst.msk [vmem:[#allocation4 + $0x131] sm:$0x1] %vm3166_vm9, %v18298_v30  ;;  %12993 = vrcp.f32 %v8017_v20  ;;  %v8020_v26 = vadd.f32 1.0, %v12976_v19  ;;  %8360 = vrot.lane.b32.xlu1 %v8279_v27, %s13326_s17  ;;  %8358 = vrot.lane.b32.xlu0 %v8278_v41, %s13326_s17  ;;  %v8221_v61 = vld [vmem:[#allocation4 + $0x128] sm:$0xff]  ;;  %v8283_v28 = vld [vmem:[#allocation4 + $0x111] sm:$0xff]  ;;  %v4972_v20 = vld [vmem:[#allocation6] sm:$0xff] }
 0x516   : > { %v12980_v2 = vpop.eup %12979  ;;  %8156 = vst.msk [vmem:[#allocation4 + $0x148] sm:$0xff] %vm238_vm8, %v8108_v17  ;;  %v8019_v50 = vadd.f32 1.0, %v12978_v53  ;;  %8251 = vst.msk [vmem:[#allocation3 + $0xb8] sm:$0xff] %vm238_vm8, %v8219_v6  ;;  %v8282_v47 = vld [vmem:[#allocation4 + $0x109] sm:$0xff]  ;;  %v8475_v29 = vld [vmem:[#allocation4 + $0x112] sm:$0xff] }
 0x517   : > { %v12982_v9 = vpop.eup %12981  ;;  %v8107_v7 = vmul.f32 %v12980_v2, %v17013_v60  ;;  %8194 = vst.msk [vmem:[#allocation4 + $0x149] sm:$0x1] %vm3166_vm9, %v18298_v30  ;;  %12995 = vrcp.f32 %v8020_v26  ;;  %v10940_v60 = vld [vmem:[%s18136_s3 + $0xa0] sm:$0xff]  ;;  %v8474_v62 = vld [vmem:[#allocation4 + $0x10a] sm:$0xff]  ;;  %v5010_v26 = vadd.f32 %v17248_v36, %v4972_v20 }
 0x518   : > { %8253 = vst.msk [vmem:[#allocation3 + $0xc8] sm:$0xff] %vm238_vm8, %v8221_v61  ;;  %v12984_v44 = vpop.eup %12983  ;;  %v8110_v51 = vmul.f32 %v12982_v9, %v17024_v8  ;;  %12997 = vrcp.f32 %v8019_v50  ;;  %v8220_v54 = vld [vmem:[#allocation4 + $0x120] sm:$0xff]  ;;  %12434 = vmatprep.subr.mxu0 %v10940_v60  ;;  %v10934_v53 = vld [vmem:[%s18136_s3 + $0x70] sm:$0xff]  ;;  %v4973_v27 = vld [vmem:[#allocation6 + $0x8] sm:$0xff] }
 0x519   : > { %v12986_v43 = vpop.eup %12985  ;;  %8155 = vst.msk [vmem:[#allocation4 + $0x140] sm:$0xff] %vm238_vm8, %v8107_v7  ;;  %v8021_v1 = vadd.f32 1.0, %v12984_v44  ;;  %8252 = vst.msk [vmem:[#allocation3 + $0xc0] sm:$0xff] %vm238_vm8, %v8220_v54  ;;  %8552 = vrot.lane.b32.xlu1 %v8471_v38, %s13327_s11  ;;  %8550 = vrot.lane.b32.xlu0 %v8470_v37, %s13327_s11  ;;  %v8284_v18 = vld [vmem:[#allocation4 + $0x121] sm:$0xff]  ;;  %v5011_v50 = vadd.f32 %v17248_v36, %v4973_v27  ;;  %v4974_v7 = vld [vmem:[#allocation6 + $0x10] sm:$0xff] }
 0x51a   : > { %v12988_v56 = vpop.eup %12987  ;;  %8158 = vst.msk [vmem:[#allocation4 + $0x158] sm:$0xff] %vm238_vm8, %v8110_v51  ;;  %v8109_v63 = vmul.f32 %v12986_v43, %v17036_v45  ;;  %v8222_v8 = vld [vmem:[#allocation4 + $0x138] sm:$0xff]  ;;  %12435 = vmatpush3.msra.mxu0 %v10940_v60  ;;  %v8476_v40 = vld [vmem:[#allocation4 + $0x122] sm:$0xff]  ;;  %v5012_v37 = vadd.f32 %v17248_v36, %v4974_v7 }
 0x51b   : > { %v8112_v15 = vmul.f32 %v12988_v56, %v17045_v31  ;;  %12999 = vrcp.f32 %v8021_v1  ;;  %8254 = vst.msk [vmem:[#allocation3 + $0xd0] sm:$0xff] %vm238_vm8, %v8222_v8  ;;  %v8280_v45 = vld [vmem:[#allocation4 + $0xf1] sm:$0xff]  ;;  %v8285_v34 = vld [vmem:[#allocation4 + $0x129] sm:$0xff]  ;;  %v18299_v6 = vld [vmem:[#allocation10_spill] sm:$0xff] }
 0x51c   : > { %8157 = vst.msk [vmem:[#allocation4 + $0x150] sm:$0xff] %vm238_vm8, %v8109_v63  ;;  %v10939_v31 = vld [vmem:[%s18136_s3 + $0x98] sm:$0xff]  ;;  %v8477_v13 = vld [vmem:[#allocation4 + $0x12a] sm:$0xff]  ;;  %v17260_v61 = vadd.f32 %v5010_v26, %v18299_v6  ;;  %v10932_v1 = vld [vmem:[%s18136_s3 + $0x60] sm:$0xff] }
 0x51d   : > { %8179 = vst.msk [vmem:[#allocation4 + $0x150] sm:$0x1] %vm3166_vm9, %v18298_v30  ;;  %v12990_v11 = vpop.eup %12989  ;;  %8362 = vrot.lane.b32.xlu0 %v8280_v45, %s13326_s17  ;;  %8364 = vrot.lane.b32.xlu1 %v8281_v49, %s13326_s17  ;;  %v10933_v9 = vld [vmem:[%s18136_s3 + $0x68] sm:$0xff]  ;;  %v4988_v60 = vld [vmem:[#allocation6 + $0x80] sm:$0xff]  ;;  %v4975_v56 = vld [vmem:[#allocation6 + $0x18] sm:$0xff] }
 0x51e   : > { %8160 = vst.msk [vmem:[#allocation4 + $0x168] sm:$0xff] %vm238_vm8, %v8112_v15  ;;  %v8111_v21 = vmul.f32 %v12990_v11, %v17058_v55  ;;  %12436 = vmatprep.subr.mxu0 %v10939_v31  ;;  %v18300_v54 = vld [vmem:[#allocation11_spill] sm:$0xff]  ;;  %v5074_v38 = vsub.f32 0.0, %v17260_v61  ;;  %v5026_v45 = vadd.f32 %v17248_v36, %v4988_v60 }
 0x51f   : > { %8180 = vst.msk [vmem:[#allocation4 + $0x168] sm:$0x1] %vm3166_vm9, %v18298_v30  ;;  %v12992_v0 = vpop.eup %12991  ;;  %12437 = vmatpush3.msra.mxu0 %v10939_v31  ;;  %v17266_v43 = vadd.f32 %v5011_v50, %v18300_v54  ;;  %v4989_v49 = vld [vmem:[#allocation6 + $0x88] sm:$0xff]  ;;  %v18301_v31 = vld [vmem:[#allocation12_spill] sm:$0xff] }
 0x520   : > { %8159 = vst.msk [vmem:[#allocation4 + $0x160] sm:$0xff] %vm238_vm8, %v8111_v21  ;;  %v8114_v42 = vmul.f32 %v12992_v0, %v17074_v32  ;;  %v8223_v48 = vld [vmem:[#allocation4 + $0x140] sm:$0xff]  ;;  %v10938_v32 = vld [vmem:[%s18136_s3 + $0x90] sm:$0xff]  ;;  %v5106_v11 = vmul.f32 1.442695, %v5074_v38  ;;  %v17280_v21 = vadd.f32 %v5012_v37, %v18301_v31  ;;  %v5013_v0 = vadd.f32 %v17248_v36, %v4975_v56  ;;  %v18308_v38 = vld [vmem:[#allocation17_spill] sm:$0xff] }
 0x521   : > { %v8225_v39 = vld [vmem:[#allocation4 + $0x158] sm:$0xff]  ;;  %8195 = vst.msk [vmem:[#allocation4 + $0x161] sm:$0x1] %vm3166_vm9, %v18298_v30  ;;  %8554 = vrot.lane.b32.xlu0 %v8472_v22, %s13327_s11  ;;  %8556 = vrot.lane.b32.xlu1 %v8473_v25, %s13327_s11  ;;  %v8287_v4 = vld [vmem:[#allocation4 + $0x141] sm:$0xff]  ;;  %v5075_v15 = vsub.f32 0.0, %v17266_v43 }
 0x522   : > { %v12994_v12 = vpop.eup %12993  ;;  %8255 = vst.msk [vmem:[#allocation3 + $0xd8] sm:$0xff] %vm238_vm8, %v8223_v48  ;;  %8257 = vst.msk [vmem:[#allocation3 + $0xe8] sm:$0xff] %vm238_vm8, %v8225_v39  ;;  %12438 = vmatprep.subr.mxu0 %v10938_v32  ;;  %v8286_v52 = vld [vmem:[#allocation4 + $0x139] sm:$0xff]  ;;  %v8479_v19 = vld [vmem:[#allocation4 + $0x142] sm:$0xff]  ;;  %v5027_v48 = vadd.f32 %v17248_v36, %v4989_v49  ;;  %13001 = vpow2.f32 %v5106_v11 }
 0x523   : > { %8162 = vst.msk [vmem:[#allocation4 + $0x178] sm:$0xff] %vm238_vm8, %v8114_v42  ;;  %v8113_v55 = vmul.f32 %v12994_v12, %v17086_v16  ;;  %12439 = vmatpush3.msra.mxu0 %v10938_v32  ;;  %v8478_v17 = vld [vmem:[#allocation4 + $0x13a] sm:$0xff]  ;;  %v8288_v41 = vld [vmem:[#allocation4 + $0x151] sm:$0xff] }
 0x524   : > { %v12996_v23 = vpop.eup %12995  ;;  %8196 = vst.msk [vmem:[#allocation4 + $0x179] sm:$0x1] %vm3166_vm9, %v18298_v30  ;;  %v8224_v24 = vld [vmem:[#allocation4 + $0x150] sm:$0xff]  ;;  %v4976_v22 = vld [vmem:[#allocation6 + $0x20] sm:$0xff] }
 0x525   : > { %v12998_v3 = vpop.eup %12997  ;;  %8161 = vst.msk [vmem:[#allocation4 + $0x170] sm:$0xff] %vm238_vm8, %v8113_v55  ;;  %v8116_v10 = vmul.f32 %v12996_v23, %v17089_v57  ;;  %8256 = vst.msk [vmem:[#allocation3 + $0xe0] sm:$0xff] %vm238_vm8, %v8224_v24  ;;  %8368 = vrot.lane.b32.xlu1 %v8283_v28, %s13326_s17  ;;  %8366 = vrot.lane.b32.xlu0 %v8282_v47, %s13326_s17  ;;  %v8480_v44 = vld [vmem:[#allocation4 + $0x152] sm:$0xff]  ;;  %v5108_v55 = vmul.f32 1.442695, %v5075_v15  ;;  %v18302_v32 = vld [vmem:[#allocation26_spill] sm:$0xff]  ;;  %v5014_v47 = vadd.f32 %v17248_v36, %v4976_v22 }
 0x526   : > { %v8226_v16 = vld [vmem:[#allocation4 + $0x168] sm:$0xff]  ;;  %v8115_v59 = vmul.f32 %v12998_v3, %v17097_v33  ;;  %v17287_v23 = vadd.f32 %v5026_v45, %v18302_v32  ;;  %v5076_v3 = vsub.f32 0.0, %v17280_v21  ;;  %v18309_v11 = vld [vmem:[#allocation16_spill] sm:$0xff] }
 0x527   : > { %8258 = vst.msk [vmem:[#allocation3 + $0xf0] sm:$0xff] %vm238_vm8, %v8226_v16  ;;  %8164 = vst.msk [vmem:[#allocation4 + $0x188] sm:$0xff] %vm238_vm8, %v8116_v10  ;;  %v10937_v33 = vld [vmem:[%s18136_s3 + $0x88] sm:$0xff]  ;;  %v8289_v2 = vld [vmem:[#allocation4 + $0x159] sm:$0xff]  ;;  %13003 = vpow2.f32 %v5108_v55 }
 0x528   : > { %v13000_v14 = vpop.eup %12999  ;;  %8163 = vst.msk [vmem:[#allocation4 + $0x180] sm:$0xff] %vm238_vm8, %v8115_v59  ;;  %12440 = vmatprep.subr.mxu0 %v10937_v33  ;;  %v8481_v51 = vld [vmem:[#allocation4 + $0x15a] sm:$0xff]  ;;  %v4977_v24 = vld [vmem:[#allocation6 + $0x28] sm:$0xff]  ;;  %v4990_v16 = vld [vmem:[#allocation6 + $0x90] sm:$0xff] }
 0x529   : > { %8181 = vst.msk [vmem:[#allocation4 + $0x180] sm:$0x1] %vm3166_vm9, %v18298_v30  ;;  %v8117_v57 = vmul.f32 %v13000_v14, %v17109_v5  ;;  %8560 = vrot.lane.b32.xlu1 %v8475_v29, %s13327_s11  ;;  %8558 = vrot.lane.b32.xlu0 %v8474_v62, %s13327_s11  ;;  %v18303_v10 = vld [vmem:[#allocation13_spill] sm:$0xff]  ;;  %v5015_v62 = vadd.f32 %v17248_v36, %v4977_v24 }
 0x52a   : > { %12441 = vmatpush3.msra.mxu0 %v10937_v33  ;;  %v17293_v28 = vadd.f32 %v5013_v0, %v18303_v10  ;;  %v4979_v33 = vld [vmem:[#allocation6 + $0x38] sm:$0xff]  ;;  %v4980_v0 = vld [vmem:[#allocation6 + $0x40] sm:$0xff] }
 0x52b   : > { %8165 = vst.msk [vmem:[#allocation4 + $0x190] sm:$0xff] %vm238_vm8, %v8117_v57  ;;  %12442 = vmatprep.subr.mxu0 %v10936_v46  ;;  %v18304_v57 = vld [vmem:[#allocation27_spill] sm:$0xff]  ;;  %v5018_v24 = vadd.f32 %v17248_v36, %v4980_v0 }
 0x52c   : > { %8197 = vst.msk [vmem:[#allocation4 + $0x191] sm:$0x1] %vm3166_vm9, %v18298_v30  ;;  %v8227_v5 = vld [vmem:[#allocation4 + $0x170] sm:$0xff]  ;;  %12443 = vmatpush3.msra.mxu0 %v10936_v46  ;;  %v17297_v29 = vadd.f32 %v5027_v48, %v18304_v57  ;;  %v5028_v46 = vadd.f32 %v17248_v36, %v4990_v16 }
 0x52d   : > { %8370 = vrot.lane.b32.xlu0 %v8284_v18, %s13326_s17  ;;  %8372 = vrot.lane.b32.xlu1 %v8285_v34, %s13326_s17  ;;  %8259 = vst.msk [vmem:[#allocation3 + $0xf8] sm:$0xff] %vm238_vm8, %v8227_v5  ;;  %v8291_v63 = vld [vmem:[#allocation4 + $0x171] sm:$0xff]  ;;  %v8290_v8 = vld [vmem:[#allocation4 + $0x169] sm:$0xff]  ;;  %v5090_v5 = vsub.f32 0.0, %v17287_v23 }
 0x52e   : > { %v8229_v58 = vld [vmem:[#allocation4 + $0x188] sm:$0xff]  ;;  %12444 = vmatprep.subr.mxu0 %v10935_v35  ;;  %v8483_v39 = vld [vmem:[#allocation4 + $0x172] sm:$0xff] }
 0x52f   : > { %8261 = vst.msk [vmem:[#allocation3 + $0x108] sm:$0xff] %vm238_vm8, %v8229_v58  ;;  %12445 = vmatpush3.msra.mxu0 %v10935_v35  ;;  %v8482_v12 = vld [vmem:[#allocation4 + $0x16a] sm:$0xff]  ;;  %v8292_v18 = vld [vmem:[#allocation4 + $0x181] sm:$0xff]  ;;  %v5138_v6 = vmul.f32 1.442695, %v5090_v5  ;;  %v13002_v55 = vpop.eup %13001 }
 0x530   : > { %v8228_v30 = vld [vmem:[#allocation4 + $0x180] sm:$0xff]  ;;  %12446 = vmatprep.subr.mxu0 %v10934_v53  ;;  %v4978_v58 = vld [vmem:[#allocation6 + $0x30] sm:$0xff] }
 0x531   : > { %8260 = vst.msk [vmem:[#allocation3 + $0x100] sm:$0xff] %vm238_vm8, %v8228_v30  ;;  %8562 = vrot.lane.b32.xlu0 %v8476_v40, %s13327_s11  ;;  %8564 = vrot.lane.b32.xlu1 %v8477_v13, %s13327_s11  ;;  %v5110_v30 = vmul.f32 1.442695, %v5076_v3  ;;  %v5077_v40 = vsub.f32 0.0, %v17293_v28  ;;  %v18305_v13 = vld [vmem:[#allocation14_spill] sm:$0xff]  ;;  %v5016_v27 = vadd.f32 %v17248_v36, %v4978_v58  ;;  %v18311_v3 = vld [vmem:[#allocation19_spill] sm:$0xff] }
 0x532   : > { %12447 = vmatpush3.msra.mxu0 %v10934_v53  ;;  %v8293_v34 = vld [vmem:[#allocation4 + $0x189] sm:$0xff]  ;;  %v17308_v35 = vadd.f32 %v5014_v47, %v18305_v13 }
 0x533   : > { %12448 = vmatprep.subr.mxu0 %v10933_v9  ;;  %v18306_v53 = vld [vmem:[#allocation15_spill] sm:$0xff]  ;;  %13005 = vpow2.f32 %v5110_v30  ;;  %v17331_v31 = vadd.f32 %v5016_v27, %v18309_v11  ;;  %v4994_v5 = vld [vmem:[#allocation6 + $0xb0] sm:$0xff]  ;;  %v4983_v11 = vld [vmem:[#allocation6 + $0x58] sm:$0xff] }
 0x534   : > { %12449 = vmatpush3.msra.mxu0 %v10933_v9  ;;  %v17313_v26 = vadd.f32 %v5015_v62, %v18306_v53  ;;  %v8485_v50 = vld [vmem:[#allocation4 + $0x18a] sm:$0xff]  ;;  %v5078_v54 = vsub.f32 0.0, %v17308_v35  ;;  %13007 = vpow2.f32 %v5138_v6  ;;  %v13004_v58 = vpop.eup %13003 }
 0x535   : > { %8376 = vrot.lane.b32.xlu1 %v8287_v4, %s13326_s17  ;;  %8374 = vrot.lane.b32.xlu0 %v8286_v52, %s13326_s17  ;;  %v4991_v4 = vld [vmem:[#allocation6 + $0x98] sm:$0xff]  ;;  %v5017_v52 = vadd.f32 %v17248_v36, %v4979_v33  ;;  %v18307_v9 = vld [vmem:[#allocation28_spill] sm:$0xff]  ;;  %v18314_v27 = vld [vmem:[#allocation31_spill] sm:$0xff] }
 0x536   : > { %12450 = vmatprep.subr.mxu0 %v10932_v1  ;;  %v17319_v7 = vadd.f32 %v5028_v46, %v18307_v9  ;;  %v5079_v49 = vsub.f32 0.0, %v17313_v26  ;;  %v5170_v46 = vadd.f32 1.0, %v13002_v55  ;;  %v18316_v55 = vld [vmem:[#allocation20_spill] sm:$0xff] }
 0x537   : > { %12451 = vmatpush3.msra.mxu0 %v10932_v1  ;;  %v4992_v1 = vld [vmem:[#allocation6 + $0xa0] sm:$0xff]  ;;  %v17326_v37 = vadd.f32 %v5017_v52, %v18308_v38 }
 0x538   : > { %v5092_v22 = vsub.f32 0.0, %v17319_v7  ;;  %v5030_v48 = vadd.f32 %v17248_v36, %v4992_v1 }
 0x539   : > { %8568 = vrot.lane.b32.xlu1 %v8479_v19, %s13327_s11  ;;  %8566 = vrot.lane.b32.xlu0 %v8478_v17, %s13327_s11  ;;  %v5091_v17 = vsub.f32 0.0, %v17297_v29  ;;  %v5081_v32 = vsub.f32 0.0, %v17326_v37 }
 0x53a   : > { %v5142_v62 = vmul.f32 1.442695, %v5092_v22  ;;  %v4996_v22 = vld [vmem:[#allocation6 + $0xc0] sm:$0xff] }
 0x53b   : > { %v5140_v45 = vmul.f32 1.442695, %v5091_v17  ;;  %v5120_v30 = vmul.f32 1.442695, %v5081_v32 }
 0x53d   : > { %8378 = vrot.lane.b32.xlu0 %v8288_v41, %s13326_s17  ;;  %8380 = vrot.lane.b32.xlu1 %v8289_v2, %s13326_s17  ;;  %v4981_v41 = vld [vmem:[#allocation6 + $0x48] sm:$0xff] }
 0x53e   : > { %v8484_v2 = vld [vmem:[#allocation4 + $0x182] sm:$0xff]  ;;  %v5019_v60 = vadd.f32 %v17248_v36, %v4981_v41 }
 0x540   : > { %v17345_v10 = vadd.f32 %v5019_v60, %v18311_v3 }
 0x541   : > { %8570 = vrot.lane.b32.xlu0 %v8480_v44, %s13327_s11  ;;  %8572 = vrot.lane.b32.xlu1 %v8481_v51, %s13327_s11  ;;  %v5029_v44 = vadd.f32 %v17248_v36, %v4991_v4  ;;  %v5112_v51 = vmul.f32 1.442695, %v5077_v40  ;;  %v18313_v40 = vld [vmem:[#allocation18_spill] sm:$0xff] }
 0x542   : > { %v17356_v13 = vadd.f32 %v5018_v24, %v18313_v40  ;;  %v5083_v4 = vsub.f32 0.0, %v17345_v10  ;;  %v5021_v24 = vadd.f32 %v17248_v36, %v4983_v11  ;;  %v4984_v40 = vld [vmem:[#allocation6 + $0x60] sm:$0xff] }
 0x543   : > { %13009 = vpow2.f32 %v5112_v51  ;;  %v5171_v51 = vadd.f32 1.0, %v13004_v58 }
 0x544   : > { %13011 = vpow2.f32 %v5140_v45  ;;  %v5082_v1 = vsub.f32 0.0, %v17356_v13  ;;  %v5124_v38 = vmul.f32 1.442695, %v5083_v4 }
 0x545   : > { %8384 = vrot.lane.b32.xlu1 %v8291_v63, %s13326_s17  ;;  %8382 = vrot.lane.b32.xlu0 %v8290_v8, %s13326_s17 }
 0x546   : > { %v8329_v42 = vpop.permute.xlu1 %8328  ;;  %v8327_v25 = vpop.permute.xlu0 %8326 }
 0x547   : > { %8423 = vst.msk [vmem:[#allocation3 + $0x18] sm:$0xff] %vm3424_vm11, %v8329_v42  ;;  %8422 = vst.msk [vmem:[#allocation3 + $0x10] sm:$0xff] %vm3424_vm11, %v8327_v25  ;;  %v18310_v42 = vld [vmem:[#allocation29_spill] sm:$0xff] }
 0x548   : > { %v17338_v25 = vadd.f32 %v5029_v44, %v18310_v42  ;;  %v4995_v44 = vld [vmem:[#allocation6 + $0xb8] sm:$0xff] }
 0x549   : > { %8576 = vrot.lane.b32.xlu1 %v8483_v39, %s13327_s11  ;;  %8574 = vrot.lane.b32.xlu0 %v8482_v12, %s13327_s11  ;;  %v4993_v39 = vld [vmem:[#allocation6 + $0xa8] sm:$0xff]  ;;  %v5114_v12 = vmul.f32 1.442695, %v5078_v54  ;;  %v13006_v54 = vpop.eup %13005 }
 0x54a   : > { %v8521_v59 = vpop.permute.xlu1 %8520  ;;  %v8519_v14 = vpop.permute.xlu0 %8518  ;;  %v5031_v57 = vadd.f32 %v17248_v36, %v4993_v39  ;;  %v5093_v33 = vsub.f32 0.0, %v17338_v25 }
 0x54b   : > { %8615 = vst.msk [vmem:[#allocation3 + $0x18] sm:$0xff] %vm3617_vm12, %v8521_v59  ;;  %8614 = vst.msk [vmem:[#allocation3 + $0x10] sm:$0xff] %vm3617_vm12, %v8519_v14  ;;  %v5116_v59 = vmul.f32 1.442695, %v5079_v49  ;;  %v5080_v14 = vsub.f32 0.0, %v17331_v31  ;;  %13013 = vpow2.f32 %v5114_v12  ;;  %v5033_v49 = vadd.f32 %v17248_v36, %v4995_v44  ;;  %v13008_v42 = vpop.eup %13007  ;;  %v4985_v44 = vld [vmem:[#allocation6 + $0x68] sm:$0xff] }
 0x54c   : > { %v17360_v41 = vadd.f32 %v5031_v57, %v18314_v27  ;;  %v5144_v6 = vmul.f32 1.442695, %v5093_v33  ;;  %v5122_v12 = vmul.f32 1.442695, %v5082_v1  ;;  %v5022_v1 = vadd.f32 %v17248_v36, %v4984_v40  ;;  %v18322_v40 = vld [vmem:[#allocation23_spill] sm:$0xff] }
 0x54d   : > { %8386 = vrot.lane.b32.xlu0 %v8292_v18, %s13326_s17  ;;  %8388 = vrot.lane.b32.xlu1 %v8293_v34, %s13326_s17  ;;  %v18312_v18 = vld [vmem:[#allocation30_spill] sm:$0xff]  ;;  %13015 = vpow2.f32 %v5116_v59  ;;  %v5118_v53 = vmul.f32 1.442695, %v5080_v14 }
 0x54e   : > { %v8331_v20 = vpop.permute.xlu0 %8330  ;;  %v17353_v34 = vadd.f32 %v5030_v48, %v18312_v18  ;;  %13017 = vpow2.f32 %v5142_v62  ;;  %v5172_v48 = vadd.f32 1.0, %v13006_v54  ;;  %v18317_v62 = vld [vmem:[#allocation33_spill] sm:$0xff]  ;;  %v5034_v18 = vadd.f32 %v17248_v36, %v4996_v22 }
 0x54f   : > { %v8333_v19 = vpop.permute.xlu1 %8332  ;;  %8424 = vst.msk [vmem:[#allocation3 + $0x20] sm:$0xff] %vm3424_vm11, %v8331_v20  ;;  %13019 = vrcp.f32 %v5170_v46  ;;  %v17385_v33 = vadd.f32 %v5033_v49, %v18317_v62  ;;  %v5186_v46 = vadd.f32 1.0, %v13008_v42  ;;  %v18320_v49 = vld [vmem:[#allocation35_spill] sm:$0xff] }
 0x550   : > { %8425 = vst.msk [vmem:[#allocation3 + $0x28] sm:$0xff] %vm3424_vm11, %v8333_v19  ;;  %v5094_v9 = vsub.f32 0.0, %v17353_v34  ;;  %13021 = vpow2.f32 %v5120_v30  ;;  %v13010_v39 = vpop.eup %13009 }
 0x551   : > { %8578 = vrot.lane.b32.xlu0 %v8484_v2, %s13327_s11  ;;  %8580 = vrot.lane.b32.xlu1 %v8485_v50, %s13327_s11  ;;  %v5032_v2 = vadd.f32 %v17248_v36, %v4994_v5  ;;  %v4982_v50 = vld [vmem:[#allocation6 + $0x50] sm:$0xff]  ;;  %13023 = vpow2.f32 %v5118_v53  ;;  %v4997_v5 = vld [vmem:[#allocation6 + $0xc8] sm:$0xff]  ;;  %v13012_v58 = vpop.eup %13011  ;;  %v5173_v30 = vadd.f32 1.0, %v13010_v39 }
 0x552   : > { %v8523_v56 = vpop.permute.xlu0 %8522  ;;  %v8648_v8 = vld [vmem:[#allocation3 + $0x10] sm:$0xff]  ;;  %v8649_v15 = vld [vmem:[#allocation3 + $0x18] sm:$0xff]  ;;  %v5020_v60 = vadd.f32 %v17248_v36, %v4982_v50  ;;  %13025 = vpow2.f32 %v5144_v6  ;;  %v5146_v0 = vmul.f32 1.442695, %v5094_v9  ;;  %v5097_v50 = vsub.f32 0.0, %v17385_v33  ;;  %v18319_v6 = vld [vmem:[#allocation34_spill] sm:$0xff] }
 0x553   : > { %v8525_v63 = vpop.permute.xlu1 %8524  ;;  %8616 = vst.msk [vmem:[#allocation3 + $0x20] sm:$0xff] %vm3617_vm12, %v8523_v56  ;;  %12383 = vmatprep.mubr.msk.f32.mxu0 %vm246_vm10, %v8648_v8  ;;  %v5095_v8 = vsub.f32 0.0, %v17360_v41  ;;  %13027 = vrcp.f32 %v5171_v51  ;;  %v17401_v9 = vadd.f32 %v5034_v18, %v18319_v6  ;;  %v5187_v54 = vadd.f32 1.0, %v13012_v58 }
 0x554   : > { %8617 = vst.msk [vmem:[#allocation3 + $0x28] sm:$0xff] %vm3617_vm12, %v8525_v63  ;;  %12384 = vmatmul.mubr.msk.f32.gmra.mxu0 %vm246_vm10, %v8649_v15  ;;  %v18315_v15 = vld [vmem:[#allocation32_spill] sm:$0xff]  ;;  %13029 = vpow2.f32 %v5124_v38  ;;  %v17380_v32 = vadd.f32 %v5020_v60, %v18316_v55  ;;  %v5152_v55 = vmul.f32 1.442695, %v5097_v50 }
 0x555   : > { %v17374_v45 = vadd.f32 %v5032_v2, %v18315_v15  ;;  %v5148_v14 = vmul.f32 1.442695, %v5095_v8  ;;  %13031 = vpow2.f32 %v5146_v0  ;;  %v4998_v38 = vld [vmem:[#allocation6 + $0xd0] sm:$0xff]  ;;  %v5023_v0 = vadd.f32 %v17248_v36, %v4985_v44 }
 0x556   : > { %13033 = vrcp.f32 %v5172_v48 }
 0x557   : > { %v8337_v47 = vpop.permute.xlu1 %8336  ;;  %v8335_v16 = vpop.permute.xlu0 %8334  ;;  %v5096_v57 = vsub.f32 0.0, %v17374_v45  ;;  %13035 = vpow2.f32 %v5122_v12 }
 0x558   : > { %8427 = vst.msk [vmem:[#allocation3 + $0x38] sm:$0xff] %vm3424_vm11, %v8337_v47  ;;  %8426 = vst.msk [vmem:[#allocation3 + $0x30] sm:$0xff] %vm3424_vm11, %v8335_v16  ;;  %v13014_v4 = vpop.eup %13013  ;;  %13037 = vpow2.f32 %v5148_v14 }
 0x559   : > { %v5150_v2 = vmul.f32 1.442695, %v5096_v57  ;;  %13039 = vrcp.f32 %v5186_v46  ;;  %v4999_v57 = vld [vmem:[#allocation6 + $0xd8] sm:$0xff] }
 0x55a   : > { %v8650_v19 = vld [vmem:[#allocation3 + $0x20] sm:$0xff]  ;;  %v13016_v51 = vpop.eup %13015  ;;  %13041 = vrcp.f32 %v5173_v30  ;;  %v5037_v50 = vadd.f32 %v17248_v36, %v4999_v57 }
 0x55b   : > { %v8529_v52 = vpop.permute.xlu1 %8528  ;;  %v8527_v20 = vpop.permute.xlu0 %8526  ;;  %v8651_v17 = vld [vmem:[#allocation3 + $0x28] sm:$0xff]  ;;  %12386 = vmatprep.mubr.msk.f32.mxu0 %vm246_vm10, %v8650_v19  ;;  %12524 = vmatprep.mubr.msk.f32.mxu1 %vm246_vm10, %v8650_v19  ;;  %13043 = vpow2.f32 %v5150_v2  ;;  %v18323_v2 = vld [vmem:[#allocation36_spill] sm:$0xff] }
 0x55c   : > { %8619 = vst.msk [vmem:[#allocation3 + $0x38] sm:$0xff] %vm3617_vm12, %v8529_v52  ;;  %8618 = vst.msk [vmem:[#allocation3 + $0x30] sm:$0xff] %vm3617_vm12, %v8527_v20  ;;  %12387 = vmatmul.mubr.msk.f32.gmra.mxu0 %vm246_vm10, %v8651_v17  ;;  %12525 = vmatmul.mubr.msk.f32.vlgmr.msra.gmra.mxu1 %vm246_vm10, %v8651_v17  ;;  %v5084_v52 = vsub.f32 0.0, %v17380_v32  ;;  %v18318_v20 = vld [vmem:[#allocation21_spill] sm:$0xff]  ;;  %v5035_v17 = vadd.f32 %v17248_v36, %v4997_v5  ;;  %v13018_v60 = vpop.eup %13017  ;;  %13045 = vrcp.f32 %v5187_v54  ;;  %v5175_v5 = vadd.f32 1.0, %v13016_v51  ;;  %v5000_v51 = vld [vmem:[#allocation6 + $0xe0] sm:$0xff] }
 0x55d   : > { %v17396_v19 = vadd.f32 %v5021_v24, %v18318_v20  ;;  %v5098_v24 = vsub.f32 0.0, %v17401_v9 }
 0x55e   : > { %v5126_v8 = vmul.f32 1.442695, %v5084_v52  ;;  %v17408_v11 = vadd.f32 %v5035_v17, %v18320_v49  ;;  %v4986_v52 = vld [vmem:[#allocation6 + $0x70] sm:$0xff] }
 0x55f   : > { %v8339_v56 = vpop.permute.xlu0 %8338  ;;  %v8341_v63 = vpop.permute.xlu1 %8340  ;;  %v5085_v15 = vsub.f32 0.0, %v17396_v19 }
 0x560   : > { %8428 = vst.msk [vmem:[#allocation3 + $0x40] sm:$0xff] %vm3424_vm11, %v8339_v56  ;;  %8429 = vst.msk [vmem:[#allocation3 + $0x48] sm:$0xff] %vm3424_vm11, %v8341_v63  ;;  %v5174_v56 = vadd.f32 1.0, %v13014_v4  ;;  %v13020_v63 = vpop.eup %13019  ;;  %v5099_v30 = vsub.f32 0.0, %v17408_v11  ;;  %v17425_v4 = vadd.f32 %v5023_v0, %v18322_v40 }
 0x561   : > { %v13022_v22 = vpop.eup %13021  ;;  %v5234_v18 = vmul.f32 %v13020_v63, %v17260_v61  ;;  %v5128_v58 = vmul.f32 1.442695, %v5085_v15 }
 0x562   : > { %13047 = vrcp.f32 %v5174_v56  ;;  %v4987_v56 = vld [vmem:[#allocation6 + $0x78] sm:$0xff]  ;;  %v5156_v15 = vmul.f32 1.442695, %v5099_v30  ;;  %v5087_v49 = vsub.f32 0.0, %v17425_v4 }
 0x563   : > { %v8531_v3 = vpop.permute.xlu0 %8530  ;;  %v8533_v47 = vpop.permute.xlu1 %8532  ;;  %v8652_v16 = vld [vmem:[#allocation3 + $0x30] sm:$0xff]  ;;  %v8653_v59 = vld [vmem:[#allocation3 + $0x38] sm:$0xff]  ;;  %13049 = vpow2.f32 %v5126_v8  ;;  %v5177_v8 = vadd.f32 1.0, %v13022_v22 }
 0x564   : > { %8620 = vst.msk [vmem:[#allocation3 + $0x40] sm:$0xff] %vm3617_vm12, %v8531_v3  ;;  %8621 = vst.msk [vmem:[#allocation3 + $0x48] sm:$0xff] %vm3617_vm12, %v8533_v47  ;;  %12389 = vmatprep.mubr.msk.f32.mxu0 %vm246_vm10, %v8652_v16  ;;  %12527 = vmatprep.mubr.msk.f32.mxu1 %vm246_vm10, %v8652_v16  ;;  %v5036_v3 = vadd.f32 %v17248_v36, %v4998_v38  ;;  %v13024_v47 = vpop.eup %13023  ;;  %v5188_v16 = vadd.f32 1.0, %v13018_v60  ;;  %13051 = vpow2.f32 %v5152_v55  ;;  %v18324_v55 = vld [vmem:[#allocation37_spill] sm:$0xff]  ;;  %v5132_v40 = vmul.f32 1.442695, %v5087_v49 }
 0x565   : > { %12390 = vmatmul.mubr.msk.f32.gmra.mxu0 %vm246_vm10, %v8653_v59  ;;  %12528 = vmatmul.mubr.msk.f32.gmra.mxu1 %vm246_vm10, %v8653_v59  ;;  %v18321_v59 = vld [vmem:[#allocation22_spill] sm:$0xff]  ;;  %v13026_v62 = vpop.eup %13025  ;;  %v5176_v38 = vadd.f32 1.0, %v13024_v47  ;;  %v5024_v60 = vadd.f32 %v17248_v36, %v4986_v52 }
 0x566   : > { %v17418_v14 = vadd.f32 %v5022_v1, %v18321_v59  ;;  %v13028_v46 = vpop.eup %13027  ;;  %v17430_v61 = vadd.f32 %v5036_v3, %v18323_v2  ;;  %13053 = vrcp.f32 %v5188_v16  ;;  %v5189_v6 = vadd.f32 1.0, %v13026_v62  ;;  %v18326_v2 = vld [vmem:[#allocation38_spill] sm:$0xff] }
 0x567   : > { %v8345_v53 = vpop.permute.xlu1 %8344  ;;  %v8343_v27 = vpop.permute.xlu0 %8342  ;;  %v5235_v1 = vmul.f32 %v13028_v46, %v17266_v43  ;;  %13055 = vrcp.f32 %v5175_v5  ;;  %v5038_v3 = vadd.f32 %v17248_v36, %v5000_v51  ;;  %v5025_v16 = vadd.f32 %v17248_v36, %v4987_v56  ;;  %v5001_v46 = vld [vmem:[#allocation6 + $0xe8] sm:$0xff]  ;;  %v18327_v56 = vld [vmem:[#allocation25_spill] sm:$0xff] }
 0x568   : > { %8431 = vst.msk [vmem:[#allocation3 + $0x58] sm:$0xff] %vm3424_vm11, %v8345_v53  ;;  %8430 = vst.msk [vmem:[#allocation3 + $0x50] sm:$0xff] %vm3424_vm11, %v8343_v27  ;;  %v17427_v20 = vpop.eup %13029  ;;  %v5154_v27 = vmul.f32 1.442695, %v5098_v24  ;;  %v5086_v44 = vsub.f32 0.0, %v17418_v14  ;;  %13057 = vpow2.f32 %v5128_v58  ;;  %v5100_v43 = vsub.f32 0.0, %v17430_v61 }
 0x569   : > { %v13032_v54 = vpop.eup %13031  ;;  %v17441_v24 = vadd.f32 %v5037_v50, %v18324_v55  ;;  %v17457_v50 = vadd.f32 %v5038_v3, %v18326_v2  ;;  %v5039_v51 = vadd.f32 %v17248_v36, %v5001_v46  ;;  %v18328_v3 = vld [vmem:[#allocation39_spill] sm:$0xff] }
 0x56a   : > { %v13034_v63 = vpop.eup %13033  ;;  %13059 = vpow2.f32 %v5154_v27  ;;  %v5190_v22 = vadd.f32 1.0, %v13032_v54  ;;  %v5130_v62 = vmul.f32 1.442695, %v5086_v44  ;;  %v5002_v54 = vld [vmem:[#allocation6 + $0xf0] sm:$0xff] }
 0x56b   : > { %v8537_v42 = vpop.permute.xlu1 %8536  ;;  %v8535_v48 = vpop.permute.xlu0 %8534  ;;  %v8654_v39 = vld [vmem:[#allocation3 + $0x40] sm:$0xff]  ;;  %v8655_v12 = vld [vmem:[#allocation3 + $0x48] sm:$0xff]  ;;  %13061 = vrcp.f32 %v5189_v6  ;;  %v5236_v57 = vmul.f32 %v13034_v63, %v17280_v21  ;;  %v5101_v27 = vsub.f32 0.0, %v17441_v24  ;;  %v17466_v63 = vadd.f32 %v5025_v16, %v18327_v56 }
 0x56c   : > { %8623 = vst.msk [vmem:[#allocation3 + $0x58] sm:$0xff] %vm3617_vm12, %v8537_v42  ;;  %8622 = vst.msk [vmem:[#allocation3 + $0x50] sm:$0xff] %vm3617_vm12, %v8535_v48  ;;  %12392 = vmatprep.mubr.msk.f32.mxu0 %vm246_vm10, %v8654_v39  ;;  %12530 = vmatprep.mubr.msk.f32.mxu1 %vm246_vm10, %v8654_v39  ;;  %v13036_v0 = vpop.eup %13035  ;;  %13063 = vrcp.f32 %v5176_v38 }
 0x56d   : > { %12393 = vmatmul.mubr.msk.f32.gmra.mxu0 %vm246_vm10, %v8655_v12  ;;  %12531 = vmatmul.mubr.msk.f32.gmra.mxu1 %vm246_vm10, %v8655_v12  ;;  %v13038_v47 = vpop.eup %13037  ;;  %13065 = vrcp.f32 %v5177_v8  ;;  %v5178_v30 = vadd.f32 1.0, %v13036_v0 }
 0x56e   : > { %v13040_v59 = vpop.eup %13039  ;;  %13067 = vpow2.f32 %v5156_v15  ;;  %v5191_v44 = vadd.f32 1.0, %v13038_v47  ;;  %v5179_v15 = vadd.f32 1.0, %v17427_v20  ;;  %v17477_v47 = vadd.f32 %v5039_v51, %v18328_v3 }
 0x56f   : > { %v8347_v17 = vpop.permute.xlu0 %8346  ;;  %v8349_v53 = vpop.permute.xlu1 %8348  ;;  %5266 = vxpose.xlu0.b32.start [1/16] (narrow) %v5234_v18, 8  ;;  %v18325_v18 = vld [vmem:[#allocation24_spill] sm:$0xff]  ;;  %v5250_v6 = vmul.f32 %v13040_v59, %v17287_v23  ;;  %13069 = vrcp.f32 %v5190_v22 }
 0x570   : > { %8432 = vst.msk [vmem:[#allocation3 + $0x60] sm:$0xff] %vm3424_vm11, %v8347_v17  ;;  %8433 = vst.msk [vmem:[#allocation3 + $0x68] sm:$0xff] %vm3424_vm11, %v8349_v53  ;;  %v17453_v5 = vadd.f32 %v5024_v60, %v18325_v18  ;;  %v13042_v58 = vpop.eup %13041  ;;  %v5158_v53 = vmul.f32 1.442695, %v5100_v43  ;;  %13071 = vpow2.f32 %v5130_v62  ;;  %v5003_v62 = vld [vmem:[#allocation6 + $0xf8] sm:$0xff]  ;;  %v5103_v2 = vsub.f32 0.0, %v17477_v47 }
 0x571   : > { %v13044_v21 = vpop.eup %13043  ;;  %v5237_v38 = vmul.f32 %v13042_v58, %v17293_v28  ;;  %13073 = vrcp.f32 %v5178_v30  ;;  %v5102_v28 = vsub.f32 0.0, %v17457_v50 }
 0x572   : > { %v5088_v60 = vsub.f32 0.0, %v17453_v5  ;;  %13075 = vpow2.f32 %v5158_v53  ;;  %v5192_v55 = vadd.f32 1.0, %v13044_v21  ;;  %v18329_v53 = vld [vmem:[#allocation40_spill] sm:$0xff]  ;;  %v5041_v21 = vadd.f32 %v17248_v36, %v5003_v62 }
 0x573   : > { %v8539_v42 = vpop.permute.xlu0 %8538  ;;  %v8541_v48 = vpop.permute.xlu1 %8540  ;;  %5267 = vxpose.xlu0.b32.cont [2/16] (narrow) %v5235_v1, 8  ;;  %v8656_v39 = vld [vmem:[#allocation3 + $0x50] sm:$0xff]  ;;  %v8657_v12 = vld [vmem:[#allocation3 + $0x58] sm:$0xff] }
 0x574   : > { %8624 = vst.msk [vmem:[#allocation3 + $0x60] sm:$0xff] %vm3617_vm12, %v8539_v42  ;;  %8625 = vst.msk [vmem:[#allocation3 + $0x68] sm:$0xff] %vm3617_vm12, %v8541_v48  ;;  %12395 = vmatprep.mubr.msk.f32.mxu0 %vm246_vm10, %v8656_v39  ;;  %12533 = vmatprep.mubr.msk.f32.mxu1 %vm246_vm10, %v8656_v39  ;;  %v13046_v1 = vpop.eup %13045  ;;  %v5160_v39 = vmul.f32 1.442695, %v5101_v27  ;;  %13077 = vrcp.f32 %v5191_v44  ;;  %v5134_v59 = vmul.f32 1.442695, %v5088_v60 }
 0x575   : > { %12396 = vmatmul.mubr.msk.f32.gmra.mxu0 %vm246_vm10, %v8657_v12  ;;  %12534 = vmatmul.mubr.msk.f32.gmra.mxu1 %vm246_vm10, %v8657_v12  ;;  %v13048_v8 = vpop.eup %13047  ;;  %v5040_v12 = vadd.f32 %v17248_v36, %v5002_v54  ;;  %v5251_v20 = vmul.f32 %v13046_v1, %v17297_v29  ;;  %13079 = vpow2.f32 %v5132_v40 }
 0x576   : > { %v13050_v23 = vpop.eup %13049  ;;  %v5238_v16 = vmul.f32 %v13048_v8, %v17308_v35  ;;  %13081 = vrcp.f32 %v5179_v15 }
 0x577   : > { %v8353_v52 = vpop.permute.xlu1 %8352  ;;  %v8351_v17 = vpop.permute.xlu0 %8350  ;;  %5268 = vxpose.xlu0.b32.cont [3/16] (narrow) %v5236_v57, 8  ;;  %v5089_v57 = vsub.f32 0.0, %v17466_v63  ;;  %v5180_v29 = vadd.f32 1.0, %v13050_v23  ;;  %v17484_v27 = vadd.f32 %v5040_v12, %v18329_v53  ;;  %v5164_v23 = vmul.f32 1.442695, %v5103_v2 }
 0x578   : > { %8435 = vst.msk [vmem:[#allocation3 + $0x78] sm:$0xff] %vm3424_vm11, %v8353_v52  ;;  %8434 = vst.msk [vmem:[#allocation3 + $0x70] sm:$0xff] %vm3424_vm11, %v8351_v17  ;;  %v13052_v43 = vpop.eup %13051  ;;  %13083 = vpow2.f32 %v5160_v39  ;;  %v5162_v17 = vmul.f32 1.442695, %v5102_v28 }
 0x579   : > { %v13054_v22 = vpop.eup %13053  ;;  %v5193_v52 = vadd.f32 1.0, %v13052_v43  ;;  %13085 = vrcp.f32 %v5192_v55  ;;  %v5136_v51 = vmul.f32 1.442695, %v5089_v57  ;;  %v5104_v36 = vsub.f32 0.0, %v17484_v27 }
 0x57a   : > { %5298 = vxpose.xlu1.b32.start [1/16] (narrow) %v5250_v6, 8  ;;  %v13056_v18 = vpop.eup %13055  ;;  %v5252_v40 = vmul.f32 %v13054_v22, %v17319_v7  ;;  %13087 = vpow2.f32 %v5134_v59 }
 0x57b   : > { %v8545_v49 = vpop.permute.xlu1 %8544  ;;  %v8543_v0 = vpop.permute.xlu0 %8542  ;;  %5269 = vxpose.xlu0.b32.cont [4/16] (narrow) %v5237_v38, 8  ;;  %v8658_v42 = vld [vmem:[#allocation3 + $0x60] sm:$0xff]  ;;  %v8659_v48 = vld [vmem:[#allocation3 + $0x68] sm:$0xff]  ;;  %v5239_v44 = vmul.f32 %v13056_v18, %v17313_v26  ;;  %v5166_v22 = vmul.f32 1.442695, %v5104_v36 }
 0x57c   : > { %8627 = vst.msk [vmem:[#allocation3 + $0x78] sm:$0xff] %vm3617_vm12, %v8545_v49  ;;  %8626 = vst.msk [vmem:[#allocation3 + $0x70] sm:$0xff] %vm3617_vm12, %v8543_v0  ;;  %12398 = vmatprep.mubr.msk.f32.mxu0 %vm246_vm10, %v8658_v42  ;;  %12536 = vmatprep.mubr.msk.f32.mxu1 %vm246_vm10, %v8658_v42  ;;  %v13058_v46 = vpop.eup %13057  ;;  %13089 = vrcp.f32 %v5180_v29  ;;  %v18330_v49 = vld [vmem:[#allocation41_spill] sm:$0xff] }
 0x57d   : > { %12399 = vmatmul.mubr.msk.f32.gmra.mxu0 %vm246_vm10, %v8659_v48  ;;  %12537 = vmatmul.mubr.msk.f32.gmra.mxu1 %vm246_vm10, %v8659_v48  ;;  %v13060_v35 = vpop.eup %13059  ;;  %13091 = vrcp.f32 %v5193_v52  ;;  %v17505_v0 = vadd.f32 %v5041_v21, %v18330_v49  ;;  %v5181_v39 = vadd.f32 1.0, %v13058_v46 }
 0x57e   : > { %5299 = vxpose.xlu1.b32.cont [2/16] (narrow) %v5251_v20, 8  ;;  %v13062_v6 = vpop.eup %13061  ;;  %v5194_v8 = vadd.f32 1.0, %v13060_v35  ;;  %13093 = vpow2.f32 %v5162_v17 }
 0x57f   : > { %v8355_v58 = vpop.permute.xlu0 %8354  ;;  %v8357_v30 = vpop.permute.xlu1 %8356  ;;  %5270 = vxpose.xlu0.b32.cont [5/16] (narrow) %v5238_v16, 8  ;;  %v5253_v26 = vmul.f32 %v13062_v6, %v17338_v25 }
 0x580   : > { %8436 = vst.msk [vmem:[#allocation3 + $0x80] sm:$0xff] %vm3424_vm11, %v8355_v58  ;;  %8437 = vst.msk [vmem:[#allocation3 + $0x88] sm:$0xff] %vm3424_vm11, %v8357_v30  ;;  %v13064_v54 = vpop.eup %13063  ;;  %13095 = vpow2.f32 %v5136_v51 }
 0x581   : > { %v13066_v1 = vpop.eup %13065  ;;  %v5240_v48 = vmul.f32 %v13064_v54, %v17331_v31  ;;  %13097 = vrcp.f32 %v5194_v8  ;;  %v5105_v31 = vsub.f32 0.0, %v17505_v0 }
 0x582   : > { %5300 = vxpose.xlu1.b32.cont [3/16] (narrow) %v5252_v40, 8  ;;  %v13068_v15 = vpop.eup %13067  ;;  %13099 = vpow2.f32 %v5164_v23  ;;  %v5241_v59 = vmul.f32 %v13066_v1, %v17326_v37 }
 0x583   : > { %v8547_v38 = vpop.permute.xlu0 %8546  ;;  %v8549_v60 = vpop.permute.xlu1 %8548  ;;  %5271 = vxpose.xlu0.b32.cont [6/16] (narrow) %v5239_v44, 8  ;;  %v17492_v56 = vld [vmem:[#allocation3 + $0x70] sm:$0xff]  ;;  %v17494_v7 = vld [vmem:[#allocation3 + $0x78] sm:$0xff]  ;;  %v5195_v20 = vadd.f32 1.0, %v13068_v15  ;;  %v5168_v17 = vmul.f32 1.442695, %v5105_v31 }
 0x584   : > { %8628 = vst.msk [vmem:[#allocation3 + $0x80] sm:$0xff] %vm3617_vm12, %v8547_v38  ;;  %8629 = vst.msk [vmem:[#allocation3 + $0x88] sm:$0xff] %vm3617_vm12, %v8549_v60  ;;  %12401 = vmatprep.mubr.msk.f32.mxu0 %vm246_vm10, %v17492_v56  ;;  %12539 = vmatprep.mubr.msk.f32.mxu1 %vm246_vm10, %v17492_v56  ;;  %v13070_v42 = vpop.eup %13069  ;;  %13101 = vrcp.f32 %v5181_v39 }
 0x585   : > { %12402 = vmatmul.mubr.msk.f32.gmra.mxu0 %vm246_vm10, %v17494_v7  ;;  %12540 = vmatmul.mubr.msk.f32.gmra.mxu1 %vm246_vm10, %v17494_v7  ;;  %v13072_v28 = vpop.eup %13071  ;;  %v5254_v3 = vmul.f32 %v13070_v42, %v17353_v34  ;;  %13103 = vrcp.f32 %v5195_v20 }
 0x586   : > { %5301 = vxpose.xlu1.b32.cont [4/16] (narrow) %v5253_v26, 8  ;;  %v13074_v12 = vpop.eup %13073  ;;  %v5182_v57 = vadd.f32 1.0, %v13072_v28  ;;  %13105 = vpow2.f32 %v5166_v22 }
 0x587   : > { %v8361_v25 = vpop.permute.xlu1 %8360  ;;  %v8359_v43 = vpop.permute.xlu0 %8358  ;;  %5272 = vxpose.xlu0.b32.cont [7/16] (narrow) %v5240_v48, 8  ;;  %v5242_v35 = vmul.f32 %v13074_v12, %v17356_v13 }
 0x588   : > { %v13076_v55 = vpop.eup %13075  ;;  %8439 = vst.msk [vmem:[#allocation3 + $0x98] sm:$0xff] %vm3424_vm11, %v8361_v25  ;;  %8438 = vst.msk [vmem:[#allocation3 + $0x90] sm:$0xff] %vm3424_vm11, %v8359_v43  ;;  %13107 = vrcp.f32 %v5182_v57 }
 0x589   : > { %v13078_v16 = vpop.eup %13077  ;;  %v5196_v34 = vadd.f32 1.0, %v13076_v55 }
 0x58a   : > { %v13080_v62 = vpop.eup %13079  ;;  %5302 = vxpose.xlu1.b32.cont [5/16] (narrow) %v5254_v3, 8  ;;  %v5255_v37 = vmul.f32 %v13078_v16, %v17360_v41 }
 0x58b   : > { %v13082_v18 = vpop.eup %13081  ;;  %v8553_v29 = vpop.permute.xlu1 %8552  ;;  %5273 = vxpose.xlu0.b32.cont [8/16] (narrow) %v5241_v59, 8  ;;  %v17517_v58 = vld [vmem:[#allocation3 + $0x80] sm:$0xff]  ;;  %v17519_v30 = vld [vmem:[#allocation3 + $0x88] sm:$0xff]  ;;  %v5183_v40 = vadd.f32 1.0, %v13080_v62  ;;  %13109 = vrcp.f32 %v5196_v34 }
 0x58c   : > { %v8551_v46 = vpop.permute.xlu0 %8550  ;;  %v13084_v52 = vpop.eup %13083  ;;  %8631 = vst.msk [vmem:[#allocation3 + $0x98] sm:$0xff] %vm3617_vm12, %v8553_v29  ;;  %12404 = vmatprep.mubr.msk.f32.mxu0 %vm246_vm10, %v17517_v58  ;;  %12542 = vmatprep.mubr.msk.f32.mxu1 %vm246_vm10, %v17517_v58  ;;  %13111 = vpow2.f32 %v5168_v17  ;;  %v5243_v13 = vmul.f32 %v13082_v18, %v17345_v10 }
 0x58d   : > { %8630 = vst.msk [vmem:[#allocation3 + $0x90] sm:$0xff] %vm3617_vm12, %v8551_v46  ;;  %v13086_v53 = vpop.eup %13085  ;;  %12405 = vmatmul.mubr.msk.f32.gmra.mxu0 %vm246_vm10, %v17519_v30  ;;  %12543 = vmatmul.mubr.msk.f32.gmra.mxu1 %vm246_vm10, %v17519_v30  ;;  %v5197_v54 = vadd.f32 1.0, %v13084_v52  ;;  %13113 = vrcp.f32 %v5183_v40 }
 0x58e   : > { %v13088_v2 = vpop.eup %13087  ;;  %5303 = vxpose.xlu1.b32.cont [6/16] (narrow) %v5255_v37, 8  ;;  %v5256_v51 = vmul.f32 %v13086_v53, %v17374_v45 }
 0x58f   : > { %v13090_v21 = vpop.eup %13089  ;;  %v8365_v44 = vpop.permute.xlu1 %8364  ;;  %5274 = vxpose.xlu0.b32.cont [9/16] (narrow) %v5242_v35, 8  ;;  %v5184_v38 = vadd.f32 1.0, %v13088_v2  ;;  %13115 = vrcp.f32 %v5197_v54 }
 0x590   : > { %v8363_v6 = vpop.permute.xlu0 %8362  ;;  %v13092_v41 = vpop.eup %13091  ;;  %8441 = vst.msk [vmem:[#allocation3 + $0xa8] sm:$0xff] %vm3424_vm11, %v8365_v44  ;;  %v5244_v39 = vmul.f32 %v13090_v21, %v17380_v32 }
 0x591   : > { %8440 = vst.msk [vmem:[#allocation3 + $0xa0] sm:$0xff] %vm3424_vm11, %v8363_v6  ;;  %v13094_v1 = vpop.eup %13093  ;;  %v12382_v8 = vpop.f32.mrf.mxu0  ;;  %v5257_v10 = vmul.f32 %v13092_v41, %v17385_v33  ;;  %13117 = vrcp.f32 %v5184_v38 }
 0x592   : > { %v13096_v60 = vpop.eup %13095  ;;  %5304 = vxpose.xlu1.b32.cont [7/16] (narrow) %v5256_v51, 8  ;;  %9012 = vst.msk [vmem:[#allocation6 + $0x8] sm:$0xff] %vm354_vm5, %v12382_v8  ;;  %v5198_v49 = vadd.f32 1.0, %v13094_v1 }
 0x593   : > { %v8557_v15 = vpop.permute.xlu1 %8556  ;;  %5275 = vxpose.xlu0.b32.cont [10/16] (narrow) %v5243_v13, 8  ;;  %v17539_v23 = vld [vmem:[#allocation3 + $0x98] sm:$0xff]  ;;  %v13098_v45 = vpop.eup %13097  ;;  %v5185_v28 = vadd.f32 1.0, %v13096_v60 }
 0x594   : > { %v8555_v36 = vpop.permute.xlu0 %8554  ;;  %v17537_v26 = vld [vmem:[#allocation3 + $0x90] sm:$0xff]  ;;  %8633 = vst.msk [vmem:[#allocation3 + $0xa8] sm:$0xff] %vm3617_vm12, %v8557_v15  ;;  %v8852_v42 = vpop.f32.mrf.mxu0  ;;  %v5258_v20 = vmul.f32 %v13098_v45, %v17401_v9  ;;  %13119 = vrcp.f32 %v5198_v49 }
 0x595   : > { %8632 = vst.msk [vmem:[#allocation3 + $0xa0] sm:$0xff] %vm3617_vm12, %v8555_v36  ;;  %12407 = vmatprep.mubr.msk.f32.mxu0 %vm246_vm10, %v17537_v26  ;;  %12545 = vmatprep.mubr.msk.f32.mxu1 %vm246_vm10, %v17537_v26  ;;  %v13100_v48 = vpop.eup %13099  ;;  %13121 = vrcp.f32 %v5185_v28 }
 0x596   : > { %12408 = vmatmul.mubr.msk.f32.gmra.mxu0 %vm246_vm10, %v17539_v23  ;;  %12546 = vmatmul.mubr.msk.f32.gmra.mxu1 %vm246_vm10, %v17539_v23  ;;  %9011 = vst.msk [vmem:[#allocation6] sm:$0xff] %vm354_vm5, %v8852_v42  ;;  %v13102_v12 = vpop.eup %13101  ;;  %v5199_v55 = vadd.f32 1.0, %v13100_v48 }
 0x597   : > { %5305 = vxpose.xlu1.b32.cont [8/16] (narrow) %v5257_v10, 8  ;;  %v8369_v25 = vpop.permute.xlu1 %8368  ;;  %5276 = vxpose.xlu0.b32.cont [11/16] (narrow) %v5244_v39, 8  ;;  %v13104_v43 = vpop.eup %13103  ;;  %v5245_v32 = vmul.f32 %v13102_v12, %v17396_v19 }
 0x598   : > { %v8367_v33 = vpop.permute.xlu0 %8366  ;;  %8443 = vst.msk [vmem:[#allocation3 + $0xb8] sm:$0xff] %vm3424_vm11, %v8369_v25  ;;  %v13106_v3 = vpop.eup %13105  ;;  %v5259_v19 = vmul.f32 %v13104_v43, %v17408_v11  ;;  %13123 = vrcp.f32 %v5199_v55 }
 0x599   : > { %8442 = vst.msk [vmem:[#allocation3 + $0xb0] sm:$0xff] %vm3424_vm11, %v8367_v33  ;;  %v13108_v22 = vpop.eup %13107  ;;  %v5200_v9 = vadd.f32 1.0, %v13106_v3 }
 0x59a   : > { %v13110_v62 = vpop.eup %13109  ;;  %v5246_v29 = vmul.f32 %v13108_v22, %v17418_v14  ;;  %v9043_v22 = vld [vmem:[#allocation3 + $0x10] sm:$0xff] }
 0x59b   : > { %5306 = vxpose.xlu1.b32.cont [9/16] (narrow) %v5258_v20, 8  ;;  %v8561_v31 = vpop.permute.xlu1 %8560  ;;  %5277 = vxpose.xlu0.b32.cont [12/16] (narrow) %v5245_v32, 8  ;;  %v17561_v57 = vld [vmem:[#allocation3 + $0xa8] sm:$0xff]  ;;  %v13112_v18 = vpop.eup %13111  ;;  %v5260_v11 = vmul.f32 %v13110_v62, %v17430_v61  ;;  %13125 = vrcp.f32 %v5200_v9  ;;  %v9534_v9 = vld [vmem:[#allocation3 + $0x110] sm:$0xff] }
 0x59c   : > { %v8559_v16 = vpop.permute.xlu0 %8558  ;;  %v17559_v59 = vld [vmem:[#allocation3 + $0xa0] sm:$0xff]  ;;  %8635 = vst.msk [vmem:[#allocation3 + $0xb8] sm:$0xff] %vm3617_vm12, %v8561_v31  ;;  %v13114_v46 = vpop.eup %13113  ;;  %v5201_v37 = vadd.f32 1.0, %v13112_v18  ;;  %v9044_v31 = vld [vmem:[#allocation3 + $0x18] sm:$0xff]  ;;  %v9046_v18 = vld [vmem:[#allocation3 + $0x28] sm:$0xff] }
 0x59d   : > { %8634 = vst.msk [vmem:[#allocation3 + $0xb0] sm:$0xff] %vm3617_vm12, %v8559_v16  ;;  %12410 = vmatprep.mubr.msk.f32.mxu0 %vm246_vm10, %v17559_v59  ;;  %12548 = vmatprep.mubr.msk.f32.mxu1 %vm246_vm10, %v17559_v59  ;;  %v13116_v17 = vpop.eup %13115  ;;  %v5247_v53 = vmul.f32 %v13114_v46, %v17425_v4  ;;  %v9045_v16 = vld [vmem:[#allocation3 + $0x20] sm:$0xff]  ;;  %v9535_v46 = vld [vmem:[#allocation3 + $0x118] sm:$0xff] }
 0x59e   : > { %12411 = vmatmul.mubr.msk.f32.gmra.mxu0 %vm246_vm10, %v17561_v57  ;;  %12549 = vmatmul.mubr.msk.f32.gmra.mxu1 %vm246_vm10, %v17561_v57  ;;  %v13118_v35 = vpop.eup %13117  ;;  %v5261_v4 = vmul.f32 %v13116_v17, %v17441_v24  ;;  %13127 = vrcp.f32 %v5201_v37  ;;  %v9051_v37 = vld [vmem:[#allocation3 + $0x50] sm:$0xff]  ;;  %v9052_v17 = vld [vmem:[#allocation3 + $0x58] sm:$0xff] }
 0x59f   : > { %5307 = vxpose.xlu1.b32.cont [10/16] (narrow) %v5259_v19, 8  ;;  %v8373_v52 = vpop.permute.xlu1 %8372  ;;  %5278 = vxpose.xlu0.b32.cont [13/16] (narrow) %v5246_v29, 8  ;;  %v5248_v6 = vmul.f32 %v13118_v35, %v17453_v5  ;;  %v9047_v29 = vld [vmem:[#allocation3 + $0x30] sm:$0xff]  ;;  %v9054_v35 = vld [vmem:[#allocation3 + $0x68] sm:$0xff] }
 0x5a0   : > { %v8371_v34 = vpop.permute.xlu0 %8370  ;;  %8445 = vst.msk [vmem:[#allocation3 + $0xc8] sm:$0xff] %vm3424_vm11, %v8373_v52  ;;  %v9049_v52 = vld [vmem:[#allocation3 + $0x40] sm:$0xff] }
 0x5a1   : > { %8444 = vst.msk [vmem:[#allocation3 + $0xc0] sm:$0xff] %vm3424_vm11, %v8371_v34  ;;  %v13120_v61 = vpop.eup %13119  ;;  %v9048_v34 = vld [vmem:[#allocation3 + $0x38] sm:$0xff] }
 0x5a2   : > { %v13122_v44 = vpop.eup %13121  ;;  %v5262_v24 = vmul.f32 %v13120_v61, %v17457_v50 }
 0x5a3   : > { %5308 = vxpose.xlu1.b32.cont [11/16] (narrow) %v5260_v11, 8  ;;  %v8565_v14 = vpop.permute.xlu1 %8564  ;;  %5279 = vxpose.xlu0.b32.cont [14/16] (narrow) %v5247_v53, 8  ;;  %v17581_v21 = vld [vmem:[#allocation3 + $0xb8] sm:$0xff]  ;;  %v5249_v1 = vmul.f32 %v13122_v44, %v17466_v63  ;;  %v9050_v11 = vld [vmem:[#allocation3 + $0x48] sm:$0xff]  ;;  %v9053_v53 = vld [vmem:[#allocation3 + $0x60] sm:$0xff] }
 0x5a4   : > { %v8563_v40 = vpop.permute.xlu0 %8562  ;;  %v17579_v2 = vld [vmem:[#allocation3 + $0xb0] sm:$0xff]  ;;  %8637 = vst.msk [vmem:[#allocation3 + $0xc8] sm:$0xff] %vm3617_vm12, %v8565_v14 }
 0x5a5   : > { %8636 = vst.msk [vmem:[#allocation3 + $0xc0] sm:$0xff] %vm3617_vm12, %v8563_v40  ;;  %12413 = vmatprep.mubr.msk.f32.mxu0 %vm246_vm10, %v17579_v2  ;;  %12551 = vmatprep.mubr.msk.f32.mxu1 %vm246_vm10, %v17579_v2  ;;  %v13124_v54 = vpop.eup %13123 }
 0x5a6   : > { %12414 = vmatmul.mubr.msk.f32.gmra.mxu0 %vm246_vm10, %v17581_v21  ;;  %12552 = vmatmul.mubr.msk.f32.gmra.mxu1 %vm246_vm10, %v17581_v21  ;;  %v5263_v50 = vmul.f32 %v13124_v54, %v17477_v47 }
 0x5a7   : > { %5309 = vxpose.xlu1.b32.cont [12/16] (narrow) %v5261_v4, 8  ;;  %v8377_v41 = vpop.permute.xlu1 %8376  ;;  %5280 = vxpose.xlu0.b32.cont [15/16] (narrow) %v5248_v6, 8 }
 0x5a8   : > { %v8375_v51 = vpop.permute.xlu0 %8374  ;;  %8447 = vst.msk [vmem:[#allocation3 + $0xd8] sm:$0xff] %vm3424_vm11, %v8377_v41  ;;  %v13126_v63 = vpop.eup %13125 }
 0x5a9   : > { %8446 = vst.msk [vmem:[#allocation3 + $0xd0] sm:$0xff] %vm3424_vm11, %v8375_v51  ;;  %v5264_v15 = vmul.f32 %v13126_v63, %v17484_v27 }
 0x5ab   : > { %5310 = vxpose.xlu1.b32.cont [13/16] (narrow) %v5262_v24, 8  ;;  %v8569_v13 = vpop.permute.xlu1 %8568  ;;  %5281 = vxpose.xlu0.b32.end [16/16] (narrow) %v5249_v1, 8  ;;  %v17601_v5 = vld [vmem:[#allocation3 + $0xc8] sm:$0xff]  ;;  %v13128_v45 = vpop.eup %13127 }
 0x5ac   : > { %v8567_v38 = vpop.permute.xlu0 %8566  ;;  %v17599_v60 = vld [vmem:[#allocation3 + $0xc0] sm:$0xff]  ;;  %8639 = vst.msk [vmem:[#allocation3 + $0xd8] sm:$0xff] %vm3617_vm12, %v8569_v13  ;;  %v5265_v27 = vmul.f32 %v13128_v45, %v17505_v0 }
 0x5ad   : > { %8638 = vst.msk [vmem:[#allocation3 + $0xd0] sm:$0xff] %vm3617_vm12, %v8567_v38  ;;  %12416 = vmatprep.mubr.msk.f32.mxu0 %vm246_vm10, %v17599_v60  ;;  %12554 = vmatprep.mubr.msk.f32.mxu1 %vm246_vm10, %v17599_v60 }
 0x5ae   : > { %12417 = vmatmul.mubr.msk.f32.gmra.mxu0 %vm246_vm10, %v17601_v5  ;;  %12555 = vmatmul.mubr.msk.f32.gmra.mxu1 %vm246_vm10, %v17601_v5 }
 0x5af   : > { %5311 = vxpose.xlu1.b32.cont [14/16] (narrow) %v5263_v50, 8  ;;  %v8381_v36 = vpop.permute.xlu1 %8380 }
 0x5b0   : > { %v8379_v8 = vpop.permute.xlu0 %8378  ;;  %8449 = vst.msk [vmem:[#allocation3 + $0xe8] sm:$0xff] %vm3424_vm11, %v8381_v36 }
 0x5b1   : > { %8448 = vst.msk [vmem:[#allocation3 + $0xe0] sm:$0xff] %vm3424_vm11, %v8379_v8 }
 0x5b3   : > { %5312 = vxpose.xlu1.b32.cont [15/16] (narrow) %v5264_v15, 8  ;;  %v8573_v47 = vpop.permute.xlu1 %8572  ;;  %v17619_v42 = vld [vmem:[#allocation3 + $0xd8] sm:$0xff] }
 0x5b4   : > { %v8571_v10 = vpop.permute.xlu0 %8570  ;;  %v17617_v49 = vld [vmem:[#allocation3 + $0xd0] sm:$0xff]  ;;  %8641 = vst.msk [vmem:[#allocation3 + $0xe8] sm:$0xff] %vm3617_vm12, %v8573_v47 }
 0x5b5   : > { %8640 = vst.msk [vmem:[#allocation3 + $0xe0] sm:$0xff] %vm3617_vm12, %v8571_v10  ;;  %12419 = vmatprep.mubr.msk.f32.mxu0 %vm246_vm10, %v17617_v49  ;;  %12557 = vmatprep.mubr.msk.f32.mxu1 %vm246_vm10, %v17617_v49 }
 0x5b6   : > { %12420 = vmatmul.mubr.msk.f32.gmra.mxu0 %vm246_vm10, %v17619_v42  ;;  %12558 = vmatmul.mubr.msk.f32.gmra.mxu1 %vm246_vm10, %v17619_v42 }
 0x5b7   : > { %5313 = vxpose.xlu1.b32.end [16/16] (narrow) %v5265_v27, 8  ;;  %v8385_v48 = vpop.permute.xlu1 %8384 }
 0x5b8   : > { %v8383_v39 = vpop.permute.xlu0 %8382  ;;  %8451 = vst.msk [vmem:[#allocation3 + $0xf8] sm:$0xff] %vm3424_vm11, %v8385_v48 }
 0x5b9   : > { %8450 = vst.msk [vmem:[#allocation3 + $0xf0] sm:$0xff] %vm3424_vm11, %v8383_v39 }
 0x5bb   : > { %v8577_v28 = vpop.permute.xlu1 %8576  ;;  %v17636_v33 = vld [vmem:[#allocation3 + $0xe8] sm:$0xff] }
 0x5bc   : > { %v8575_v12 = vpop.permute.xlu0 %8574  ;;  %v17634_v25 = vld [vmem:[#allocation3 + $0xe0] sm:$0xff]  ;;  %8643 = vst.msk [vmem:[#allocation3 + $0xf8] sm:$0xff] %vm3617_vm12, %v8577_v28 }
 0x5bd   : > { %8642 = vst.msk [vmem:[#allocation3 + $0xf0] sm:$0xff] %vm3617_vm12, %v8575_v12  ;;  %12422 = vmatprep.mubr.msk.f32.mxu0 %vm246_vm10, %v17634_v25  ;;  %12560 = vmatprep.mubr.msk.f32.mxu1 %vm246_vm10, %v17634_v25 }
 0x5be   : > { %12423 = vmatmul.mubr.msk.f32.gmra.mxu0 %vm246_vm10, %v17636_v33  ;;  %12561 = vmatmul.mubr.msk.f32.gmra.mxu1 %vm246_vm10, %v17636_v33 }
 0x5bf   : > { %v8389_v43 = vpop.permute.xlu1 %8388 }
 0x5c0   : > { %v8387_v0 = vpop.permute.xlu0 %8386  ;;  %8453 = vst.msk [vmem:[#allocation3 + $0x108] sm:$0xff] %vm3424_vm11, %v8389_v43  ;;  %v9408_v43 = vld [vmem:[#allocation6] sm:$0xff] }
 0x5c1   : > { %8452 = vst.msk [vmem:[#allocation3 + $0x100] sm:$0xff] %vm3424_vm11, %v8387_v0 }
 0x5c3   : > { %v8581_v55 = vpop.permute.xlu1 %8580  ;;  %v8677_v32 = vld [vmem:[#allocation3 + $0xf8] sm:$0xff] }
 0x5c4   : > { %v8579_v20 = vpop.permute.xlu0 %8578  ;;  %v8676_v3 = vld [vmem:[#allocation3 + $0xf0] sm:$0xff]  ;;  %8645 = vst.msk [vmem:[#allocation3 + $0x108] sm:$0xff] %vm3617_vm12, %v8581_v55 }
 0x5c5   : > { %8644 = vst.msk [vmem:[#allocation3 + $0x100] sm:$0xff] %vm3617_vm12, %v8579_v20  ;;  %12425 = vmatprep.mubr.msk.f32.mxu0 %vm246_vm10, %v8676_v3  ;;  %12563 = vmatprep.mubr.msk.f32.mxu1 %vm246_vm10, %v8676_v3 }
 0x5c6   : > { %12426 = vmatmul.mubr.msk.f32.gmra.mxu0 %vm246_vm10, %v8677_v32  ;;  %12564 = vmatmul.mubr.msk.f32.gmra.mxu1 %vm246_vm10, %v8677_v32 }
 0x5c7   : > { %12452 = vmatprep.mubr.msk.f32.mxu0 %vm246_vm10, %v9043_v22 }
 0x5ca   : > { %12453 = vmatmul.mubr.msk.f32.vlgmr.msra.gmra.mxu0 %vm246_vm10, %v9044_v31 }
 0x5cb   : > { %12455 = vmatprep.mubr.msk.f32.mxu0 %vm246_vm10, %v9045_v16  ;;  %v9533_v19 = vld [vmem:[#allocation3 + $0x108] sm:$0xff] }
 0x5cc   : > { %v9532_v62 = vld [vmem:[#allocation3 + $0x100] sm:$0xff] }
 0x5cd   : > { %12566 = vmatprep.mubr.msk.f32.mxu1 %vm246_vm10, %v9532_v62 }
 0x5ce   : > { %12456 = vmatmul.mubr.msk.f32.gmra.mxu0 %vm246_vm10, %v9046_v18  ;;  %12567 = vmatmul.mubr.msk.f32.gmra.mxu1 %vm246_vm10, %v9533_v19 }
 0x5cf   : > { %12458 = vmatprep.mubr.msk.f32.mxu0 %vm246_vm10, %v9047_v29  ;;  %12569 = vmatprep.mubr.msk.f32.mxu1 %vm246_vm10, %v9534_v9 }
 0x5d2   : > { %12459 = vmatmul.mubr.msk.f32.gmra.mxu0 %vm246_vm10, %v9048_v34  ;;  %12570 = vmatmul.mubr.msk.f32.gmra.mxu1 %vm246_vm10, %v9535_v46 }
 0x5d3   : > { %12461 = vmatprep.mubr.msk.f32.mxu0 %vm246_vm10, %v9049_v52 }
 0x5d6   : > { %12462 = vmatmul.mubr.msk.f32.gmra.mxu0 %vm246_vm10, %v9050_v11 }
 0x5d7   : > { %12464 = vmatprep.mubr.msk.f32.mxu0 %vm246_vm10, %v9051_v37 }
 0x5da   : > { %12465 = vmatmul.mubr.msk.f32.gmra.mxu0 %vm246_vm10, %v9052_v17 }
 0x5db   : > { %12467 = vmatprep.mubr.msk.f32.mxu0 %vm246_vm10, %v9053_v53 }
 0x5de   : > { %12468 = vmatmul.mubr.msk.f32.gmra.mxu0 %vm246_vm10, %v9054_v35 }
 0x5df   : > { %12470 = vmatprep.mubr.msk.f32.mxu0 %vm246_vm10, %v17492_v56 }
 0x5e2   : > { %12471 = vmatmul.mubr.msk.f32.gmra.mxu0 %vm246_vm10, %v17494_v7 }
 0x5e3   : > { %12473 = vmatprep.mubr.msk.f32.mxu0 %vm246_vm10, %v17517_v58 }
 0x5e6   : > { %12474 = vmatmul.mubr.msk.f32.gmra.mxu0 %vm246_vm10, %v17519_v30 }
 0x5e7   : > { %12476 = vmatprep.mubr.msk.f32.mxu0 %vm246_vm10, %v17537_v26 }
 0x5ea   : > { %12477 = vmatmul.mubr.msk.f32.gmra.mxu0 %vm246_vm10, %v17539_v23 }
 0x5eb   : > { %12479 = vmatprep.mubr.msk.f32.mxu0 %vm246_vm10, %v17559_v59 }
 0x5ee   : > { %12480 = vmatmul.mubr.msk.f32.gmra.mxu0 %vm246_vm10, %v17561_v57 }
 0x5ef   : > { %12482 = vmatprep.mubr.msk.f32.mxu0 %vm246_vm10, %v17579_v2 }
 0x5f2   : > { %12483 = vmatmul.mubr.msk.f32.gmra.mxu0 %vm246_vm10, %v17581_v21 }
 0x5f3   : > { %12485 = vmatprep.mubr.msk.f32.mxu0 %vm246_vm10, %v17599_v60 }
 0x5f6   : > { %12486 = vmatmul.mubr.msk.f32.gmra.mxu0 %vm246_vm10, %v17601_v5 }
 0x5f7   : > { %12488 = vmatprep.mubr.msk.f32.mxu0 %vm246_vm10, %v17617_v49 }
 0x5fa   : > { %12489 = vmatmul.mubr.msk.f32.gmra.mxu0 %vm246_vm10, %v17619_v42 }
 0x5fb   : > { %12491 = vmatprep.mubr.msk.f32.mxu0 %vm246_vm10, %v17634_v25  ;;  %v9409_v25 = vld [vmem:[#allocation6 + $0x8] sm:$0xff] }
 0x5fe   : > { %12492 = vmatmul.mubr.msk.f32.gmra.mxu0 %vm246_vm10, %v17636_v33 }
 0x5ff   : > { %12494 = vmatprep.mubr.msk.f32.mxu0 %vm246_vm10, %v8676_v3 }
 0x602   : > { %12495 = vmatmul.mubr.msk.f32.gmra.mxu0 %vm246_vm10, %v8677_v32 }
 0x603   : > { %12497 = vmatprep.mubr.msk.f32.mxu0 %vm246_vm10, %v9532_v62 }
 0x606   : > { %12498 = vmatmul.mubr.msk.f32.gmra.mxu0 %vm246_vm10, %v9533_v19 }
 0x614   : > { %v12385_v56 = vpop.f32.mrf.mxu0 }
 0x615   : > { %9014 = vst.msk [vmem:[#allocation6 + $0x18] sm:$0xff] %vm354_vm5, %v12385_v56 }
 0x616   : > { %v8862_v7 = vpop.f32.mrf.mxu0 }
 0x617   : > { %9013 = vst.msk [vmem:[#allocation6 + $0x10] sm:$0xff] %vm354_vm5, %v8862_v7 }
 0x61c   : > { %v12388_v58 = vpop.f32.mrf.mxu0  ;;  %v12526_v5 = vpop.f32.mrf.mxu1  ;;  %v9411_v32 = vld [vmem:[#allocation6 + $0x18] sm:$0xff] }
 0x61d   : > { %9016 = vst.msk [vmem:[#allocation6 + $0x28] sm:$0xff] %vm354_vm5, %v12388_v58 }
 0x61e   : > { %v8872_v30 = vpop.f32.mrf.mxu0  ;;  %v9710_v50 = vpop.f32.mrf.mxu1  ;;  %v9410_v62 = vld [vmem:[#allocation6 + $0x10] sm:$0xff] }
 0x61f   : > { %9015 = vst.msk [vmem:[#allocation6 + $0x20] sm:$0xff] %vm354_vm5, %v8872_v30 }
 0x624   : > { %v9413_v18 = vld [vmem:[#allocation6 + $0x28] sm:$0xff] }
 0x625   : > { %v12391_v26 = vpop.f32.mrf.mxu0  ;;  %v12529_v8 = vpop.f32.mrf.mxu1 }
 0x626   : > { %9018 = vst.msk [vmem:[#allocation6 + $0x38] sm:$0xff] %vm354_vm5, %v12391_v26  ;;  %v9412_v11 = vld [vmem:[#allocation6 + $0x20] sm:$0xff] }
 0x627   : > { %v8882_v23 = vpop.f32.mrf.mxu0  ;;  %v9720_v15 = vpop.f32.mrf.mxu1 }
 0x628   : > { %9017 = vst.msk [vmem:[#allocation6 + $0x30] sm:$0xff] %vm354_vm5, %v8882_v23 }
 0x62d   : > { %v12394_v59 = vpop.f32.mrf.mxu0  ;;  %v17734_v45 = vpop.f32.mrf.mxu1  ;;  %v9415_v7 = vld [vmem:[#allocation6 + $0x38] sm:$0xff] }
 0x62e   : > { %9020 = vst.msk [vmem:[#allocation6 + $0x48] sm:$0xff] %vm354_vm5, %v12394_v59 }
 0x62f   : > { %v8892_v57 = vpop.f32.mrf.mxu0  ;;  %v17738_v49 = vpop.f32.mrf.mxu1  ;;  %v9414_v59 = vld [vmem:[#allocation6 + $0x30] sm:$0xff] }
 0x630   : > { %9019 = vst.msk [vmem:[#allocation6 + $0x40] sm:$0xff] %vm354_vm5, %v8892_v57 }
 0x635   : > { %v12397_v40 = vpop.f32.mrf.mxu0  ;;  %v17740_v42 = vpop.f32.mrf.mxu1 }
 0x636   : > { %9022 = vst.msk [vmem:[#allocation6 + $0x58] sm:$0xff] %vm354_vm5, %v12397_v40 }
 0x637   : > { %v8902_v14 = vpop.f32.mrf.mxu0  ;;  %v17743_v48 = vpop.f32.mrf.mxu1 }
 0x638   : > { %9021 = vst.msk [vmem:[#allocation6 + $0x50] sm:$0xff] %vm354_vm5, %v8902_v14 }
 0x63d   : > { %v12400_v2 = vpop.f32.mrf.mxu0  ;;  %v17746_v28 = vpop.f32.mrf.mxu1 }
 0x63e   : > { %9024 = vst.msk [vmem:[#allocation6 + $0x68] sm:$0xff] %vm354_vm5, %v12400_v2 }
 0x63f   : > { %v8912_v21 = vpop.f32.mrf.mxu0  ;;  %v17749_v55 = vpop.f32.mrf.mxu1 }
 0x640   : > { %9023 = vst.msk [vmem:[#allocation6 + $0x60] sm:$0xff] %vm354_vm5, %v8912_v21 }
 0x645   : > { %v12403_v4 = vpop.f32.mrf.mxu0  ;;  %v17752_v31 = vpop.f32.mrf.mxu1 }
 0x646   : > { %9026 = vst.msk [vmem:[#allocation6 + $0x78] sm:$0xff] %vm354_vm5, %v12403_v4  ;;  %v9417_v4 = vld [vmem:[#allocation6 + $0x48] sm:$0xff] }
 0x647   : > { %v8922_v61 = vpop.f32.mrf.mxu0  ;;  %v17756_v46 = vpop.f32.mrf.mxu1 }
 0x648   : > { %9025 = vst.msk [vmem:[#allocation6 + $0x70] sm:$0xff] %vm354_vm5, %v8922_v61 }
 0x64d   : > { %v12406_v6 = vpop.f32.mrf.mxu0  ;;  %v17759_v53 = vpop.f32.mrf.mxu1 }
 0x64e   : > { %9028 = vst.msk [vmem:[#allocation6 + $0x88] sm:$0xff] %vm354_vm5, %v12406_v6 }
 0x64f   : > { %v8932_v44 = vpop.f32.mrf.mxu0  ;;  %v17765_v14 = vpop.f32.mrf.mxu1 }
 0x650   : > { %9027 = vst.msk [vmem:[#allocation6 + $0x80] sm:$0xff] %vm354_vm5, %v8932_v44 }
 0x656   : > { %v12409_v41 = vpop.f32.mrf.mxu0  ;;  %v17769_v44 = vpop.f32.mrf.mxu1 }
 0x657   : > { %9030 = vst.msk [vmem:[#allocation6 + $0x98] sm:$0xff] %vm354_vm5, %v12409_v41 }
 0x658   : > { %v8942_v51 = vpop.f32.mrf.mxu0 }
 0x659   : > { %9029 = vst.msk [vmem:[#allocation6 + $0x90] sm:$0xff] %vm354_vm5, %v8942_v51 }
 0x65e   : > { %v12412_v24 = vpop.f32.mrf.mxu0 }
 0x65f   : > { %9032 = vst.msk [vmem:[#allocation6 + $0xa8] sm:$0xff] %vm354_vm5, %v12412_v24  ;;  %v9416_v24 = vld [vmem:[#allocation6 + $0x40] sm:$0xff] }
 0x660   : > { %v8952_v54 = vpop.f32.mrf.mxu0 }
 0x661   : > { %9031 = vst.msk [vmem:[#allocation6 + $0xa0] sm:$0xff] %vm354_vm5, %v8952_v54 }
 0x666   : > { %v12415_v1 = vpop.f32.mrf.mxu0 }
 0x667   : > { %9034 = vst.msk [vmem:[#allocation6 + $0xb8] sm:$0xff] %vm354_vm5, %v12415_v1 }
 0x668   : > { %v8962_v13 = vpop.f32.mrf.mxu0 }
 0x669   : > { %9033 = vst.msk [vmem:[#allocation6 + $0xb0] sm:$0xff] %vm354_vm5, %v8962_v13 }
 0x66e   : > { %v12418_v38 = vpop.f32.mrf.mxu0 }
 0x66f   : > { %9036 = vst.msk [vmem:[#allocation6 + $0xc8] sm:$0xff] %vm354_vm5, %v12418_v38 }
 0x670   : > { %v8972_v60 = vpop.f32.mrf.mxu0 }
 0x671   : > { %9035 = vst.msk [vmem:[#allocation6 + $0xc0] sm:$0xff] %vm354_vm5, %v8972_v60  ;;  %v9419_v60 = vld [vmem:[#allocation6 + $0x58] sm:$0xff] }
 0x676   : > { %v12421_v63 = vpop.f32.mrf.mxu0 }
 0x677   : > { %9038 = vst.msk [vmem:[#allocation6 + $0xd8] sm:$0xff] %vm354_vm5, %v12421_v63 }
 0x678   : > { %v8982_v36 = vpop.f32.mrf.mxu0 }
 0x679   : > { %9037 = vst.msk [vmem:[#allocation6 + $0xd0] sm:$0xff] %vm354_vm5, %v8982_v36 }
 0x67e   : > { %v12424_v10 = vpop.f32.mrf.mxu0 }
 0x67f   : > { %9040 = vst.msk [vmem:[#allocation6 + $0xe8] sm:$0xff] %vm354_vm5, %v12424_v10 }
 0x680   : > { %v8992_v47 = vpop.f32.mrf.mxu0 }
 0x681   : > { %9039 = vst.msk [vmem:[#allocation6 + $0xe0] sm:$0xff] %vm354_vm5, %v8992_v47  ;;  %v9418_v47 = vld [vmem:[#allocation6 + $0x50] sm:$0xff] }
 0x686   : > { %v12427_v27 = vpop.f32.mrf.mxu0 }
 0x687   : > { %9042 = vst.msk [vmem:[#allocation6 + $0xf8] sm:$0xff] %vm354_vm5, %v12427_v27 }
 0x688   : > { %v9002_v39 = vpop.f32.mrf.mxu0 }
 0x689   : > { %9041 = vst.msk [vmem:[#allocation6 + $0xf0] sm:$0xff] %vm354_vm5, %v9002_v39 }
 0x68a   : > { %v12454_v12 = vpop.f32.mrf.mxu0 }
 0x68b   : > { %v9441_v33 = vadd.f32 %v12454_v12, %v9409_v25  ;;  %v18331_v25 = vld [vmem:[#allocation42_spill] sm:$0xff] }
 0x68c   : > { %v9249_v0 = vpop.f32.mrf.mxu0 }
 0x68d   : > { %9473 = vst.msk [vmem:[#allocation6 + $0x8] sm:$0xff] %vm354_vm5, %v9441_v33  ;;  %v9440_v20 = vadd.f32 %v9408_v43, %v9249_v0 }
 0x68e   : > { %v12457_v3 = vpop.f32.mrf.mxu0 }
 0x68f   : > { %9472 = vst.msk [vmem:[#allocation6] sm:$0xff] %vm354_vm5, %v9440_v20  ;;  %v9443_v22 = vadd.f32 %v12457_v3, %v9411_v32  ;;  %v9421_v3 = vld [vmem:[#allocation6 + $0x68] sm:$0xff] }
 0x690   : > { %v9259_v16 = vpop.f32.mrf.mxu0 }
 0x691   : > { %9475 = vst.msk [vmem:[#allocation6 + $0x18] sm:$0xff] %vm354_vm5, %v9443_v22  ;;  %v9442_v19 = vadd.f32 %v9410_v62, %v9259_v16  ;;  %v18332_v16 = vld [vmem:[#allocation43_spill] sm:$0xff] }
 0x692   : > { %v12460_v9 = vpop.f32.mrf.mxu0 }
 0x693   : > { %9474 = vst.msk [vmem:[#allocation6 + $0x10] sm:$0xff] %vm354_vm5, %v9442_v19  ;;  %v9445_v29 = vadd.f32 %v12460_v9, %v9413_v18 }
 0x694   : > { %v9870_v34 = vld [vmem:[#allocation6 + $0x8] sm:$0xff]  ;;  %v9269_v52 = vpop.f32.mrf.mxu0 }
 0x695   : > { %v9902_v37 = vadd.f32 %v12526_v5, %v9870_v34  ;;  %9477 = vst.msk [vmem:[#allocation6 + $0x28] sm:$0xff] %vm354_vm5, %v9445_v29  ;;  %v9444_v17 = vadd.f32 %v9412_v11, %v9269_v52  ;;  %v9420_v29 = vld [vmem:[#allocation6 + $0x60] sm:$0xff] }
 0x696   : > { %v9869_v35 = vld [vmem:[#allocation6] sm:$0xff]  ;;  %v12463_v56 = vpop.f32.mrf.mxu0 }
 0x697   : > { %9934 = vst.msk [vmem:[#allocation6 + $0x8] sm:$0xff] %vm354_vm5, %v9902_v37  ;;  %v9901_v58 = vadd.f32 %v9869_v35, %v9710_v50  ;;  %9476 = vst.msk [vmem:[#allocation6 + $0x20] sm:$0xff] %vm354_vm5, %v9444_v17  ;;  %v9447_v30 = vadd.f32 %v12463_v56, %v9415_v7 }
 0x698   : > { %v9872_v26 = vld [vmem:[#allocation6 + $0x18] sm:$0xff]  ;;  %v9279_v23 = vpop.f32.mrf.mxu0 }
 0x699   : > { %9933 = vst.msk [vmem:[#allocation6] sm:$0xff] %vm354_vm5, %v9901_v58  ;;  %v9904_v57 = vadd.f32 %v12529_v8, %v9872_v26  ;;  %9479 = vst.msk [vmem:[#allocation6 + $0x38] sm:$0xff] %vm354_vm5, %v9447_v30  ;;  %v9446_v40 = vadd.f32 %v9414_v59, %v9279_v23  ;;  %v17780_v8 = vld [vmem:[%s18137_s4] ss:$0 sm:$0xff]  ;;  %v9423_v58 = vld [vmem:[#allocation6 + $0x78] sm:$0xff] }
 0x69a   : > { %v9871_v2 = vld [vmem:[#allocation6 + $0x10] sm:$0xff]  ;;  %v12466_v21 = vpop.f32.mrf.mxu0  ;;  %v18333_v26 = vld [vmem:[#allocation45_spill] sm:$0xff] }
 0x69b   : > { %9936 = vst.msk [vmem:[#allocation6 + $0x18] sm:$0xff] %vm354_vm5, %v9904_v57  ;;  %v9903_v61 = vadd.f32 %v9871_v2, %v9720_v15  ;;  %9478 = vst.msk [vmem:[#allocation6 + $0x30] sm:$0xff] %vm354_vm5, %v9446_v40  ;;  %v9449_v6 = vadd.f32 %v12466_v21, %v9417_v4  ;;  %v17783_v15 = vpop.f32.mrf.mxu1  ;;  %v5282_v2 = vpop.trf.xlu0 }
 0x69c   : > { %v9874_v41 = vld [vmem:[#allocation6 + $0x28] sm:$0xff]  ;;  %v9289_v51 = vpop.f32.mrf.mxu0  ;;  %v5314_v21 = vpop.trf.xlu1 }
 0x69d   : > { %9935 = vst.msk [vmem:[#allocation6 + $0x10] sm:$0xff] %vm354_vm5, %v9903_v61  ;;  %v9906_v54 = vadd.f32 %v17734_v45, %v9874_v41  ;;  %9481 = vst.msk [vmem:[#allocation6 + $0x48] sm:$0xff] %vm354_vm5, %v9449_v6  ;;  %v9448_v1 = vadd.f32 %v9416_v24, %v9289_v51  ;;  %v17792_v0 = vpop.f32.mrf.mxu1  ;;  %v9422_v41 = vld [vmem:[#allocation6 + $0x70] sm:$0xff] }
 0x69e   : > { %v9873_v13 = vld [vmem:[#allocation6 + $0x20] sm:$0xff]  ;;  %v12469_v38 = vpop.f32.mrf.mxu0  ;;  %v9966_v5 = vld [vmem:[#allocation6 + $0x8] sm:$0xff]  ;;  %v18334_v51 = vld [vmem:[#allocation44_spill] sm:$0xff] }
 0x69f   : > { %9938 = vst.msk [vmem:[#allocation6 + $0x28] sm:$0xff] %vm354_vm5, %v9906_v54  ;;  %v9905_v50 = vadd.f32 %v9873_v13, %v17738_v49  ;;  %9480 = vst.msk [vmem:[#allocation6 + $0x40] sm:$0xff] %vm354_vm5, %v9448_v1  ;;  %v9451_v63 = vadd.f32 %v12469_v38, %v9419_v60  ;;  %v9998_v36 = vadd.f32 %v17780_v8, %v9966_v5  ;;  %v17806_v35 = vpop.f32.mrf.mxu1 }
 0x6a0   : > { %v9876_v45 = vld [vmem:[#allocation6 + $0x38] sm:$0xff]  ;;  %v9299_v10 = vpop.f32.mrf.mxu0  ;;  %v9965_v27 = vld [vmem:[#allocation6] sm:$0xff]  ;;  %v5332_v13 = vcombine.low %v5282_v2, %v5314_v21 }
 0x6a1   : > { %9937 = vst.msk [vmem:[#allocation6 + $0x20] sm:$0xff] %vm354_vm5, %v9905_v50  ;;  %v9908_v49 = vadd.f32 %v17740_v42, %v9876_v45  ;;  %9483 = vst.msk [vmem:[#allocation6 + $0x58] sm:$0xff] %vm354_vm5, %v9451_v63  ;;  %v9450_v39 = vadd.f32 %v9418_v47, %v9299_v10  ;;  %v9997_v12 = vadd.f32 %v17780_v8, %v9965_v27  ;;  %v17816_v4 = vpop.f32.mrf.mxu1  ;;  %v18335_v47 = vld [vmem:[#allocation46_spill] sm:$0xff]  ;;  %v18338_v21 = vld [vmem:[#allocation49_spill] sm:$0xff] }
 0x6a2   : > { %v17790_v33 = vadd.f32 %v18331_v25, %v9998_v36  ;;  %v9875_v43 = vld [vmem:[#allocation6 + $0x30] sm:$0xff]  ;;  %v12472_v20 = vpop.f32.mrf.mxu0  ;;  %v9968_v32 = vld [vmem:[#allocation6 + $0x18] sm:$0xff]  ;;  %v9425_v36 = vld [vmem:[#allocation6 + $0x88] sm:$0xff]  ;;  %5334 = vst [vmem:[%s17833_s16] sm:$0xff] %v5332_v13 }
 0x6a3   : > { %9940 = vst.msk [vmem:[#allocation6 + $0x38] sm:$0xff] %vm354_vm5, %v9908_v49  ;;  %v9907_v22 = vadd.f32 %v9875_v43, %v17743_v48  ;;  %9482 = vst.msk [vmem:[#allocation6 + $0x50] sm:$0xff] %vm354_vm5, %v9450_v39  ;;  %v9453_v42 = vadd.f32 %v12472_v20, %v9421_v3  ;;  %v17798_v62 = vadd.f32 %v18332_v16, %v9997_v12  ;;  %v18336_v12 = vld [vmem:[#allocation47_spill] sm:$0xff]  ;;  %v17842_v43 = vpop.f32.mrf.mxu1 }
 0x6a4   : > { %v10062_v19 = vsub.f32 0.0, %v17790_v33  ;;  %v9878_v9 = vld [vmem:[#allocation6 + $0x48] sm:$0xff]  ;;  %v9309_v18 = vpop.f32.mrf.mxu0  ;;  %v9967_v34 = vld [vmem:[#allocation6 + $0x10] sm:$0xff]  ;;  %v10000_v52 = vadd.f32 %v17780_v8, %v9968_v32  ;;  %v9424_v32 = vld [vmem:[#allocation6 + $0x80] sm:$0xff] }
 0x6a5   : > { %9939 = vst.msk [vmem:[#allocation6 + $0x30] sm:$0xff] %vm354_vm5, %v9907_v22  ;;  %v9910_v11 = vadd.f32 %v17746_v28, %v9878_v9  ;;  %9485 = vst.msk [vmem:[#allocation6 + $0x68] sm:$0xff] %vm354_vm5, %v9453_v42  ;;  %v9452_v48 = vadd.f32 %v9420_v29, %v9309_v18  ;;  %v10061_v37 = vsub.f32 0.0, %v17798_v62  ;;  %v9999_v30 = vadd.f32 %v17780_v8, %v9967_v34  ;;  %v17851_v34 = vpop.f32.mrf.mxu1  ;;  %v18339_v13 = vld [vmem:[#allocation51_spill] sm:$0xff] }
 0x6a6   : > { %v10095_v17 = vmul.f32 1.442695, %v10062_v19  ;;  %v9877_v56 = vld [vmem:[#allocation6 + $0x40] sm:$0xff]  ;;  %v12475_v7 = vpop.f32.mrf.mxu0  ;;  %v17810_v23 = vadd.f32 %v18333_v26, %v10000_v52  ;;  %v9970_v59 = vld [vmem:[#allocation6 + $0x28] sm:$0xff] }
 0x6a7   : > { %9942 = vst.msk [vmem:[#allocation6 + $0x48] sm:$0xff] %vm354_vm5, %v9910_v11  ;;  %v9909_v28 = vadd.f32 %v9877_v56, %v17749_v55  ;;  %9484 = vst.msk [vmem:[#allocation6 + $0x60] sm:$0xff] %vm354_vm5, %v9452_v48  ;;  %v9455_v57 = vadd.f32 %v12475_v7, %v9423_v58  ;;  %v10093_v40 = vmul.f32 1.442695, %v10061_v37  ;;  %v17819_v24 = vadd.f32 %v18334_v51, %v9999_v30  ;;  %v9427_v48 = vld [vmem:[#allocation6 + $0x98] sm:$0xff]  ;;  %v18337_v7 = vld [vmem:[#allocation48_spill] sm:$0xff] }
 0x6a8   : > { %13129 = vpow2.f32 %v10095_v17  ;;  %v9880_v61 = vld [vmem:[#allocation6 + $0x58] sm:$0xff]  ;;  %v9319_v6 = vpop.f32.mrf.mxu0  ;;  %v10064_v54 = vsub.f32 0.0, %v17810_v23  ;;  %v9969_v55 = vld [vmem:[#allocation6 + $0x20] sm:$0xff]  ;;  %v10002_v1 = vadd.f32 %v17780_v8, %v9970_v59  ;;  %v9426_v59 = vld [vmem:[#allocation6 + $0x90] sm:$0xff] }
 0x6a9   : > { %9941 = vst.msk [vmem:[#allocation6 + $0x40] sm:$0xff] %vm354_vm5, %v9909_v28  ;;  %v9912_v38 = vadd.f32 %v17752_v31, %v9880_v61  ;;  %9487 = vst.msk [vmem:[#allocation6 + $0x78] sm:$0xff] %vm354_vm5, %v9455_v57  ;;  %v9454_v60 = vadd.f32 %v9422_v41, %v9319_v6  ;;  %13131 = vpow2.f32 %v10093_v40  ;;  %v10001_v5 = vadd.f32 %v17780_v8, %v9969_v55  ;;  %v17866_v6 = vpop.f32.mrf.mxu1 }
 0x6aa   : > { %v9879_v50 = vld [vmem:[#allocation6 + $0x50] sm:$0xff]  ;;  %v12478_v63 = vpop.f32.mrf.mxu0  ;;  %v10063_v45 = vsub.f32 0.0, %v17819_v24  ;;  %v10099_v10 = vmul.f32 1.442695, %v10064_v54  ;;  %v17831_v27 = vadd.f32 %v18335_v47, %v10002_v1  ;;  %v9972_v49 = vld [vmem:[#allocation6 + $0x38] sm:$0xff]  ;;  %v9429_v54 = vld [vmem:[#allocation6 + $0xa8] sm:$0xff] }
 0x6ab   : > { %9944 = vst.msk [vmem:[#allocation6 + $0x58] sm:$0xff] %vm354_vm5, %v9912_v38  ;;  %v9911_v31 = vadd.f32 %v9879_v50, %v17756_v46  ;;  %9486 = vst.msk [vmem:[#allocation6 + $0x70] sm:$0xff] %vm354_vm5, %v9454_v60  ;;  %v9457_v39 = vadd.f32 %v12478_v63, %v9425_v36  ;;  %v17840_v25 = vadd.f32 %v18336_v12, %v10001_v5  ;;  %v17876_v63 = vpop.f32.mrf.mxu1  ;;  %v18340_v47 = vld [vmem:[#allocation50_spill] sm:$0xff] }
 0x6ac   : > { %v9882_v20 = vld [vmem:[#allocation6 + $0x68] sm:$0xff]  ;;  %v9329_v3 = vpop.f32.mrf.mxu0  ;;  %v10097_v22 = vmul.f32 1.442695, %v10063_v45  ;;  %13133 = vpow2.f32 %v10099_v10  ;;  %v10066_v42 = vsub.f32 0.0, %v17831_v27  ;;  %v9971_v16 = vld [vmem:[#allocation6 + $0x30] sm:$0xff]  ;;  %v10004_v19 = vadd.f32 %v17780_v8, %v9972_v49  ;;  %v9428_v10 = vld [vmem:[#allocation6 + $0xa0] sm:$0xff] }
 0x6ad   : > { %9943 = vst.msk [vmem:[#allocation6 + $0x50] sm:$0xff] %vm354_vm5, %v9911_v31  ;;  %v9914_v46 = vadd.f32 %v17759_v53, %v9882_v20  ;;  %9489 = vst.msk [vmem:[#allocation6 + $0x88] sm:$0xff] %vm354_vm5, %v9457_v39  ;;  %v9456_v9 = vadd.f32 %v9424_v32, %v9329_v3  ;;  %v10065_v18 = vsub.f32 0.0, %v17840_v25  ;;  %v10003_v29 = vadd.f32 %v17780_v8, %v9971_v16 }
 0x6ae   : > { %v9881_v52 = vld [vmem:[#allocation6 + $0x60] sm:$0xff]  ;;  %v12481_v11 = vpop.f32.mrf.mxu0  ;;  %13135 = vpow2.f32 %v10097_v22  ;;  %v9974_v37 = vld [vmem:[#allocation6 + $0x48] sm:$0xff]  ;;  %v10103_v28 = vmul.f32 1.442695, %v10066_v42  ;;  %v17864_v61 = vadd.f32 %v18338_v21, %v10004_v19  ;;  %v9431_v22 = vld [vmem:[#allocation6 + $0xb8] sm:$0xff] }
 0x6af   : > { %9946 = vst.msk [vmem:[#allocation6 + $0x68] sm:$0xff] %vm354_vm5, %v9914_v46  ;;  %v9913_v17 = vadd.f32 %v9881_v52, %v17765_v14  ;;  %9488 = vst.msk [vmem:[#allocation6 + $0x80] sm:$0xff] %vm354_vm5, %v9456_v9  ;;  %v9459_v53 = vadd.f32 %v12481_v11, %v9427_v48  ;;  %v10101_v56 = vmul.f32 1.442695, %v10065_v18  ;;  %v17857_v58 = vadd.f32 %v18337_v7, %v10003_v29  ;;  %v17891_v52 = vpop.f32.mrf.mxu1  ;;  %v18342_v21 = vld [vmem:[#allocation53_spill] sm:$0xff] }
 0x6b0   : > { %v9884_v30 = vld [vmem:[#allocation6 + $0x78] sm:$0xff]  ;;  %v9339_v26 = vpop.f32.mrf.mxu0  ;;  %v9973_v57 = vld [vmem:[#allocation6 + $0x40] sm:$0xff]  ;;  %v10006_v40 = vadd.f32 %v17780_v8, %v9974_v37  ;;  %v10068_v12 = vsub.f32 0.0, %v17864_v61  ;;  %v9430_v37 = vld [vmem:[#allocation6 + $0xb0] sm:$0xff] }
 0x6b1   : > { %9945 = vst.msk [vmem:[#allocation6 + $0x60] sm:$0xff] %vm354_vm5, %v9913_v17  ;;  %v9916_v2 = vadd.f32 %v17769_v44, %v9884_v30  ;;  %9491 = vst.msk [vmem:[#allocation6 + $0x98] sm:$0xff] %vm354_vm5, %v9459_v53  ;;  %v9458_v14 = vadd.f32 %v9426_v59, %v9339_v26  ;;  %13137 = vpow2.f32 %v10101_v56  ;;  %v10067_v55 = vsub.f32 0.0, %v17857_v58  ;;  %v17897_v26 = vpop.f32.mrf.mxu1 }
 0x6b2   : > { %v9883_v41 = vld [vmem:[#allocation6 + $0x70] sm:$0xff]  ;;  %v12484_v51 = vpop.f32.mrf.mxu0  ;;  %v10005_v1 = vadd.f32 %v17780_v8, %v9973_v57  ;;  %v17871_v38 = vadd.f32 %v18339_v13, %v10006_v40  ;;  %v9976_v5 = vld [vmem:[#allocation6 + $0x58] sm:$0xff]  ;;  %13139 = vpow2.f32 %v10103_v28  ;;  %v10107_v7 = vmul.f32 1.442695, %v10068_v12  ;;  %v9433_v57 = vld [vmem:[#allocation6 + $0xc8] sm:$0xff] }
 0x6b3   : > { %9948 = vst.msk [vmem:[#allocation6 + $0x78] sm:$0xff] %vm354_vm5, %v9916_v2  ;;  %v9915_v44 = vadd.f32 %v9883_v41, %v17783_v15  ;;  %9490 = vst.msk [vmem:[#allocation6 + $0x90] sm:$0xff] %vm354_vm5, %v9458_v14  ;;  %v9461_v60 = vadd.f32 %v12484_v51, %v9429_v54  ;;  %v10105_v42 = vmul.f32 1.442695, %v10067_v55  ;;  %v10008_v46 = vadd.f32 %v17780_v8, %v9976_v5  ;;  %v18341_v2 = vld [vmem:[#allocation52_spill] sm:$0xff]  ;;  %v9432_v13 = vld [vmem:[#allocation6 + $0xc0] sm:$0xff] }
 0x6b4   : > { %v9886_v36 = vld [vmem:[#allocation6 + $0x88] sm:$0xff]  ;;  %v9349_v45 = vpop.f32.mrf.mxu0  ;;  %v17879_v49 = vadd.f32 %v18340_v47, %v10005_v1  ;;  %v9975_v31 = vld [vmem:[#allocation6 + $0x50] sm:$0xff]  ;;  %v10070_v16 = vsub.f32 0.0, %v17871_v38 }
 0x6b5   : > { %v13130_v50 = vpop.eup %13129  ;;  %9947 = vst.msk [vmem:[#allocation6 + $0x70] sm:$0xff] %vm354_vm5, %v9915_v44  ;;  %v9918_v39 = vadd.f32 %v17792_v0, %v9886_v36  ;;  %9493 = vst.msk [vmem:[#allocation6 + $0xa8] sm:$0xff] %vm354_vm5, %v9461_v60  ;;  %v9460_v15 = vadd.f32 %v9428_v10, %v9349_v45  ;;  %v10007_v19 = vadd.f32 %v17780_v8, %v9975_v31  ;;  %v9435_v45 = vld [vmem:[#allocation6 + $0xd8] sm:$0xff] }
 0x6b6   : > { %v13132_v20 = vpop.eup %13131  ;;  %v9885_v3 = vld [vmem:[#allocation6 + $0x80] sm:$0xff]  ;;  %v12487_v32 = vpop.f32.mrf.mxu0  ;;  %v10158_v29 = vadd.f32 1.0, %v13130_v50  ;;  %v10069_v17 = vsub.f32 0.0, %v17879_v49  ;;  %v10111_v40 = vmul.f32 1.442695, %v10070_v16  ;;  %v17903_v41 = vadd.f32 %v18342_v21, %v10008_v46  ;;  %v9434_v46 = vld [vmem:[#allocation6 + $0xd0] sm:$0xff] }
 0x6b7   : > { %9950 = vst.msk [vmem:[#allocation6 + $0x88] sm:$0xff] %vm354_vm5, %v9918_v39  ;;  %v9917_v0 = vadd.f32 %v9885_v3, %v17806_v35  ;;  %9492 = vst.msk [vmem:[#allocation6 + $0xa0] sm:$0xff] %vm354_vm5, %v9460_v15  ;;  %v9463_v9 = vadd.f32 %v12487_v32, %v9431_v22  ;;  %v10157_v18 = vadd.f32 1.0, %v13132_v20  ;;  %v17900_v14 = vadd.f32 %v18341_v2, %v10007_v19  ;;  %v9978_v20 = vld [vmem:[#allocation6 + $0x68] sm:$0xff]  ;;  %v18345_v2 = vld [vmem:[#allocation58_spill] sm:$0xff] }
 0x6b8   : > { %v9888_v11 = vld [vmem:[#allocation6 + $0x98] sm:$0xff]  ;;  %v9359_v48 = vpop.f32.mrf.mxu0  ;;  %v9977_v30 = vld [vmem:[#allocation6 + $0x60] sm:$0xff]  ;;  %v10109_v60 = vmul.f32 1.442695, %v10069_v17  ;;  %v10072_v12 = vsub.f32 0.0, %v17903_v41 }
 0x6b9   : > { %v13134_v53 = vpop.eup %13133  ;;  %9949 = vst.msk [vmem:[#allocation6 + $0x80] sm:$0xff] %vm354_vm5, %v9917_v0  ;;  %v9920_v56 = vadd.f32 %v17816_v4, %v9888_v11  ;;  %9495 = vst.msk [vmem:[#allocation6 + $0xb8] sm:$0xff] %vm354_vm5, %v9463_v9  ;;  %v9462_v35 = vadd.f32 %v9430_v37, %v9359_v48  ;;  %13141 = vrcp.f32 %v10157_v18  ;;  %v10009_v5 = vadd.f32 %v17780_v8, %v9977_v30  ;;  %v18343_v9 = vld [vmem:[#allocation54_spill] sm:$0xff]  ;;  %v18344_v30 = vld [vmem:[#allocation59_spill] sm:$0xff] }
 0x6ba   : > { %v9887_v59 = vld [vmem:[#allocation6 + $0x90] sm:$0xff]  ;;  %v12490_v28 = vpop.f32.mrf.mxu0  ;;  %13143 = vpow2.f32 %v10105_v42  ;;  %v10160_v31 = vadd.f32 1.0, %v13134_v53  ;;  %v10071_v15 = vsub.f32 0.0, %v17900_v14  ;;  %v10010_v37 = vadd.f32 %v17780_v8, %v9978_v20  ;;  %v9980_v17 = vld [vmem:[#allocation6 + $0x78] sm:$0xff] }
 0x6bb   : > { %v13136_v4 = vpop.eup %13135  ;;  %9952 = vst.msk [vmem:[#allocation6 + $0x98] sm:$0xff] %vm354_vm5, %v9920_v56  ;;  %v9919_v51 = vadd.f32 %v9887_v59, %v17842_v43  ;;  %9494 = vst.msk [vmem:[#allocation6 + $0xb0] sm:$0xff] %vm354_vm5, %v9462_v35  ;;  %v9465_v54 = vadd.f32 %v12490_v28, %v9433_v57  ;;  %13145 = vrcp.f32 %v10158_v29  ;;  %v17912_v43 = vpop.f32.mrf.mxu1  ;;  %v17923_v18 = vadd.f32 %v18343_v9, %v10009_v5  ;;  %v9437_v35 = vld [vmem:[#allocation6 + $0xe8] sm:$0xff] }
 0x6bc   : > { %v9890_v55 = vld [vmem:[#allocation6 + $0xa8] sm:$0xff]  ;;  %v9369_v1 = vpop.f32.mrf.mxu0  ;;  %v10159_v44 = vadd.f32 1.0, %v13136_v4  ;;  %13147 = vpow2.f32 %v10107_v7  ;;  %v17933_v28 = vmul.f32 1.442695, %v10072_v12  ;;  %v10113_v4 = vmul.f32 1.442695, %v10071_v15 }
 0x6bd   : > { %9951 = vst.msk [vmem:[#allocation6 + $0x90] sm:$0xff] %vm354_vm5, %v9919_v51  ;;  %v9922_v50 = vadd.f32 %v17851_v34, %v9890_v55  ;;  %9497 = vst.msk [vmem:[#allocation6 + $0xc8] sm:$0xff] %vm354_vm5, %v9465_v54  ;;  %v9464_v36 = vadd.f32 %v9432_v13, %v9369_v1  ;;  %13149 = vpow2.f32 %v10111_v40  ;;  %v17920_v42 = vpop.f32.mrf.mxu1  ;;  %v9436_v1 = vld [vmem:[#allocation6 + $0xe0] sm:$0xff] }
 0x6be   : > { %v9889_v10 = vld [vmem:[#allocation6 + $0xa0] sm:$0xff]  ;;  %v12493_v47 = vpop.f32.mrf.mxu0  ;;  %v9982_v39 = vld [vmem:[#allocation6 + $0x88] sm:$0xff]  ;;  %v13138_v3 = vpop.eup %13137  ;;  %13151 = vrcp.f32 %v10159_v44 }
 0x6bf   : > { %9954 = vst.msk [vmem:[#allocation6 + $0xa8] sm:$0xff] %vm354_vm5, %v9922_v50  ;;  %v9921_v34 = vadd.f32 %v9889_v10, %v17866_v6  ;;  %9496 = vst.msk [vmem:[#allocation6 + $0xc0] sm:$0xff] %vm354_vm5, %v9464_v36  ;;  %v9467_v32 = vadd.f32 %v12493_v47, %v9435_v45  ;;  %v10014_v22 = vadd.f32 %v17780_v8, %v9982_v39  ;;  %13153 = vpow2.f32 %v10109_v60  ;;  %v13140_v29 = vpop.eup %13139  ;;  %v9840_v51 = vpop.f32.mrf.mxu1  ;;  %v18346_v10 = vld [vmem:[#allocation55_spill] sm:$0xff] }
 0x6c0   : > { %v9892_v16 = vld [vmem:[#allocation6 + $0xb8] sm:$0xff]  ;;  %v9379_v19 = vpop.f32.mrf.mxu0  ;;  %v9981_v0 = vld [vmem:[#allocation6 + $0x80] sm:$0xff]  ;;  %13155 = vrcp.f32 %v10160_v31  ;;  %v10161_v7 = vadd.f32 1.0, %v13138_v3  ;;  %v10162_v13 = vadd.f32 1.0, %v13140_v29  ;;  %v17944_v50 = vadd.f32 %v17780_v8, %v9980_v17  ;;  %v9979_v31 = vld [vmem:[#allocation6 + $0x70] sm:$0xff] }
 0x6c1   : > { %9953 = vst.msk [vmem:[#allocation6 + $0xa0] sm:$0xff] %vm354_vm5, %v9921_v34  ;;  %v9924_v6 = vadd.f32 %v17876_v63, %v9892_v16  ;;  %9499 = vst.msk [vmem:[#allocation6 + $0xd8] sm:$0xff] %vm354_vm5, %v9467_v32  ;;  %v9466_v11 = vadd.f32 %v9434_v46, %v9379_v19  ;;  %v10013_v48 = vadd.f32 %v17780_v8, %v9981_v0  ;;  %v10073_v45 = vsub.f32 0.0, %v17923_v18  ;;  %v12568_v15 = vpop.f32.mrf.mxu1  ;;  %v9439_v3 = vld [vmem:[#allocation6 + $0xf8] sm:$0xff]  ;;  %v18348_v17 = vld [vmem:[#allocation60_spill] sm:$0xff] }
 0x6c2   : > { %v9891_v53 = vld [vmem:[#allocation6 + $0xb0] sm:$0xff]  ;;  %v12496_v56 = vpop.f32.mrf.mxu0  ;;  %v17931_v59 = vadd.f32 %v18344_v30, %v10014_v22  ;;  %v9984_v57 = vld [vmem:[#allocation6 + $0x98] sm:$0xff]  ;;  %v17951_v47 = vadd.f32 %v18346_v10, %v10010_v37  ;;  %13157 = vrcp.f32 %v10161_v7 }
 0x6c3   : > { %9956 = vst.msk [vmem:[#allocation6 + $0xb8] sm:$0xff] %vm354_vm5, %v9924_v6  ;;  %v9923_v63 = vadd.f32 %v9891_v53, %v17891_v52  ;;  %9498 = vst.msk [vmem:[#allocation6 + $0xd0] sm:$0xff] %vm354_vm5, %v9466_v11  ;;  %v9469_v40 = vadd.f32 %v12496_v56, %v9437_v35  ;;  %v17939_v21 = vadd.f32 %v18345_v2, %v10013_v48  ;;  %v18347_v0 = vld [vmem:[#allocation61_spill] sm:$0xff]  ;;  %v9438_v48 = vld [vmem:[#allocation6 + $0xf0] sm:$0xff]  ;;  %13159 = vrcp.f32 %v10162_v13 }
 0x6c4   : > { %v9894_v54 = vld [vmem:[#allocation6 + $0xc8] sm:$0xff]  ;;  %v9389_v55 = vpop.f32.mrf.mxu0  ;;  %v10078_v44 = vsub.f32 0.0, %v17931_v59  ;;  %v9983_v60 = vld [vmem:[#allocation6 + $0x90] sm:$0xff]  ;;  %v10016_v5 = vadd.f32 %v17780_v8, %v9984_v57  ;;  %v9850_v57 = vpop.f32.mrf.mxu1  ;;  %v10117_v2 = vmul.f32 1.442695, %v10073_v45  ;;  %v10074_v10 = vsub.f32 0.0, %v17951_v47 }
 0x6c5   : > { %9955 = vst.msk [vmem:[#allocation6 + $0xb0] sm:$0xff] %vm354_vm5, %v9923_v63  ;;  %v9926_v52 = vadd.f32 %v17897_v26, %v9894_v54  ;;  %9501 = vst.msk [vmem:[#allocation6 + $0xe8] sm:$0xff] %vm354_vm5, %v9469_v40  ;;  %v9468_v36 = vadd.f32 %v9436_v1, %v9389_v55  ;;  %v10077_v34 = vsub.f32 0.0, %v17939_v21  ;;  %v10015_v26 = vadd.f32 %v17780_v8, %v9983_v60 }
 0x6c6   : > { %v13142_v39 = vpop.eup %13141  ;;  %v9893_v12 = vld [vmem:[#allocation6 + $0xc0] sm:$0xff]  ;;  %v12499_v20 = vpop.f32.mrf.mxu0  ;;  %v10127_v32 = vmul.f32 1.442695, %v10078_v44  ;;  %v17960_v9 = vadd.f32 %v18347_v0, %v10016_v5  ;;  %v9986_v55 = vld [vmem:[#allocation6 + $0xa8] sm:$0xff] }
 0x6c7   : > { %v13144_v22 = vpop.eup %13143  ;;  %9958 = vst.msk [vmem:[#allocation6 + $0xc8] sm:$0xff] %vm354_vm5, %v9926_v52  ;;  %v9925_v16 = vadd.f32 %v9893_v12, %v17912_v43  ;;  %9500 = vst.msk [vmem:[#allocation6 + $0xe0] sm:$0xff] %vm354_vm5, %v9468_v36  ;;  %v9471_v19 = vadd.f32 %v12499_v20, %v9439_v3  ;;  %v10221_v46 = vmul.f32 %v13142_v39, %v17798_v62  ;;  %v10125_v37 = vmul.f32 1.442695, %v10077_v34  ;;  %v12571_v52 = vpop.f32.mrf.mxu1  ;;  %v18349_v36 = vld [vmem:[#allocation62_spill] sm:$0xff]  ;;  %v18350_v20 = vld [vmem:[#allocation56_spill] sm:$0xff] }
 0x6c8   : > { %v13146_v29 = vpop.eup %13145  ;;  %v9896_v6 = vld [vmem:[#allocation6 + $0xd8] sm:$0xff]  ;;  %v9399_v11 = vpop.f32.mrf.mxu0  ;;  %v17963_v53 = vadd.f32 %v18348_v17, %v10015_v26  ;;  %v9985_v56 = vld [vmem:[#allocation6 + $0xa0] sm:$0xff]  ;;  %v10011_v43 = vadd.f32 %v17780_v8, %v9979_v31  ;;  %13161 = vpow2.f32 %v10127_v32  ;;  %v10080_v7 = vsub.f32 0.0, %v17960_v9 }
 0x6c9   : > { %9957 = vst.msk [vmem:[#allocation6 + $0xc0] sm:$0xff] %vm354_vm5, %v9925_v16  ;;  %v9928_v35 = vadd.f32 %v17920_v42, %v9896_v6  ;;  %9503 = vst.msk [vmem:[#allocation6 + $0xf8] sm:$0xff] %vm354_vm5, %v9471_v19  ;;  %v9470_v62 = vadd.f32 %v9438_v48, %v9399_v11  ;;  %10253 = vxpose.xlu0.b32.start [1/16] (narrow) %v10221_v46, 8  ;;  %v13148_v30 = vpop.eup %13147  ;;  %13163 = vpow2.f32 %v10113_v4  ;;  %v10163_v44 = vadd.f32 1.0, %v13144_v22  ;;  %v18351_v19 = vld [vmem:[#allocation63_spill] sm:$0xff]  ;;  %v9860_v6 = vpop.f32.mrf.mxu1 }
 0x6ca   : > { %v9895_v63 = vld [vmem:[#allocation6 + $0xd0] sm:$0xff]  ;;  %v10079_v40 = vsub.f32 0.0, %v17963_v53  ;;  %v10017_v54 = vadd.f32 %v17780_v8, %v9985_v56  ;;  %v13150_v1 = vpop.eup %13149  ;;  %v10222_v13 = vmul.f32 %v13146_v29, %v17790_v33  ;;  %13165 = vpow2.f32 %v10125_v37  ;;  %v9988_v0 = vld [vmem:[#allocation6 + $0xb8] sm:$0xff] }
 0x6cb   : > { %9960 = vst.msk [vmem:[#allocation6 + $0xd8] sm:$0xff] %vm354_vm5, %v9928_v35  ;;  %v9927_v42 = vadd.f32 %v9895_v63, %v9840_v51  ;;  %9502 = vst.msk [vmem:[#allocation6 + $0xf0] sm:$0xff] %vm354_vm5, %v9470_v62  ;;  %v13152_v60 = vpop.eup %13151  ;;  %13167 = vpow2.f32 %v17933_v28  ;;  %v10131_v33 = vmul.f32 1.442695, %v10080_v7  ;;  %v10018_v12 = vadd.f32 %v17780_v8, %v9986_v55  ;;  %v18352_v37 = vld [vmem:[#allocation64_spill] sm:$0xff]  ;;  %v18353_v55 = vld [vmem:[#allocation57_spill] sm:$0xff] }
 0x6cc   : > { %v9898_v5 = vld [vmem:[#allocation6 + $0xe8] sm:$0xff]  ;;  %v10129_v4 = vmul.f32 1.442695, %v10079_v40  ;;  %v17977_v45 = vadd.f32 %v18349_v36, %v10017_v54  ;;  %v9987_v31 = vld [vmem:[#allocation6 + $0xb0] sm:$0xff]  ;;  %v13154_v39 = vpop.eup %13153  ;;  %v17983_v3 = vadd.f32 %v18350_v20, %v10011_v43  ;;  %v10164_v32 = vadd.f32 1.0, %v13148_v30 }
 0x6cd   : > { %9959 = vst.msk [vmem:[#allocation6 + $0xd0] sm:$0xff] %vm354_vm5, %v9927_v42  ;;  %v9930_v51 = vadd.f32 %v12568_v15, %v9898_v5  ;;  %10254 = vxpose.xlu0.b32.cont [2/16] (narrow) %v10222_v13, 8  ;;  %v10019_v26 = vadd.f32 %v17780_v8, %v9987_v31  ;;  %v13156_v22 = vpop.eup %13155  ;;  %v10223_v15 = vmul.f32 %v13152_v60, %v17819_v24  ;;  %v10166_v11 = vadd.f32 1.0, %v13150_v1  ;;  %v18354_v13 = vld [vmem:[#allocation65_spill] sm:$0xff] }
 0x6ce   : > { %v9897_v34 = vld [vmem:[#allocation6 + $0xe0] sm:$0xff]  ;;  %13169 = vpow2.f32 %v10129_v4  ;;  %v10081_v28 = vsub.f32 0.0, %v17977_v45  ;;  %v17990_v46 = vadd.f32 %v18351_v19, %v10018_v12  ;;  %v10119_v48 = vmul.f32 1.442695, %v10074_v10 }
 0x6cf   : > { %9962 = vst.msk [vmem:[#allocation6 + $0xe8] sm:$0xff] %vm354_vm5, %v9930_v51  ;;  %v9929_v16 = vadd.f32 %v9897_v34, %v9850_v57  ;;  %13171 = vrcp.f32 %v10163_v44  ;;  %v17993_v17 = vadd.f32 %v18352_v37, %v10019_v26  ;;  %v10165_v7 = vadd.f32 1.0, %v13154_v39  ;;  %v13158_v63 = vpop.eup %13157 }
 0x6d0   : > { %v9900_v29 = vld [vmem:[#allocation6 + $0xf8] sm:$0xff]  ;;  %13173 = vpow2.f32 %v10131_v33  ;;  %v10133_v43 = vmul.f32 1.442695, %v10081_v28  ;;  %v10082_v24 = vsub.f32 0.0, %v17990_v46  ;;  %v9989_v35 = vld [vmem:[#allocation6 + $0xc0] sm:$0xff]  ;;  %v10075_v30 = vsub.f32 0.0, %v17983_v3  ;;  %v13160_v5 = vpop.eup %13159 }
 0x6d1   : > { %9961 = vst.msk [vmem:[#allocation6 + $0xe0] sm:$0xff] %vm354_vm5, %v9929_v16  ;;  %v9932_v56 = vadd.f32 %v12571_v52, %v9900_v29  ;;  %10255 = vxpose.xlu0.b32.cont [3/16] (narrow) %v10223_v15, 8  ;;  %13175 = vrcp.f32 %v10164_v32  ;;  %v10020_v57 = vadd.f32 %v17780_v8, %v9988_v0  ;;  %v10224_v54 = vmul.f32 %v13156_v22, %v17810_v23  ;;  %v9990_v23 = vld [vmem:[#allocation6 + $0xc8] sm:$0xff]  ;;  %v18355_v33 = vld [vmem:[#allocation66_spill] sm:$0xff] }
 0x6d2   : > { %v9899_v62 = vld [vmem:[#allocation6 + $0xf0] sm:$0xff]  ;;  %13177 = vpow2.f32 %v10117_v2  ;;  %v18003_v1 = vadd.f32 %v18353_v55, %v17944_v50  ;;  %v10083_v42 = vsub.f32 0.0, %v17993_v17  ;;  %v10021_v60 = vadd.f32 %v17780_v8, %v9989_v35 }
 0x6d3   : > { %9964 = vst.msk [vmem:[#allocation6 + $0xf8] sm:$0xff] %vm354_vm5, %v9932_v56  ;;  %v9931_v40 = vadd.f32 %v9899_v62, %v9860_v6  ;;  %13179 = vrcp.f32 %v10166_v11  ;;  %v18007_v44 = vadd.f32 %v18354_v13, %v10020_v57  ;;  %v10135_v52 = vmul.f32 1.442695, %v10082_v24  ;;  %v18356_v11 = vld [vmem:[#allocation67_spill] sm:$0xff]  ;;  %v18357_v57 = vld [vmem:[#allocation68_spill] sm:$0xff] }
 0x6d4   : > { %13181 = vpow2.f32 %v10133_v43  ;;  %v10121_v4 = vmul.f32 1.442695, %v10075_v30  ;;  %v10225_v36 = vmul.f32 %v13158_v63, %v17840_v25  ;;  %v10076_v10 = vsub.f32 0.0, %v18003_v1  ;;  %v9991_v34 = vld [vmem:[#allocation6 + $0xd0] sm:$0xff]  ;;  %v9992_v43 = vld [vmem:[#allocation6 + $0xd8] sm:$0xff] }
 0x6d5   : > { %9963 = vst.msk [vmem:[#allocation6 + $0xf0] sm:$0xff] %vm354_vm5, %v9931_v40  ;;  %10256 = vxpose.xlu0.b32.cont [4/16] (narrow) %v10224_v54, 8  ;;  %v13162_v2 = vpop.eup %13161  ;;  %13183 = vrcp.f32 %v10165_v7  ;;  %v10137_v39 = vmul.f32 1.442695, %v10083_v42  ;;  %v10084_v51 = vsub.f32 0.0, %v18007_v44  ;;  %v18015_v12 = vadd.f32 %v18355_v33, %v10021_v60 }
 0x6d6   : > { %v13164_v50 = vpop.eup %13163  ;;  %13185 = vpow2.f32 %v10119_v48  ;;  %v10022_v20 = vadd.f32 %v17780_v8, %v9990_v23  ;;  %v10174_v26 = vadd.f32 1.0, %v13162_v2  ;;  %v10226_v16 = vmul.f32 %v13160_v5, %v17831_v27 }
 0x6d7   : > { %v13166_v31 = vpop.eup %13165  ;;  %13187 = vpow2.f32 %v10135_v52  ;;  %v10167_v22 = vadd.f32 1.0, %v13164_v50  ;;  %v10123_v15 = vmul.f32 1.442695, %v10076_v10  ;;  %v10023_v19 = vadd.f32 %v17780_v8, %v9991_v34 }
 0x6d8   : > { %v13168_v32 = vpop.eup %13167  ;;  %v10173_v28 = vadd.f32 1.0, %v13166_v31  ;;  %13189 = vpow2.f32 %v10121_v4  ;;  %v10139_v29 = vmul.f32 1.442695, %v10084_v51  ;;  %v10085_v6 = vsub.f32 0.0, %v18015_v12  ;;  %v9993_v42 = vld [vmem:[#allocation6 + $0xe0] sm:$0xff]  ;;  %v9994_v31 = vld [vmem:[#allocation6 + $0xe8] sm:$0xff] }
 0x6d9   : > { %10257 = vxpose.xlu0.b32.cont [5/16] (narrow) %v10225_v36, 8  ;;  %v18022_v48 = vadd.f32 %v18356_v11, %v10022_v20  ;;  %v10168_v35 = vadd.f32 1.0, %v13168_v32  ;;  %v18027_v63 = vadd.f32 %v18357_v57, %v10023_v19  ;;  %v10024_v55 = vadd.f32 %v17780_v8, %v9992_v43  ;;  %v18358_v36 = vld [vmem:[#allocation69_spill] sm:$0xff]  ;;  %v18359_v32 = vld [vmem:[#allocation70_spill] sm:$0xff] }
 0x6da   : > { %13191 = vrcp.f32 %v10173_v28  ;;  %v10141_v7 = vmul.f32 1.442695, %v10085_v6  ;;  %v10025_v4 = vadd.f32 %v17780_v8, %v9993_v42 }
 0x6db   : > { %v13170_v25 = vpop.eup %13169  ;;  %13193 = vpow2.f32 %v10137_v39  ;;  %v10086_v30 = vsub.f32 0.0, %v18022_v48  ;;  %v10087_v2 = vsub.f32 0.0, %v18027_v63  ;;  %v18034_v10 = vadd.f32 %v18358_v36, %v10024_v55 }
 0x6dc   : > { %v13172_v0 = vpop.eup %13171  ;;  %13195 = vrcp.f32 %v10174_v26  ;;  %v10175_v37 = vadd.f32 1.0, %v13170_v25  ;;  %v18038_v28 = vadd.f32 %v18359_v32, %v10025_v4  ;;  %v10026_v26 = vadd.f32 %v17780_v8, %v9994_v31  ;;  %v18362_v4 = vld [vmem:[#allocation73_spill] sm:$0xff] }
 0x6dd   : > { %10258 = vxpose.xlu0.b32.cont [6/16] (narrow) %v10226_v16, 8  ;;  %v13174_v56 = vpop.eup %13173  ;;  %13197 = vrcp.f32 %v10167_v22  ;;  %v10227_v27 = vmul.f32 %v13172_v0, %v17857_v58  ;;  %v10143_v23 = vmul.f32 1.442695, %v10086_v30  ;;  %v10145_v34 = vmul.f32 1.442695, %v10087_v2  ;;  %v9995_v22 = vld [vmem:[#allocation6 + $0xf0] sm:$0xff] }
 0x6de   : > { %v13176_v24 = vpop.eup %13175  ;;  %13199 = vpow2.f32 %v10123_v15  ;;  %v10176_v54 = vadd.f32 1.0, %v13174_v56  ;;  %v10088_v19 = vsub.f32 0.0, %v18034_v10  ;;  %v10027_v11 = vadd.f32 %v17780_v8, %v9995_v22 }
 0x6df   : > { %v13178_v62 = vpop.eup %13177  ;;  %13201 = vpow2.f32 %v10139_v29  ;;  %v10228_v58 = vmul.f32 %v13176_v24, %v17864_v61  ;;  %v10089_v43 = vsub.f32 0.0, %v18038_v28  ;;  %v18360_v24 = vld [vmem:[#allocation71_spill] sm:$0xff] }
 0x6e0   : > { %v13180_v40 = vpop.eup %13179  ;;  %13203 = vrcp.f32 %v10175_v37  ;;  %v10169_v5 = vadd.f32 1.0, %v13178_v62 }
 0x6e1   : > { %10259 = vxpose.xlu0.b32.cont [7/16] (narrow) %v10227_v27, 8  ;;  %v13182_v13 = vpop.eup %13181  ;;  %13205 = vrcp.f32 %v10168_v35  ;;  %v10230_v29 = vmul.f32 %v13180_v40, %v17871_v38  ;;  %v9996_v27 = vld [vmem:[#allocation6 + $0xf8] sm:$0xff]  ;;  %v10149_v55 = vmul.f32 1.442695, %v10089_v43 }
 0x6e2   : > { %v13184_v60 = vpop.eup %13183  ;;  %13207 = vpow2.f32 %v10141_v7  ;;  %v10177_v50 = vadd.f32 1.0, %v13182_v13  ;;  %v10147_v7 = vmul.f32 1.442695, %v10088_v19  ;;  %v10028_v40 = vadd.f32 %v17780_v8, %v9996_v27  ;;  %v18361_v13 = vld [vmem:[#allocation72_spill] sm:$0xff] }
 0x6e3   : > { %v13186_v52 = vpop.eup %13185  ;;  %13209 = vrcp.f32 %v10176_v54  ;;  %v10229_v61 = vmul.f32 %v13184_v60, %v17879_v49  ;;  %v18054_v60 = vadd.f32 %v18361_v13, %v10027_v11 }
 0x6e4   : > { %v13188_v39 = vpop.eup %13187  ;;  %13211 = vrcp.f32 %v10169_v5  ;;  %v10170_v33 = vadd.f32 1.0, %v13186_v52 }
 0x6e5   : > { %10260 = vxpose.xlu0.b32.cont [8/16] (narrow) %v10228_v58, 8  ;;  %v13190_v51 = vpop.eup %13189  ;;  %13213 = vpow2.f32 %v10143_v23  ;;  %v10178_v15 = vadd.f32 1.0, %v13188_v39  ;;  %v10091_v2 = vsub.f32 0.0, %v18054_v60 }
 0x6e6   : > { %13215 = vrcp.f32 %v10177_v50  ;;  %v10171_v6 = vadd.f32 1.0, %v13190_v51  ;;  %v18060_v50 = vadd.f32 %v18362_v4, %v10028_v40 }
 0x6e7   : > { %v13192_v20 = vpop.eup %13191  ;;  %13217 = vrcp.f32 %v10170_v33 }
 0x6e8   : > { %v13194_v25 = vpop.eup %13193  ;;  %v10237_v16 = vmul.f32 %v13192_v20, %v17939_v21  ;;  %13219 = vpow2.f32 %v10145_v34  ;;  %v18047_v21 = vadd.f32 %v18360_v24, %v10026_v26  ;;  %v10092_v33 = vsub.f32 0.0, %v18060_v50 }
 0x6e9   : > { %10261 = vxpose.xlu0.b32.cont [9/16] (narrow) %v10229_v61, 8  ;;  %v13196_v49 = vpop.eup %13195  ;;  %v10179_v56 = vadd.f32 1.0, %v13194_v25  ;;  %13221 = vrcp.f32 %v10178_v15  ;;  %v10153_v61 = vmul.f32 1.442695, %v10091_v2 }
 0x6ea   : > { %v13198_v0 = vpop.eup %13197  ;;  %10285 = vxpose.xlu1.b32.start [1/16] (narrow) %v10237_v16, 8  ;;  %v10238_v62 = vmul.f32 %v13196_v49, %v17931_v59  ;;  %13223 = vrcp.f32 %v10171_v6  ;;  %v10090_v42 = vsub.f32 0.0, %v18047_v21  ;;  %v10155_v25 = vmul.f32 1.442695, %v10092_v33 }
 0x6eb   : > { %v13200_v37 = vpop.eup %13199  ;;  %v10231_v30 = vmul.f32 %v13198_v0, %v17900_v14  ;;  %13225 = vrcp.f32 %v10179_v56 }
 0x6ec   : > { %v13202_v35 = vpop.eup %13201  ;;  %v10172_v57 = vadd.f32 1.0, %v13200_v37  ;;  %13227 = vpow2.f32 %v10147_v7  ;;  %v10151_v23 = vmul.f32 1.442695, %v10090_v42 }
 0x6ed   : > { %10262 = vxpose.xlu0.b32.cont [10/16] (narrow) %v10230_v29, 8  ;;  %v13204_v38 = vpop.eup %13203  ;;  %v10180_v5 = vadd.f32 1.0, %v13202_v35 }
 0x6ee   : > { %10286 = vxpose.xlu1.b32.cont [2/16] (narrow) %v10238_v62, 8  ;;  %v13206_v54 = vpop.eup %13205  ;;  %v10239_v59 = vmul.f32 %v13204_v38, %v17963_v53  ;;  %13229 = vrcp.f32 %v10172_v57 }
 0x6ef   : > { %v13208_v58 = vpop.eup %13207  ;;  %v10232_v14 = vmul.f32 %v13206_v54, %v17903_v41  ;;  %13231 = vpow2.f32 %v10149_v55 }
 0x6f0   : > { %v13210_v52 = vpop.eup %13209  ;;  %13233 = vrcp.f32 %v10180_v5  ;;  %v10181_v53 = vadd.f32 1.0, %v13208_v58 }
 0x6f1   : > { %10263 = vxpose.xlu0.b32.cont [11/16] (narrow) %v10231_v30, 8  ;;  %v13212_v8 = vpop.eup %13211  ;;  %v10240_v31 = vmul.f32 %v13210_v52, %v17960_v9  ;;  %13235 = vpow2.f32 %v10151_v23 }
 0x6f2   : > { %10287 = vxpose.xlu1.b32.cont [3/16] (narrow) %v10239_v59, 8  ;;  %v13214_v36 = vpop.eup %13213  ;;  %v10233_v51 = vmul.f32 %v13212_v8, %v17923_v18  ;;  %13237 = vrcp.f32 %v10181_v53 }
 0x6f3   : > { %v13216_v39 = vpop.eup %13215  ;;  %v10182_v32 = vadd.f32 1.0, %v13214_v36  ;;  %13239 = vpow2.f32 %v10153_v61 }
 0x6f4   : > { %v13218_v41 = vpop.eup %13217  ;;  %v10241_v34 = vmul.f32 %v13216_v39, %v17977_v45 }
 0x6f5   : > { %10264 = vxpose.xlu0.b32.cont [12/16] (narrow) %v10232_v14, 8  ;;  %v13220_v20 = vpop.eup %13219  ;;  %v10234_v9 = vmul.f32 %v13218_v41, %v17951_v47  ;;  %13241 = vrcp.f32 %v10182_v32 }
 0x6f6   : > { %10288 = vxpose.xlu1.b32.cont [4/16] (narrow) %v10240_v31, 8  ;;  %v13222_v26 = vpop.eup %13221  ;;  %v10183_v15 = vadd.f32 1.0, %v13220_v20  ;;  %13243 = vpow2.f32 %v10155_v25 }
 0x6f7   : > { %v13224_v22 = vpop.eup %13223  ;;  %v10242_v18 = vmul.f32 %v13222_v26, %v17990_v46 }
 0x6f8   : > { %v13226_v16 = vpop.eup %13225  ;;  %v10235_v49 = vmul.f32 %v13224_v22, %v17983_v3  ;;  %13245 = vrcp.f32 %v10183_v15 }
 0x6f9   : > { %10265 = vxpose.xlu0.b32.cont [13/16] (narrow) %v10233_v51, 8  ;;  %v13228_v19 = vpop.eup %13227  ;;  %v10243_v29 = vmul.f32 %v13226_v16, %v17993_v17 }
 0x6fa   : > { %10289 = vxpose.xlu1.b32.cont [5/16] (narrow) %v10241_v34, 8  ;;  %v10184_v47 = vadd.f32 1.0, %v13228_v19 }
 0x6fb   : > { %v13230_v45 = vpop.eup %13229 }
 0x6fc   : > { %v13232_v0 = vpop.eup %13231  ;;  %v10236_v11 = vmul.f32 %v13230_v45, %v18003_v1  ;;  %13247 = vrcp.f32 %v10184_v47 }
 0x6fd   : > { %10266 = vxpose.xlu0.b32.cont [14/16] (narrow) %v10234_v9, 8  ;;  %v13234_v6 = vpop.eup %13233  ;;  %v10185_v56 = vadd.f32 1.0, %v13232_v0 }
 0x6fe   : > { %10290 = vxpose.xlu1.b32.cont [6/16] (narrow) %v10242_v18, 8  ;;  %v13236_v37 = vpop.eup %13235  ;;  %v10244_v46 = vmul.f32 %v13234_v6, %v18007_v44 }
 0x6ff   : > { %v13238_v43 = vpop.eup %13237  ;;  %13249 = vrcp.f32 %v10185_v56  ;;  %v10186_v27 = vadd.f32 1.0, %v13236_v37 }
 0x700   : > { %v13240_v3 = vpop.eup %13239  ;;  %v10245_v24 = vmul.f32 %v13238_v43, %v18015_v12 }
 0x701   : > { %10267 = vxpose.xlu0.b32.cont [15/16] (narrow) %v10235_v49, 8  ;;  %13251 = vrcp.f32 %v10186_v27  ;;  %v10187_v1 = vadd.f32 1.0, %v13240_v3 }
 0x702   : > { %10291 = vxpose.xlu1.b32.cont [7/16] (narrow) %v10243_v29, 8  ;;  %v13242_v17 = vpop.eup %13241 }
 0x703   : > { %v13244_v35 = vpop.eup %13243  ;;  %v10246_v62 = vmul.f32 %v13242_v17, %v18022_v48  ;;  %13253 = vrcp.f32 %v10187_v1 }
 0x704   : > { %v10188_v38 = vadd.f32 1.0, %v13244_v35 }
 0x705   : > { %10268 = vxpose.xlu0.b32.end [16/16] (narrow) %v10236_v11, 8  ;;  %v13246_v7 = vpop.eup %13245 }
 0x706   : > { %10292 = vxpose.xlu1.b32.cont [8/16] (narrow) %v10244_v46, 8  ;;  %v10247_v44 = vmul.f32 %v13246_v7, %v18027_v63  ;;  %13255 = vrcp.f32 %v10188_v38 }
 0x709   : > { %v13248_v30 = vpop.eup %13247 }
 0x70a   : > { %10293 = vxpose.xlu1.b32.cont [9/16] (narrow) %v10245_v24, 8  ;;  %v10248_v12 = vmul.f32 %v13248_v30, %v18034_v10 }
 0x70c   : > { %v13250_v57 = vpop.eup %13249 }
 0x70d   : > { %v10249_v40 = vmul.f32 %v13250_v57, %v18038_v28 }
 0x70e   : > { %10294 = vxpose.xlu1.b32.cont [10/16] (narrow) %v10246_v62, 8  ;;  %v13252_v48 = vpop.eup %13251 }
 0x70f   : > { %v10250_v54 = vmul.f32 %v13252_v48, %v18047_v21 }
 0x710   : > { %v13254_v63 = vpop.eup %13253 }
 0x711   : > { %v10251_v55 = vmul.f32 %v13254_v63, %v18054_v60 }
 0x712   : > { %10295 = vxpose.xlu1.b32.cont [11/16] (narrow) %v10247_v44, 8 }
 0x713   : > { %v13256_v42 = vpop.eup %13255 }
 0x714   : > { %v10252_v10 = vmul.f32 %v13256_v42, %v18060_v50 }
 0x716   : > { %10296 = vxpose.xlu1.b32.cont [12/16] (narrow) %v10248_v12, 8 }
 0x71a   : > { %10297 = vxpose.xlu1.b32.cont [13/16] (narrow) %v10249_v40, 8 }
 0x71e   : > { %10298 = vxpose.xlu1.b32.cont [14/16] (narrow) %v10250_v54, 8 }
 0x722   : > { %10299 = vxpose.xlu1.b32.cont [15/16] (narrow) %v10251_v55, 8 }
 0x726   : > { %10300 = vxpose.xlu1.b32.end [16/16] (narrow) %v10252_v10, 8 }
 0x745   : > { %v10269_v13 = vpop.trf.xlu0 }
 0x766   : > { %v10301_v28 = vpop.trf.xlu1 }
 0x767   : > { %v10319_v21 = vcombine.low %v10269_v13, %v10301_v28 }
 0x769   : > { %11020 = vst [vmem:[%s17833_s16 + $0x8] sm:$0xff] %v10319_v21 }
 0x76a   : > { %13274 = shalt.err (!%p13271_p3)
}
 0x76b   : > { %s13275_s13 = scalar_lea.hbm %s18087_s23, 256  ;;  %s13279_s14 = scalar_lea.hbm %s18138_s5, 512 }
 0x76c   : > { %p13276_p4 = scmp.ne.s32.totalorder %s18087_s23, %s13275_s13  ;;  %p13280_p9 = scmp.lt.s32.totalorder %s18087_s23, %s18138_s5 }
 0x76d   : > { %p13281_p10 = scmp.lt.s32.totalorder %s13279_s14, %s13275_s13 }
 0x76e   : > { %p13277_p7 = pnand %p13276_p4, %p13398_p5 }
 0x76f   : > { %p13282_p11 = por %p13281_p10, %p13280_p9 }
 0x770   : > { %p13278_p8 = pneg %p13277_p7 }
 0x772   : > { %p13283_p12 = pnand %p13282_p11, %p13278_p8 }
 0x774   : > { %13286 = shalt.err (!%p13283_p12)
}
 0x775   : > { %s13329_s6 = smov 128  }
 0x776   : > { %12572 = dma.vmem_to_hbm [thread:$0]  (%p13398_p5), %s18082_s30, 256, %s18087_s23, %s18092_s9, %s13329_s6, %s13329_s6, %s13325_s26  }
 0x777 PF: > { %p12578_p13 = scmp.ge.s32.totalorder %s13321_s21, 2  ;;  %s10353_s7 = sand.u32 1, %s13309_s18  }
 0x778   : > { %s10354_s8 = scalar_lea.sflag [#allocation8], %s10353_s7 }
 0x779   : > { %p12575_p0 = pnand %p12578_p13, %p13402_p6 }
 0x77b   : > { %p12576_p1 = pneg %p12575_p0 }
 0x77d   : > { %13304 = dma.done.wait (%p12576_p1), %s10354_s8, 256  }
 0x77e   : > { %13306 = vsyncadd (%p12576_p1), %s10354_s8, 4294967040  ;;  %p15_p2 = scmp.ge.s32.totalorder %s13385_s24, 4   ;;  %s18363_s18 = smov %s13313_s19 }
 0x77f   : > { %s18364_s19 = smov %s13317_s20  ;;  %s18365_s20 = smov %s13396_s27 }
 0x780   : > { %s18366_s21 = smov %s13385_s24  ;;  %17 = sbr.rel (!%p15_p2) target bundleno = 3 (0x3), region = 90 }
 0x785   :  { %10359 = vsyncpa [#allocation8], 1 }
 0x786   :  { %10361 = vsyncpa [#allocation8 + $0x1], 1 }

</bundles_post_ra>
